<compile_context>
chip_gen: v5e
topology: v5e:2x2
jax: 0.10.0
libtpu: 0.0.40
codegen_flags: <defaults>
</compile_context>

<pallas_src>
import functools

import jax
import jax.numpy as jnp
from jax.experimental import pallas as pl
from jax.experimental.pallas import tpu as pltpu

NUM_LANDMARKS = 703
FEAT_DIM = 1280                       # mobilenetv2_100: backbone.num_features == 1280
REG_OUT = NUM_LANDMARKS * 2           # 1406
REG_OUT_PAD = 1408                    # 11 * 128: lane-dense regressor output
STEM_K = 27                           # 3*3*3 im2col K
STEM_K_PAD = 32                       # zero-padded stem K
C_STEM = 32
C_EXP = 96                            # logical expand width
C_EXP_PAD = 128                       # lane-dense padded expand width
C_PROJ = 16


# ---------------------------------------------------------------------------
# Fused kernel: stem -> expand -> dw3x3 -> proj -> head -> GAP -> regressor.
# One grid step per batch element; every intermediate stays resident in VMEM.
# ---------------------------------------------------------------------------
def _fused_kernel(cols_ref, stem_w_ref, stem_b_ref,
                  exp_w_ref, exp_b_ref,
                  dw_w_ref, dw_b_ref,
                  proj_w_ref, proj_b_ref,
                  head_w_ref, head_b_ref,
                  reg_w_ref, reg_b_ref,
                  out_ref, pad_ref, *, H, W):
    HW = H * W

    # stem 3x3 s2 conv as im2col matmul (K zero-padded 27 -> 32) + ReLU6
    s = jnp.dot(cols_ref[0], stem_w_ref[...], preferred_element_type=jnp.float32)
    s = jnp.clip(s + stem_b_ref[...], 0.0, 6.0)                        # (HW, 32)

    # 1x1 expand + ReLU6 (channels zero-padded 96 -> 128, lane dense)
    e = jnp.dot(s, exp_w_ref[...], preferred_element_type=jnp.float32)
    e = jnp.clip(e + exp_b_ref[...], 0.0, 6.0)                         # (HW, 128)

    # zero-padded expanded activation, resident in VMEM scratch
    pad_ref[...] = jnp.zeros_like(pad_ref)
    pad_ref[1:H + 1, 1:W + 1, :] = e.reshape(H, W, C_EXP_PAD)

    # depthwise 3x3 + bias + ReLU6: 9 shifted VMEM views, VPU MACs, one reshape
    dw_w = dw_w_ref[...]                                               # (9, 128)
    acc = jnp.zeros((H, W, C_EXP_PAD), jnp.float32)
    for k in range(9):
        dy, dx = divmod(k, 3)
        acc = acc + pad_ref[dy:dy + H, dx:dx + W, :] * dw_w[k]
    d = jnp.clip(acc.reshape(HW, C_EXP_PAD) + dw_b_ref[...], 0.0, 6.0)

    # 1x1 project (linear, no activation)
    p = jnp.dot(d, proj_w_ref[...], preferred_element_type=jnp.float32)
    p = p + proj_b_ref[...]                                            # (HW, 16)

    # 1x1 head (bf16 weights, f32 accumulation) + f32 bias/ReLU6 epilogue
    h = jnp.dot(p.astype(jnp.bfloat16), head_w_ref[...],
                preferred_element_type=jnp.float32)
    h = jnp.clip(h + head_b_ref[...], 0.0, 6.0)                        # (HW, 1280)

    # fused global average pool over the spatial rows
    feat = jnp.mean(h, axis=0, keepdims=True)                          # (1, 1280)

    # landmark regressor (bf16 weight, f32 acc, lane-dense 1408-wide output)
    lm = jnp.dot(feat.astype(jnp.bfloat16), reg_w_ref[...],
                 preferred_element_type=jnp.float32)
    out_ref[...] = (lm + reg_b_ref[...]).reshape(1, 1, REG_OUT_PAD)


def fused_forward(cols, params, H, W):
    N, HW, KC = cols.shape
    out = pl.pallas_call(
        functools.partial(_fused_kernel, H=H, W=W),
        out_shape=jax.ShapeDtypeStruct((N, 1, REG_OUT_PAD), jnp.float32),
        grid=(N,),
        in_specs=[
            pl.BlockSpec((1, HW, KC), lambda n: (n, 0, 0)),
            pl.BlockSpec((STEM_K_PAD, C_STEM), lambda n: (0, 0)),
            pl.BlockSpec((1, C_STEM), lambda n: (0, 0)),
            pl.BlockSpec((C_STEM, C_EXP_PAD), lambda n: (0, 0)),
            pl.BlockSpec((1, C_EXP_PAD), lambda n: (0, 0)),
            pl.BlockSpec((9, C_EXP_PAD), lambda n: (0, 0)),
            pl.BlockSpec((1, C_EXP_PAD), lambda n: (0, 0)),
            pl.BlockSpec((C_EXP_PAD, C_PROJ), lambda n: (0, 0)),
            pl.BlockSpec((1, C_PROJ), lambda n: (0, 0)),
            pl.BlockSpec((C_PROJ, FEAT_DIM), lambda n: (0, 0)),
            pl.BlockSpec((1, FEAT_DIM), lambda n: (0, 0)),
            pl.BlockSpec((FEAT_DIM, REG_OUT_PAD), lambda n: (0, 0)),
            pl.BlockSpec((1, REG_OUT_PAD), lambda n: (0, 0)),
        ],
        out_specs=pl.BlockSpec((1, 1, REG_OUT_PAD), lambda n: (n, 0, 0)),
        scratch_shapes=[pltpu.VMEM((H + 2, W + 2, C_EXP_PAD), jnp.float32)],
        compiler_params=pltpu.CompilerParams(
            dimension_semantics=("parallel",)),
    )(cols,
      params["stem_w"], params["stem_b"].reshape(1, C_STEM),
      params["exp_w"], params["exp_b"].reshape(1, C_EXP_PAD),
      params["dw_w"], params["dw_b"].reshape(1, C_EXP_PAD),
      params["proj_w"], params["proj_b"].reshape(1, C_PROJ),
      params["head_w"], params["head_b"].reshape(1, FEAT_DIM),
      params["reg_w"], params["reg_b"].reshape(1, REG_OUT_PAD))
    return out.reshape(N, REG_OUT_PAD)


# ---------------------------------------------------------------------------
# JAX glue: im2col for the strided stem conv (tiny; stays outside the kernel)
# ---------------------------------------------------------------------------
def _stem_im2col(x_nhwc, kh=3, kw=3, stride=2, pad=1):
    N, H, W, C = x_nhwc.shape
    xp = jnp.pad(x_nhwc, ((0, 0), (pad, pad), (pad, pad), (0, 0)))
    Ho = (H + 2 * pad - kh) // stride + 1
    Wo = (W + 2 * pad - kw) // stride + 1
    cols = []
    for dy in range(kh):
        for dx in range(kw):
            patch = jax.lax.slice(
                xp, (0, dy, dx, 0),
                (N, dy + stride * (Ho - 1) + 1, dx + stride * (Wo - 1) + 1, C),
                (1, stride, stride, 1))
            cols.append(patch)
    cols = jnp.stack(cols, axis=3)                       # (N, Ho, Wo, 9, C)
    cols = cols.reshape(N, Ho * Wo, kh * kw * C)         # (N, HW, 27)
    cols = jnp.pad(cols, ((0, 0), (0, 0), (0, STEM_K_PAD - kh * kw * C)))
    return cols, Ho, Wo


# ---------------------------------------------------------------------------
# Model: DenseLandmarkPredictor
# ---------------------------------------------------------------------------
def init_params(key):
    ks = jax.random.split(key, 6)

    def w(k, shape, fan_in):
        return jax.random.normal(k, shape, jnp.float32) * (1.0 / jnp.sqrt(fan_in))

    p = {}
    # TODO(synk): the full pretrained 17-block mobilenetv2_100 stack (timm, network
    # download) is not replicated; this is a deterministic representative backbone
    # with the same 1280-d feature width and the same op structure.
    stem = w(ks[0], (3, 3, 3, C_STEM), 27).reshape(STEM_K, C_STEM)     # HWIO -> (27, 32)
    p["stem_w"] = jnp.pad(stem, ((0, STEM_K_PAD - STEM_K), (0, 0)))    # K padded 27 -> 32
    p["stem_b"] = jnp.zeros((C_STEM,), jnp.float32)

    exp = w(ks[1], (C_STEM, C_EXP), C_STEM)                            # 1x1 expand
    p["exp_w"] = jnp.pad(exp, ((0, 0), (0, C_EXP_PAD - C_EXP)))        # cols 96 -> 128
    p["exp_b"] = jnp.zeros((C_EXP_PAD,), jnp.float32)

    dw = w(ks[2], (9, C_EXP), 9)                                       # depthwise 3x3
    p["dw_w"] = jnp.pad(dw, ((0, 0), (0, C_EXP_PAD - C_EXP)))
    p["dw_b"] = jnp.zeros((C_EXP_PAD,), jnp.float32)

    proj = w(ks[3], (C_EXP, C_PROJ), C_EXP)                            # 1x1 project
    p["proj_w"] = jnp.pad(proj, ((0, C_EXP_PAD - C_EXP), (0, 0)))      # rows 96 -> 128
    p["proj_b"] = jnp.zeros((C_PROJ,), jnp.float32)

    p["head_w"] = w(ks[4], (C_PROJ, FEAT_DIM), C_PROJ).astype(jnp.bfloat16)
    p["head_b"] = jnp.zeros((FEAT_DIM,), jnp.float32)

    # regressor Linear(1280, 1406); columns zero-padded to 1408 (11*128), bf16 weight.
    reg = w(ks[5], (FEAT_DIM, REG_OUT), FEAT_DIM)
    p["reg_w"] = jnp.pad(reg, ((0, 0), (0, REG_OUT_PAD - REG_OUT))).astype(jnp.bfloat16)
    p["reg_b"] = jnp.zeros((REG_OUT_PAD,), jnp.float32)
    return p


def dense_landmark_predictor(params, x_nchw):
    # NCHW (PyTorch) -> NHWC for the kernel.
    x = jnp.transpose(x_nchw, (0, 2, 3, 1)).astype(jnp.float32)

    # im2col for the strided stem conv, then one fused pallas_call end-to-end.
    cols, Ho, Wo = _stem_im2col(x)
    lm = fused_forward(cols, params, Ho, Wo)                           # (N, 1408)

    # slice the lane-padding columns off before the (-1, 703, 2) view
    lm = lm[:, :REG_OUT]
    return lm.reshape(-1, NUM_LANDMARKS, 2)


if __name__ == "__main__":
    key = jax.random.PRNGKey(0)
    pkey, xkey = jax.random.split(key)
    params = init_params(pkey)
    # Small NCHW input, as in PyTorch.
    x = jax.random.normal(xkey, (2, 3, 32, 32), jnp.float32)

    out = jax.jit(dense_landmark_predictor)(params, x)
    out = jax.block_until_ready(out)
    assert out.shape == (2, NUM_LANDMARKS, 2), out.shape
    assert out.dtype == jnp.float32
    print("KERNEL_OK")
</pallas_src>

<mosaic_0001>
module attributes {stable_mosaic.version = 11 : i64} {
  func.func @_fused_kernel(%arg0: i32, %arg1: memref<1x256x32xf32, #tpu.memory_space<vmem>>, %arg2: memref<32x32xf32, #tpu.memory_space<vmem>>, %arg3: memref<1x32xf32, #tpu.memory_space<vmem>>, %arg4: memref<32x128xf32, #tpu.memory_space<vmem>>, %arg5: memref<1x128xf32, #tpu.memory_space<vmem>>, %arg6: memref<9x128xf32, #tpu.memory_space<vmem>>, %arg7: memref<1x128xf32, #tpu.memory_space<vmem>>, %arg8: memref<128x16xf32, #tpu.memory_space<vmem>>, %arg9: memref<1x16xf32, #tpu.memory_space<vmem>>, %arg10: memref<16x1280xbf16, #tpu.memory_space<vmem>>, %arg11: memref<1x1280xf32, #tpu.memory_space<vmem>>, %arg12: memref<1280x1408xbf16, #tpu.memory_space<vmem>>, %arg13: memref<1x1408xf32, #tpu.memory_space<vmem>>, %arg14: memref<1x1x1408xf32, #tpu.memory_space<vmem>>, %arg15: memref<18x18x128xf32, #tpu.memory_space<vmem>>) attributes {dimension_semantics = [#tpu.dimension_semantics<parallel>], iteration_bounds = array<i64: 2>, scalar_prefetch = 0 : i64, scratch_operands = 1 : i64, tpu.core_type = #tpu.core_type<tc>, window_params = [{transform_indices = @transform_0, window_bounds = array<i64: 1, 256, 32>}, {pipeline_mode = #tpu.pipeline_mode<synchronous>, transform_indices = @transform_1, window_bounds = array<i64: 32, 32>}, {pipeline_mode = #tpu.pipeline_mode<synchronous>, transform_indices = @transform_2, window_bounds = array<i64: 1, 32>}, {pipeline_mode = #tpu.pipeline_mode<synchronous>, transform_indices = @transform_3, window_bounds = array<i64: 32, 128>}, {pipeline_mode = #tpu.pipeline_mode<synchronous>, transform_indices = @transform_4, window_bounds = array<i64: 1, 128>}, {pipeline_mode = #tpu.pipeline_mode<synchronous>, transform_indices = @transform_5, window_bounds = array<i64: 9, 128>}, {pipeline_mode = #tpu.pipeline_mode<synchronous>, transform_indices = @transform_6, window_bounds = array<i64: 1, 128>}, {pipeline_mode = #tpu.pipeline_mode<synchronous>, transform_indices = @transform_7, window_bounds = array<i64: 128, 16>}, {pipeline_mode = #tpu.pipeline_mode<synchronous>, transform_indices = @transform_8, window_bounds = array<i64: 1, 16>}, {pipeline_mode = #tpu.pipeline_mode<synchronous>, transform_indices = @transform_9, window_bounds = array<i64: 16, 1280>}, {pipeline_mode = #tpu.pipeline_mode<synchronous>, transform_indices = @transform_10, window_bounds = array<i64: 1, 1280>}, {pipeline_mode = #tpu.pipeline_mode<synchronous>, transform_indices = @transform_11, window_bounds = array<i64: 1280, 1408>}, {pipeline_mode = #tpu.pipeline_mode<synchronous>, transform_indices = @transform_12, window_bounds = array<i64: 1, 1408>}, {transform_indices = @transform_13, window_bounds = array<i64: 1, 1, 1408>}]} {
    %c0 = arith.constant 0 : index
    %c0_0 = arith.constant 0 : index
    %c0_1 = arith.constant 0 : index
    %0 = vector.load %arg1[%c0, %c0_0, %c0_1] : memref<1x256x32xf32, #tpu.memory_space<vmem>>, vector<1x256x32xf32>
    %1 = vector.shape_cast %0 : vector<1x256x32xf32> to vector<256x32xf32>
    %c0_2 = arith.constant 0 : index
    %c0_3 = arith.constant 0 : index
    %2 = vector.load %arg2[%c0_2, %c0_3] : memref<32x32xf32, #tpu.memory_space<vmem>>, vector<32x32xf32>
    %cst = arith.constant dense<0.000000e+00> : vector<256x32xf32>
    %3 = tpu.matmul %1, %2, %cst {dimension_numbers = #tpu.dot_dimension_numbers<[1], [0], [0], [1], [0, 0, 1, 1], [], []>} : vector<256x32xf32>, vector<32x32xf32>, vector<256x32xf32> -> vector<256x32xf32>
    %c0_4 = arith.constant 0 : index
    %c0_5 = arith.constant 0 : index
    %4 = vector.load %arg3[%c0_4, %c0_5] : memref<1x32xf32, #tpu.memory_space<vmem>>, vector<1x32xf32>
    %5 = vector.broadcast %4 : vector<1x32xf32> to vector<256x32xf32>
    %6 = arith.addf %3, %5 : vector<256x32xf32>
    %cst_6 = arith.constant 0.000000e+00 : f32
    %cst_7 = arith.constant 6.000000e+00 : f32
    %7 = vector.broadcast %cst_6 : f32 to vector<256x32xf32>
    %8 = arith.maximumf %7, %6 : vector<256x32xf32>
    %9 = vector.broadcast %cst_7 : f32 to vector<256x32xf32>
    %10 = arith.minimumf %9, %8 : vector<256x32xf32>
    %c0_8 = arith.constant 0 : index
    %c0_9 = arith.constant 0 : index
    %11 = vector.load %arg4[%c0_8, %c0_9] : memref<32x128xf32, #tpu.memory_space<vmem>>, vector<32x128xf32>
    %cst_10 = arith.constant dense<0.000000e+00> : vector<256x128xf32>
    %12 = tpu.matmul %10, %11, %cst_10 {dimension_numbers = #tpu.dot_dimension_numbers<[1], [0], [0], [1], [0, 0, 1, 1], [], []>} : vector<256x32xf32>, vector<32x128xf32>, vector<256x128xf32> -> vector<256x128xf32>
    %c0_11 = arith.constant 0 : index
    %c0_12 = arith.constant 0 : index
    %13 = vector.load %arg5[%c0_11, %c0_12] : memref<1x128xf32, #tpu.memory_space<vmem>>, vector<1x128xf32>
    %14 = vector.broadcast %13 : vector<1x128xf32> to vector<256x128xf32>
    %15 = arith.addf %12, %14 : vector<256x128xf32>
    %cst_13 = arith.constant 0.000000e+00 : f32
    %cst_14 = arith.constant 6.000000e+00 : f32
    %16 = vector.broadcast %cst_13 : f32 to vector<256x128xf32>
    %17 = arith.maximumf %16, %15 : vector<256x128xf32>
    %18 = vector.broadcast %cst_14 : f32 to vector<256x128xf32>
    %19 = arith.minimumf %18, %17 : vector<256x128xf32>
    %cst_15 = arith.constant 0.000000e+00 : f32
    %20 = vector.broadcast %cst_15 : f32 to vector<18x18x128xf32>
    %c0_16 = arith.constant 0 : index
    %c0_17 = arith.constant 0 : index
    %c0_18 = arith.constant 0 : index
    %21 = vector.load %arg15[%c0_16, %c0_17, %c0_18] : memref<18x18x128xf32, #tpu.memory_space<vmem>>, vector<18x18x128xf32>
    tpu.vector_store %arg15[%c0_16, %c0_17, %c0_18], %20 {strides = array<i32>} : memref<18x18x128xf32, #tpu.memory_space<vmem>>, vector<18x18x128xf32>,
    %22 = vector.shape_cast %19 : vector<256x128xf32> to vector<16x16x128xf32>
    %c1 = arith.constant 1 : index
    %c1_19 = arith.constant 1 : index
    %c0_20 = arith.constant 0 : index
    %23 = vector.load %arg15[%c1, %c1_19, %c0_20] : memref<18x18x128xf32, #tpu.memory_space<vmem>>, vector<16x16x128xf32>
    tpu.vector_store %arg15[%c1, %c1_19, %c0_20], %22 {strides = array<i32>} : memref<18x18x128xf32, #tpu.memory_space<vmem>>, vector<16x16x128xf32>,
    %c0_21 = arith.constant 0 : index
    %c0_22 = arith.constant 0 : index
    %24 = vector.load %arg6[%c0_21, %c0_22] : memref<9x128xf32, #tpu.memory_space<vmem>>, vector<9x128xf32>
    %cst_23 = arith.constant 0.000000e+00 : f32
    %25 = vector.broadcast %cst_23 : f32 to vector<16x16x128xf32>
    %c0_24 = arith.constant 0 : index
    %c0_25 = arith.constant 0 : index
    %c0_26 = arith.constant 0 : index
    %26 = vector.load %arg15[%c0_24, %c0_25, %c0_26] : memref<18x18x128xf32, #tpu.memory_space<vmem>>, vector<16x16x128xf32>
    %27 = vector.extract_strided_slice %24 {offsets = [0, 0], sizes = [1, 128], strides = [1, 1]} : vector<9x128xf32> to vector<1x128xf32>
    %28 = vector.shape_cast %27 : vector<1x128xf32> to vector<128xf32>
    %29 = vector.shape_cast %28 : vector<128xf32> to vector<1x1x128xf32>
    %30 = vector.broadcast %29 : vector<1x1x128xf32> to vector<16x16x128xf32>
    %31 = arith.mulf %26, %30 : vector<16x16x128xf32>
    %32 = arith.addf %25, %31 : vector<16x16x128xf32>
    %c0_27 = arith.constant 0 : index
    %c1_28 = arith.constant 1 : index
    %c0_29 = arith.constant 0 : index
    %33 = vector.load %arg15[%c0_27, %c1_28, %c0_29] : memref<18x18x128xf32, #tpu.memory_space<vmem>>, vector<16x16x128xf32>
    %34 = vector.extract_strided_slice %24 {offsets = [1, 0], sizes = [1, 128], strides = [1, 1]} : vector<9x128xf32> to vector<1x128xf32>
    %35 = vector.shape_cast %34 : vector<1x128xf32> to vector<128xf32>
    %36 = vector.shape_cast %35 : vector<128xf32> to vector<1x1x128xf32>
    %37 = vector.broadcast %36 : vector<1x1x128xf32> to vector<16x16x128xf32>
    %38 = arith.mulf %33, %37 : vector<16x16x128xf32>
    %39 = arith.addf %32, %38 : vector<16x16x128xf32>
    %c0_30 = arith.constant 0 : index
    %c2 = arith.constant 2 : index
    %c0_31 = arith.constant 0 : index
    %40 = vector.load %arg15[%c0_30, %c2, %c0_31] : memref<18x18x128xf32, #tpu.memory_space<vmem>>, vector<16x16x128xf32>
    %41 = vector.extract_strided_slice %24 {offsets = [2, 0], sizes = [1, 128], strides = [1, 1]} : vector<9x128xf32> to vector<1x128xf32>
    %42 = vector.shape_cast %41 : vector<1x128xf32> to vector<128xf32>
    %43 = vector.shape_cast %42 : vector<128xf32> to vector<1x1x128xf32>
    %44 = vector.broadcast %43 : vector<1x1x128xf32> to vector<16x16x128xf32>
    %45 = arith.mulf %40, %44 : vector<16x16x128xf32>
    %46 = arith.addf %39, %45 : vector<16x16x128xf32>
    %c1_32 = arith.constant 1 : index
    %c0_33 = arith.constant 0 : index
    %c0_34 = arith.constant 0 : index
    %47 = vector.load %arg15[%c1_32, %c0_33, %c0_34] : memref<18x18x128xf32, #tpu.memory_space<vmem>>, vector<16x16x128xf32>
    %48 = vector.extract_strided_slice %24 {offsets = [3, 0], sizes = [1, 128], strides = [1, 1]} : vector<9x128xf32> to vector<1x128xf32>
    %49 = vector.shape_cast %48 : vector<1x128xf32> to vector<128xf32>
    %50 = vector.shape_cast %49 : vector<128xf32> to vector<1x1x128xf32>
    %51 = vector.broadcast %50 : vector<1x1x128xf32> to vector<16x16x128xf32>
    %52 = arith.mulf %47, %51 : vector<16x16x128xf32>
    %53 = arith.addf %46, %52 : vector<16x16x128xf32>
    %c1_35 = arith.constant 1 : index
    %c1_36 = arith.constant 1 : index
    %c0_37 = arith.constant 0 : index
    %54 = vector.load %arg15[%c1_35, %c1_36, %c0_37] : memref<18x18x128xf32, #tpu.memory_space<vmem>>, vector<16x16x128xf32>
    %55 = vector.extract_strided_slice %24 {offsets = [4, 0], sizes = [1, 128], strides = [1, 1]} : vector<9x128xf32> to vector<1x128xf32>
    %56 = vector.shape_cast %55 : vector<1x128xf32> to vector<128xf32>
    %57 = vector.shape_cast %56 : vector<128xf32> to vector<1x1x128xf32>
    %58 = vector.broadcast %57 : vector<1x1x128xf32> to vector<16x16x128xf32>
    %59 = arith.mulf %54, %58 : vector<16x16x128xf32>
    %60 = arith.addf %53, %59 : vector<16x16x128xf32>
    %c1_38 = arith.constant 1 : index
    %c2_39 = arith.constant 2 : index
    %c0_40 = arith.constant 0 : index
    %61 = vector.load %arg15[%c1_38, %c2_39, %c0_40] : memref<18x18x128xf32, #tpu.memory_space<vmem>>, vector<16x16x128xf32>
    %62 = vector.extract_strided_slice %24 {offsets = [5, 0], sizes = [1, 128], strides = [1, 1]} : vector<9x128xf32> to vector<1x128xf32>
    %63 = vector.shape_cast %62 : vector<1x128xf32> to vector<128xf32>
    %64 = vector.shape_cast %63 : vector<128xf32> to vector<1x1x128xf32>
    %65 = vector.broadcast %64 : vector<1x1x128xf32> to vector<16x16x128xf32>
    %66 = arith.mulf %61, %65 : vector<16x16x128xf32>
    %67 = arith.addf %60, %66 : vector<16x16x128xf32>
    %c2_41 = arith.constant 2 : index
    %c0_42 = arith.constant 0 : index
    %c0_43 = arith.constant 0 : index
    %68 = vector.load %arg15[%c2_41, %c0_42, %c0_43] : memref<18x18x128xf32, #tpu.memory_space<vmem>>, vector<16x16x128xf32>
    %69 = vector.extract_strided_slice %24 {offsets = [6, 0], sizes = [1, 128], strides = [1, 1]} : vector<9x128xf32> to vector<1x128xf32>
    %70 = vector.shape_cast %69 : vector<1x128xf32> to vector<128xf32>
    %71 = vector.shape_cast %70 : vector<128xf32> to vector<1x1x128xf32>
    %72 = vector.broadcast %71 : vector<1x1x128xf32> to vector<16x16x128xf32>
    %73 = arith.mulf %68, %72 : vector<16x16x128xf32>
    %74 = arith.addf %67, %73 : vector<16x16x128xf32>
    %c2_44 = arith.constant 2 : index
    %c1_45 = arith.constant 1 : index
    %c0_46 = arith.constant 0 : index
    %75 = vector.load %arg15[%c2_44, %c1_45, %c0_46] : memref<18x18x128xf32, #tpu.memory_space<vmem>>, vector<16x16x128xf32>
    %76 = vector.extract_strided_slice %24 {offsets = [7, 0], sizes = [1, 128], strides = [1, 1]} : vector<9x128xf32> to vector<1x128xf32>
    %77 = vector.shape_cast %76 : vector<1x128xf32> to vector<128xf32>
    %78 = vector.shape_cast %77 : vector<128xf32> to vector<1x1x128xf32>
    %79 = vector.broadcast %78 : vector<1x1x128xf32> to vector<16x16x128xf32>
    %80 = arith.mulf %75, %79 : vector<16x16x128xf32>
    %81 = arith.addf %74, %80 : vector<16x16x128xf32>
    %c2_47 = arith.constant 2 : index
    %c2_48 = arith.constant 2 : index
    %c0_49 = arith.constant 0 : index
    %82 = vector.load %arg15[%c2_47, %c2_48, %c0_49] : memref<18x18x128xf32, #tpu.memory_space<vmem>>, vector<16x16x128xf32>
    %83 = vector.extract_strided_slice %24 {offsets = [8, 0], sizes = [1, 128], strides = [1, 1]} : vector<9x128xf32> to vector<1x128xf32>
    %84 = vector.shape_cast %83 : vector<1x128xf32> to vector<128xf32>
    %85 = vector.shape_cast %84 : vector<128xf32> to vector<1x1x128xf32>
    %86 = vector.broadcast %85 : vector<1x1x128xf32> to vector<16x16x128xf32>
    %87 = arith.mulf %82, %86 : vector<16x16x128xf32>
    %88 = arith.addf %81, %87 : vector<16x16x128xf32>
    %89 = vector.shape_cast %88 : vector<16x16x128xf32> to vector<256x128xf32>
    %c0_50 = arith.constant 0 : index
    %c0_51 = arith.constant 0 : index
    %90 = vector.load %arg7[%c0_50, %c0_51] : memref<1x128xf32, #tpu.memory_space<vmem>>, vector<1x128xf32>
    %91 = vector.broadcast %90 : vector<1x128xf32> to vector<256x128xf32>
    %92 = arith.addf %89, %91 : vector<256x128xf32>
    %cst_52 = arith.constant 0.000000e+00 : f32
    %cst_53 = arith.constant 6.000000e+00 : f32
    %93 = vector.broadcast %cst_52 : f32 to vector<256x128xf32>
    %94 = arith.maximumf %93, %92 : vector<256x128xf32>
    %95 = vector.broadcast %cst_53 : f32 to vector<256x128xf32>
    %96 = arith.minimumf %95, %94 : vector<256x128xf32>
    %c0_54 = arith.constant 0 : index
    %c0_55 = arith.constant 0 : index
    %97 = vector.load %arg8[%c0_54, %c0_55] : memref<128x16xf32, #tpu.memory_space<vmem>>, vector<128x16xf32>
    %cst_56 = arith.constant dense<0.000000e+00> : vector<256x16xf32>
    %98 = tpu.matmul %96, %97, %cst_56 {dimension_numbers = #tpu.dot_dimension_numbers<[1], [0], [0], [1], [0, 0, 1, 1], [], []>} : vector<256x128xf32>, vector<128x16xf32>, vector<256x16xf32> -> vector<256x16xf32>
    %c0_57 = arith.constant 0 : index
    %c0_58 = arith.constant 0 : index
    %99 = vector.load %arg9[%c0_57, %c0_58] : memref<1x16xf32, #tpu.memory_space<vmem>>, vector<1x16xf32>
    %100 = vector.broadcast %99 : vector<1x16xf32> to vector<256x16xf32>
    %101 = arith.addf %98, %100 : vector<256x16xf32>
    %102 = arith.truncf %101 : vector<256x16xf32> to vector<256x16xbf16>
    %c0_59 = arith.constant 0 : index
    %c0_60 = arith.constant 0 : index
    %103 = vector.load %arg10[%c0_59, %c0_60] : memref<16x1280xbf16, #tpu.memory_space<vmem>>, vector<16x1280xbf16>
    %cst_61 = arith.constant dense<0.000000e+00> : vector<256x1280xf32>
    %104 = tpu.matmul %102, %103, %cst_61 {dimension_numbers = #tpu.dot_dimension_numbers<[1], [0], [0], [1], [0, 0, 1, 1], [], []>} : vector<256x16xbf16>, vector<16x1280xbf16>, vector<256x1280xf32> -> vector<256x1280xf32>
    %c0_62 = arith.constant 0 : index
    %c0_63 = arith.constant 0 : index
    %105 = vector.load %arg11[%c0_62, %c0_63] : memref<1x1280xf32, #tpu.memory_space<vmem>>, vector<1x1280xf32>
    %106 = vector.broadcast %105 : vector<1x1280xf32> to vector<256x1280xf32>
    %107 = arith.addf %104, %106 : vector<256x1280xf32>
    %cst_64 = arith.constant 0.000000e+00 : f32
    %cst_65 = arith.constant 6.000000e+00 : f32
    %108 = vector.broadcast %cst_64 : f32 to vector<256x1280xf32>
    %109 = arith.maximumf %108, %107 : vector<256x1280xf32>
    %110 = vector.broadcast %cst_65 : f32 to vector<256x1280xf32>
    %111 = arith.minimumf %110, %109 : vector<256x1280xf32>
    %cst_66 = arith.constant dense<0.000000e+00> : vector<1280xf32>
    %112 = vector.multi_reduction <add>, %111, %cst_66 [0] : vector<256x1280xf32> to vector<1280xf32>
    %113 = vector.shape_cast %112 : vector<1280xf32> to vector<1x1280xf32>
    %cst_67 = arith.constant 2.560000e+02 : f32
    %114 = vector.broadcast %cst_67 : f32 to vector<1x1280xf32>
    %115 = arith.divf %113, %114 : vector<1x1280xf32>
    %116 = arith.truncf %115 : vector<1x1280xf32> to vector<1x1280xbf16>
    %c0_68 = arith.constant 0 : index
    %c0_69 = arith.constant 0 : index
    %117 = vector.load %arg12[%c0_68, %c0_69] : memref<1280x1408xbf16, #tpu.memory_space<vmem>>, vector<1280x1408xbf16>
    %cst_70 = arith.constant dense<0.000000e+00> : vector<1x1408xf32>
    %118 = tpu.matmul %116, %117, %cst_70 {dimension_numbers = #tpu.dot_dimension_numbers<[1], [0], [0], [1], [0, 0, 1, 1], [], []>} : vector<1x1280xbf16>, vector<1280x1408xbf16>, vector<1x1408xf32> -> vector<1x1408xf32>
    %c0_71 = arith.constant 0 : index
    %c0_72 = arith.constant 0 : index
    %119 = vector.load %arg13[%c0_71, %c0_72] : memref<1x1408xf32, #tpu.memory_space<vmem>>, vector<1x1408xf32>
    %120 = arith.addf %118, %119 : vector<1x1408xf32>
    %121 = vector.shape_cast %120 : vector<1x1408xf32> to vector<1x1x1408xf32>
    %c0_73 = arith.constant 0 : index
    %c0_74 = arith.constant 0 : index
    %c0_75 = arith.constant 0 : index
    %122 = vector.load %arg14[%c0_73, %c0_74, %c0_75] : memref<1x1x1408xf32, #tpu.memory_space<vmem>>, vector<1x1x1408xf32>
    tpu.vector_store %arg14[%c0_73, %c0_74, %c0_75], %121 {strides = array<i32>} : memref<1x1x1408xf32, #tpu.memory_space<vmem>>, vector<1x1x1408xf32>,
    return
  }
  func.func @transform_0(%arg0: i32) -> (i32, i32, i32) {
    %c0_i32 = arith.constant 0 : i32
    %c0_i32_0 = arith.constant 0 : i32
    %c0_i32_1 = arith.constant 0 : i32
    return %arg0, %c0_i32, %c0_i32_0 : i32, i32, i32
  }
  func.func @transform_1(%arg0: i32) -> (i32, i32) {
    %c0_i32 = arith.constant 0 : i32
    %c0_i32_0 = arith.constant 0 : i32
    %c0_i32_1 = arith.constant 0 : i32
    return %c0_i32, %c0_i32_0 : i32, i32
  }
  func.func @transform_2(%arg0: i32) -> (i32, i32) {
    %c0_i32 = arith.constant 0 : i32
    %c0_i32_0 = arith.constant 0 : i32
    %c0_i32_1 = arith.constant 0 : i32
    return %c0_i32, %c0_i32_0 : i32, i32
  }
  func.func @transform_3(%arg0: i32) -> (i32, i32) {
    %c0_i32 = arith.constant 0 : i32
    %c0_i32_0 = arith.constant 0 : i32
    %c0_i32_1 = arith.constant 0 : i32
    return %c0_i32, %c0_i32_0 : i32, i32
  }
  func.func @transform_4(%arg0: i32) -> (i32, i32) {
    %c0_i32 = arith.constant 0 : i32
    %c0_i32_0 = arith.constant 0 : i32
    %c0_i32_1 = arith.constant 0 : i32
    return %c0_i32, %c0_i32_0 : i32, i32
  }
  func.func @transform_5(%arg0: i32) -> (i32, i32) {
    %c0_i32 = arith.constant 0 : i32
    %c0_i32_0 = arith.constant 0 : i32
    %c0_i32_1 = arith.constant 0 : i32
    return %c0_i32, %c0_i32_0 : i32, i32
  }
  func.func @transform_6(%arg0: i32) -> (i32, i32) {
    %c0_i32 = arith.constant 0 : i32
    %c0_i32_0 = arith.constant 0 : i32
    %c0_i32_1 = arith.constant 0 : i32
    return %c0_i32, %c0_i32_0 : i32, i32
  }
  func.func @transform_7(%arg0: i32) -> (i32, i32) {
    %c0_i32 = arith.constant 0 : i32
    %c0_i32_0 = arith.constant 0 : i32
    %c0_i32_1 = arith.constant 0 : i32
    return %c0_i32, %c0_i32_0 : i32, i32
  }
  func.func @transform_8(%arg0: i32) -> (i32, i32) {
    %c0_i32 = arith.constant 0 : i32
    %c0_i32_0 = arith.constant 0 : i32
    %c0_i32_1 = arith.constant 0 : i32
    return %c0_i32, %c0_i32_0 : i32, i32
  }
  func.func @transform_9(%arg0: i32) -> (i32, i32) {
    %c0_i32 = arith.constant 0 : i32
    %c0_i32_0 = arith.constant 0 : i32
    %c0_i32_1 = arith.constant 0 : i32
    return %c0_i32, %c0_i32_0 : i32, i32
  }
  func.func @transform_10(%arg0: i32) -> (i32, i32) {
    %c0_i32 = arith.constant 0 : i32
    %c0_i32_0 = arith.constant 0 : i32
    %c0_i32_1 = arith.constant 0 : i32
    return %c0_i32, %c0_i32_0 : i32, i32
  }
  func.func @transform_11(%arg0: i32) -> (i32, i32) {
    %c0_i32 = arith.constant 0 : i32
    %c0_i32_0 = arith.constant 0 : i32
    %c0_i32_1 = arith.constant 0 : i32
    return %c0_i32, %c0_i32_0 : i32, i32
  }
  func.func @transform_12(%arg0: i32) -> (i32, i32) {
    %c0_i32 = arith.constant 0 : i32
    %c0_i32_0 = arith.constant 0 : i32
    %c0_i32_1 = arith.constant 0 : i32
    return %c0_i32, %c0_i32_0 : i32, i32
  }
  func.func @transform_13(%arg0: i32) -> (i32, i32, i32) {
    %c0_i32 = arith.constant 0 : i32
    %c0_i32_0 = arith.constant 0 : i32
    %c0_i32_1 = arith.constant 0 : i32
    return %arg0, %c0_i32, %c0_i32_0 : i32, i32, i32
  }
}

</mosaic_0001>

<bundles_post_ra>
// kernel: dense_landmark_predictor.1
= control target key start
LH: loop header
LB: loop body
LE: loop exit
PB: predicated region body
PF: predicated region fallthrough
CT: control target
= control target key end

     0   :  { %s16099_s25 = smov 0   ;;  %s23840_s0 = inlined_call_operand.vmem [shape: f32[2,256,32], index: 0, kind: input, shape index: {}]   ;;  %s23841_s1 = inlined_call_operand.vmem [shape: f32[32,32], index: 1, kind: input, shape index: {}]   ;;  %s23842_s2 = inlined_call_operand.vmem [shape: f32[1,32], index: 2, kind: input, shape index: {}]   ;;  %s23843_s3 = inlined_call_operand.vmem [shape: f32[32,128], index: 3, kind: input, shape index: {}]   ;;  %s23844_s4 = inlined_call_operand.vmem [shape: f32[1,128], index: 4, kind: input, shape index: {}]   ;;  %s23845_s5 = inlined_call_operand.vmem [shape: f32[9,128], index: 5, kind: input, shape index: {}]   ;;  %s23846_s6 = inlined_call_operand.vmem [shape: f32[1,128], index: 6, kind: input, shape index: {}]   ;;  %s23847_s7 = inlined_call_operand.vmem [shape: f32[128,16], index: 7, kind: input, shape index: {}]   ;;  %s23848_s8 = inlined_call_operand.vmem [shape: f32[1,16], index: 8, kind: input, shape index: {}]   ;;  %s23849_s9 = inlined_call_operand.vmem [shape: bf16[16,1280], index: 9, kind: input, shape index: {}]   ;;  %s23850_s10 = inlined_call_operand.vmem [shape: f32[1,1280], index: 10, kind: input, shape index: {}]   ;;  %s23851_s11 = inlined_call_operand.vmem [shape: bf16[1280,1408], index: 11, kind: input, shape index: {}]   ;;  %s23852_s12 = inlined_call_operand.vmem [shape: f32[1,1408], index: 12, kind: input, shape index: {}]   ;;  %s23853_s13 = inlined_call_operand.vmem [shape: f32[2,1,1408], index: 13, kind: output, shape index: {}]  }
   0x1 LB: > { %s11300_s26 = sadd.s32 4294967295, %s16025_s25   ;;  %p11304_p0 = scmp.ge.s32.totalorder %s16025_s25, 1  ;;  %s16025_s25 = sphi %s16099_s25, %s23_s25  }
   0x2   : > { %p387_p1 = scmp.lt.s32.totalorder %s16025_s25, 3 }
   0x4   : > { %p388_p2 = pnand %p11304_p0, %p387_p1 }
   0x6   : > { %391 = sbr.rel (%p388_p2) target bundleno = 2593 (0xa21), region = 72 }
   0xb   : > { %v475_v0 = vld [vmem:[%s23841_s1 + $0x18] sm:$0xff]  ;;  %v474_v1 = vld [vmem:[%s23841_s1 + $0x10] sm:$0xff]  ;;  %p430_p3 = scmp.lt.s32.totalorder %s11300_s26, 1  ;;  %v473_v2 = vld [vmem:[%s23841_s1 + $0x8] sm:$0xff]  ;;  %vm480_vm0 = vcmask 261120   ;;  %vm2331_vm1 = vcmask 130048  }
   0xc   : > { %589 = vmatpush.msra.mxu0 %v475_v0  ;;  %15984 = vmatpush.msra.mxu1 %v475_v0  ;;  %v472_v3 = vld [vmem:[%s23841_s1] sm:$0xff]  ;;  %v757_v17 = vld [vmem:[%s23843_s3 + $0x18] sm:$0xff]  ;;  %v756_v19 = vld [vmem:[%s23843_s3 + $0x10] sm:$0xff]  ;;  %vm11223_vm3 = vcmask 1040384   ;;  %vm11225_vm4 = vcmask 1042434   ;;  %vm11227_vm5 = vcmask 1041408  }
   0xd   : > { %s23868_s26 = smov (!%p430_p3, %s11300_s26), 1  ;;  %v755_v20 = vld [vmem:[%s23843_s3 + $0x8] sm:$0xff]  ;;  %v754_v21 = vld [vmem:[%s23843_s3] sm:$0xff]  ;;  %vm11229_vm6 = vcmask 1044484   ;;  %vm11231_vm7 = vcmask 1046534   ;;  %vm11233_vm8 = vcmask 1045508  }
   0xe   : > { %590 = vmatpush.msra.mxu0 %v474_v1  ;;  %15985 = vmatpush.msra.mxu1 %v474_v1  ;;  %s15093_s18 = sshll.u32 %s23868_s26, 8  ;;  %v16176_v25 = vld [vmem:[%s23842_s2] ss:$0 sm:$0xff]  ;;  %s15988_s20 = smul.u32 11, %s23868_s26  ;;  %vm11235_vm9 = vcmask 1043456  }
   0xf   : > { %s16125_s21 = scalar_lea.vmem %s23840_s0, %s15093_s18 }
  0x10   : > { %591 = vmatpush.msra.mxu0 %v473_v2  ;;  %15986 = vmatpush.msra.mxu1 %v473_v2  ;;  %v440_v4 = vld [vmem:[%s16125_s21] sm:$0xff]  ;;  %v441_v5 = vld [vmem:[%s16125_s21 + $0x8] sm:$0xff]  ;;  %v442_v6 = vld [vmem:[%s16125_s21 + $0x10] sm:$0xff]  ;;  %s23641_s28 = scalar_lea.vmem %s23853_s13, %s15988_s20 }
  0x11   : > { %v443_v7 = vld [vmem:[%s16125_s21 + $0x18] sm:$0xff]  ;;  %v444_v8 = vld [vmem:[%s16125_s21 + $0x20] sm:$0xff]  ;;  %v445_v9 = vld [vmem:[%s16125_s21 + $0x28] sm:$0xff] }
  0x12   : > { %592 = vmatpush.msra.mxu0 %v472_v3  ;;  %15987 = vmatpush.msra.mxu1 %v472_v3  ;;  %v446_v10 = vld [vmem:[%s16125_s21 + $0x30] sm:$0xff]  ;;  %v447_v11 = vld [vmem:[%s16125_s21 + $0x38] sm:$0xff]  ;;  %v448_v12 = vld [vmem:[%s16125_s21 + $0x40] sm:$0xff] }
  0x13   : > { %11307 = vmatmul.msk.f32.vlgmr.msra.gmra.mxu0 %vm480_vm0, %v440_v4  ;;  %v449_v13 = vld [vmem:[%s16125_s21 + $0x48] sm:$0xff]  ;;  %v450_v14 = vld [vmem:[%s16125_s21 + $0x50] sm:$0xff]  ;;  %v451_v15 = vld [vmem:[%s16125_s21 + $0x58] sm:$0xff] }
  0x14   : > { %v471_v16 = vld [vmem:[%s16125_s21 + $0xf8] sm:$0xff]  ;;  %v452_v18 = vld [vmem:[%s16125_s21 + $0x60] sm:$0xff]  ;;  %870 = vmatpush.msrb.mxu1 %v757_v17  ;;  %v453_v22 = vld [vmem:[%s16125_s21 + $0x68] sm:$0xff] }
  0x15   : > { %11338 = vmatmul.msk.f32.vlgmr.msra.gmra.mxu1 %vm480_vm0, %v471_v16  ;;  %v454_v23 = vld [vmem:[%s16125_s21 + $0x70] sm:$0xff]  ;;  %v455_v24 = vld [vmem:[%s16125_s21 + $0x78] sm:$0xff]  ;;  %v456_v27 = vld [vmem:[%s16125_s21 + $0x80] sm:$0xff] }
  0x16   : > { %871 = vmatpush.msrb.mxu1 %v756_v19  ;;  %v457_v32 = vld [vmem:[%s16125_s21 + $0x88] sm:$0xff]  ;;  %v458_v37 = vld [vmem:[%s16125_s21 + $0x90] sm:$0xff]  ;;  %v459_v42 = vld [vmem:[%s16125_s21 + $0x98] sm:$0xff] }
  0x17   : > { %v460_v47 = vld [vmem:[%s16125_s21 + $0xa0] sm:$0xff]  ;;  %v461_v52 = vld [vmem:[%s16125_s21 + $0xa8] sm:$0xff]  ;;  %v462_v57 = vld [vmem:[%s16125_s21 + $0xb0] sm:$0xff] }
  0x18   : > { %872 = vmatpush.msrb.mxu1 %v755_v20  ;;  %v463_v62 = vld [vmem:[%s16125_s21 + $0xb8] sm:$0xff]  ;;  %v464_v3 = vld [vmem:[%s16125_s21 + $0xc0] sm:$0xff] }
  0x1a   : > { %873 = vmatpush.msrb.mxu1 %v754_v21 }
  0x1b   : > { %11308 = vmatmul.msk.f32.gmra.mxu0 %vm480_vm0, %v441_v5 }
  0x23   : > { %11309 = vmatmul.msk.f32.gmra.mxu0 %vm480_vm0, %v442_v6 }
  0x2b   : > { %11310 = vmatmul.msk.f32.gmra.mxu0 %vm480_vm0, %v443_v7 }
  0x33   : > { %11311 = vmatmul.msk.f32.gmra.mxu0 %vm480_vm0, %v444_v8  ;;  %v465_v8 = vld [vmem:[%s16125_s21 + $0xc8] sm:$0xff] }
  0x3b   : > { %11312 = vmatmul.msk.f32.gmra.mxu0 %vm480_vm0, %v445_v9 }
  0x43   : > { %11313 = vmatmul.msk.f32.gmra.mxu0 %vm480_vm0, %v446_v10 }
  0x4b   : > { %11314 = vmatmul.msk.f32.gmra.mxu0 %vm480_vm0, %v447_v11 }
  0x53   : > { %11315 = vmatmul.msk.f32.gmra.mxu0 %vm480_vm0, %v448_v12 }
  0x5b   : > { %11316 = vmatmul.msk.f32.gmra.mxu0 %vm480_vm0, %v449_v13  ;;  %v466_v13 = vld [vmem:[%s16125_s21 + $0xd0] sm:$0xff] }
  0x63   : > { %11317 = vmatmul.msk.f32.gmra.mxu0 %vm480_vm0, %v450_v14 }
  0x6b   : > { %11318 = vmatmul.msk.f32.gmra.mxu0 %vm480_vm0, %v451_v15 }
  0x73   : > { %11319 = vmatmul.msk.f32.gmra.mxu0 %vm480_vm0, %v452_v18  ;;  %v467_v18 = vld [vmem:[%s16125_s21 + $0xd8] sm:$0xff] }
  0x7b   : > { %11320 = vmatmul.msk.f32.gmra.mxu0 %vm480_vm0, %v453_v22 }
  0x83   : > { %11321 = vmatmul.msk.f32.gmra.mxu0 %vm480_vm0, %v454_v23  ;;  %v468_v23 = vld [vmem:[%s16125_s21 + $0xe0] sm:$0xff] }
  0x8b   : > { %11322 = vmatmul.msk.f32.gmra.mxu0 %vm480_vm0, %v455_v24 }
  0x90   : > { %v594_v26 = vpop.f32.mrf.mxu0 }
  0x91   : > { %v595_v28 = vadd.f32 %v16176_v25, %v594_v26 }
  0x93   : > { %v690_v29 = vmax.f32 %v595_v28, 0.0  ;;  %11323 = vmatmul.msk.f32.gmra.mxu0 %vm480_vm0, %v456_v27  ;;  %v16027_v28 = vmov 0.0  }
  0x94   : > { %1038 = vst [vmem:[#allocation2 + $0x18] sm:$0xff] %v16027_v28 }
  0x95   : > { %v722_v30 = vmin.f32 %v690_v29, 6.0  ;;  %1039 = vst [vmem:[#allocation2 + $0x20] sm:$0xff] %v16027_v28 }
  0x96   : > { %1035 = vst [vmem:[#allocation2] sm:$0xff] %v16027_v28 }
  0x97   : > { %11339 = vmatmul.msk.f32.vlgmr.msrb.gmra.mxu1 %vm480_vm0, %v722_v30  ;;  %v469_v30 = vld [vmem:[%s16125_s21 + $0xe8] sm:$0xff]  ;;  %1036 = vst [vmem:[#allocation2 + $0x8] sm:$0xff] %v16027_v28 }
  0x98   : > { %v597_v31 = vpop.f32.mrf.mxu0  ;;  %1037 = vst [vmem:[#allocation2 + $0x10] sm:$0x3] %v16027_v28 }
  0x99   : > { %v598_v33 = vadd.f32 %v16176_v25, %v597_v31  ;;  %1040 = vst [vmem:[#allocation2 + $0x28] sm:$0x3] %v16027_v28 }
  0x9a   : > { %1041 = vst [vmem:[#allocation2 + $0x30] sm:$0xff] %v16027_v28 }
  0x9b   : > { %v691_v34 = vmax.f32 %v598_v33, 0.0  ;;  %11324 = vmatmul.msk.f32.gmra.mxu0 %vm480_vm0, %v457_v32  ;;  %1042 = vst [vmem:[#allocation2 + $0x38] sm:$0xff] %v16027_v28 }
  0x9c   : > { %1043 = vst [vmem:[#allocation2 + $0x40] sm:$0x3] %v16027_v28 }
  0x9d   : > { %v723_v35 = vmin.f32 %v691_v34, 6.0  ;;  %1044 = vst [vmem:[#allocation2 + $0x48] sm:$0xff] %v16027_v28 }
  0x9e   : > { %1045 = vst [vmem:[#allocation2 + $0x50] sm:$0xff] %v16027_v28 }
  0x9f   : > { %11340 = vmatmul.msk.f32.gmra.mxu1 %vm480_vm0, %v723_v35  ;;  %v470_v35 = vld [vmem:[%s16125_s21 + $0xf0] sm:$0xff]  ;;  %1046 = vst [vmem:[#allocation2 + $0x58] sm:$0x3] %v16027_v28 }
  0xa0   : > { %v600_v36 = vpop.f32.mrf.mxu0  ;;  %1047 = vst [vmem:[#allocation2 + $0x60] sm:$0xff] %v16027_v28 }
  0xa1   : > { %v601_v38 = vadd.f32 %v16176_v25, %v600_v36  ;;  %1048 = vst [vmem:[#allocation2 + $0x68] sm:$0xff] %v16027_v28 }
  0xa2   : > { %1049 = vst [vmem:[#allocation2 + $0x70] sm:$0x3] %v16027_v28 }
  0xa3   : > { %v692_v39 = vmax.f32 %v601_v38, 0.0  ;;  %11325 = vmatmul.msk.f32.gmra.mxu0 %vm480_vm0, %v458_v37  ;;  %1050 = vst [vmem:[#allocation2 + $0x78] sm:$0xff] %v16027_v28 }
  0xa4   : > { %1051 = vst [vmem:[#allocation2 + $0x80] sm:$0xff] %v16027_v28 }
  0xa5   : > { %v724_v40 = vmin.f32 %v692_v39, 6.0  ;;  %1052 = vst [vmem:[#allocation2 + $0x88] sm:$0x3] %v16027_v28 }
  0xa6   : > { %1053 = vst [vmem:[#allocation2 + $0x90] sm:$0xff] %v16027_v28 }
  0xa7   : > { %11341 = vmatmul.msk.f32.gmra.mxu1 %vm480_vm0, %v724_v40  ;;  %1054 = vst [vmem:[#allocation2 + $0x98] sm:$0xff] %v16027_v28 }
  0xa8   : > { %v603_v41 = vpop.f32.mrf.mxu0  ;;  %1055 = vst [vmem:[#allocation2 + $0xa0] sm:$0x3] %v16027_v28 }
  0xa9   : > { %v604_v43 = vadd.f32 %v16176_v25, %v603_v41  ;;  %v16258_v41 = vpop.f32.mrf.mxu1  ;;  %1056 = vst [vmem:[#allocation2 + $0xa8] sm:$0xff] %v16027_v28 }
  0xaa   : > { %1057 = vst [vmem:[#allocation2 + $0xb0] sm:$0xff] %v16027_v28 }
  0xab   : > { %v693_v44 = vmax.f32 %v604_v43, 0.0  ;;  %11326 = vmatmul.msk.f32.gmra.mxu0 %vm480_vm0, %v459_v42  ;;  %1058 = vst [vmem:[#allocation2 + $0xb8] sm:$0x3] %v16027_v28 }
  0xac   : > { %1059 = vst [vmem:[#allocation2 + $0xc0] sm:$0xff] %v16027_v28 }
  0xad   : > { %v725_v45 = vmin.f32 %v693_v44, 6.0  ;;  %v2113_v44 = vld [vmem:[%s23847_s7 + $0x78] sm:$0xff]  ;;  %1060 = vst [vmem:[#allocation2 + $0xc8] sm:$0xff] %v16027_v28 }
  0xae   : > { %2118 = vmatpush.msra.mxu2 %v2113_v44  ;;  %1061 = vst [vmem:[#allocation2 + $0xd0] sm:$0x3] %v16027_v28  ;;  %v1319_v44 = vld [vmem:[#allocation2 + $0xa] sm:$0xff] }
  0xaf   : > { %11342 = vmatmul.msk.f32.gmra.mxu1 %vm480_vm0, %v725_v45  ;;  %v2112_v45 = vld [vmem:[%s23847_s7 + $0x70] sm:$0xff]  ;;  %1062 = vst [vmem:[#allocation2 + $0xd8] sm:$0xff] %v16027_v28 }
  0xb0   : > { %v606_v46 = vpop.f32.mrf.mxu0  ;;  %2119 = vmatpush.msra.mxu2 %v2112_v45  ;;  %1063 = vst [vmem:[#allocation2 + $0xe0] sm:$0xff] %v16027_v28 }
  0xb1   : > { %v607_v48 = vadd.f32 %v16176_v25, %v606_v46  ;;  %1064 = vst [vmem:[#allocation2 + $0xe8] sm:$0x3] %v16027_v28 }
  0xb2   : > { %1065 = vst [vmem:[#allocation2 + $0xf0] sm:$0xff] %v16027_v28 }
  0xb3   : > { %v694_v49 = vmax.f32 %v607_v48, 0.0  ;;  %11327 = vmatmul.msk.f32.gmra.mxu0 %vm480_vm0, %v460_v47  ;;  %v16278_v48 = vld [vmem:[%s23844_s4] ss:$0 sm:$0xff]  ;;  %1066 = vst [vmem:[#allocation2 + $0xf8] sm:$0xff] %v16027_v28 }
  0xb4   : > { %1067 = vst [vmem:[#allocation2 + $0x100] sm:$0x3] %v16027_v28 }
  0xb5   : > { %v726_v50 = vmin.f32 %v694_v49, 6.0  ;;  %v2111_v49 = vld [vmem:[%s23847_s7 + $0x68] sm:$0xff]  ;;  %1068 = vst [vmem:[#allocation2 + $0x108] sm:$0xff] %v16027_v28 }
  0xb6   : > { %2120 = vmatpush.msra.mxu2 %v2111_v49  ;;  %1069 = vst [vmem:[#allocation2 + $0x110] sm:$0xff] %v16027_v28 }
  0xb7   : > { %11343 = vmatmul.msk.f32.gmra.mxu1 %vm480_vm0, %v726_v50  ;;  %1070 = vst [vmem:[#allocation2 + $0x118] sm:$0x3] %v16027_v28 }
  0xb8   : > { %v609_v51 = vpop.f32.mrf.mxu0  ;;  %1071 = vst [vmem:[#allocation2 + $0x120] sm:$0xff] %v16027_v28 }
  0xb9   : > { %v610_v53 = vadd.f32 %v16176_v25, %v609_v51  ;;  %v2110_v51 = vld [vmem:[%s23847_s7 + $0x60] sm:$0xff]  ;;  %1072 = vst [vmem:[#allocation2 + $0x128] sm:$0xff] %v16027_v28 }
  0xba   : > { %2121 = vmatpush.msra.mxu2 %v2110_v51  ;;  %1073 = vst [vmem:[#allocation2 + $0x130] sm:$0x3] %v16027_v28 }
  0xbb   : > { %v695_v54 = vmax.f32 %v610_v53, 0.0  ;;  %11328 = vmatmul.msk.f32.gmra.mxu0 %vm480_vm0, %v461_v52  ;;  %1074 = vst [vmem:[#allocation2 + $0x138] sm:$0xff] %v16027_v28 }
  0xbc   : > { %1075 = vst [vmem:[#allocation2 + $0x140] sm:$0xff] %v16027_v28 }
  0xbd   : > { %v727_v55 = vmin.f32 %v695_v54, 6.0  ;;  %1076 = vst [vmem:[#allocation2 + $0x148] sm:$0x3] %v16027_v28 }
  0xbe   : > { %1077 = vst [vmem:[#allocation2 + $0x150] sm:$0xff] %v16027_v28 }
  0xbf   : > { %11344 = vmatmul.msk.f32.gmra.mxu1 %vm480_vm0, %v727_v55  ;;  %v2109_v55 = vld [vmem:[%s23847_s7 + $0x58] sm:$0xff]  ;;  %1078 = vst [vmem:[#allocation2 + $0x158] sm:$0xff] %v16027_v28 }
  0xc0   : > { %v612_v56 = vpop.f32.mrf.mxu0  ;;  %2122 = vmatpush.msra.mxu2 %v2109_v55  ;;  %1079 = vst [vmem:[#allocation2 + $0x160] sm:$0x3] %v16027_v28 }
  0xc1   : > { %v613_v58 = vadd.f32 %v16176_v25, %v612_v56  ;;  %1080 = vst [vmem:[#allocation2 + $0x168] sm:$0xff] %v16027_v28 }
  0xc2   : > { %1081 = vst [vmem:[#allocation2 + $0x170] sm:$0xff] %v16027_v28 }
  0xc3   : > { %v696_v59 = vmax.f32 %v613_v58, 0.0  ;;  %11329 = vmatmul.msk.f32.gmra.mxu0 %vm480_vm0, %v462_v57  ;;  %v2108_v57 = vld [vmem:[%s23847_s7 + $0x50] sm:$0xff]  ;;  %1082 = vst [vmem:[#allocation2 + $0x178] sm:$0x3] %v16027_v28 }
  0xc4   : > { %2123 = vmatpush.msra.mxu2 %v2108_v57  ;;  %1083 = vst [vmem:[#allocation2 + $0x180] sm:$0xff] %v16027_v28 }
  0xc5   : > { %v728_v60 = vmin.f32 %v696_v59, 6.0  ;;  %1084 = vst [vmem:[#allocation2 + $0x188] sm:$0xff] %v16027_v28 }
  0xc6   : > { %1085 = vst [vmem:[#allocation2 + $0x190] sm:$0x3] %v16027_v28 }
  0xc7   : > { %11345 = vmatmul.msk.f32.gmra.mxu1 %vm480_vm0, %v728_v60  ;;  %1086 = vst [vmem:[#allocation2 + $0x198] sm:$0xff] %v16027_v28 }
  0xc8   : > { %v615_v61 = vpop.f32.mrf.mxu0  ;;  %1087 = vst [vmem:[#allocation2 + $0x1a0] sm:$0xff] %v16027_v28 }
  0xc9   : > { %v616_v63 = vadd.f32 %v16176_v25, %v615_v61  ;;  %v2107_v61 = vld [vmem:[%s23847_s7 + $0x48] sm:$0xff]  ;;  %1088 = vst [vmem:[#allocation2 + $0x1a8] sm:$0x3] %v16027_v28 }
  0xca   : > { %2124 = vmatpush.msra.mxu2 %v2107_v61 }
  0xcb   : > { %v697_v0 = vmax.f32 %v616_v63, 0.0  ;;  %11330 = vmatmul.msk.f32.gmra.mxu0 %vm480_vm0, %v463_v62  ;;  %v2106_v63 = vld [vmem:[%s23847_s7 + $0x40] sm:$0xff] }
  0xcc   : > { %2125 = vmatpush.msra.mxu2 %v2106_v63 }
  0xcd   : > { %v729_v1 = vmin.f32 %v697_v0, 6.0 }
  0xcf   : > { %11346 = vmatmul.msk.f32.gmra.mxu1 %vm480_vm0, %v729_v1 }
  0xd0   : > { %v618_v2 = vpop.f32.mrf.mxu0 }
  0xd1   : > { %v619_v4 = vadd.f32 %v16176_v25, %v618_v2  ;;  %v2105_v2 = vld [vmem:[%s23847_s7 + $0x38] sm:$0xff] }
  0xd2   : > { %2126 = vmatpush.msra.mxu2 %v2105_v2 }
  0xd3   : > { %v698_v5 = vmax.f32 %v619_v4, 0.0  ;;  %11331 = vmatmul.msk.f32.gmra.mxu0 %vm480_vm0, %v464_v3  ;;  %v2104_v3 = vld [vmem:[%s23847_s7 + $0x30] sm:$0xff] }
  0xd4   : > { %2127 = vmatpush.msra.mxu2 %v2104_v3 }
  0xd5   : > { %v730_v6 = vmin.f32 %v698_v5, 6.0 }
  0xd7   : > { %11347 = vmatmul.msk.f32.gmra.mxu1 %vm480_vm0, %v730_v6  ;;  %v2103_v6 = vld [vmem:[%s23847_s7 + $0x28] sm:$0xff] }
  0xd8   : > { %v621_v7 = vpop.f32.mrf.mxu0  ;;  %2128 = vmatpush.msra.mxu2 %v2103_v6 }
  0xd9   : > { %v622_v9 = vadd.f32 %v16176_v25, %v621_v7  ;;  %v16334_v7 = vld [vmem:[%s23845_s5] sm:$0xff] }
  0xda   : > { %v16397_v55 = vperm.slane %v16334_v7, 5  ;;  %v16401_v57 = vperm.slane %v16334_v7, 6  ;;  %v16411_v6 = vperm.slane %v16334_v7, 7 }
  0xdb   : > { %v699_v10 = vmax.f32 %v622_v9, 0.0  ;;  %11332 = vmatmul.msk.f32.gmra.mxu0 %vm480_vm0, %v465_v8  ;;  %v16339_v9 = vperm.slane %v16334_v7, 0 }
  0xdd   : > { %v731_v11 = vmin.f32 %v699_v10, 6.0 }
  0xdf   : > { %11348 = vmatmul.msk.f32.gmra.mxu1 %vm480_vm0, %v731_v11  ;;  %v2102_v11 = vld [vmem:[%s23847_s7 + $0x20] sm:$0xff] }
  0xe0   : > { %v624_v12 = vpop.f32.mrf.mxu0  ;;  %2129 = vmatpush.msra.mxu2 %v2102_v11 }
  0xe1   : > { %v625_v14 = vadd.f32 %v16176_v25, %v624_v12  ;;  %v1221_v12 = vld [vmem:[#allocation2 + $0x1] sm:$0xff] }
  0xe3   : > { %v700_v15 = vmax.f32 %v625_v14, 0.0  ;;  %11333 = vmatmul.msk.f32.gmra.mxu0 %vm480_vm0, %v466_v13  ;;  %v16347_v14 = vperm.slane %v16334_v7, 1 }
  0xe5   : > { %v732_v16 = vmin.f32 %v700_v15, 6.0 }
  0xe7   : > { %11349 = vmatmul.msk.f32.gmra.mxu1 %vm480_vm0, %v732_v16 }
  0xe8   : > { %v627_v17 = vpop.f32.mrf.mxu0 }
  0xe9   : > { %v628_v19 = vadd.f32 %v16176_v25, %v627_v17  ;;  %v2101_v17 = vld [vmem:[%s23847_s7 + $0x18] sm:$0xff] }
  0xea   : > { %2130 = vmatpush.msra.mxu2 %v2101_v17 }
  0xeb   : > { %v701_v20 = vmax.f32 %v628_v19, 0.0  ;;  %11334 = vmatmul.msk.f32.gmra.mxu0 %vm480_vm0, %v467_v18  ;;  %v1157_v19 = vmul.f32 0.0, %v16339_v9 }
  0xed   : > { %v733_v21 = vmin.f32 %v701_v20, 6.0  ;;  %v1254_v20 = vmul.f32 %v16347_v14, %v1221_v12  ;;  %v16420_v12 = vld [vmem:[%s23845_s5 + $0x8] ss:$0 sm:$0xff] }
  0xef   : > { %11350 = vmatmul.msk.f32.gmra.mxu1 %vm480_vm0, %v733_v21  ;;  %v16358_v21 = vperm.slane %v16334_v7, 2 }
  0xf0   : > { %v630_v22 = vpop.f32.mrf.mxu0 }
  0xf1   : > { %v631_v24 = vadd.f32 %v16176_v25, %v630_v22  ;;  %v1352_v28 = vmul.f32 %v16358_v21, %v1319_v44 }
  0xf3   : > { %v702_v26 = vmax.f32 %v631_v24, 0.0  ;;  %11335 = vmatmul.msk.f32.gmra.mxu0 %vm480_vm0, %v468_v23  ;;  %v2100_v23 = vld [vmem:[%s23847_s7 + $0x10] sm:$0xff]  ;;  %v1318_v24 = vld [vmem:[#allocation2 + $0x2] sm:$0xff] }
  0xf4   : > { %2131 = vmatpush.msra.mxu2 %v2100_v23 }
  0xf5   : > { %v734_v27 = vmin.f32 %v702_v26, 6.0 }
  0xf7   : > { %11351 = vmatmul.msk.f32.gmra.mxu1 %vm480_vm0, %v734_v27 }
  0xf8   : > { %v633_v29 = vpop.f32.mrf.mxu0 }
  0xf9   : > { %v634_v31 = vadd.f32 %v16176_v25, %v633_v29  ;;  %v2099_v29 = vld [vmem:[%s23847_s7 + $0x8] sm:$0xff] }
  0xfa   : > { %2132 = vmatpush.msra.mxu2 %v2099_v29 }
  0xfb   : > { %v703_v32 = vmax.f32 %v634_v31, 0.0  ;;  %11336 = vmatmul.msk.f32.gmra.mxu0 %vm480_vm0, %v469_v30  ;;  %v1222_v30 = vld [vmem:[#allocation2 + $0x9] sm:$0xff] }
  0xfd   : > { %v735_v33 = vmin.f32 %v703_v32, 6.0  ;;  %v1286_v32 = vadd.f32 %v1254_v20, %v1157_v19 }
  0xff   : > { %11352 = vmatmul.msk.f32.gmra.mxu1 %vm480_vm0, %v735_v33  ;;  %v1351_v33 = vmul.f32 %v16358_v21, %v1318_v24 }
 0x100   : > { %v636_v34 = vpop.f32.mrf.mxu0 }
 0x101   : > { %v637_v36 = vadd.f32 %v16176_v25, %v636_v34  ;;  %v16374_v34 = vperm.slane %v16334_v7, 3  ;;  %v1383_v45 = vadd.f32 %v1351_v33, %v1286_v32 }
 0x103   : > { %v704_v37 = vmax.f32 %v637_v36, 0.0  ;;  %11337 = vmatmul.msk.f32.gmra.mxu0 %vm480_vm0, %v470_v35 }
 0x105   : > { %v736_v38 = vmin.f32 %v704_v37, 6.0  ;;  %v2098_v37 = vld [vmem:[%s23847_s7] sm:$0xff] }
 0x106   : > { %2133 = vmatpush.msra.mxu2 %v2098_v37 }
 0x107   : > { %11353 = vmatmul.msk.f32.gmra.mxu1 %vm480_vm0, %v736_v38 }
 0x108   : > { %v639_v39 = vpop.f32.mrf.mxu0 }
 0x109   : > { %v640_v40 = vadd.f32 %v16176_v25, %v639_v39 }
 0x10b   : > { %v705_v42 = vmax.f32 %v640_v40, 0.0  ;;  %v1255_v40 = vmul.f32 %v16347_v14, %v1222_v30 }
 0x10d   : > { %v737_v43 = vmin.f32 %v705_v42, 6.0  ;;  %v1287_v51 = vadd.f32 %v1255_v40, %v1157_v19 }
 0x10f   : > { %11354 = vmatmul.msk.f32.gmra.mxu1 %vm480_vm0, %v737_v43  ;;  %v1384_v61 = vadd.f32 %v1352_v28, %v1287_v51 }
 0x110   : > { %v642_v46 = vpop.f32.mrf.mxu0 }
 0x111   : > { %v643_v47 = vadd.f32 %v16176_v25, %v642_v46 }
 0x113   : > { %v706_v50 = vmax.f32 %v643_v47, 0.0 }
 0x114   : > { %v875_v52 = vpop.f32.mrf.mxu1 }
 0x115   : > { %v738_v53 = vmin.f32 %v706_v50, 6.0  ;;  %v876_v54 = vadd.f32 %v16278_v48, %v875_v52  ;;  %v16390_v50 = vperm.slane %v16334_v7, 4 }
 0x117   : > { %v971_v56 = vmax.f32 %v876_v54, 0.0  ;;  %11355 = vmatmul.msk.f32.gmra.mxu1 %vm480_vm0, %v738_v53 }
 0x118   : > { %v645_v58 = vpop.f32.mrf.mxu0 }
 0x119   : > { %v16302_v59 = vmin.f32 %v971_v56, 6.0  ;;  %v646_v60 = vadd.f32 %v16176_v25, %v645_v58 }
 0x11b   : > { %1090 = vst [vmem:[#allocation2 + $0x19] sm:$0xff] %v16302_v59  ;;  %v707_v62 = vmax.f32 %v646_v60, 0.0  ;;  %v1545_v60 = vmul.f32 %v16390_v50, %v16302_v59  ;;  %v1256_v7 = vmul.f32 %v16347_v14, %v16302_v59 }
 0x11c   : > { %v878_v0 = vpop.f32.mrf.mxu1 }
 0x11d   : > { %v739_v1 = vmin.f32 %v707_v62, 6.0  ;;  %v879_v8 = vadd.f32 %v16278_v48, %v878_v0 }
 0x11f   : > { %11356 = vmatmul.msk.f32.gmra.mxu1 %vm480_vm0, %v739_v1  ;;  %v972_v18 = vmax.f32 %v879_v8, 0.0 }
 0x120   : > { %v648_v4 = vpop.f32.mrf.mxu0 }
 0x121   : > { %v649_v5 = vadd.f32 %v16176_v25, %v648_v4  ;;  %v1004_v31 = vmin.f32 %v972_v18, 6.0 }
 0x122   : > { %v1415_v38 = vld [vmem:[#allocation2 + $0x18] sm:$0xff] }
 0x123   : > { %v708_v10 = vmax.f32 %v649_v5, 0.0  ;;  %1091 = vst [vmem:[#allocation2 + $0x21] sm:$0xff] %v1004_v31  ;;  %v1448_v46 = vmul.f32 %v16374_v34, %v1415_v38  ;;  %v1159_v2 = vmul.f32 %v1415_v38, %v16339_v9  ;;  %v1257_v20 = vmul.f32 %v16347_v14, %v1004_v31 }
 0x124   : > { %v881_v13 = vpop.f32.mrf.mxu1 }
 0x125   : > { %v740_v15 = vmin.f32 %v708_v10, 6.0  ;;  %v882_v16 = vadd.f32 %v16278_v48, %v881_v13  ;;  %v1480_v54 = vadd.f32 %v1448_v46, %v1383_v45  ;;  %v1546_v13 = vmul.f32 %v16390_v50, %v1004_v31 }
 0x126   : > { %v1288_v24 = vadd.f32 %v1256_v7, %v1159_v2 }
 0x127   : > { %v973_v22 = vmax.f32 %v882_v16, 0.0  ;;  %11357 = vmatmul.msk.f32.gmra.mxu1 %vm480_vm0, %v740_v15  ;;  %v1577_v3 = vadd.f32 %v1545_v60, %v1480_v54 }
 0x128   : > { %v651_v26 = vpop.f32.mrf.mxu0 }
 0x129   : > { %v652_v27 = vadd.f32 %v16176_v25, %v651_v26  ;;  %v16377_v35 = vmin.f32 %v973_v22, 6.0 }
 0x12a   : > { %v1609_v0 = vld [vmem:[#allocation2 + $0x1a] sm:$0xff]  ;;  %v1610_v15 = vld [vmem:[#allocation2 + $0x22] sm:$0xff] }
 0x12b   : > { %v709_v36 = vmax.f32 %v652_v27, 0.0  ;;  %1092 = vst [vmem:[#allocation2 + $0x31] sm:$0xff] %v16377_v35  ;;  %v1416_v1 = vld [vmem:[#allocation2 + $0x20] sm:$0xff]  ;;  %v1642_v4 = vmul.f32 %v16397_v55, %v1609_v0  ;;  %v1353_v26 = vmul.f32 %v1609_v0, %v16358_v21  ;;  %v1837_v29 = vmul.f32 %v16411_v6, %v16377_v35 }
 0x12c   : > { %v884_v39 = vpop.f32.mrf.mxu1  ;;  %v1449_v8 = vmul.f32 %v16374_v34, %v1416_v1  ;;  %v1160_v19 = vmul.f32 %v1416_v1, %v16339_v9  ;;  %v1643_v32 = vmul.f32 %v16397_v55, %v1610_v15  ;;  %v1354_v54 = vmul.f32 %v1610_v15, %v16358_v21 }
 0x12d   : > { %v741_v42 = vmin.f32 %v709_v36, 6.0  ;;  %v885_v43 = vadd.f32 %v16278_v48, %v884_v39  ;;  %v1674_v17 = vadd.f32 %v1642_v4, %v1577_v3  ;;  %v1385_v51 = vadd.f32 %v1353_v26, %v1288_v24 }
 0x12e   : > { %v1481_v18 = vadd.f32 %v1449_v8, %v1384_v61  ;;  %v1289_v44 = vadd.f32 %v1257_v20, %v1160_v19  ;;  %v1547_v4 = vmul.f32 %v16390_v50, %v16377_v35 }
 0x12f   : > { %v974_v47 = vmax.f32 %v885_v43, 0.0  ;;  %11358 = vmatmul.msk.f32.gmra.mxu1 %vm480_vm0, %v741_v42  ;;  %v16442_v42 = vld [vmem:[%s23846_s6] ss:$0 sm:$0xff] }
 0x130   : > { %v654_v49 = vpop.f32.mrf.mxu0  ;;  %v1578_v59 = vadd.f32 %v1546_v13, %v1481_v18  ;;  %v1386_v1 = vadd.f32 %v1354_v54, %v1289_v44 }
 0x131   : > { %v16393_v52 = vmin.f32 %v974_v47, 6.0  ;;  %v655_v53 = vadd.f32 %v16176_v25, %v654_v49 }
 0x132   : > { %v16408_v5 = vld [vmem:[#allocation2 + $0x30] sm:$0xff]  ;;  %v1675_v43 = vadd.f32 %v1643_v32, %v1578_v59 }
 0x133   : > { %1093 = vst [vmem:[#allocation2 + $0x39] sm:$0xff] %v16393_v52  ;;  %v710_v56 = vmax.f32 %v655_v53, 0.0  ;;  %v1740_v11 = vmul.f32 %v16401_v57, %v16408_v5  ;;  %v1450_v38 = vmul.f32 %v16408_v5, %v16374_v34  ;;  %v1838_v47 = vmul.f32 %v16411_v6, %v16393_v52 }
 0x134   : > { %v887_v58 = vpop.f32.mrf.mxu1  ;;  %v1161_v59 = vmul.f32 %v16408_v5, %v16339_v9 }
 0x135   : > { %v742_v62 = vmin.f32 %v710_v56, 6.0  ;;  %v888_v63 = vadd.f32 %v16278_v48, %v887_v58  ;;  %v1772_v27 = vadd.f32 %v1740_v11, %v1674_v17  ;;  %v1482_v60 = vadd.f32 %v1450_v38, %v1385_v51 }
 0x137   : > { %v975_v10 = vmax.f32 %v888_v63, 0.0  ;;  %11359 = vmatmul.msk.f32.gmra.mxu1 %vm480_vm0, %v742_v62  ;;  %v1869_v40 = vadd.f32 %v1837_v29, %v1772_v27 }
 0x138   : > { %v657_v16 = vpop.f32.mrf.mxu0 }
 0x139   : > { %v16427_v22 = vmin.f32 %v975_v10, 6.0  ;;  %v658_v23 = vadd.f32 %v16176_v25, %v657_v16  ;;  %v1579_v16 = vadd.f32 %v1547_v4, %v1482_v60 }
 0x13a   : > { %v1901_v30 = vld [vmem:[#allocation2 + $0x32] sm:$0xff]  ;;  %v16447_v49 = vld [vmem:[#allocation2 + $0x3a] sm:$0xff] }
 0x13b   : > { %v1708_v33 = vld [vmem:[#allocation2 + $0x38] sm:$0xff]  ;;  %1094 = vst [vmem:[#allocation2 + $0x49] sm:$0xff] %v16427_v22  ;;  %v711_v36 = vmax.f32 %v658_v23, 0.0  ;;  %v1934_v31 = vmul.f32 %v16420_v12, %v1901_v30  ;;  %v1935_v0 = vmul.f32 %v16420_v12, %v16447_v49  ;;  %v1644_v8 = vmul.f32 %v1901_v30, %v16397_v55 }
 0x13c   : > { %v1741_v37 = vmul.f32 %v16401_v57, %v1708_v33  ;;  %v890_v39 = vpop.f32.mrf.mxu1  ;;  %v1451_v56 = vmul.f32 %v1708_v33, %v16374_v34  ;;  %v1548_v23 = vmul.f32 %v16390_v50, %v16393_v52 }
 0x13d   : > { %v743_v45 = vmin.f32 %v711_v36, 6.0  ;;  %v891_v46 = vadd.f32 %v16278_v48, %v890_v39  ;;  %v1966_v28 = vadd.f32 %v1934_v31, %v1869_v40  ;;  %v1676_v27 = vadd.f32 %v1644_v8, %v1579_v16 }
 0x13e   : > { %v1773_v53 = vadd.f32 %v1741_v37, %v1675_v43  ;;  %v1483_v15 = vadd.f32 %v1451_v56, %v1386_v1  ;;  %v1258_v31 = vmul.f32 %v16347_v14, %v16377_v35  ;;  %v1645_v39 = vmul.f32 %v16447_v49, %v16397_v55 }
 0x13f   : > { %v976_v58 = vmax.f32 %v891_v46, 0.0  ;;  %11360 = vmatmul.msk.f32.gmra.mxu1 %vm480_vm0, %v743_v45  ;;  %v2002_v62 = vadd.f32 %v16442_v42, %v1966_v28  ;;  %v1355_v40 = vmul.f32 %v1901_v30, %v16358_v21  ;;  %v1162_v43 = vmul.f32 %v1708_v33, %v16339_v9 }
 0x140   : > { %v660_v61 = vpop.f32.mrf.mxu0  ;;  %v1870_v63 = vadd.f32 %v1838_v47, %v1773_v53  ;;  %v1580_v29 = vadd.f32 %v1548_v23, %v1483_v15  ;;  %v1839_v45 = vmul.f32 %v16411_v6, %v16427_v22  ;;  %v1290_v35 = vadd.f32 %v1258_v31, %v1161_v59 }
 0x141   : > { %v16455_v2 = vmin.f32 %v976_v58, 6.0  ;;  %v661_v3 = vadd.f32 %v16176_v25, %v660_v61  ;;  %v2034_v10 = vmax.f32 %v2002_v62, 0.0  ;;  %v1259_v53 = vmul.f32 %v16347_v14, %v16393_v52 }
 0x142   : > { %v1967_v11 = vadd.f32 %v1935_v0, %v1870_v63  ;;  %v16461_v13 = vld [vmem:[#allocation2 + $0x48] sm:$0xff]  ;;  %v1677_v47 = vadd.f32 %v1645_v39, %v1580_v29  ;;  %v1387_v63 = vadd.f32 %v1355_v40, %v1290_v35 }
 0x143   : > { %1095 = vst [vmem:[#allocation2 + $0x51] sm:$0xff] %v16455_v2  ;;  %v712_v7 = vmax.f32 %v661_v3, 0.0  ;;  %v1742_v17 = vmul.f32 %v16401_v57, %v16461_v13  ;;  %v2066_v19 = vmin.f32 %v2034_v10, 6.0  ;;  %v1452_v28 = vmul.f32 %v16461_v13, %v16374_v34 }
 0x144   : > { %v893_v18 = vpop.f32.mrf.mxu1  ;;  %v2003_v20 = vadd.f32 %v16442_v42, %v1967_v11  ;;  %v1840_v61 = vmul.f32 %v16411_v6, %v16455_v2  ;;  %v1291_v0 = vadd.f32 %v1259_v53, %v1162_v43  ;;  %v1356_v10 = vmul.f32 %v16447_v49, %v16358_v21 }
 0x145   : > { %v744_v24 = vmin.f32 %v712_v7, 6.0  ;;  %v894_v26 = vadd.f32 %v16278_v48, %v893_v18  ;;  %2134 = vmatmul.f32.vlgmr.msra.gmra.mxu2 %v2066_v19  ;;  %v1774_v36 = vadd.f32 %v1742_v17, %v1676_v27  ;;  %v1484_v8 = vadd.f32 %v1452_v28, %v1387_v63 }
 0x146   : > { %v2035_v38 = vmax.f32 %v2003_v20, 0.0  ;;  %v1549_v19 = vmul.f32 %v16390_v50, %v16427_v22  ;;  %v1388_v23 = vadd.f32 %v1356_v10, %v1291_v0  ;;  %v1550_v40 = vmul.f32 %v16390_v50, %v16455_v2 }
 0x147   : > { %v977_v32 = vmax.f32 %v894_v26, 0.0  ;;  %11361 = vmatmul.msk.f32.gmra.mxu1 %vm480_vm0, %v744_v24  ;;  %v1871_v33 = vadd.f32 %v1839_v45, %v1774_v36  ;;  %v1163_v35 = vmul.f32 %v16461_v13, %v16339_v9 }
 0x148   : > { %v663_v37 = vpop.f32.mrf.mxu0  ;;  %v2067_v60 = vmin.f32 %v2035_v38, 6.0  ;;  %v1581_v31 = vadd.f32 %v1549_v19, %v1484_v8 }
 0x149   : > { %v16479_v44 = vmin.f32 %v977_v32, 6.0  ;;  %v664_v5 = vadd.f32 %v16176_v25, %v663_v37 }
 0x14a   : > { %v1903_v46 = vld [vmem:[#allocation2 + $0x4a] sm:$0xff]  ;;  %v16493_v62 = vld [vmem:[#allocation2 + $0x52] sm:$0xff] }
 0x14b   : > { %v1710_v51 = vld [vmem:[#allocation2 + $0x50] sm:$0xff]  ;;  %1096 = vst [vmem:[#allocation2 + $0x61] sm:$0xff] %v16479_v44  ;;  %v713_v30 = vmax.f32 %v664_v5, 0.0  ;;  %v1936_v54 = vmul.f32 %v16420_v12, %v1903_v46  ;;  %v1937_v17 = vmul.f32 %v16420_v12, %v16493_v62  ;;  %v1646_v20 = vmul.f32 %v1903_v46, %v16397_v55 }
 0x14c   : > { %v1743_v56 = vmul.f32 %v16401_v57, %v1710_v51  ;;  %v896_v58 = vpop.f32.mrf.mxu1  ;;  %v1453_v11 = vmul.f32 %v1710_v51, %v16374_v34  ;;  %v1841_v63 = vmul.f32 %v16411_v6, %v16479_v44 }
 0x14d   : > { %v745_v1 = vmin.f32 %v713_v30, 6.0  ;;  %v897_v52 = vadd.f32 %v16278_v48, %v896_v58  ;;  %v1968_v3 = vadd.f32 %v1936_v54, %v1871_v33  ;;  %2137 = vmatmul.f32.gmra.mxu2 %v2067_v60  ;;  %v1678_v45 = vadd.f32 %v1646_v20, %v1581_v31 }
 0x14e   : > { %v1775_v4 = vadd.f32 %v1743_v56, %v1677_v47  ;;  %v1485_v59 = vadd.f32 %v1453_v11, %v1388_v23  ;;  %v1260_v30 = vmul.f32 %v16347_v14, %v16427_v22  ;;  %v1647_v56 = vmul.f32 %v16493_v62, %v16397_v55 }
 0x14f   : > { %v978_v15 = vmax.f32 %v897_v52, 0.0  ;;  %11362 = vmatmul.msk.f32.gmra.mxu1 %vm480_vm0, %v745_v1  ;;  %v2004_v7 = vadd.f32 %v16442_v42, %v1968_v3  ;;  %v1357_v58 = vmul.f32 %v1903_v46, %v16358_v21  ;;  %v1164_v60 = vmul.f32 %v1710_v51, %v16339_v9 }
 0x150   : > { %v1872_v16 = vadd.f32 %v1840_v61, %v1775_v4  ;;  %v666_v18 = vpop.f32.mrf.mxu0  ;;  %v1582_v47 = vadd.f32 %v1550_v40, %v1485_v59  ;;  %v1292_v22 = vadd.f32 %v1260_v30, %v1163_v35  ;;  %v1261_v4 = vmul.f32 %v16347_v14, %v16455_v2 }
 0x151   : > { %v16506_v24 = vmin.f32 %v978_v15, 6.0  ;;  %v667_v49 = vadd.f32 %v16176_v25, %v666_v18  ;;  %v2036_v26 = vmax.f32 %v2004_v7, 0.0 }
 0x152   : > { %v1969_v27 = vadd.f32 %v1937_v17, %v1872_v16  ;;  %v16509_v29 = vld [vmem:[#allocation2 + $0x60] sm:$0xff]  ;;  %v1679_v1 = vadd.f32 %v1647_v56, %v1582_v47  ;;  %v1389_v17 = vadd.f32 %v1357_v58, %v1292_v22  ;;  %v1293_v18 = vadd.f32 %v1261_v4, %v1164_v60 }
 0x153   : > { %1097 = vst [vmem:[#allocation2 + $0x69] sm:$0xff] %v16506_v24  ;;  %v714_v32 = vmax.f32 %v667_v49, 0.0  ;;  %v2068_v36 = vmin.f32 %v2036_v26, 6.0  ;;  %v1744_v37 = vmul.f32 %v16401_v57, %v16509_v29  ;;  %v1454_v3 = vmul.f32 %v16509_v29, %v16374_v34 }
 0x154   : > { %v899_v38 = vpop.f32.mrf.mxu1  ;;  %v2005_v39 = vadd.f32 %v16442_v42, %v1969_v27  ;;  %v1842_v7 = vmul.f32 %v16411_v6, %v16506_v24  ;;  %v1358_v26 = vmul.f32 %v16493_v62, %v16358_v21  ;;  %v1552_v58 = vmul.f32 %v16390_v50, %v16506_v24 }
 0x155   : > { %v746_v43 = vmin.f32 %v714_v32, 6.0  ;;  %v900_v5 = vadd.f32 %v16278_v48, %v899_v38  ;;  %2140 = vmatmul.f32.gmra.mxu2 %v2068_v36  ;;  %v1776_v53 = vadd.f32 %v1744_v37, %v1678_v45  ;;  %v1486_v49 = vadd.f32 %v1454_v3, %v1389_v17 }
 0x156   : > { %v2037_v54 = vmax.f32 %v2005_v39, 0.0  ;;  %v1551_v38 = vmul.f32 %v16390_v50, %v16479_v44  ;;  %v1390_v40 = vadd.f32 %v1358_v26, %v1293_v18  ;;  %v1165_v22 = vmul.f32 %v16509_v29, %v16339_v9 }
 0x157   : > { %v979_v28 = vmax.f32 %v900_v5, 0.0  ;;  %11363 = vmatmul.msk.f32.gmra.mxu1 %vm480_vm0, %v746_v43  ;;  %v1873_v51 = vadd.f32 %v1841_v63, %v1776_v53 }
 0x158   : > { %v669_v33 = vpop.f32.mrf.mxu0  ;;  %v2069_v15 = vmin.f32 %v2037_v54, 6.0  ;;  %v1583_v30 = vadd.f32 %v1551_v38, %v1486_v49 }
 0x159   : > { %v16527_v61 = vmin.f32 %v979_v28, 6.0  ;;  %v670_v13 = vadd.f32 %v16176_v25, %v669_v33 }
 0x15a   : > { %v1905_v0 = vld [vmem:[#allocation2 + $0x62] sm:$0xff]  ;;  %v16541_v16 = vld [vmem:[#allocation2 + $0x6a] sm:$0xff] }
 0x15b   : > { %v1712_v52 = vld [vmem:[#allocation2 + $0x68] sm:$0xff]  ;;  %1098 = vst [vmem:[#allocation2 + $0x79] sm:$0xff] %v16527_v61  ;;  %v715_v46 = vmax.f32 %v670_v13, 0.0  ;;  %v1938_v8 = vmul.f32 %v16420_v12, %v1905_v0  ;;  %v1939_v31 = vmul.f32 %v16420_v12, %v16541_v16  ;;  %v1648_v39 = vmul.f32 %v1905_v0, %v16397_v55 }
 0x15c   : > { %v1745_v10 = vmul.f32 %v16401_v57, %v1712_v52  ;;  %v902_v11 = vpop.f32.mrf.mxu1  ;;  %v1455_v27 = vmul.f32 %v1712_v52, %v16374_v34  ;;  %v1843_v17 = vmul.f32 %v16411_v6, %v16527_v61 }
 0x15d   : > { %v747_v19 = vmin.f32 %v715_v46, 6.0  ;;  %v903_v2 = vadd.f32 %v16278_v48, %v902_v11  ;;  %v1970_v20 = vadd.f32 %v1938_v8, %v1873_v51  ;;  %2143 = vmatmul.f32.gmra.mxu2 %v2069_v15  ;;  %v1680_v63 = vadd.f32 %v1648_v39, %v1583_v30 }
 0x15e   : > { %v1777_v23 = vadd.f32 %v1745_v10, %v1679_v1  ;;  %v1487_v35 = vadd.f32 %v1455_v27, %v1390_v40  ;;  %v1262_v46 = vmul.f32 %v16347_v14, %v16479_v44  ;;  %v1649_v10 = vmul.f32 %v16541_v16, %v16397_v55 }
 0x15f   : > { %v980_v59 = vmax.f32 %v903_v2, 0.0  ;;  %11364 = vmatmul.msk.f32.gmra.mxu1 %vm480_vm0, %v747_v19  ;;  %v2006_v32 = vadd.f32 %v16442_v42, %v1970_v20  ;;  %v1359_v11 = vmul.f32 %v1905_v0, %v16358_v21  ;;  %v1166_v15 = vmul.f32 %v1712_v52, %v16339_v9 }
 0x160   : > { %v1874_v36 = vadd.f32 %v1842_v7, %v1777_v23  ;;  %v672_v37 = vpop.f32.mrf.mxu0  ;;  %v1584_v1 = vadd.f32 %v1552_v58, %v1487_v35  ;;  %v1294_v44 = vadd.f32 %v1262_v46, %v1165_v22  ;;  %v1263_v23 = vmul.f32 %v16347_v14, %v16506_v24 }
 0x161   : > { %v16554_v43 = vmin.f32 %v980_v59, 6.0  ;;  %v673_v62 = vadd.f32 %v16176_v25, %v672_v37  ;;  %v2038_v5 = vmax.f32 %v2006_v32, 0.0 }
 0x162   : > { %v1971_v45 = vadd.f32 %v1939_v31, %v1874_v36  ;;  %v16557_v47 = vld [vmem:[#allocation2 + $0x78] sm:$0xff]  ;;  %v1681_v19 = vadd.f32 %v1649_v10, %v1584_v1  ;;  %v1391_v36 = vadd.f32 %v1359_v11, %v1294_v44  ;;  %v1295_v31 = vadd.f32 %v1263_v23, %v1166_v15 }
 0x163   : > { %1099 = vst [vmem:[#allocation2 + $0x81] sm:$0xff] %v16554_v43  ;;  %v716_v28 = vmax.f32 %v673_v62, 0.0  ;;  %v2070_v53 = vmin.f32 %v2038_v5, 6.0  ;;  %v1746_v33 = vmul.f32 %v16401_v57, %v16557_v47  ;;  %v1456_v20 = vmul.f32 %v16557_v47, %v16374_v34 }
 0x164   : > { %v905_v54 = vpop.f32.mrf.mxu1  ;;  %v2007_v56 = vadd.f32 %v16442_v42, %v1971_v45  ;;  %v1844_v59 = vmul.f32 %v16411_v6, %v16554_v43  ;;  %v1360_v62 = vmul.f32 %v16541_v16, %v16358_v21  ;;  %v16607_v16 = vld [vmem:[%s23842_s2] ss:$0 sm:$0xff]  ;;  %v1554_v11 = vmul.f32 %v16390_v50, %v16554_v43 }
 0x165   : > { %v748_v60 = vmin.f32 %v716_v28, 6.0  ;;  %v906_v13 = vadd.f32 %v16278_v48, %v905_v54  ;;  %2146 = vmatmul.f32.gmra.mxu2 %v2070_v53  ;;  %v1778_v4 = vadd.f32 %v1746_v33, %v1680_v63  ;;  %v1488_v40 = vadd.f32 %v1456_v20, %v1391_v36 }
 0x166   : > { %v2039_v8 = vmax.f32 %v2007_v56, 0.0  ;;  %v1553_v33 = vmul.f32 %v16390_v50, %v16527_v61  ;;  %v1392_v56 = vadd.f32 %v1360_v62, %v1295_v31  ;;  %v1167_v44 = vmul.f32 %v16557_v47, %v16339_v9 }
 0x167   : > { %v981_v3 = vmax.f32 %v906_v13, 0.0  ;;  %11365 = vmatmul.msk.f32.gmra.mxu1 %vm480_vm0, %v748_v60  ;;  %v1875_v52 = vadd.f32 %v1843_v17, %v1778_v4 }
 0x168   : > { %v675_v51 = vpop.f32.mrf.mxu0  ;;  %v2071_v27 = vmin.f32 %v2039_v8, 6.0  ;;  %v1585_v46 = vadd.f32 %v1553_v33, %v1488_v40 }
 0x169   : > { %v16575_v7 = vmin.f32 %v981_v3, 6.0  ;;  %v676_v29 = vadd.f32 %v16176_v25, %v675_v51 }
 0x16a   : > { %v1907_v18 = vld [vmem:[#allocation2 + $0x7a] sm:$0xff]  ;;  %v16589_v32 = vld [vmem:[#allocation2 + $0x82] sm:$0xff] }
 0x16b   : > { %v1714_v2 = vld [vmem:[#allocation2 + $0x80] sm:$0xff]  ;;  %1100 = vst [vmem:[#allocation2 + $0x91] sm:$0xff] %v16575_v7  ;;  %v717_v0 = vmax.f32 %v676_v29, 0.0  ;;  %v1940_v49 = vmul.f32 %v16420_v12, %v1907_v18  ;;  %v1941_v53 = vmul.f32 %v16420_v12, %v16589_v32  ;;  %v1650_v54 = vmul.f32 %v1907_v18, %v16397_v55 }
 0x16c   : > { %v1747_v25 = vmul.f32 %v16401_v57, %v1714_v2  ;;  %v908_v26 = vpop.f32.mrf.mxu1  ;;  %v1457_v5 = vmul.f32 %v1714_v2, %v16374_v34  ;;  %v1845_v36 = vmul.f32 %v16411_v6, %v16575_v7 }
 0x16d   : > { %v749_v37 = vmin.f32 %v717_v0, 6.0  ;;  %v909_v24 = vadd.f32 %v16278_v48, %v908_v26  ;;  %v1972_v38 = vadd.f32 %v1940_v49, %v1875_v52  ;;  %2149 = vmatmul.f32.gmra.mxu2 %v2071_v27  ;;  %v1682_v17 = vadd.f32 %v1650_v54, %v1585_v46 }
 0x16e   : > { %v1779_v39 = vadd.f32 %v1747_v25, %v1681_v19  ;;  %v1489_v22 = vadd.f32 %v1457_v5, %v1392_v56  ;;  %v1264_v0 = vmul.f32 %v16347_v14, %v16527_v61  ;;  %v1651_v25 = vmul.f32 %v16589_v32, %v16397_v55 }
 0x16f   : > { %v982_v45 = vmax.f32 %v909_v24, 0.0  ;;  %11366 = vmatmul.msk.f32.gmra.mxu1 %vm480_vm0, %v749_v37  ;;  %v2008_v35 = vadd.f32 %v16442_v42, %v1972_v38  ;;  %v1361_v26 = vmul.f32 %v1907_v18, %v16358_v21  ;;  %v1168_v27 = vmul.f32 %v1714_v2, %v16339_v9 }
 0x170   : > { %v1876_v28 = vadd.f32 %v1844_v59, %v1779_v39  ;;  %v678_v30 = vpop.f32.mrf.mxu0  ;;  %v1586_v19 = vadd.f32 %v1554_v11, %v1489_v22  ;;  %v1296_v61 = vadd.f32 %v1264_v0, %v1167_v44  ;;  %v1265_v39 = vmul.f32 %v16347_v14, %v16554_v43 }
 0x171   : > { %v16602_v58 = vmin.f32 %v982_v45, 6.0  ;;  %v679_v60 = vadd.f32 %v16607_v16, %v678_v30  ;;  %v2040_v13 = vmax.f32 %v2008_v35, 0.0 }
 0x172   : > { %v1973_v63 = vadd.f32 %v1941_v53, %v1876_v28  ;;  %v16610_v1 = vld [vmem:[#allocation2 + $0x90] sm:$0xff]  ;;  %v1683_v37 = vadd.f32 %v1651_v25, %v1586_v19  ;;  %v1393_v53 = vadd.f32 %v1361_v26, %v1296_v61  ;;  %v1297_v30 = vadd.f32 %v1265_v39, %v1168_v27 }
 0x173   : > { %1101 = vst [vmem:[#allocation2 + $0x99] sm:$0xff] %v16602_v58  ;;  %v718_v3 = vmax.f32 %v679_v60, 0.0  ;;  %v2072_v4 = vmin.f32 %v2040_v13, 6.0  ;;  %v1748_v51 = vmul.f32 %v16401_v57, %v16610_v1  ;;  %v1458_v38 = vmul.f32 %v16610_v1, %v16374_v34 }
 0x174   : > { %v911_v8 = vpop.f32.mrf.mxu1  ;;  %v2009_v10 = vadd.f32 %v16442_v42, %v1973_v63  ;;  %v1846_v28 = vmul.f32 %v16411_v6, %v16602_v58  ;;  %v1362_v63 = vmul.f32 %v16589_v32, %v16358_v21  ;;  %v688_v19 = vadd.f32 %v16607_v16, %v16258_v41 }
 0x175   : > { %v750_v15 = vmin.f32 %v718_v3, 6.0  ;;  %v912_v29 = vadd.f32 %v16278_v48, %v911_v8  ;;  %2152 = vmatmul.f32.gmra.mxu2 %v2072_v4  ;;  %v1780_v23 = vadd.f32 %v1748_v51, %v1682_v17  ;;  %v1490_v13 = vadd.f32 %v1458_v38, %v1393_v53 }
 0x176   : > { %v2041_v49 = vmax.f32 %v2009_v10, 0.0  ;;  %v1555_v8 = vmul.f32 %v16390_v50, %v16575_v7  ;;  %v1394_v11 = vadd.f32 %v1362_v63, %v1297_v30  ;;  %v1556_v41 = vmul.f32 %v16390_v50, %v16602_v58 }
 0x177   : > { %v983_v20 = vmax.f32 %v912_v29, 0.0  ;;  %11367 = vmatmul.msk.f32.gmra.mxu1 %vm480_vm0, %v750_v15  ;;  %v1877_v2 = vadd.f32 %v1845_v36, %v1780_v23 }
 0x178   : > { %v681_v52 = vpop.f32.mrf.mxu0  ;;  %v2073_v35 = vmin.f32 %v2041_v49, 6.0  ;;  %v1587_v44 = vadd.f32 %v1555_v8, %v1490_v13 }
 0x179   : > { %v16628_v59 = vmin.f32 %v983_v20, 6.0  ;;  %v682_v47 = vadd.f32 %v16607_v16, %v681_v52 }
 0x17a   : > { %v1909_v31 = vld [vmem:[#allocation2 + $0x92] sm:$0xff]  ;;  %v16640_v5 = vld [vmem:[#allocation2 + $0x9a] sm:$0xff] }
 0x17b   : > { %v1716_v24 = vld [vmem:[#allocation2 + $0x98] sm:$0xff]  ;;  %1102 = vst [vmem:[#allocation2 + $0xa9] sm:$0xff] %v16628_v59  ;;  %v719_v18 = vmax.f32 %v682_v47, 0.0  ;;  %v1942_v40 = vmul.f32 %v16420_v12, %v1909_v31  ;;  %v1943_v60 = vmul.f32 %v16420_v12, %v16640_v5  ;;  %v1652_v10 = vmul.f32 %v1909_v31, %v16397_v55 }
 0x17c   : > { %v1749_v62 = vmul.f32 %v16401_v57, %v1716_v24  ;;  %v914_v45 = vpop.f32.mrf.mxu1  ;;  %v1459_v46 = vmul.f32 %v1716_v24, %v16374_v34 }
 0x17d   : > { %v751_v33 = vmin.f32 %v719_v18, 6.0  ;;  %v915_v43 = vadd.f32 %v16278_v48, %v914_v45  ;;  %v1974_v54 = vadd.f32 %v1942_v40, %v1877_v2  ;;  %2155 = vmatmul.f32.gmra.mxu2 %v2073_v35  ;;  %v1684_v36 = vadd.f32 %v1652_v10, %v1587_v44 }
 0x17e   : > { %v1781_v56 = vadd.f32 %v1749_v62, %v1683_v37  ;;  %v1491_v49 = vadd.f32 %v1459_v46, %v1394_v11  ;;  %v721_v37 = vmax.f32 %v688_v19, 0.0  ;;  %v1266_v2 = vmul.f32 %v16347_v14, %v16575_v7 }
 0x17f   : > { %v984_v22 = vmax.f32 %v915_v43, 0.0  ;;  %11368 = vmatmul.msk.f32.gmra.mxu1 %vm480_vm0, %v751_v33  ;;  %v2010_v3 = vadd.f32 %v16442_v42, %v1974_v54  ;;  %v1363_v40 = vmul.f32 %v1909_v31, %v16358_v21  ;;  %v1170_v62 = vmul.f32 %v1716_v24, %v16339_v9 }
 0x180   : > { %v1878_v4 = vadd.f32 %v1846_v28, %v1781_v56  ;;  %v684_v51 = vpop.f32.mrf.mxu0  ;;  %v1588_v39 = vadd.f32 %v1556_v41, %v1491_v49  ;;  %v1847_v35 = vmul.f32 %v16411_v6, %v16628_v59  ;;  %v1267_v7 = vmul.f32 %v16347_v14, %v16602_v58 }
 0x181   : > { %v16655_v15 = vmin.f32 %v984_v22, 6.0  ;;  %v685_v29 = vadd.f32 %v16607_v16, %v684_v51  ;;  %v2042_v32 = vmax.f32 %v2010_v3, 0.0  ;;  %v1169_v16 = vmul.f32 %v16610_v1, %v16339_v9 }
 0x182   : > { %v1975_v17 = vadd.f32 %v1943_v60, %v1878_v4  ;;  %v16660_v20 = vld [vmem:[#allocation2 + $0xa8] sm:$0xff]  ;;  %v1653_v1 = vmul.f32 %v16640_v5, %v16397_v55  ;;  %v753_v60 = vmin.f32 %v721_v37, 6.0  ;;  %v1299_v3 = vadd.f32 %v1267_v7, %v1170_v62 }
 0x183   : > { %1103 = vst [vmem:[#allocation2 + $0xb1] sm:$0xff] %v16655_v15  ;;  %v720_v23 = vmax.f32 %v685_v29, 0.0  ;;  %v2074_v0 = vmin.f32 %v2042_v32, 6.0  ;;  %v1750_v52 = vmul.f32 %v16401_v57, %v16660_v20  ;;  %v1298_v30 = vadd.f32 %v1266_v2, %v1169_v16  ;;  %v16715_v16 = vld [vmem:[%s23844_s4] ss:$0 sm:$0xff] }
 0x184   : > { %v917_v25 = vpop.f32.mrf.mxu1  ;;  %v2011_v26 = vadd.f32 %v16442_v42, %v1975_v17  ;;  %v1460_v33 = vmul.f32 %v16660_v20, %v16374_v34  ;;  %v1685_v43 = vadd.f32 %v1653_v1, %v1588_v39  ;;  %v1848_v58 = vmul.f32 %v16411_v6, %v16655_v15 }
 0x185   : > { %v752_v27 = vmin.f32 %v720_v23, 6.0  ;;  %v918_v47 = vadd.f32 %v16278_v48, %v917_v25  ;;  %2158 = vmatmul.f32.gmra.mxu2 %v2074_v0  ;;  %v1782_v38 = vadd.f32 %v1750_v52, %v1684_v36  ;;  %v1395_v22 = vadd.f32 %v1363_v40, %v1298_v30 }
 0x186   : > { %v2043_v18 = vmax.f32 %v2011_v26, 0.0  ;;  %v1364_v11 = vmul.f32 %v16640_v5, %v16358_v21  ;;  %v1557_v19 = vmul.f32 %v16390_v50, %v16628_v59  ;;  %v1171_v39 = vmul.f32 %v16660_v20, %v16339_v9 }
 0x187   : > { %v985_v61 = vmax.f32 %v918_v47, 0.0  ;;  %11369 = vmatmul.msk.f32.gmra.mxu1 %vm480_vm0, %v752_v27  ;;  %v1879_v31 = vadd.f32 %v1847_v35, %v1782_v38  ;;  %v1492_v10 = vadd.f32 %v1460_v33, %v1395_v22  ;;  %v1558_v38 = vmul.f32 %v16390_v50, %v16655_v15 }
 0x188   : > { %v2075_v63 = vmin.f32 %v2043_v18, 6.0  ;;  %v1396_v44 = vadd.f32 %v1364_v11, %v1299_v3  ;;  %v1268_v35 = vmul.f32 %v16347_v14, %v16628_v59  ;;  %v1269_v59 = vmul.f32 %v16347_v14, %v16655_v15 }
 0x189   : > { %v16676_v45 = vmin.f32 %v985_v61, 6.0  ;;  %v1589_v26 = vadd.f32 %v1557_v19, %v1492_v10 }
 0x18a   : > { %v1911_v28 = vld [vmem:[#allocation2 + $0xaa] sm:$0xff]  ;;  %v16689_v56 = vld [vmem:[#allocation2 + $0xb2] sm:$0xff] }
 0x18b   : > { %v1718_v53 = vld [vmem:[#allocation2 + $0xb0] sm:$0xff]  ;;  %1104 = vst [vmem:[#allocation2 + $0xc1] sm:$0xff] %v16676_v45  ;;  %v1944_v24 = vmul.f32 %v16420_v12, %v1911_v28  ;;  %v1945_v8 = vmul.f32 %v16420_v12, %v16689_v56  ;;  %v1654_v49 = vmul.f32 %v1911_v28, %v16397_v55  ;;  %v1365_v1 = vmul.f32 %v1911_v28, %v16358_v21 }
 0x18c   : > { %v1751_v54 = vmul.f32 %v16401_v57, %v1718_v53  ;;  %v920_v13 = vpop.f32.mrf.mxu1  ;;  %v1172_v30 = vmul.f32 %v1718_v53, %v16339_v9  ;;  %v1849_v7 = vmul.f32 %v16411_v6, %v16676_v45 }
 0x18d   : > { %v921_v4 = vadd.f32 %v16278_v48, %v920_v13  ;;  %v1976_v46 = vadd.f32 %v1944_v24, %v1879_v31  ;;  %2161 = vmatmul.f32.gmra.mxu2 %v2075_v63  ;;  %v1461_v48 = vmul.f32 %v1718_v53, %v16374_v34  ;;  %v1686_v61 = vadd.f32 %v1654_v49, %v1589_v26 }
 0x18e   : > { %v1783_v51 = vadd.f32 %v1751_v54, %v1685_v43  ;;  %v1655_v31 = vmul.f32 %v16689_v56, %v16397_v55  ;;  %v1300_v43 = vadd.f32 %v1268_v35, %v1171_v39 }
 0x18f   : > { %v986_v29 = vmax.f32 %v921_v4, 0.0  ;;  %11370 = vmatmul.msk.f32.gmra.mxu1 %vm480_vm0, %v753_v60  ;;  %v2012_v32 = vadd.f32 %v16442_v42, %v1976_v46  ;;  %v1493_v47 = vadd.f32 %v1461_v48, %v1396_v44  ;;  %v1301_v46 = vadd.f32 %v1269_v59, %v1172_v30 }
 0x190   : > { %v1880_v17 = vadd.f32 %v1848_v58, %v1783_v51  ;;  %v1397_v4 = vadd.f32 %v1365_v1, %v1300_v43  ;;  %v1559_v44 = vmul.f32 %v16390_v50, %v16676_v45  ;;  %v1270_v30 = vmul.f32 %v16347_v14, %v16676_v45 }
 0x191   : > { %v16703_v23 = vmin.f32 %v986_v29, 6.0  ;;  %v2044_v0 = vmax.f32 %v2012_v32, 0.0  ;;  %v1590_v40 = vadd.f32 %v1558_v38, %v1493_v47  ;;  %v1366_v29 = vmul.f32 %v16689_v56, %v16358_v21 }
 0x192   : > { %v1977_v52 = vadd.f32 %v1945_v8, %v1880_v17  ;;  %v16706_v25 = vld [vmem:[#allocation2 + $0xc0] sm:$0xff] }
 0x193   : > { %1105 = vst [vmem:[#allocation2 + $0xc9] sm:$0xff] %v16703_v23  ;;  %v2076_v5 = vmin.f32 %v2044_v0, 6.0  ;;  %v1752_v27 = vmul.f32 %v16401_v57, %v16706_v25  ;;  %v1462_v54 = vmul.f32 %v16706_v25, %v16374_v34  ;;  %v1687_v60 = vadd.f32 %v1655_v31, %v1590_v40 }
 0x194   : > { %v923_v36 = vpop.f32.mrf.mxu1  ;;  %v2013_v41 = vadd.f32 %v16442_v42, %v1977_v52  ;;  %v1850_v15 = vmul.f32 %v16411_v6, %v16703_v23  ;;  %v1398_v0 = vadd.f32 %v1366_v29, %v1301_v46  ;;  %v1271_v45 = vmul.f32 %v16347_v14, %v16703_v23 }
 0x195   : > { %v924_v37 = vadd.f32 %v16715_v16, %v923_v36  ;;  %2164 = vmatmul.f32.gmra.mxu2 %v2076_v5  ;;  %v1784_v2 = vadd.f32 %v1752_v27, %v1686_v61  ;;  %v1494_v11 = vadd.f32 %v1462_v54, %v1397_v4 }
 0x196   : > { %v2045_v62 = vmax.f32 %v2013_v41, 0.0 }
 0x197   : > { %v987_v18 = vmax.f32 %v924_v37, 0.0  ;;  %v1881_v28 = vadd.f32 %v1849_v7, %v1784_v2  ;;  %v1591_v47 = vadd.f32 %v1559_v44, %v1494_v11  ;;  %v1173_v2 = vmul.f32 %v16706_v25, %v16339_v9 }
 0x198   : > { %v2077_v3 = vmin.f32 %v2045_v62, 6.0 }
 0x199   : > { %v16726_v33 = vmin.f32 %v987_v18, 6.0  ;;  %v1560_v18 = vmul.f32 %v16390_v50, %v16703_v23 }
 0x19a   : > { %v1913_v20 = vld [vmem:[#allocation2 + $0xc2] sm:$0xff]  ;;  %v16739_v63 = vld [vmem:[#allocation2 + $0xca] sm:$0xff] }
 0x19b   : > { %v1720_v24 = vld [vmem:[#allocation2 + $0xc8] sm:$0xff]  ;;  %1106 = vst [vmem:[#allocation2 + $0xd9] sm:$0xff] %v16726_v33  ;;  %v1946_v53 = vmul.f32 %v16420_v12, %v1913_v20  ;;  %v1947_v10 = vmul.f32 %v16420_v12, %v16739_v63  ;;  %v1656_v26 = vmul.f32 %v1913_v20, %v16397_v55  ;;  %v1367_v7 = vmul.f32 %v1913_v20, %v16358_v21 }
 0x19c   : > { %v1753_v13 = vmul.f32 %v16401_v57, %v1720_v24  ;;  %v926_v22 = vpop.f32.mrf.mxu1  ;;  %v1463_v19 = vmul.f32 %v1720_v24, %v16374_v34  ;;  %v1174_v31 = vmul.f32 %v1720_v24, %v16339_v9  ;;  %v1851_v54 = vmul.f32 %v16411_v6, %v16726_v33 }
 0x19d   : > { %v927_v51 = vadd.f32 %v16715_v16, %v926_v22  ;;  %v1978_v58 = vadd.f32 %v1946_v53, %v1881_v28  ;;  %2167 = vmatmul.f32.gmra.mxu2 %v2077_v3  ;;  %v1688_v39 = vadd.f32 %v1656_v26, %v1591_v47  ;;  %v1657_v59 = vmul.f32 %v16739_v63, %v16397_v55 }
 0x19e   : > { %v1785_v8 = vadd.f32 %v1753_v13, %v1687_v60  ;;  %v1495_v41 = vadd.f32 %v1463_v19, %v1398_v0  ;;  %v1302_v53 = vadd.f32 %v1270_v30, %v1173_v2  ;;  %v1561_v0 = vmul.f32 %v16390_v50, %v16726_v33  ;;  %v11381_v2 = vld [vmem:[%s23849_s9 + $0x8] sm:$0xf]  ;;  %v15095_v30 = vld [vmem:[%s23849_s9 + $0xc] sm:$0xf] }
 0x19f   : > { %v988_v32 = vmax.f32 %v927_v51, 0.0  ;;  %v2014_v17 = vadd.f32 %v16442_v42, %v1978_v58  ;;  %v1303_v58 = vadd.f32 %v1271_v45, %v1174_v31  ;;  %v11383_v31 = vld [vmem:[%s23849_s9 + $0x30] sm:$0xf0] }
 0x1a0   : > { %v1882_v48 = vadd.f32 %v1850_v15, %v1785_v8  ;;  %v1592_v35 = vadd.f32 %v1560_v18, %v1495_v41  ;;  %v1399_v51 = vadd.f32 %v1367_v7, %v1302_v53  ;;  %v15099_v18 = vld [vmem:[%s23849_s9 + $0x24] sm:$0xf0]  ;;  %v11386_v45 = vor.u32 %v15095_v30, %v11383_v31 }
 0x1a1   : > { %v16752_v52 = vmin.f32 %v988_v32, 6.0  ;;  %v2046_v49 = vmax.f32 %v2014_v17, 0.0  ;;  %v1368_v32 = vmul.f32 %v16739_v63, %v16358_v21 }
 0x1a2   : > { %v1979_v5 = vadd.f32 %v1947_v10, %v1882_v48  ;;  %v16755_v27 = vld [vmem:[#allocation2 + $0xd8] sm:$0xff]  ;;  %v1689_v13 = vadd.f32 %v1657_v59, %v1592_v35  ;;  %2654 = vmatpush.bf16.msra.mxu1 %v11386_v45 }
 0x1a3   : > { %1107 = vst [vmem:[#allocation2 + $0xe1] sm:$0xff] %v16752_v52  ;;  %v2078_v56 = vmin.f32 %v2046_v49, 6.0  ;;  %v1754_v36 = vmul.f32 %v16401_v57, %v16755_v27  ;;  %v1464_v60 = vmul.f32 %v16755_v27, %v16374_v34  ;;  %v1852_v23 = vmul.f32 %v16411_v6, %v16752_v52 }
 0x1a4   : > { %v929_v37 = vpop.f32.mrf.mxu1  ;;  %v2015_v61 = vadd.f32 %v16442_v42, %v1979_v5  ;;  %v1400_v49 = vadd.f32 %v1368_v32, %v1303_v58  ;;  %v1562_v35 = vmul.f32 %v16390_v50, %v16752_v52 }
 0x1a5   : > { %v930_v38 = vadd.f32 %v16715_v16, %v929_v37  ;;  %2170 = vmatmul.f32.gmra.mxu2 %v2078_v56  ;;  %v1786_v62 = vadd.f32 %v1754_v36, %v1688_v39  ;;  %v1496_v29 = vadd.f32 %v1464_v60, %v1399_v51  ;;  %v11373_v39 = vld [vmem:[%s23849_s9] sm:$0xf] }
 0x1a6   : > { %v2047_v1 = vmax.f32 %v2015_v61, 0.0 }
 0x1a7   : > { %v989_v40 = vmax.f32 %v930_v38, 0.0  ;;  %v1883_v20 = vadd.f32 %v1851_v54, %v1786_v62  ;;  %v1593_v36 = vadd.f32 %v1561_v0, %v1496_v29  ;;  %v1175_v54 = vmul.f32 %v16755_v27, %v16339_v9 }
 0x1a8   : > { %v2079_v46 = vmin.f32 %v2047_v1, 6.0  ;;  %v11374_v1 = vor.u32 %v15099_v18, %v11373_v39 }
 0x1a9   : > { %v16770_v43 = vmin.f32 %v989_v40, 6.0 }
 0x1aa   : > { %v1915_v25 = vld [vmem:[#allocation2 + $0xda] sm:$0xff]  ;;  %v16783_v3 = vld [vmem:[#allocation2 + $0xe2] sm:$0xff]  ;;  %2387 = vmatpush.bf16.msra.mxu3 %v11374_v1 }
 0x1ab   : > { %v1722_v28 = vld [vmem:[#allocation2 + $0xe0] sm:$0xff]  ;;  %1108 = vst [vmem:[#allocation2 + $0xf1] sm:$0xff] %v16770_v43  ;;  %v1948_v24 = vmul.f32 %v16420_v12, %v1915_v25  ;;  %v1949_v11 = vmul.f32 %v16420_v12, %v16783_v3  ;;  %v1658_v12 = vmul.f32 %v1915_v25, %v16397_v55  ;;  %v1659_v27 = vmul.f32 %v16783_v3, %v16397_v55 }
 0x1ac   : > { %v1755_v22 = vmul.f32 %v16401_v57, %v1722_v28  ;;  %v932_v4 = vpop.f32.mrf.mxu1  ;;  %v1465_v44 = vmul.f32 %v1722_v28, %v16374_v34 }
 0x1ad   : > { %v933_v8 = vadd.f32 %v16715_v16, %v932_v4  ;;  %v1980_v15 = vadd.f32 %v1948_v24, %v1883_v20  ;;  %2173 = vmatmul.f32.gmra.mxu2 %v2079_v46  ;;  %v1690_v62 = vadd.f32 %v1658_v12, %v1593_v36  ;;  %v1272_v24 = vmul.f32 %v16347_v14, %v16726_v33  ;;  %v16862_v36 = vld [vmem:[%s23846_s6] ss:$0 sm:$0xff] }
 0x1ae   : > { %v1787_v10 = vadd.f32 %v1755_v22, %v1689_v13  ;;  %v1497_v37 = vadd.f32 %v1465_v44, %v1400_v49  ;;  %v1369_v13 = vmul.f32 %v1915_v25, %v16358_v21  ;;  %v1176_v22 = vmul.f32 %v1722_v28, %v16339_v9  ;;  %v16846_v28 = vld [vmem:[%s23845_s5 + $0x8] ss:$0 sm:$0xff] }
 0x1af   : > { %v990_v17 = vmax.f32 %v933_v8, 0.0  ;;  %v2016_v48 = vadd.f32 %v16442_v42, %v1980_v15  ;;  %v1853_v46 = vmul.f32 %v16411_v6, %v16770_v43  ;;  %v1304_v8 = vadd.f32 %v1272_v24, %v1175_v54 }
 0x1b0   : > { %v1884_v19 = vadd.f32 %v1852_v23, %v1787_v10  ;;  %v1594_v60 = vadd.f32 %v1562_v35, %v1497_v37  ;;  %v1273_v33 = vmul.f32 %v16347_v14, %v16752_v52  ;;  %v1370_v12 = vmul.f32 %v16783_v3, %v16358_v21 }
 0x1b1   : > { %v16796_v5 = vmin.f32 %v990_v17, 6.0  ;;  %v2048_v26 = vmax.f32 %v2016_v48, 0.0  ;;  %v1401_v48 = vadd.f32 %v1369_v13, %v1304_v8 }
 0x1b2   : > { %v1981_v56 = vadd.f32 %v1949_v11, %v1884_v19  ;;  %v16799_v47 = vld [vmem:[#allocation2 + $0xf0] sm:$0xff]  ;;  %v1691_v23 = vadd.f32 %v1659_v27, %v1594_v60  ;;  %v1305_v19 = vadd.f32 %v1273_v33, %v1176_v22  ;;  %v1274_v22 = vmul.f32 %v16347_v14, %v16770_v43 }
 0x1b3   : > { %1109 = vst [vmem:[#allocation2 + $0xf9] sm:$0xff] %v16796_v5  ;;  %v2080_v63 = vmin.f32 %v2048_v26, 6.0  ;;  %v1756_v41 = vmul.f32 %v16401_v57, %v16799_v47  ;;  %v1466_v15 = vmul.f32 %v16799_v47, %v16374_v34  ;;  %v1854_v49 = vmul.f32 %v16411_v6, %v16796_v5 }
 0x1b4   : > { %v935_v61 = vpop.f32.mrf.mxu1  ;;  %v2017_v38 = vadd.f32 %v16442_v42, %v1981_v56  ;;  %v15100_v42 = vld [vmem:[%s23849_s9 + $0x2c] sm:$0xf0]  ;;  %v1402_v39 = vadd.f32 %v1370_v12, %v1305_v19  ;;  %v1177_v60 = vmul.f32 %v16799_v47, %v16339_v9  ;;  %v16907_v12 = vld [vmem:[%s23848_s8] ss:$0 sm:$0xff] }
 0x1b5   : > { %v936_v40 = vadd.f32 %v16715_v16, %v935_v61  ;;  %2176 = vmatmul.f32.gmra.mxu2 %v2080_v63  ;;  %v11382_v7 = vor.u32 %v15100_v42, %v11381_v2  ;;  %v1788_v53 = vadd.f32 %v1756_v41, %v1690_v62  ;;  %v1498_v56 = vadd.f32 %v1466_v15, %v1401_v48 }
 0x1b6   : > { %v2049_v20 = vmax.f32 %v2017_v38, 0.0  ;;  %v1563_v38 = vmul.f32 %v16390_v50, %v16770_v43  ;;  %v1275_v43 = vmul.f32 %v16347_v14, %v16796_v5 }
 0x1b7   : > { %v991_v59 = vmax.f32 %v936_v40, 0.0  ;;  %2565 = vmatpush.bf16.msrb.mxu0 %v11382_v7  ;;  %v1885_v25 = vadd.f32 %v1853_v46, %v1788_v53  ;;  %v1564_v53 = vmul.f32 %v16390_v50, %v16796_v5 }
 0x1b8   : > { %v2081_v17 = vmin.f32 %v2049_v20, 6.0  ;;  %v1595_v1 = vadd.f32 %v1563_v38, %v1498_v56 }
 0x1b9   : > { %v16832_v4 = vmin.f32 %v991_v59, 6.0 }
 0x1ba   : > { %v1917_v51 = vld [vmem:[#allocation2 + $0xf2] sm:$0xff]  ;;  %v16850_v29 = vld [vmem:[#allocation2 + $0xfa] sm:$0xff] }
 0x1bb   : > { %v1724_v58 = vld [vmem:[#allocation2 + $0xf8] sm:$0xff]  ;;  %1110 = vst [vmem:[#allocation2 + $0x109] sm:$0xff] %v16832_v4  ;;  %v1950_v10 = vmul.f32 %v16846_v28, %v1917_v51  ;;  %v1951_v26 = vmul.f32 %v16846_v28, %v16850_v29  ;;  %v1660_v3 = vmul.f32 %v1917_v51, %v16397_v55  ;;  %v1371_v46 = vmul.f32 %v1917_v51, %v16358_v21 }
 0x1bc   : > { %v1757_v11 = vmul.f32 %v16401_v57, %v1724_v58  ;;  %v938_v32 = vpop.f32.mrf.mxu1  ;;  %v1467_v61 = vmul.f32 %v1724_v58, %v16374_v34  ;;  %v1178_v27 = vmul.f32 %v1724_v58, %v16339_v9  ;;  %v1855_v33 = vmul.f32 %v16411_v6, %v16832_v4 }
 0x1bd   : > { %v939_v52 = vadd.f32 %v16715_v16, %v938_v32  ;;  %v1982_v44 = vadd.f32 %v1950_v10, %v1885_v25  ;;  %2179 = vmatmul.f32.gmra.mxu2 %v2081_v17  ;;  %v1692_v59 = vadd.f32 %v1660_v3, %v1595_v1  ;;  %v1661_v47 = vmul.f32 %v16850_v29, %v16397_v55 }
 0x1be   : > { %v1789_v0 = vadd.f32 %v1757_v11, %v1691_v23  ;;  %v1499_v30 = vadd.f32 %v1467_v61, %v1402_v39  ;;  %v1306_v23 = vadd.f32 %v1274_v22, %v1177_v60 }
 0x1bf   : > { %v992_v63 = vmax.f32 %v939_v52, 0.0  ;;  %v2018_v41 = vadd.f32 %v16862_v36, %v1982_v44 }
 0x1c0   : > { %v1886_v37 = vadd.f32 %v1854_v49, %v1789_v0  ;;  %v1596_v24 = vadd.f32 %v1564_v53, %v1499_v30  ;;  %v1403_v44 = vadd.f32 %v1371_v46, %v1306_v23  ;;  %v1307_v0 = vadd.f32 %v1275_v43, %v1178_v27 }
 0x1c1   : > { %v16868_v18 = vmin.f32 %v992_v63, 6.0  ;;  %v2050_v2 = vmax.f32 %v2018_v41, 0.0  ;;  %v1276_v43 = vmul.f32 %v16347_v14, %v16832_v4 }
 0x1c2   : > { %v1983_v40 = vadd.f32 %v1951_v26, %v1886_v37  ;;  %v16871_v62 = vld [vmem:[#allocation2 + $0x108] sm:$0xff]  ;;  %v1693_v32 = vadd.f32 %v1661_v47, %v1596_v24  ;;  %v1372_v37 = vmul.f32 %v16850_v29, %v16358_v21 }
 0x1c3   : > { %1111 = vst [vmem:[#allocation2 + $0x111] sm:$0xff] %v16868_v18  ;;  %v2082_v35 = vmin.f32 %v2050_v2, 6.0  ;;  %v1758_v42 = vmul.f32 %v16401_v57, %v16871_v62  ;;  %v1468_v11 = vmul.f32 %v16871_v62, %v16374_v34  ;;  %v1856_v5 = vmul.f32 %v16411_v6, %v16868_v18 }
 0x1c4   : > { %v941_v7 = vpop.f32.mrf.mxu1  ;;  %v2019_v31 = vadd.f32 %v16862_v36, %v1983_v40  ;;  %v1565_v40 = vmul.f32 %v16390_v50, %v16832_v4  ;;  %v1404_v3 = vadd.f32 %v1372_v37, %v1307_v0  ;;  %v1566_v27 = vmul.f32 %v16390_v50, %v16868_v18 }
 0x1c5   : > { %v942_v54 = vadd.f32 %v16715_v16, %v941_v7  ;;  %2182 = vmatmul.f32.gmra.mxu2 %v2082_v35  ;;  %v1790_v20 = vadd.f32 %v1758_v42, %v1692_v59  ;;  %v1500_v41 = vadd.f32 %v1468_v11, %v1403_v44  ;;  %v1277_v4 = vmul.f32 %v16347_v14, %v16868_v18 }
 0x1c6   : > { %v2051_v13 = vmax.f32 %v2019_v31, 0.0 }
 0x1c7   : > { %v993_v45 = vmax.f32 %v942_v54, 0.0  ;;  %v1887_v51 = vadd.f32 %v1855_v33, %v1790_v20  ;;  %v1597_v53 = vadd.f32 %v1565_v40, %v1500_v41 }
 0x1c8   : > { %v2135_v15 = vpop.f32.mrf.mxu2  ;;  %v2083_v52 = vmin.f32 %v2051_v13, 6.0 }
 0x1c9   : > { %v16886_v8 = vmin.f32 %v993_v45, 6.0  ;;  %v2136_v31 = vadd.f32 %v16907_v12, %v2135_v15  ;;  %v1179_v15 = vmul.f32 %v16871_v62, %v16339_v9 }
 0x1ca   : > { %v1919_v25 = vld [vmem:[#allocation2 + $0x10a] sm:$0xff]  ;;  %v16899_v48 = vld [vmem:[#allocation2 + $0x112] sm:$0xff] }
 0x1cb   : > { %v1726_v10 = vld [vmem:[#allocation2 + $0x110] sm:$0xff]  ;;  %1112 = vst [vmem:[#allocation2 + $0x121] sm:$0xff] %v16886_v8  ;;  %v1952_v58 = vmul.f32 %v16846_v28, %v1919_v25  ;;  %v1953_v63 = vmul.f32 %v16846_v28, %v16899_v48  ;;  %v1662_v7 = vmul.f32 %v1919_v25, %v16397_v55  ;;  %v1308_v0 = vadd.f32 %v1276_v43, %v1179_v15 }
 0x1cc   : > { %v1759_v17 = vmul.f32 %v16401_v57, %v1726_v10  ;;  %v944_v19 = vpop.f32.mrf.mxu1  ;;  %v1469_v2 = vmul.f32 %v1726_v10, %v16374_v34 }
 0x1cd   : > { %v945_v49 = vadd.f32 %v16715_v16, %v944_v19  ;;  %v1984_v26 = vadd.f32 %v1952_v58, %v1887_v51  ;;  %2185 = vmatmul.f32.gmra.mxu2 %v2083_v52  ;;  %v1694_v46 = vadd.f32 %v1662_v7, %v1597_v53  ;;  %v1373_v51 = vmul.f32 %v1919_v25, %v16358_v21 }
 0x1ce   : > { %v1791_v56 = vadd.f32 %v1759_v17, %v1693_v32  ;;  %v1501_v45 = vadd.f32 %v1469_v2, %v1404_v3  ;;  %v1180_v58 = vmul.f32 %v1726_v10, %v16339_v9  ;;  %v1857_v17 = vmul.f32 %v16411_v6, %v16886_v8 }
 0x1cf   : > { %v994_v61 = vmax.f32 %v945_v49, 0.0  ;;  %v2020_v38 = vadd.f32 %v16862_v36, %v1984_v26  ;;  %v1663_v19 = vmul.f32 %v16899_v48, %v16397_v55  ;;  %v1405_v37 = vadd.f32 %v1373_v51, %v1308_v0 }
 0x1d0   : > { %v1888_v39 = vadd.f32 %v1856_v5, %v1791_v56  ;;  %v2138_v1 = vpop.f32.mrf.mxu2  ;;  %v1598_v23 = vadd.f32 %v1566_v27, %v1501_v45 }
 0x1d1   : > { %v16917_v35 = vmin.f32 %v994_v61, 6.0  ;;  %v2052_v42 = vmax.f32 %v2020_v38, 0.0  ;;  %v2139_v29 = vadd.f32 %v16907_v12, %v2138_v1  ;;  %v1309_v61 = vadd.f32 %v1277_v4, %v1180_v58 }
 0x1d2   : > { %v1985_v30 = vadd.f32 %v1953_v63, %v1888_v39  ;;  %v16922_v54 = vld [vmem:[#allocation2 + $0x120] sm:$0xff]  ;;  %v1695_v26 = vadd.f32 %v1663_v19, %v1598_v23  ;;  %v1374_v1 = vmul.f32 %v16899_v48, %v16358_v21 }
 0x1d3   : > { %1113 = vst [vmem:[#allocation2 + $0x129] sm:$0xff] %v16917_v35  ;;  %v2084_v59 = vmin.f32 %v2052_v42, 6.0  ;;  %v1760_v60 = vmul.f32 %v16401_v57, %v16922_v54  ;;  %v16927_v20 = vpack.c.bf16 %v2139_v29, %v2136_v31  ;;  %v1470_v49 = vmul.f32 %v16922_v54, %v16374_v34 }
 0x1d4   : > { %v947_v24 = vpop.f32.mrf.mxu1  ;;  %v2021_v13 = vadd.f32 %v16862_v36, %v1985_v30  ;;  %v1858_v18 = vmul.f32 %v16411_v6, %v16917_v35  ;;  %v1567_v29 = vmul.f32 %v16390_v50, %v16886_v8 }
 0x1d5   : > { %v948_v22 = vadd.f32 %v16715_v16, %v947_v24  ;;  %2188 = vmatmul.f32.gmra.mxu2 %v2084_v59  ;;  %11411 = vmatmul.msk.bf16.vlgmr.msra.gmra.mxu3 %vm2331_vm1, %v16927_v20  ;;  %v1792_v47 = vadd.f32 %v1760_v60, %v1694_v46  ;;  %v1502_v3 = vadd.f32 %v1470_v49, %v1405_v37 }
 0x1d6   : > { %11443 = vmatmul.msk.bf16.vlgmr.msrb.gmra.mxu0 %vm2331_vm1, %v16927_v20  ;;  %11459 = vmatmul.msk.bf16.vlgmr.msra.gmra.mxu1 %vm2331_vm1, %v16927_v20  ;;  %v2053_v11 = vmax.f32 %v2021_v13, 0.0  ;;  %v1406_v59 = vadd.f32 %v1374_v1, %v1309_v61 }
 0x1d7   : > { %v995_v33 = vmax.f32 %v948_v22, 0.0  ;;  %v1889_v25 = vadd.f32 %v1857_v17, %v1792_v47  ;;  %v1599_v15 = vadd.f32 %v1567_v29, %v1502_v3  ;;  %v1181_v17 = vmul.f32 %v16922_v54, %v16339_v9 }
 0x1d8   : > { %v2141_v62 = vpop.f32.mrf.mxu2  ;;  %v2085_v41 = vmin.f32 %v2053_v11, 6.0 }
 0x1d9   : > { %v16945_v32 = vmin.f32 %v995_v33, 6.0  ;;  %v2142_v22 = vadd.f32 %v16907_v12, %v2141_v62  ;;  %v1568_v62 = vmul.f32 %v16390_v50, %v16917_v35 }
 0x1da   : > { %v1921_v52 = vld [vmem:[#allocation2 + $0x122] sm:$0xff]  ;;  %v16958_v5 = vld [vmem:[#allocation2 + $0x12a] sm:$0xff] }
 0x1db   : > { %v1728_v44 = vld [vmem:[#allocation2 + $0x128] sm:$0xff]  ;;  %1114 = vst [vmem:[#allocation2 + $0x139] sm:$0xff] %v16945_v32  ;;  %v1954_v10 = vmul.f32 %v16846_v28, %v1921_v52  ;;  %v1955_v40 = vmul.f32 %v16846_v28, %v16958_v5  ;;  %v1664_v13 = vmul.f32 %v1921_v52, %v16397_v55 }
 0x1dc   : > { %v1761_v56 = vmul.f32 %v16401_v57, %v1728_v44  ;;  %v950_v63 = vpop.f32.mrf.mxu1  ;;  %v1471_v31 = vmul.f32 %v1728_v44, %v16374_v34 }
 0x1dd   : > { %v951_v38 = vadd.f32 %v16715_v16, %v950_v63  ;;  %v1986_v39 = vadd.f32 %v1954_v10, %v1889_v25  ;;  %2191 = vmatmul.f32.gmra.mxu2 %v2085_v41  ;;  %v1696_v58 = vadd.f32 %v1664_v13, %v1599_v15  ;;  %v1278_v25 = vmul.f32 %v16347_v14, %v16886_v8 }
 0x1de   : > { %v1793_v2 = vadd.f32 %v1761_v56, %v1695_v26  ;;  %v1503_v47 = vadd.f32 %v1471_v31, %v1406_v59  ;;  %v1375_v10 = vmul.f32 %v1921_v52, %v16358_v21  ;;  %v1182_v26 = vmul.f32 %v1728_v44, %v16339_v9 }
 0x1df   : > { %v996_v42 = vmax.f32 %v951_v38, 0.0  ;;  %v2022_v30 = vadd.f32 %v16862_v36, %v1986_v39  ;;  %v1859_v63 = vmul.f32 %v16411_v6, %v16945_v32  ;;  %v1665_v41 = vmul.f32 %v16958_v5, %v16397_v55 }
 0x1e0   : > { %v1890_v7 = vadd.f32 %v1858_v18, %v1793_v2  ;;  %v2144_v60 = vpop.f32.mrf.mxu2  ;;  %v1600_v49 = vadd.f32 %v1568_v62, %v1503_v47  ;;  %v1310_v38 = vadd.f32 %v1278_v25, %v1181_v17  ;;  %v1279_v8 = vmul.f32 %v16347_v14, %v16917_v35 }
 0x1e1   : > { %v16971_v53 = vmin.f32 %v996_v42, 6.0  ;;  %v2054_v45 = vmax.f32 %v2022_v30, 0.0  ;;  %v2145_v48 = vadd.f32 %v16907_v12, %v2144_v60 }
 0x1e2   : > { %v1987_v24 = vadd.f32 %v1955_v40, %v1890_v7  ;;  %v16976_v46 = vld [vmem:[#allocation2 + $0x138] sm:$0xff]  ;;  %v1697_v2 = vadd.f32 %v1665_v41, %v1600_v49  ;;  %v1407_v42 = vadd.f32 %v1375_v10, %v1310_v38  ;;  %v1311_v30 = vadd.f32 %v1279_v8, %v1182_v26 }
 0x1e3   : > { %1115 = vst [vmem:[#allocation2 + $0x141] sm:$0xff] %v16971_v53  ;;  %v2086_v27 = vmin.f32 %v2054_v45, 6.0  ;;  %v1762_v33 = vmul.f32 %v16401_v57, %v16976_v46  ;;  %v16981_v23 = vpack.c.bf16 %v2145_v48, %v2142_v22  ;;  %v1472_v39 = vmul.f32 %v16976_v46, %v16374_v34 }
 0x1e4   : > { %v953_v11 = vpop.f32.mrf.mxu1  ;;  %v2023_v43 = vadd.f32 %v16862_v36, %v1987_v24  ;;  %v1860_v35 = vmul.f32 %v16411_v6, %v16971_v53  ;;  %v1376_v45 = vmul.f32 %v16958_v5, %v16358_v21  ;;  %v1183_v41 = vmul.f32 %v16976_v46, %v16339_v9 }
 0x1e5   : > { %v954_v51 = vadd.f32 %v16715_v16, %v953_v11  ;;  %2194 = vmatmul.f32.gmra.mxu2 %v2086_v27  ;;  %11412 = vmatmul.msk.bf16.gmra.mxu3 %vm2331_vm1, %v16981_v23  ;;  %v1794_v0 = vadd.f32 %v1762_v33, %v1696_v58  ;;  %v1504_v60 = vadd.f32 %v1472_v39, %v1407_v42 }
 0x1e6   : > { %11444 = vmatmul.msk.bf16.gmra.mxu0 %vm2331_vm1, %v16981_v23  ;;  %11460 = vmatmul.msk.bf16.gmra.mxu1 %vm2331_vm1, %v16981_v23  ;;  %v2055_v4 = vmax.f32 %v2023_v43, 0.0  ;;  %v1569_v27 = vmul.f32 %v16390_v50, %v16945_v32  ;;  %v1408_v15 = vadd.f32 %v1376_v45, %v1311_v30 }
 0x1e7   : > { %v997_v19 = vmax.f32 %v954_v51, 0.0  ;;  %v1891_v52 = vadd.f32 %v1859_v63, %v1794_v0  ;;  %v1570_v63 = vmul.f32 %v16390_v50, %v16971_v53 }
 0x1e8   : > { %v2147_v54 = vpop.f32.mrf.mxu2  ;;  %v2087_v1 = vmin.f32 %v2055_v4, 6.0 }
 0x1e9   : > { %v16999_v56 = vmin.f32 %v997_v19, 6.0  ;;  %v2148_v58 = vadd.f32 %v16907_v12, %v2147_v54  ;;  %v1601_v19 = vadd.f32 %v1569_v27, %v1504_v60 }
 0x1ea   : > { %v1923_v37 = vld [vmem:[#allocation2 + $0x13a] sm:$0xff]  ;;  %v17012_v40 = vld [vmem:[#allocation2 + $0x142] sm:$0xff] }
 0x1eb   : > { %v1730_v61 = vld [vmem:[#allocation2 + $0x140] sm:$0xff]  ;;  %1116 = vst [vmem:[#allocation2 + $0x151] sm:$0xff] %v16999_v56  ;;  %v1956_v44 = vmul.f32 %v16846_v28, %v1923_v37  ;;  %v1957_v59 = vmul.f32 %v16846_v28, %v17012_v40  ;;  %v1666_v51 = vmul.f32 %v1923_v37, %v16397_v55  ;;  %v1667_v42 = vmul.f32 %v17012_v40, %v16397_v55 }
 0x1ec   : > { %v1763_v18 = vmul.f32 %v16401_v57, %v1730_v61  ;;  %v956_v3 = vpop.f32.mrf.mxu1  ;;  %v1473_v48 = vmul.f32 %v1730_v61, %v16374_v34 }
 0x1ed   : > { %v957_v7 = vadd.f32 %v16715_v16, %v956_v3  ;;  %v1988_v31 = vadd.f32 %v1956_v44, %v1891_v52  ;;  %2197 = vmatmul.f32.gmra.mxu2 %v2087_v1  ;;  %v1698_v54 = vadd.f32 %v1666_v51, %v1601_v19  ;;  %v1280_v44 = vmul.f32 %v16347_v14, %v16945_v32 }
 0x1ee   : > { %v1795_v29 = vadd.f32 %v1763_v18, %v1697_v2  ;;  %v1505_v49 = vadd.f32 %v1473_v48, %v1408_v15  ;;  %v1377_v2 = vmul.f32 %v1923_v37, %v16358_v21  ;;  %v1184_v18 = vmul.f32 %v1730_v61, %v16339_v9 }
 0x1ef   : > { %v998_v24 = vmax.f32 %v957_v7, 0.0  ;;  %v2024_v13 = vadd.f32 %v16862_v36, %v1988_v31  ;;  %v1861_v1 = vmul.f32 %v16411_v6, %v16999_v56  ;;  %v1312_v31 = vadd.f32 %v1280_v44, %v1183_v41 }
 0x1f0   : > { %v1892_v22 = vadd.f32 %v1860_v35, %v1795_v29  ;;  %v2150_v47 = vpop.f32.mrf.mxu2  ;;  %v1602_v8 = vadd.f32 %v1570_v63, %v1505_v49  ;;  %v1281_v32 = vmul.f32 %v16347_v14, %v16971_v53  ;;  %v1571_v19 = vmul.f32 %v16390_v50, %v16999_v56 }
 0x1f1   : > { %v17025_v33 = vmin.f32 %v998_v24, 6.0  ;;  %v2056_v11 = vmax.f32 %v2024_v13, 0.0  ;;  %v2151_v5 = vadd.f32 %v16907_v12, %v2150_v47  ;;  %v1409_v13 = vadd.f32 %v1377_v2, %v1312_v31 }
 0x1f2   : > { %v1989_v43 = vadd.f32 %v1957_v59, %v1892_v22  ;;  %v17030_v62 = vld [vmem:[#allocation2 + $0x150] sm:$0xff]  ;;  %v1699_v35 = vadd.f32 %v1667_v42, %v1602_v8  ;;  %v1313_v22 = vadd.f32 %v1281_v32, %v1184_v18 }
 0x1f3   : > { %1117 = vst [vmem:[#allocation2 + $0x159] sm:$0xff] %v17025_v33  ;;  %v2088_v17 = vmin.f32 %v2056_v11, 6.0  ;;  %v1764_v0 = vmul.f32 %v16401_v57, %v17030_v62  ;;  %v17035_v4 = vpack.c.bf16 %v2151_v5, %v2148_v58  ;;  %v1474_v29 = vmul.f32 %v17030_v62, %v16374_v34 }
 0x1f4   : > { %v959_v25 = vpop.f32.mrf.mxu1  ;;  %v2025_v10 = vadd.f32 %v16862_v36, %v1989_v43  ;;  %v1862_v53 = vmul.f32 %v16411_v6, %v17025_v33  ;;  %v1378_v43 = vmul.f32 %v17012_v40, %v16358_v21  ;;  %v1572_v31 = vmul.f32 %v16390_v50, %v17025_v33 }
 0x1f5   : > { %23858 = vst [vmem:[#allocation3_spill] sm:$0xff] %v17035_v4  ;;  %v960_v26 = vadd.f32 %v16715_v16, %v959_v25  ;;  %2200 = vmatmul.f32.gmra.mxu2 %v2088_v17  ;;  %11413 = vmatmul.msk.bf16.gmra.mxu3 %vm2331_vm1, %v17035_v4  ;;  %v1796_v39 = vadd.f32 %v1764_v0, %v1698_v54 }
 0x1f6   : > { %11445 = vmatmul.msk.bf16.gmra.mxu0 %vm2331_vm1, %v17035_v4  ;;  %11461 = vmatmul.msk.bf16.gmra.mxu1 %vm2331_vm1, %v17035_v4  ;;  %v2057_v52 = vmax.f32 %v2025_v10, 0.0  ;;  %v1506_v11 = vadd.f32 %v1474_v29, %v1409_v13  ;;  %v1410_v0 = vadd.f32 %v1378_v43, %v1313_v22  ;;  %v1282_v29 = vmul.f32 %v16347_v14, %v16999_v56 }
 0x1f7   : > { %v999_v38 = vmax.f32 %v960_v26, 0.0  ;;  %v1893_v37 = vadd.f32 %v1861_v1, %v1796_v39  ;;  %v1185_v1 = vmul.f32 %v17030_v62, %v16339_v9 }
 0x1f8   : > { %v2153_v46 = vpop.f32.mrf.mxu2  ;;  %v2089_v24 = vmin.f32 %v2057_v52, 6.0  ;;  %v1603_v39 = vadd.f32 %v1571_v19, %v1506_v11 }
 0x1f9   : > { %v17053_v3 = vmin.f32 %v999_v38, 6.0  ;;  %v2154_v63 = vadd.f32 %v16907_v12, %v2153_v46 }
 0x1fa   : > { %v1925_v30 = vld [vmem:[#allocation2 + $0x152] sm:$0xff]  ;;  %v17066_v60 = vld [vmem:[#allocation2 + $0x15a] sm:$0xff] }
 0x1fb   : > { %v1732_v7 = vld [vmem:[#allocation2 + $0x158] sm:$0xff]  ;;  %1118 = vst [vmem:[#allocation2 + $0x169] sm:$0xff] %v17053_v3  ;;  %v1958_v61 = vmul.f32 %v16846_v28, %v1925_v30  ;;  %v1959_v47 = vmul.f32 %v16846_v28, %v17066_v60  ;;  %v1668_v54 = vmul.f32 %v1925_v30, %v16397_v55  ;;  %v1379_v32 = vmul.f32 %v1925_v30, %v16358_v21 }
 0x1fc   : > { %v1765_v59 = vmul.f32 %v16401_v57, %v1732_v7  ;;  %v962_v45 = vpop.f32.mrf.mxu1  ;;  %v1475_v17 = vmul.f32 %v1732_v7, %v16374_v34  ;;  %v1863_v30 = vmul.f32 %v16411_v6, %v17053_v3  ;;  %v1669_v22 = vmul.f32 %v17066_v60, %v16397_v55 }
 0x1fd   : > { %v963_v48 = vadd.f32 %v16715_v16, %v962_v45  ;;  %v1990_v27 = vadd.f32 %v1958_v61, %v1893_v37  ;;  %2203 = vmatmul.f32.gmra.mxu2 %v2089_v24  ;;  %v1700_v42 = vadd.f32 %v1668_v54, %v1603_v39  ;;  %v1186_v24 = vmul.f32 %v1732_v7, %v16339_v9 }
 0x1fe   : > { %v1797_v15 = vadd.f32 %v1765_v59, %v1699_v35  ;;  %v1507_v52 = vadd.f32 %v1475_v17, %v1410_v0  ;;  %v1314_v59 = vadd.f32 %v1282_v29, %v1185_v1  ;;  %v1573_v19 = vmul.f32 %v16390_v50, %v17053_v3 }
 0x1ff   : > { %v1000_v51 = vmax.f32 %v963_v48, 0.0  ;;  %v2026_v58 = vadd.f32 %v16862_v36, %v1990_v27  ;;  %v1284_v1 = vmul.f32 %v16347_v14, %v17053_v3 }
 0x200   : > { %v1894_v5 = vadd.f32 %v1862_v53, %v1797_v15  ;;  %v2156_v25 = vpop.f32.mrf.mxu2  ;;  %v1604_v61 = vadd.f32 %v1572_v31, %v1507_v52  ;;  %v1411_v15 = vadd.f32 %v1379_v32, %v1314_v59  ;;  %v1283_v53 = vmul.f32 %v16347_v14, %v17025_v33 }
 0x201   : > { %v17079_v49 = vmin.f32 %v1000_v51, 6.0  ;;  %v2058_v10 = vmax.f32 %v2026_v58, 0.0  ;;  %v2157_v40 = vadd.f32 %v16907_v12, %v2156_v25 }
 0x202   : > { %v1991_v26 = vadd.f32 %v1959_v47, %v1894_v5  ;;  %v1733_v41 = vld [vmem:[#allocation2 + $0x168] sm:$0xff]  ;;  %v1701_v11 = vadd.f32 %v1669_v22, %v1604_v61  ;;  %v1315_v0 = vadd.f32 %v1283_v53, %v1186_v24 }
 0x203   : > { %1119 = vst [vmem:[#allocation2 + $0x171] sm:$0xff] %v17079_v49  ;;  %v2090_v38 = vmin.f32 %v2058_v10, 6.0  ;;  %v1766_v8 = vmul.f32 %v16401_v57, %v1733_v41  ;;  %v17086_v44 = vpack.c.bf16 %v2157_v40, %v2154_v63  ;;  %v1476_v45 = vmul.f32 %v1733_v41, %v16374_v34 }
 0x204   : > { %v965_v2 = vpop.f32.mrf.mxu1  ;;  %v2027_v18 = vadd.f32 %v16862_v36, %v1991_v26  ;;  %v1864_v26 = vmul.f32 %v16411_v6, %v17079_v49  ;;  %v1380_v63 = vmul.f32 %v17066_v60, %v16358_v21  ;;  %v1574_v61 = vmul.f32 %v16390_v50, %v17079_v49 }
 0x205   : > { %23859 = vst [vmem:[#allocation4_spill] sm:$0xff] %v17086_v44  ;;  %v966_v46 = vadd.f32 %v16715_v16, %v965_v2  ;;  %2206 = vmatmul.f32.gmra.mxu2 %v2090_v38  ;;  %11414 = vmatmul.msk.bf16.gmra.mxu3 %vm2331_vm1, %v17086_v44  ;;  %v1798_v62 = vadd.f32 %v1766_v8, %v1700_v42 }
 0x206   : > { %11446 = vmatmul.msk.bf16.gmra.mxu0 %vm2331_vm1, %v17086_v44  ;;  %11462 = vmatmul.msk.bf16.gmra.mxu1 %vm2331_vm1, %v17086_v44  ;;  %v2059_v35 = vmax.f32 %v2027_v18, 0.0  ;;  %v1508_v17 = vadd.f32 %v1476_v45, %v1411_v15  ;;  %v1187_v38 = vmul.f32 %v1733_v41, %v16339_v9  ;;  %v1412_v18 = vadd.f32 %v1380_v63, %v1315_v0 }
 0x207   : > { %v1001_v37 = vmax.f32 %v966_v46, 0.0  ;;  %v1895_v47 = vadd.f32 %v1863_v30, %v1798_v62 }
 0x208   : > { %v2159_v56 = vpop.f32.mrf.mxu2  ;;  %v2091_v5 = vmin.f32 %v2059_v35, 6.0  ;;  %v1605_v2 = vadd.f32 %v1573_v19, %v1508_v17  ;;  %v1316_v45 = vadd.f32 %v1284_v1, %v1187_v38 }
 0x209   : > { %v17105_v13 = vmin.f32 %v1001_v37, 6.0  ;;  %v2160_v32 = vadd.f32 %v16907_v12, %v2159_v56 }
 0x20a   : > { %v1927_v48 = vld [vmem:[#allocation2 + $0x16a] sm:$0xff]  ;;  %v1928_v51 = vld [vmem:[#allocation2 + $0x172] sm:$0xff] }
 0x20b   : > { %v1734_v27 = vld [vmem:[#allocation2 + $0x170] sm:$0xff]  ;;  %1120 = vst [vmem:[#allocation2 + $0x181] sm:$0xff] %v17105_v13  ;;  %v1960_v7 = vmul.f32 %v16846_v28, %v1927_v48  ;;  %v1961_v54 = vmul.f32 %v16846_v28, %v1928_v51  ;;  %v1381_v60 = vmul.f32 %v1927_v48, %v16358_v21  ;;  %v1382_v0 = vmul.f32 %v1928_v51, %v16358_v21 }
 0x20c   : > { %v1767_v43 = vmul.f32 %v16401_v57, %v1734_v27  ;;  %v968_v58 = vpop.f32.mrf.mxu1  ;;  %v1477_v40 = vmul.f32 %v1734_v27, %v16374_v34  ;;  %v1188_v56 = vmul.f32 %v1734_v27, %v16339_v9  ;;  %v1865_v9 = vmul.f32 %v16411_v6, %v17105_v13 }
 0x20d   : > { %v969_v25 = vadd.f32 %v16715_v16, %v968_v58  ;;  %v1992_v10 = vadd.f32 %v1960_v7, %v1895_v47  ;;  %2209 = vmatmul.f32.gmra.mxu2 %v2091_v5  ;;  %v1670_v16 = vmul.f32 %v1927_v48, %v16397_v55  ;;  %v1413_v48 = vadd.f32 %v1381_v60, %v1316_v45  ;;  %v1931_v60 = vld [vmem:[#allocation2 + $0x19a] sm:$0xff] }
 0x20e   : > { %v1799_v33 = vadd.f32 %v1767_v43, %v1701_v11  ;;  %v1509_v62 = vadd.f32 %v1477_v40, %v1412_v18  ;;  %v1285_v47 = vmul.f32 %v16347_v14, %v17079_v49  ;;  %v1671_v27 = vmul.f32 %v1928_v51, %v16397_v55  ;;  %v16010_v40 = vld [vmem:[#allocation2] sm:$0xff] }
 0x20f   : > { %v1002_v39 = vmax.f32 %v969_v25, 0.0  ;;  %v2028_v8 = vadd.f32 %v16862_v36, %v1992_v10  ;;  %v1702_v59 = vadd.f32 %v1670_v16, %v1605_v2  ;;  %v1575_v5 = vmul.f32 %v16390_v50, %v17105_v13  ;;  %v1834_v51 = vld [vmem:[#allocation2 + $0x199] sm:$0xff] }
 0x210   : > { %v1896_v52 = vadd.f32 %v1864_v26, %v1799_v33  ;;  %v2162_v42 = vpop.f32.mrf.mxu2  ;;  %v1606_v53 = vadd.f32 %v1574_v61, %v1509_v62  ;;  %v1317_v43 = vadd.f32 %v1285_v47, %v1188_v56  ;;  %v1770_v38 = vmul.f32 %v16010_v40, %v16401_v57  ;;  %v15101_v56 = vld [vmem:[%s23849_s9 + $0x34] sm:$0xf0] }
 0x211   : > { %v1034_v46 = vmin.f32 %v1002_v39, 6.0  ;;  %v2060_v31 = vmax.f32 %v2028_v8, 0.0  ;;  %v2163_v41 = vadd.f32 %v16907_v12, %v2162_v42 }
 0x212   : > { %v1993_v29 = vadd.f32 %v1961_v54, %v1896_v52  ;;  %v1735_v37 = vld [vmem:[#allocation2 + $0x180] sm:$0xff]  ;;  %v1703_v49 = vadd.f32 %v1671_v27, %v1606_v53  ;;  %v1414_v39 = vadd.f32 %v1382_v0, %v1317_v43 }
 0x213   : > { %1121 = vst [vmem:[#allocation2 + $0x189] sm:$0xff] %v1034_v46  ;;  %v2092_v35 = vmin.f32 %v2060_v31, 6.0  ;;  %v1768_v3 = vmul.f32 %v16401_v57, %v1735_v37  ;;  %v17136_v24 = vpack.c.bf16 %v2163_v41, %v2160_v32  ;;  %v1478_v22 = vmul.f32 %v1735_v37, %v16374_v34 }
 0x214   : > { %v2029_v30 = vadd.f32 %v16862_v36, %v1993_v29  ;;  %v1866_v16 = vmul.f32 %v16411_v6, %v1034_v46  ;;  %v1576_v18 = vmul.f32 %v16390_v50, %v1034_v46  ;;  %v1964_v46 = vmul.f32 %v16846_v28, %v1931_v60 }
 0x215   : > { %23860 = vst [vmem:[#allocation5_spill] sm:$0xff] %v17136_v24  ;;  %2212 = vmatmul.f32.gmra.mxu2 %v2092_v35  ;;  %11415 = vmatmul.msk.bf16.gmra.mxu3 %vm2331_vm1, %v17136_v24  ;;  %v1800_v15 = vadd.f32 %v1768_v3, %v1702_v59  ;;  %v1510_v7 = vadd.f32 %v1478_v22, %v1413_v48  ;;  %v11389_v22 = vld [vmem:[%s23849_s9 + $0x10] sm:$0xf]  ;;  %v1835_v48 = vld [vmem:[#allocation2 + $0x1a1] sm:$0xff] }
 0x216   : > { %11447 = vmatmul.msk.bf16.gmra.mxu0 %vm2331_vm1, %v17136_v24  ;;  %11463 = vmatmul.msk.bf16.gmra.mxu1 %vm2331_vm1, %v17136_v24  ;;  %v2061_v11 = vmax.f32 %v2029_v30, 0.0 }
 0x217   : > { %v1897_v17 = vadd.f32 %v1865_v9, %v1800_v15  ;;  %v1607_v33 = vadd.f32 %v1575_v5, %v1510_v7  ;;  %v11390_v15 = vor.u32 %v15101_v56, %v11389_v22  ;;  %v1868_v7 = vmul.f32 %v16411_v6, %v1835_v48  ;;  %v1932_v9 = vld [vmem:[#allocation2 + $0x1a2] sm:$0xff] }
 0x218   : > { %v2165_v58 = vpop.f32.mrf.mxu2  ;;  %v2093_v54 = vmin.f32 %v2061_v11, 6.0  ;;  %v1965_v5 = vmul.f32 %v16846_v28, %v1932_v9 }
 0x219   : > { %v2166_v62 = vadd.f32 %v16907_v12, %v2165_v58  ;;  %2743 = vmatpush.bf16.msrb.mxu2 %v11390_v15 }
 0x21a   : > { %v1929_v14 = vld [vmem:[#allocation2 + $0x182] sm:$0xff]  ;;  %v1930_v63 = vld [vmem:[#allocation2 + $0x18a] sm:$0xff] }
 0x21b   : > { %v1736_v19 = vld [vmem:[#allocation2 + $0x188] sm:$0xff]  ;;  %v1962_v25 = vmul.f32 %v16846_v28, %v1929_v14  ;;  %v1672_v26 = vmul.f32 %v1929_v14, %v16397_v55  ;;  %v1963_v31 = vmul.f32 %v16846_v28, %v1930_v63  ;;  %v1673_v35 = vmul.f32 %v1930_v63, %v16397_v55 }
 0x21c   : > { %v1769_v10 = vmul.f32 %v16401_v57, %v1736_v19  ;;  %v1479_v13 = vmul.f32 %v1736_v19, %v16374_v34  ;;  %v1867_v57 = vmul.f32 %v16411_v6, %v1834_v51 }
 0x21d   : > { %v1994_v8 = vadd.f32 %v1962_v25, %v1897_v17  ;;  %v1704_v21 = vadd.f32 %v1672_v26, %v1607_v33  ;;  %2215 = vmatmul.f32.gmra.mxu2 %v2093_v54 }
 0x21e   : > { %v1801_v52 = vadd.f32 %v1769_v10, %v1703_v49  ;;  %v1511_v2 = vadd.f32 %v1479_v13, %v1414_v39 }
 0x21f   : > { %v2030_v1 = vadd.f32 %v16862_v36, %v1994_v8  ;;  %v1802_v29 = vadd.f32 %v1770_v38, %v1704_v21 }
 0x220   : > { %v1898_v42 = vadd.f32 %v1866_v16, %v1801_v52  ;;  %v1608_v34 = vadd.f32 %v1576_v18, %v1511_v2  ;;  %v2168_v32 = vpop.f32.mrf.mxu2  ;;  %v17215_v52 = vld [vmem:[%s23850_s10] sm:$0xff] }
 0x221   : > { %v2062_v41 = vmax.f32 %v2030_v1, 0.0  ;;  %v2169_v61 = vadd.f32 %v16907_v12, %v2168_v32  ;;  %v1899_v45 = vadd.f32 %v1867_v57, %v1802_v29  ;;  %v17220_v2 = vperm.slane %v17215_v52, 2 }
 0x222   : > { %v1995_v37 = vadd.f32 %v1963_v31, %v1898_v42  ;;  %v1705_v30 = vadd.f32 %v1673_v35, %v1608_v34  ;;  %v17223_v18 = vperm.slane %v17215_v52, 3  ;;  %v17236_v57 = vperm.slane %v17215_v52, 0 }
 0x223   : > { %v2094_v50 = vmin.f32 %v2062_v41, 6.0  ;;  %v17169_v59 = vpack.c.bf16 %v2169_v61, %v2166_v62  ;;  %v1996_v53 = vadd.f32 %v1964_v46, %v1899_v45 }
 0x224   : > { %v2031_v3 = vadd.f32 %v16862_v36, %v1995_v37  ;;  %v1803_v47 = vadd.f32 %v1770_v38, %v1705_v30 }
 0x225   : > { %23861 = vst [vmem:[#allocation6_spill] sm:$0xff] %v17169_v59  ;;  %2218 = vmatmul.f32.gmra.mxu2 %v2094_v50  ;;  %11416 = vmatmul.msk.bf16.gmra.mxu3 %vm2331_vm1, %v17169_v59  ;;  %v2032_v43 = vadd.f32 %v16862_v36, %v1996_v53 }
 0x226   : > { %11448 = vmatmul.msk.bf16.gmra.mxu0 %vm2331_vm1, %v17169_v59  ;;  %11464 = vmatmul.msk.bf16.gmra.mxu1 %vm2331_vm1, %v17169_v59  ;;  %v2063_v55 = vmax.f32 %v2031_v3, 0.0  ;;  %v1900_v58 = vadd.f32 %v1868_v7, %v1803_v47 }
 0x227   : > { %v2064_v17 = vmax.f32 %v2032_v43, 0.0 }
 0x228   : > { %v2171_v11 = vpop.f32.mrf.mxu2  ;;  %v2095_v27 = vmin.f32 %v2063_v55, 6.0  ;;  %v1997_v14 = vadd.f32 %v1965_v5, %v1900_v58 }
 0x229   : > { %v2172_v19 = vadd.f32 %v16907_v12, %v2171_v11  ;;  %v2096_v6 = vmin.f32 %v2064_v17, 6.0 }
 0x22a   : > { %v2033_v10 = vadd.f32 %v16862_v36, %v1997_v14 }
 0x22c   : > { %v2065_v28 = vmax.f32 %v2033_v10, 0.0 }
 0x22d   : > { %2221 = vmatmul.f32.gmra.mxu2 %v2095_v27 }
 0x22e   : > { %v2097_v26 = vmin.f32 %v2065_v28, 6.0 }
 0x230   : > { %v2174_v49 = vpop.f32.mrf.mxu2 }
 0x231   : > { %v2175_v0 = vadd.f32 %v16907_v12, %v2174_v49 }
 0x233   : > { %v17189_v25 = vpack.c.bf16 %v2175_v0, %v2172_v19 }
 0x235   : > { %2224 = vmatmul.f32.gmra.mxu2 %v2096_v6  ;;  %11417 = vmatmul.msk.bf16.gmra.mxu3 %vm2331_vm1, %v17189_v25 }
 0x236   : > { %11449 = vmatmul.msk.bf16.gmra.mxu0 %vm2331_vm1, %v17189_v25  ;;  %11465 = vmatmul.msk.bf16.gmra.mxu1 %vm2331_vm1, %v17189_v25 }
 0x238   : > { %v2177_v33 = vpop.f32.mrf.mxu2 }
 0x239   : > { %v2178_v63 = vadd.f32 %v16907_v12, %v2177_v33 }
 0x23d   : > { %2227 = vmatmul.f32.gmra.mxu2 %v2097_v26 }
 0x240   : > { %v2180_v54 = vpop.f32.mrf.mxu2 }
 0x241   : > { %v2181_v40 = vadd.f32 %v16907_v12, %v2180_v54 }
 0x243   : > { %v17200_v36 = vpack.c.bf16 %v2181_v40, %v2178_v63 }
 0x245   : > { %11418 = vmatmul.msk.bf16.gmra.mxu3 %vm2331_vm1, %v17200_v36  ;;  %11475 = vmatmul.msk.bf16.vlgmr.msrb.gmra.mxu2 %vm2331_vm1, %v16927_v20 }
 0x246   : > { %11450 = vmatmul.msk.bf16.gmra.mxu0 %vm2331_vm1, %v17200_v36  ;;  %11466 = vmatmul.msk.bf16.gmra.mxu1 %vm2331_vm1, %v17200_v36 }
 0x248   : > { %v2183_v38 = vpop.f32.mrf.mxu2 }
 0x249   : > { %v2184_v13 = vadd.f32 %v16907_v12, %v2183_v38 }
 0x250   : > { %v2186_v39 = vpop.f32.mrf.mxu2 }
 0x251   : > { %v2187_v8 = vadd.f32 %v16907_v12, %v2186_v39 }
 0x253   : > { %v17217_v16 = vpack.c.bf16 %v2187_v8, %v2184_v13  ;;  %v2567_v21 = vpop.f32.mrf.mxu0  ;;  %v2656_v51 = vpop.f32.mrf.mxu1 }
 0x254   : > { %v2568_v1 = vadd.f32 %v2567_v21, %v17220_v2  ;;  %v2657_v42 = vadd.f32 %v2656_v51, %v17223_v18 }
 0x255   : > { %11419 = vmatmul.msk.bf16.gmra.mxu3 %vm2331_vm1, %v17217_v16  ;;  %11476 = vmatmul.msk.bf16.gmra.mxu2 %vm2331_vm1, %v16981_v23 }
 0x256   : > { %11451 = vmatmul.msk.bf16.gmra.mxu0 %vm2331_vm1, %v17217_v16  ;;  %11467 = vmatmul.msk.bf16.gmra.mxu1 %vm2331_vm1, %v17217_v16  ;;  %v3272_v32 = vmax.f32 %v2568_v1, 0.0  ;;  %v3273_v41 = vmax.f32 %v2657_v42, 0.0 }
 0x258   : > { %v2189_v31 = vpop.f32.mrf.mxu2  ;;  %v2389_v29 = vpop.f32.mrf.mxu3  ;;  %v3592_v46 = vmin.f32 %v3272_v32, 6.0  ;;  %v3593_v3 = vmin.f32 %v3273_v41, 6.0 }
 0x259   : > { %v2390_v61 = vadd.f32 %v2389_v29, %v17236_v57  ;;  %v2190_v48 = vadd.f32 %v16907_v12, %v2189_v31 }
 0x25b   : > { %v2569_v60 = vpop.f32.mrf.mxu0  ;;  %v2658_v34 = vpop.f32.mrf.mxu1  ;;  %v3270_v15 = vmax.f32 %v2390_v61, 0.0 }
 0x25c   : > { %v2570_v37 = vadd.f32 %v2569_v60, %v17220_v2  ;;  %v2659_v62 = vadd.f32 %v2658_v34, %v17223_v18 }
 0x25d   : > { %v3590_v17 = vmin.f32 %v3270_v15, 6.0 }
 0x25e   : > { %v3282_v35 = vmax.f32 %v2570_v37, 0.0  ;;  %v3283_v50 = vmax.f32 %v2659_v62, 0.0 }
 0x260   : > { %v3602_v45 = vmin.f32 %v3282_v35, 6.0  ;;  %v3603_v30 = vmin.f32 %v3283_v50, 6.0  ;;  %v2192_v22 = vpop.f32.mrf.mxu2  ;;  %v2391_v56 = vpop.f32.mrf.mxu3 }
 0x261   : > { %v2193_v55 = vadd.f32 %v16907_v12, %v2192_v22  ;;  %v2392_v53 = vadd.f32 %v2391_v56, %v17236_v57 }
 0x262   : > { %v3984_v47 = vadd.f32 %v3602_v45, %v3592_v46  ;;  %v4021_v7 = vadd.f32 %v3603_v30, %v3593_v3 }
 0x263   : > { %v17244_v11 = vpack.c.bf16 %v2193_v55, %v2190_v48  ;;  %v3280_v9 = vmax.f32 %v2392_v53, 0.0  ;;  %v2572_v27 = vpop.f32.mrf.mxu0  ;;  %v2661_v43 = vpop.f32.mrf.mxu1 }
 0x264   : > { %v2573_v58 = vadd.f32 %v2572_v27, %v17220_v2  ;;  %v2662_v5 = vadd.f32 %v2661_v43, %v17223_v18 }
 0x265   : > { %v3600_v14 = vmin.f32 %v3280_v9, 6.0  ;;  %11420 = vmatmul.msk.bf16.gmra.mxu3 %vm2331_vm1, %v17244_v11  ;;  %11477 = vmatmul.msk.bf16.gmra.mxu2 %vm2331_vm1, %v17035_v4 }
 0x266   : > { %v3292_v49 = vmax.f32 %v2573_v58, 0.0  ;;  %v3293_v19 = vmax.f32 %v2662_v5, 0.0  ;;  %11452 = vmatmul.msk.bf16.gmra.mxu0 %vm2331_vm1, %v17244_v11  ;;  %11468 = vmatmul.msk.bf16.gmra.mxu1 %vm2331_vm1, %v17244_v11 }
 0x267   : > { %v3910_v0 = vadd.f32 %v3600_v14, %v3590_v17 }
 0x268   : > { %v3612_v6 = vmin.f32 %v3292_v49, 6.0  ;;  %v3613_v10 = vmin.f32 %v3293_v19, 6.0  ;;  %v2195_v28 = vpop.f32.mrf.mxu2  ;;  %v2394_v33 = vpop.f32.mrf.mxu3 }
 0x269   : > { %v2395_v26 = vadd.f32 %v2394_v33, %v17236_v57  ;;  %v2196_v32 = vadd.f32 %v16907_v12, %v2195_v28 }
 0x26a   : > { %v3985_v54 = vadd.f32 %v3984_v47, %v3612_v6  ;;  %v4022_v63 = vadd.f32 %v4021_v7, %v3613_v10 }
 0x26b   : > { %v3290_v40 = vmax.f32 %v2395_v26, 0.0  ;;  %v2574_v38 = vpop.f32.mrf.mxu0  ;;  %v2663_v39 = vpop.f32.mrf.mxu1 }
 0x26c   : > { %v2575_v13 = vadd.f32 %v2574_v38, %v17220_v2  ;;  %v2664_v8 = vadd.f32 %v2663_v39, %v17223_v18 }
 0x26d   : > { %v3610_v21 = vmin.f32 %v3290_v40, 6.0 }
 0x26e   : > { %v3302_v51 = vmax.f32 %v2575_v13, 0.0  ;;  %v3303_v1 = vmax.f32 %v2664_v8, 0.0 }
 0x26f   : > { %v3911_v42 = vadd.f32 %v3910_v0, %v3610_v21 }
 0x270   : > { %v3622_v31 = vmin.f32 %v3302_v51, 6.0  ;;  %v3623_v29 = vmin.f32 %v3303_v1, 6.0  ;;  %v2198_v60 = vpop.f32.mrf.mxu2  ;;  %v2396_v34 = vpop.f32.mrf.mxu3 }
 0x271   : > { %v2199_v41 = vadd.f32 %v16907_v12, %v2198_v60  ;;  %v2397_v37 = vadd.f32 %v2396_v34, %v17236_v57 }
 0x272   : > { %v3986_v62 = vadd.f32 %v3985_v54, %v3622_v31  ;;  %v4023_v61 = vadd.f32 %v4022_v63, %v3623_v29 }
 0x273   : > { %v17262_v35 = vpack.c.bf16 %v2199_v41, %v2196_v32  ;;  %v3300_v50 = vmax.f32 %v2397_v37, 0.0  ;;  %v2577_v46 = vpop.f32.mrf.mxu0  ;;  %v2666_v3 = vpop.f32.mrf.mxu1 }
 0x274   : > { %v2578_v45 = vadd.f32 %v2577_v46, %v17220_v2  ;;  %v2667_v30 = vadd.f32 %v2666_v3, %v17223_v18 }
 0x275   : > { %v3620_v22 = vmin.f32 %v3300_v50, 6.0  ;;  %11421 = vmatmul.msk.bf16.gmra.mxu3 %vm2331_vm1, %v17262_v35  ;;  %11478 = vmatmul.msk.bf16.gmra.mxu2 %vm2331_vm1, %v17086_v44 }
 0x276   : > { %v3312_v56 = vmax.f32 %v2578_v45, 0.0  ;;  %v3313_v48 = vmax.f32 %v2667_v30, 0.0  ;;  %11453 = vmatmul.msk.bf16.gmra.mxu0 %vm2331_vm1, %v17262_v35  ;;  %11469 = vmatmul.msk.bf16.gmra.mxu1 %vm2331_vm1, %v17262_v35 }
 0x277   : > { %v3912_v15 = vadd.f32 %v3911_v42, %v3620_v22 }
 0x278   : > { %v3632_v55 = vmin.f32 %v3312_v56, 6.0  ;;  %v3633_v53 = vmin.f32 %v3313_v48, 6.0  ;;  %v2201_v47 = vpop.f32.mrf.mxu2  ;;  %v2399_v7 = vpop.f32.mrf.mxu3 }
 0x279   : > { %v2400_v9 = vadd.f32 %v2399_v7, %v17236_v57  ;;  %v2202_v63 = vadd.f32 %v16907_v12, %v2201_v47 }
 0x27a   : > { %v3987_v27 = vadd.f32 %v3986_v62, %v3632_v55  ;;  %v4024_v43 = vadd.f32 %v4023_v61, %v3633_v53 }
 0x27b   : > { %v3310_v58 = vmax.f32 %v2400_v9, 0.0  ;;  %v2579_v5 = vpop.f32.mrf.mxu0  ;;  %v2668_v17 = vpop.f32.mrf.mxu1 }
 0x27c   : > { %v2580_v14 = vadd.f32 %v2579_v5, %v17220_v2  ;;  %v2669_v49 = vadd.f32 %v2668_v17, %v17223_v18 }
 0x27d   : > { %v3630_v19 = vmin.f32 %v3310_v58, 6.0 }
 0x27e   : > { %v3322_v0 = vmax.f32 %v2580_v14, 0.0  ;;  %v3323_v6 = vmax.f32 %v2669_v49, 0.0 }
 0x27f   : > { %v3913_v10 = vadd.f32 %v3912_v15, %v3630_v19 }
 0x280   : > { %v3642_v28 = vmin.f32 %v3322_v0, 6.0  ;;  %v3643_v33 = vmin.f32 %v3323_v6, 6.0  ;;  %v2204_v26 = vpop.f32.mrf.mxu2  ;;  %v2401_v54 = vpop.f32.mrf.mxu3 }
 0x281   : > { %v2205_v40 = vadd.f32 %v16907_v12, %v2204_v26  ;;  %v2402_v38 = vadd.f32 %v2401_v54, %v17236_v57 }
 0x282   : > { %v3988_v39 = vadd.f32 %v3987_v27, %v3642_v28  ;;  %v4025_v13 = vadd.f32 %v4024_v43, %v3643_v33  ;;  %v17298_v43 = vld [vmem:[%s23848_s8] ss:$0 sm:$0xff] }
 0x283   : > { %v17280_v8 = vpack.c.bf16 %v2205_v40, %v2202_v63  ;;  %v3320_v21 = vmax.f32 %v2402_v38, 0.0  ;;  %v2582_v51 = vpop.f32.mrf.mxu0  ;;  %v2671_v1 = vpop.f32.mrf.mxu1 }
 0x284   : > { %v2583_v42 = vadd.f32 %v2582_v51, %v17220_v2  ;;  %v2672_v31 = vadd.f32 %v2671_v1, %v17223_v18 }
 0x285   : > { %v3640_v29 = vmin.f32 %v3320_v21, 6.0  ;;  %11422 = vmatmul.msk.bf16.gmra.mxu3 %vm2331_vm1, %v17280_v8  ;;  %11479 = vmatmul.msk.bf16.gmra.mxu2 %vm2331_vm1, %v17136_v24 }
 0x286   : > { %v3332_v12 = vmax.f32 %v2583_v42, 0.0  ;;  %v3333_v60 = vmax.f32 %v2672_v31, 0.0  ;;  %11454 = vmatmul.msk.bf16.gmra.mxu0 %vm2331_vm1, %v17280_v8  ;;  %11470 = vmatmul.msk.bf16.gmra.mxu1 %vm2331_vm1, %v17280_v8 }
 0x287   : > { %v3914_v34 = vadd.f32 %v3913_v10, %v3640_v29 }
 0x288   : > { %v3652_v32 = vmin.f32 %v3332_v12, 6.0  ;;  %v3653_v41 = vmin.f32 %v3333_v60, 6.0  ;;  %v2207_v37 = vpop.f32.mrf.mxu2  ;;  %v2404_v62 = vpop.f32.mrf.mxu3 }
 0x289   : > { %v2405_v61 = vadd.f32 %v2404_v62, %v17236_v57  ;;  %v2208_v58 = vadd.f32 %v17298_v43, %v2207_v37 }
 0x28a   : > { %v3989_v50 = vadd.f32 %v3988_v39, %v3652_v32  ;;  %v4026_v46 = vadd.f32 %v4025_v13, %v3653_v41 }
 0x28b   : > { %v3330_v3 = vmax.f32 %v2405_v61, 0.0  ;;  %v2584_v45 = vpop.f32.mrf.mxu0  ;;  %v2673_v30 = vpop.f32.mrf.mxu1 }
 0x28c   : > { %v2585_v22 = vadd.f32 %v2584_v45, %v17220_v2  ;;  %v2674_v56 = vadd.f32 %v2673_v30, %v17223_v18 }
 0x28d   : > { %v3650_v48 = vmin.f32 %v3330_v3, 6.0 }
 0x28e   : > { %v3342_v15 = vmax.f32 %v2585_v22, 0.0  ;;  %v3343_v55 = vmax.f32 %v2674_v56, 0.0 }
 0x28f   : > { %v3915_v53 = vadd.f32 %v3914_v34, %v3650_v48 }
 0x290   : > { %v3662_v47 = vmin.f32 %v3342_v15, 6.0  ;;  %v3663_v7 = vmin.f32 %v3343_v55, 6.0  ;;  %v2210_v9 = vpop.f32.mrf.mxu2  ;;  %v2406_v27 = vpop.f32.mrf.mxu3 }
 0x291   : > { %v2211_v5 = vadd.f32 %v17298_v43, %v2210_v9  ;;  %v2407_v17 = vadd.f32 %v2406_v27, %v17236_v57 }
 0x292   : > { %v3990_v14 = vadd.f32 %v3989_v50, %v3662_v47  ;;  %v4027_v49 = vadd.f32 %v4026_v46, %v3663_v7 }
 0x293   : > { %v17303_v19 = vpack.c.bf16 %v2211_v5, %v2208_v58  ;;  %v3340_v0 = vmax.f32 %v2407_v17, 0.0  ;;  %v2587_v6 = vpop.f32.mrf.mxu0  ;;  %v2676_v10 = vpop.f32.mrf.mxu1 }
 0x294   : > { %v2588_v28 = vadd.f32 %v2587_v6, %v17220_v2  ;;  %v2677_v33 = vadd.f32 %v2676_v10, %v17223_v18 }
 0x295   : > { %v3660_v26 = vmin.f32 %v3340_v0, 6.0  ;;  %11423 = vmatmul.msk.bf16.gmra.mxu3 %vm2331_vm1, %v17303_v19  ;;  %11480 = vmatmul.msk.bf16.gmra.mxu2 %vm2331_vm1, %v17169_v59 }
 0x296   : > { %v3352_v54 = vmax.f32 %v2588_v28, 0.0  ;;  %v3353_v63 = vmax.f32 %v2677_v33, 0.0  ;;  %11455 = vmatmul.msk.bf16.gmra.mxu0 %vm2331_vm1, %v17303_v19  ;;  %11471 = vmatmul.msk.bf16.gmra.mxu1 %vm2331_vm1, %v17303_v19 }
 0x297   : > { %v3916_v40 = vadd.f32 %v3915_v53, %v3660_v26 }
 0x298   : > { %v3672_v38 = vmin.f32 %v3352_v54, 6.0  ;;  %v3673_v39 = vmin.f32 %v3353_v63, 6.0  ;;  %v2213_v13 = vpop.f32.mrf.mxu2  ;;  %v2409_v21 = vpop.f32.mrf.mxu3 }
 0x299   : > { %v2410_v51 = vadd.f32 %v2409_v21, %v17236_v57  ;;  %v2214_v45 = vadd.f32 %v17298_v43, %v2213_v13 }
 0x29a   : > { %v3991_v1 = vadd.f32 %v3990_v14, %v3672_v38  ;;  %v4028_v42 = vadd.f32 %v4027_v49, %v3673_v39 }
 0x29b   : > { %v3350_v31 = vmax.f32 %v2410_v51, 0.0  ;;  %v2589_v29 = vpop.f32.mrf.mxu0  ;;  %v2678_v12 = vpop.f32.mrf.mxu1 }
 0x29c   : > { %v2590_v60 = vadd.f32 %v2589_v29, %v17220_v2  ;;  %v2679_v34 = vadd.f32 %v2678_v12, %v17223_v18 }
 0x29d   : > { %v3670_v32 = vmin.f32 %v3350_v31, 6.0 }
 0x29e   : > { %v3362_v41 = vmax.f32 %v2590_v60, 0.0  ;;  %v3363_v37 = vmax.f32 %v2679_v34, 0.0 }
 0x29f   : > { %v3917_v62 = vadd.f32 %v3916_v40, %v3670_v32 }
 0x2a0   : > { %v3682_v61 = vmin.f32 %v3362_v41, 6.0  ;;  %v3683_v50 = vmin.f32 %v3363_v37, 6.0  ;;  %v2216_v46 = vpop.f32.mrf.mxu2  ;;  %v2411_v3 = vpop.f32.mrf.mxu3 }
 0x2a1   : > { %v2217_v30 = vadd.f32 %v17298_v43, %v2216_v46  ;;  %v2412_v22 = vadd.f32 %v2411_v3, %v17236_v57 }
 0x2a2   : > { %v3992_v56 = vadd.f32 %v3991_v1, %v3682_v61  ;;  %v4029_v48 = vadd.f32 %v4028_v42, %v3683_v50 }
 0x2a3   : > { %v17321_v15 = vpack.c.bf16 %v2217_v30, %v2214_v45  ;;  %v3360_v55 = vmax.f32 %v2412_v22, 0.0  ;;  %v2592_v53 = vpop.f32.mrf.mxu0  ;;  %v2681_v47 = vpop.f32.mrf.mxu1 }
 0x2a4   : > { %v2593_v7 = vadd.f32 %v2592_v53, %v17220_v2  ;;  %v2682_v9 = vadd.f32 %v2681_v47, %v17223_v18 }
 0x2a5   : > { %v3680_v27 = vmin.f32 %v3360_v55, 6.0  ;;  %11424 = vmatmul.msk.bf16.gmra.mxu3 %vm2331_vm1, %v17321_v15  ;;  %11481 = vmatmul.msk.bf16.gmra.mxu2 %vm2331_vm1, %v17189_v25  ;;  %v11375_v55 = vld [vmem:[%s23849_s9 + $0x28] sm:$0xf0] }
 0x2a6   : > { %v3372_v58 = vmax.f32 %v2593_v7, 0.0  ;;  %v3373_v5 = vmax.f32 %v2682_v9, 0.0  ;;  %11456 = vmatmul.msk.bf16.gmra.mxu0 %vm2331_vm1, %v17321_v15  ;;  %11472 = vmatmul.msk.bf16.gmra.mxu1 %vm2331_vm1, %v17321_v15 }
 0x2a7   : > { %v3918_v17 = vadd.f32 %v3917_v62, %v3680_v27 }
 0x2a8   : > { %v3692_v14 = vmin.f32 %v3372_v58, 6.0  ;;  %v3693_v49 = vmin.f32 %v3373_v5, 6.0  ;;  %v2219_v0 = vpop.f32.mrf.mxu2  ;;  %v2414_v6 = vpop.f32.mrf.mxu3 }
 0x2a9   : > { %v2415_v10 = vadd.f32 %v2414_v6, %v17236_v57  ;;  %v2220_v12 = vadd.f32 %v17298_v43, %v2219_v0  ;;  %v15097_v0 = vld [vmem:[%s23849_s9 + $0x1c] sm:$0xf] }
 0x2aa   : > { %v3993_v28 = vadd.f32 %v3992_v56, %v3692_v14  ;;  %v4030_v33 = vadd.f32 %v4029_v48, %v3693_v49  ;;  %v15094_v48 = vld [vmem:[%s23849_s9 + $0x4] sm:$0xf]  ;;  %v11397_v14 = vld [vmem:[%s23849_s9 + $0x18] sm:$0xf]  ;;  %v15102_v49 = vld [vmem:[%s23849_s9 + $0x3c] sm:$0xf0] }
 0x2ab   : > { %v3370_v26 = vmax.f32 %v2415_v10, 0.0  ;;  %v2594_v54 = vpop.f32.mrf.mxu0  ;;  %v2683_v63 = vpop.f32.mrf.mxu1  ;;  %v11378_v27 = vor.u32 %v15094_v48, %v11375_v55 }
 0x2ac   : > { %v2595_v40 = vadd.f32 %v2594_v54, %v17220_v2  ;;  %v2684_v38 = vadd.f32 %v2683_v63, %v17223_v18 }
 0x2ad   : > { %v3690_v39 = vmin.f32 %v3370_v26, 6.0  ;;  %2476 = vmatpush.bf16.msrb.mxu3 %v11378_v27  ;;  %v11399_v26 = vld [vmem:[%s23849_s9 + $0x40] sm:$0xf0] }
 0x2ae   : > { %v3382_v13 = vmax.f32 %v2595_v40, 0.0  ;;  %v3383_v21 = vmax.f32 %v2684_v38, 0.0  ;;  %v11402_v40 = vor.u32 %v15097_v0, %v11399_v26 }
 0x2af   : > { %v3919_v51 = vadd.f32 %v3918_v17, %v3690_v39 }
 0x2b0   : > { %v3702_v1 = vmin.f32 %v3382_v13, 6.0  ;;  %v3703_v42 = vmin.f32 %v3383_v21, 6.0  ;;  %v2222_v31 = vpop.f32.mrf.mxu2  ;;  %v2416_v29 = vpop.f32.mrf.mxu3  ;;  %3010 = vmatpush.bf16.msrb.mxu1 %v11402_v40 }
 0x2b1   : > { %v2223_v60 = vadd.f32 %v17298_v43, %v2222_v31  ;;  %v2417_v34 = vadd.f32 %v2416_v29, %v17236_v57 }
 0x2b2   : > { %v3994_v32 = vadd.f32 %v3993_v28, %v3702_v1  ;;  %v4031_v41 = vadd.f32 %v4030_v33, %v3703_v42  ;;  %v11398_v33 = vor.u32 %v15102_v49, %v11397_v14 }
 0x2b3   : > { %v17339_v37 = vpack.c.bf16 %v2223_v60, %v2220_v12  ;;  %v3380_v62 = vmax.f32 %v2417_v34, 0.0  ;;  %v2597_v61 = vpop.f32.mrf.mxu0  ;;  %v2686_v50 = vpop.f32.mrf.mxu1 }
 0x2b4   : > { %v2598_v46 = vadd.f32 %v2597_v61, %v17220_v2  ;;  %v2687_v3 = vadd.f32 %v2686_v50, %v17223_v18  ;;  %2921 = vmatpush.bf16.msra.mxu0 %v11398_v33 }
 0x2b5   : > { %v3700_v45 = vmin.f32 %v3380_v62, 6.0  ;;  %11425 = vmatmul.msk.bf16.gmra.mxu3 %vm2331_vm1, %v17339_v37  ;;  %11482 = vmatmul.msk.bf16.gmra.mxu2 %vm2331_vm1, %v17200_v36 }
 0x2b6   : > { %v3392_v30 = vmax.f32 %v2598_v46, 0.0  ;;  %v3393_v22 = vmax.f32 %v2687_v3, 0.0  ;;  %11457 = vmatmul.msk.bf16.gmra.mxu0 %vm2331_vm1, %v17339_v37  ;;  %11473 = vmatmul.msk.bf16.gmra.mxu1 %vm2331_vm1, %v17339_v37 }
 0x2b7   : > { %v3920_v56 = vadd.f32 %v3919_v51, %v3700_v45 }
 0x2b8   : > { %v3712_v53 = vmin.f32 %v3392_v30, 6.0  ;;  %v3713_v47 = vmin.f32 %v3393_v22, 6.0  ;;  %v2225_v7 = vpop.f32.mrf.mxu2  ;;  %v2419_v9 = vpop.f32.mrf.mxu3 }
 0x2b9   : > { %v2420_v58 = vadd.f32 %v2419_v9, %v17236_v57  ;;  %v2226_v29 = vadd.f32 %v17298_v43, %v2225_v7  ;;  %v17389_v7 = vperm.slane %v17215_v52, 4 }
 0x2ba   : > { %v3995_v5 = vadd.f32 %v3994_v32, %v3712_v53  ;;  %v4032_v17 = vadd.f32 %v4031_v41, %v3713_v47 }
 0x2bb   : > { %v3390_v6 = vmax.f32 %v2420_v58, 0.0  ;;  %v2599_v10 = vpop.f32.mrf.mxu0  ;;  %v2688_v28 = vpop.f32.mrf.mxu1 }
 0x2bc   : > { %v2600_v54 = vadd.f32 %v2599_v10, %v17220_v2  ;;  %v2689_v63 = vadd.f32 %v2688_v28, %v17223_v18 }
 0x2bd   : > { %v3710_v38 = vmin.f32 %v3390_v6, 6.0 }
 0x2be   : > { %v3402_v39 = vmax.f32 %v2600_v54, 0.0  ;;  %v3403_v13 = vmax.f32 %v2689_v63, 0.0 }
 0x2bf   : > { %v3921_v21 = vadd.f32 %v3920_v56, %v3710_v38 }
 0x2c0   : > { %v3722_v51 = vmin.f32 %v3402_v39, 6.0  ;;  %v3723_v1 = vmin.f32 %v3403_v13, 6.0  ;;  %v2228_v42 = vpop.f32.mrf.mxu2  ;;  %v2421_v31 = vpop.f32.mrf.mxu3 }
 0x2c1   : > { %v2229_v12 = vadd.f32 %v17298_v43, %v2228_v42  ;;  %v2422_v60 = vadd.f32 %v2421_v31, %v17236_v57 }
 0x2c2   : > { %v3996_v34 = vadd.f32 %v3995_v5, %v3722_v51  ;;  %v4033_v32 = vadd.f32 %v4032_v17, %v3723_v1 }
 0x2c3   : > { %v17375_v41 = vpack.c.bf16 %v2229_v12, %v2226_v29  ;;  %v3400_v62 = vmax.f32 %v2422_v60, 0.0  ;;  %v2602_v61 = vpop.f32.mrf.mxu0  ;;  %v2691_v50 = vpop.f32.mrf.mxu1 }
 0x2c4   : > { %v2603_v46 = vadd.f32 %v2602_v61, %v17220_v2  ;;  %v2692_v3 = vadd.f32 %v2691_v50, %v17223_v18 }
 0x2c5   : > { %v3720_v45 = vmin.f32 %v3400_v62, 6.0  ;;  %11426 = vmatmul.msk.bf16.gmra.mxu3 %vm2331_vm1, %v17375_v41  ;;  %11483 = vmatmul.msk.bf16.gmra.mxu2 %vm2331_vm1, %v17217_v16 }
 0x2c6   : > { %v3412_v43 = vmax.f32 %v2603_v46, 0.0  ;;  %v3413_v30 = vmax.f32 %v2692_v3, 0.0  ;;  %11458 = vmatmul.msk.bf16.gmra.mxu0 %vm2331_vm1, %v17375_v41  ;;  %11474 = vmatmul.msk.bf16.gmra.mxu1 %vm2331_vm1, %v17375_v41 }
 0x2c7   : > { %v3922_v22 = vadd.f32 %v3921_v21, %v3720_v45 }
 0x2c8   : > { %v3732_v56 = vmin.f32 %v3412_v43, 6.0  ;;  %v3733_v48 = vmin.f32 %v3413_v30, 6.0  ;;  %v2424_v55 = vpop.f32.mrf.mxu3  ;;  %v2745_v53 = vpop.f32.mrf.mxu2 }
 0x2c9   : > { %v2425_v47 = vadd.f32 %v2424_v55, %v17236_v57  ;;  %v2746_v6 = vadd.f32 %v2745_v53, %v17389_v7 }
 0x2ca   : > { %v3997_v9 = vadd.f32 %v3996_v34, %v3732_v56  ;;  %v4034_v27 = vadd.f32 %v4033_v32, %v3733_v48 }
 0x2cb   : > { %v3410_v58 = vmax.f32 %v2425_v47, 0.0  ;;  %v2604_v5 = vpop.f32.mrf.mxu0  ;;  %v2693_v17 = vpop.f32.mrf.mxu1  ;;  %v3274_v40 = vmax.f32 %v2746_v6, 0.0 }
 0x2cc   : > { %v2605_v14 = vadd.f32 %v2604_v5, %v17220_v2  ;;  %v2694_v49 = vadd.f32 %v2693_v17, %v17223_v18 }
 0x2cd   : > { %v3730_v0 = vmin.f32 %v3410_v58, 6.0  ;;  %v3594_v60 = vmin.f32 %v3274_v40, 6.0 }
 0x2ce   : > { %v3422_v10 = vmax.f32 %v2605_v14, 0.0  ;;  %v3423_v28 = vmax.f32 %v2694_v49, 0.0 }
 0x2cf   : > { %v3923_v33 = vadd.f32 %v3922_v22, %v3730_v0 }
 0x2d0   : > { %v3742_v26 = vmin.f32 %v3422_v10, 6.0  ;;  %v3743_v54 = vmin.f32 %v3423_v28, 6.0  ;;  %v2426_v63 = vpop.f32.mrf.mxu3  ;;  %v2747_v52 = vpop.f32.mrf.mxu2 }
 0x2d1   : > { %v2427_v38 = vadd.f32 %v2426_v63, %v17236_v57  ;;  %v2748_v39 = vadd.f32 %v2747_v52, %v17389_v7 }
 0x2d2   : > { %v3998_v13 = vadd.f32 %v3997_v9, %v3742_v26  ;;  %v4035_v21 = vadd.f32 %v4034_v27, %v3743_v54 }
 0x2d3   : > { %v3420_v51 = vmax.f32 %v2427_v38, 0.0  ;;  %v3284_v1 = vmax.f32 %v2748_v39, 0.0  ;;  %v2607_v42 = vpop.f32.mrf.mxu0  ;;  %v2696_v31 = vpop.f32.mrf.mxu1 }
 0x2d4   : > { %v2608_v29 = vadd.f32 %v2607_v42, %v17220_v2  ;;  %v2697_v12 = vadd.f32 %v2696_v31, %v17223_v18 }
 0x2d5   : > { %v3740_v34 = vmin.f32 %v3420_v51, 6.0  ;;  %v3604_v32 = vmin.f32 %v3284_v1, 6.0  ;;  %11427 = vmatmul.msk.bf16.vlgmr.msrb.gmra.mxu3 %vm2331_vm1, %v16927_v20  ;;  %11484 = vmatmul.msk.bf16.gmra.mxu2 %vm2331_vm1, %v17244_v11 }
 0x2d6   : > { %v3432_v62 = vmax.f32 %v2608_v29, 0.0  ;;  %v3433_v61 = vmax.f32 %v2697_v12, 0.0  ;;  %11507 = vmatmul.msk.bf16.vlgmr.msra.gmra.mxu0 %vm2331_vm1, %v16927_v20  ;;  %11523 = vmatmul.msk.bf16.vlgmr.msrb.gmra.mxu1 %vm2331_vm1, %v16927_v20 }
 0x2d7   : > { %v3924_v50 = vadd.f32 %v3923_v33, %v3740_v34  ;;  %v4058_v46 = vadd.f32 %v3604_v32, %v3594_v60 }
 0x2d8   : > { %v3752_v3 = vmin.f32 %v3432_v62, 6.0  ;;  %v3753_v45 = vmin.f32 %v3433_v61, 6.0  ;;  %v2429_v43 = vpop.f32.mrf.mxu3  ;;  %v2750_v30 = vpop.f32.mrf.mxu2 }
 0x2d9   : > { %v2430_v22 = vadd.f32 %v2429_v43, %v17236_v57  ;;  %v2751_v56 = vadd.f32 %v2750_v30, %v17389_v7 }
 0x2da   : > { %v3999_v48 = vadd.f32 %v3998_v13, %v3752_v3  ;;  %v4036_v55 = vadd.f32 %v4035_v21, %v3753_v45 }
 0x2db   : > { %v3430_v53 = vmax.f32 %v2430_v22, 0.0  ;;  %v3294_v47 = vmax.f32 %v2751_v56, 0.0  ;;  %v2609_v9 = vpop.f32.mrf.mxu0  ;;  %v2698_v27 = vpop.f32.mrf.mxu1 }
 0x2dc   : > { %v2610_v58 = vadd.f32 %v2609_v9, %v17220_v2  ;;  %v2699_v5 = vadd.f32 %v2698_v27, %v17223_v18 }
 0x2dd   : > { %v3750_v17 = vmin.f32 %v3430_v53, 6.0  ;;  %v3614_v14 = vmin.f32 %v3294_v47, 6.0 }
 0x2de   : > { %v3442_v49 = vmax.f32 %v2610_v58, 0.0  ;;  %v3443_v0 = vmax.f32 %v2699_v5, 0.0 }
 0x2df   : > { %v3925_v6 = vadd.f32 %v3924_v50, %v3750_v17  ;;  %v4059_v10 = vadd.f32 %v4058_v46, %v3614_v14 }
 0x2e0   : > { %v3762_v28 = vmin.f32 %v3442_v49, 6.0  ;;  %v3763_v33 = vmin.f32 %v3443_v0, 6.0  ;;  %v2431_v26 = vpop.f32.mrf.mxu3  ;;  %v2752_v54 = vpop.f32.mrf.mxu2 }
 0x2e1   : > { %v2432_v63 = vadd.f32 %v2431_v26, %v17236_v57  ;;  %v2753_v52 = vadd.f32 %v2752_v54, %v17389_v7 }
 0x2e2   : > { %v4000_v40 = vadd.f32 %v3999_v48, %v3762_v28  ;;  %v4037_v38 = vadd.f32 %v4036_v55, %v3763_v33 }
 0x2e3   : > { %v3440_v39 = vmax.f32 %v2432_v63, 0.0  ;;  %v3304_v13 = vmax.f32 %v2753_v52, 0.0  ;;  %v2612_v21 = vpop.f32.mrf.mxu0  ;;  %v2701_v51 = vpop.f32.mrf.mxu1 }
 0x2e4   : > { %v2613_v1 = vadd.f32 %v2612_v21, %v17220_v2  ;;  %v2702_v42 = vadd.f32 %v2701_v51, %v17223_v18 }
 0x2e5   : > { %v3760_v31 = vmin.f32 %v3440_v39, 6.0  ;;  %v3624_v29 = vmin.f32 %v3304_v13, 6.0  ;;  %11428 = vmatmul.msk.bf16.gmra.mxu3 %vm2331_vm1, %v16981_v23  ;;  %11485 = vmatmul.msk.bf16.gmra.mxu2 %vm2331_vm1, %v17262_v35 }
 0x2e6   : > { %v3452_v12 = vmax.f32 %v2613_v1, 0.0  ;;  %v3453_v60 = vmax.f32 %v2702_v42, 0.0  ;;  %11508 = vmatmul.msk.bf16.gmra.mxu0 %vm2331_vm1, %v16981_v23  ;;  %11524 = vmatmul.msk.bf16.gmra.mxu1 %vm2331_vm1, %v16981_v23 }
 0x2e7   : > { %v3926_v34 = vadd.f32 %v3925_v6, %v3760_v31  ;;  %v4060_v32 = vadd.f32 %v4059_v10, %v3624_v29 }
 0x2e8   : > { %v3772_v62 = vmin.f32 %v3452_v12, 6.0  ;;  %v3773_v61 = vmin.f32 %v3453_v60, 6.0  ;;  %v2434_v50 = vpop.f32.mrf.mxu3  ;;  %v2755_v46 = vpop.f32.mrf.mxu2 }
 0x2e9   : > { %v2435_v3 = vadd.f32 %v2434_v50, %v17236_v57  ;;  %v2756_v45 = vadd.f32 %v2755_v46, %v17389_v7 }
 0x2ea   : > { %v4001_v43 = vadd.f32 %v4000_v40, %v3772_v62  ;;  %v4038_v30 = vadd.f32 %v4037_v38, %v3773_v61 }
 0x2eb   : > { %v3450_v22 = vmax.f32 %v2435_v3, 0.0  ;;  %v3314_v56 = vmax.f32 %v2756_v45, 0.0  ;;  %v2614_v48 = vpop.f32.mrf.mxu0  ;;  %v2703_v55 = vpop.f32.mrf.mxu1 }
 0x2ec   : > { %v2615_v53 = vadd.f32 %v2614_v48, %v17220_v2  ;;  %v2704_v47 = vadd.f32 %v2703_v55, %v17223_v18 }
 0x2ed   : > { %v3770_v9 = vmin.f32 %v3450_v22, 6.0  ;;  %v3634_v27 = vmin.f32 %v3314_v56, 6.0 }
 0x2ee   : > { %v3462_v58 = vmax.f32 %v2615_v53, 0.0  ;;  %v3463_v5 = vmax.f32 %v2704_v47, 0.0 }
 0x2ef   : > { %v3927_v17 = vadd.f32 %v3926_v34, %v3770_v9  ;;  %v4061_v14 = vadd.f32 %v4060_v32, %v3634_v27 }
 0x2f0   : > { %v3782_v49 = vmin.f32 %v3462_v58, 6.0  ;;  %v3783_v0 = vmin.f32 %v3463_v5, 6.0  ;;  %v2436_v6 = vpop.f32.mrf.mxu3  ;;  %v2757_v10 = vpop.f32.mrf.mxu2 }
 0x2f1   : > { %v2437_v28 = vadd.f32 %v2436_v6, %v17236_v57  ;;  %v2758_v33 = vadd.f32 %v2757_v10, %v17389_v7 }
 0x2f2   : > { %v4002_v26 = vadd.f32 %v4001_v43, %v3782_v49  ;;  %v4039_v54 = vadd.f32 %v4038_v30, %v3783_v0 }
 0x2f3   : > { %v3460_v63 = vmax.f32 %v2437_v28, 0.0  ;;  %v3324_v52 = vmax.f32 %v2758_v33, 0.0  ;;  %v2617_v40 = vpop.f32.mrf.mxu0  ;;  %v2706_v38 = vpop.f32.mrf.mxu1 }
 0x2f4   : > { %v2618_v39 = vadd.f32 %v2617_v40, %v17220_v2  ;;  %v2707_v13 = vadd.f32 %v2706_v38, %v17223_v18 }
 0x2f5   : > { %v3780_v21 = vmin.f32 %v3460_v63, 6.0  ;;  %v3644_v51 = vmin.f32 %v3324_v52, 6.0  ;;  %11429 = vmatmul.msk.bf16.gmra.mxu3 %vm2331_vm1, %v17035_v4  ;;  %11486 = vmatmul.msk.bf16.gmra.mxu2 %vm2331_vm1, %v17280_v8 }
 0x2f6   : > { %v3472_v1 = vmax.f32 %v2618_v39, 0.0  ;;  %v3473_v42 = vmax.f32 %v2707_v13, 0.0  ;;  %11509 = vmatmul.msk.bf16.gmra.mxu0 %vm2331_vm1, %v17035_v4  ;;  %11525 = vmatmul.msk.bf16.gmra.mxu1 %vm2331_vm1, %v17035_v4 }
 0x2f7   : > { %v3928_v31 = vadd.f32 %v3927_v17, %v3780_v21  ;;  %v4062_v29 = vadd.f32 %v4061_v14, %v3644_v51 }
 0x2f8   : > { %v3792_v12 = vmin.f32 %v3472_v1, 6.0  ;;  %v3793_v60 = vmin.f32 %v3473_v42, 6.0  ;;  %v2439_v34 = vpop.f32.mrf.mxu3  ;;  %v2760_v32 = vpop.f32.mrf.mxu2 }
 0x2f9   : > { %v2440_v62 = vadd.f32 %v2439_v34, %v17236_v57  ;;  %v2761_v61 = vadd.f32 %v2760_v32, %v17389_v7 }
 0x2fa   : > { %v4003_v50 = vadd.f32 %v4002_v26, %v3792_v12  ;;  %v4040_v46 = vadd.f32 %v4039_v54, %v3793_v60 }
 0x2fb   : > { %v3470_v3 = vmax.f32 %v2440_v62, 0.0  ;;  %v3334_v45 = vmax.f32 %v2761_v61, 0.0  ;;  %v2619_v43 = vpop.f32.mrf.mxu0  ;;  %v2708_v30 = vpop.f32.mrf.mxu1 }
 0x2fc   : > { %v2620_v22 = vadd.f32 %v2619_v43, %v17220_v2  ;;  %v2709_v56 = vadd.f32 %v2708_v30, %v17223_v18 }
 0x2fd   : > { %v3790_v48 = vmin.f32 %v3470_v3, 6.0  ;;  %v3654_v55 = vmin.f32 %v3334_v45, 6.0 }
 0x2fe   : > { %v3482_v53 = vmax.f32 %v2620_v22, 0.0  ;;  %v3483_v47 = vmax.f32 %v2709_v56, 0.0 }
 0x2ff   : > { %v3929_v9 = vadd.f32 %v3928_v31, %v3790_v48  ;;  %v4063_v27 = vadd.f32 %v4062_v29, %v3654_v55 }
 0x300   : > { %v3802_v58 = vmin.f32 %v3482_v53, 6.0  ;;  %v3803_v5 = vmin.f32 %v3483_v47, 6.0  ;;  %v2441_v17 = vpop.f32.mrf.mxu3  ;;  %v2762_v14 = vpop.f32.mrf.mxu2 }
 0x301   : > { %v2442_v49 = vadd.f32 %v2441_v17, %v17236_v57  ;;  %v2763_v0 = vadd.f32 %v2762_v14, %v17389_v7 }
 0x302   : > { %v4004_v6 = vadd.f32 %v4003_v50, %v3802_v58  ;;  %v4041_v10 = vadd.f32 %v4040_v46, %v3803_v5 }
 0x303   : > { %v3480_v28 = vmax.f32 %v2442_v49, 0.0  ;;  %v3344_v33 = vmax.f32 %v2763_v0, 0.0  ;;  %v2622_v26 = vpop.f32.mrf.mxu0  ;;  %v2711_v54 = vpop.f32.mrf.mxu1 }
 0x304   : > { %v2623_v63 = vadd.f32 %v2622_v26, %v17220_v2  ;;  %v2712_v52 = vadd.f32 %v2711_v54, %v17223_v18 }
 0x305   : > { %v3800_v40 = vmin.f32 %v3480_v28, 6.0  ;;  %v3664_v38 = vmin.f32 %v3344_v33, 6.0  ;;  %11430 = vmatmul.msk.bf16.gmra.mxu3 %vm2331_vm1, %v17086_v44  ;;  %11487 = vmatmul.msk.bf16.gmra.mxu2 %vm2331_vm1, %v17303_v19 }
 0x306   : > { %v3492_v39 = vmax.f32 %v2623_v63, 0.0  ;;  %v3493_v13 = vmax.f32 %v2712_v52, 0.0  ;;  %11510 = vmatmul.msk.bf16.gmra.mxu0 %vm2331_vm1, %v17086_v44  ;;  %11526 = vmatmul.msk.bf16.gmra.mxu1 %vm2331_vm1, %v17086_v44 }
 0x307   : > { %v3930_v21 = vadd.f32 %v3929_v9, %v3800_v40  ;;  %v4064_v51 = vadd.f32 %v4063_v27, %v3664_v38 }
 0x308   : > { %v3812_v1 = vmin.f32 %v3492_v39, 6.0  ;;  %v3813_v42 = vmin.f32 %v3493_v13, 6.0  ;;  %v2444_v31 = vpop.f32.mrf.mxu3  ;;  %v2765_v29 = vpop.f32.mrf.mxu2 }
 0x309   : > { %v2445_v12 = vadd.f32 %v2444_v31, %v17236_v57  ;;  %v2766_v60 = vadd.f32 %v2765_v29, %v17389_v7 }
 0x30a   : > { %v4005_v34 = vadd.f32 %v4004_v6, %v3812_v1  ;;  %v4042_v32 = vadd.f32 %v4041_v10, %v3813_v42 }
 0x30b   : > { %v3490_v62 = vmax.f32 %v2445_v12, 0.0  ;;  %v3354_v61 = vmax.f32 %v2766_v60, 0.0  ;;  %v2624_v50 = vpop.f32.mrf.mxu0  ;;  %v2713_v46 = vpop.f32.mrf.mxu1 }
 0x30c   : > { %v2625_v3 = vadd.f32 %v2624_v50, %v17220_v2  ;;  %v2714_v45 = vadd.f32 %v2713_v46, %v17223_v18 }
 0x30d   : > { %v3810_v43 = vmin.f32 %v3490_v62, 6.0  ;;  %v3674_v30 = vmin.f32 %v3354_v61, 6.0 }
 0x30e   : > { %v3502_v22 = vmax.f32 %v2625_v3, 0.0  ;;  %v3503_v56 = vmax.f32 %v2714_v45, 0.0 }
 0x30f   : > { %v3931_v48 = vadd.f32 %v3930_v21, %v3810_v43  ;;  %v4065_v55 = vadd.f32 %v4064_v51, %v3674_v30 }
 0x310   : > { %v3822_v53 = vmin.f32 %v3502_v22, 6.0  ;;  %v3823_v47 = vmin.f32 %v3503_v56, 6.0  ;;  %v2446_v9 = vpop.f32.mrf.mxu3  ;;  %v2767_v27 = vpop.f32.mrf.mxu2 }
 0x311   : > { %v2447_v58 = vadd.f32 %v2446_v9, %v17236_v57  ;;  %v2768_v5 = vadd.f32 %v2767_v27, %v17389_v7 }
 0x312   : > { %v4006_v17 = vadd.f32 %v4005_v34, %v3822_v53  ;;  %v4043_v14 = vadd.f32 %v4042_v32, %v3823_v47 }
 0x313   : > { %v3500_v49 = vmax.f32 %v2447_v58, 0.0  ;;  %v3364_v0 = vmax.f32 %v2768_v5, 0.0  ;;  %v2627_v6 = vpop.f32.mrf.mxu0  ;;  %v2716_v10 = vpop.f32.mrf.mxu1 }
 0x314   : > { %v2628_v28 = vadd.f32 %v2627_v6, %v17220_v2  ;;  %v2717_v33 = vadd.f32 %v2716_v10, %v17223_v18 }
 0x315   : > { %v3820_v26 = vmin.f32 %v3500_v49, 6.0  ;;  %v3684_v54 = vmin.f32 %v3364_v0, 6.0  ;;  %11431 = vmatmul.msk.bf16.gmra.mxu3 %vm2331_vm1, %v17136_v24  ;;  %11488 = vmatmul.msk.bf16.gmra.mxu2 %vm2331_vm1, %v17321_v15 }
 0x316   : > { %v3512_v63 = vmax.f32 %v2628_v28, 0.0  ;;  %v3513_v52 = vmax.f32 %v2717_v33, 0.0  ;;  %11511 = vmatmul.msk.bf16.gmra.mxu0 %vm2331_vm1, %v17136_v24  ;;  %11527 = vmatmul.msk.bf16.gmra.mxu1 %vm2331_vm1, %v17136_v24 }
 0x317   : > { %v3932_v40 = vadd.f32 %v3931_v48, %v3820_v26  ;;  %v4066_v38 = vadd.f32 %v4065_v55, %v3684_v54 }
 0x318   : > { %v3832_v39 = vmin.f32 %v3512_v63, 6.0  ;;  %v3833_v13 = vmin.f32 %v3513_v52, 6.0  ;;  %v2449_v21 = vpop.f32.mrf.mxu3  ;;  %v2770_v51 = vpop.f32.mrf.mxu2 }
 0x319   : > { %v2450_v1 = vadd.f32 %v2449_v21, %v17236_v57  ;;  %v2771_v42 = vadd.f32 %v2770_v51, %v17389_v7 }
 0x31a   : > { %v4007_v31 = vadd.f32 %v4006_v17, %v3832_v39  ;;  %v4044_v29 = vadd.f32 %v4043_v14, %v3833_v13 }
 0x31b   : > { %v3510_v12 = vmax.f32 %v2450_v1, 0.0  ;;  %v3374_v60 = vmax.f32 %v2771_v42, 0.0  ;;  %v2629_v34 = vpop.f32.mrf.mxu0  ;;  %v2718_v32 = vpop.f32.mrf.mxu1  ;;  %v11405_v1 = vld [vmem:[%s23849_s9 + $0x20] sm:$0xf]  ;;  %v15103_v42 = vld [vmem:[%s23849_s9 + $0x44] sm:$0xf0] }
 0x31c   : > { %v2630_v62 = vadd.f32 %v2629_v34, %v17220_v2  ;;  %v2719_v61 = vadd.f32 %v2718_v32, %v17223_v18  ;;  %v11406_v34 = vor.u32 %v15103_v42, %v11405_v1 }
 0x31d   : > { %v3830_v50 = vmin.f32 %v3510_v12, 6.0  ;;  %v3694_v46 = vmin.f32 %v3374_v60, 6.0 }
 0x31e   : > { %v3522_v3 = vmax.f32 %v2630_v62, 0.0  ;;  %v3523_v45 = vmax.f32 %v2719_v61, 0.0  ;;  %3099 = vmatpush.bf16.msra.mxu2 %v11406_v34 }
 0x31f   : > { %v3933_v43 = vadd.f32 %v3932_v40, %v3830_v50  ;;  %v4067_v30 = vadd.f32 %v4066_v38, %v3694_v46 }
 0x320   : > { %v3842_v22 = vmin.f32 %v3522_v3, 6.0  ;;  %v3843_v56 = vmin.f32 %v3523_v45, 6.0  ;;  %v2451_v48 = vpop.f32.mrf.mxu3  ;;  %v2772_v55 = vpop.f32.mrf.mxu2 }
 0x321   : > { %v2452_v53 = vadd.f32 %v2451_v48, %v17236_v57  ;;  %v2773_v47 = vadd.f32 %v2772_v55, %v17389_v7 }
 0x322   : > { %v4008_v9 = vadd.f32 %v4007_v31, %v3842_v22  ;;  %v4045_v27 = vadd.f32 %v4044_v29, %v3843_v56 }
 0x323   : > { %v3520_v58 = vmax.f32 %v2452_v53, 0.0  ;;  %v3384_v5 = vmax.f32 %v2773_v47, 0.0  ;;  %v2632_v17 = vpop.f32.mrf.mxu0  ;;  %v2721_v14 = vpop.f32.mrf.mxu1 }
 0x324   : > { %v2633_v49 = vadd.f32 %v2632_v17, %v17220_v2  ;;  %v2722_v0 = vadd.f32 %v2721_v14, %v17223_v18 }
 0x325   : > { %v3840_v6 = vmin.f32 %v3520_v58, 6.0  ;;  %v3704_v10 = vmin.f32 %v3384_v5, 6.0  ;;  %11432 = vmatmul.msk.bf16.gmra.mxu3 %vm2331_vm1, %v17169_v59  ;;  %11489 = vmatmul.msk.bf16.gmra.mxu2 %vm2331_vm1, %v17339_v37 }
 0x326   : > { %v3532_v28 = vmax.f32 %v2633_v49, 0.0  ;;  %v3533_v33 = vmax.f32 %v2722_v0, 0.0  ;;  %11512 = vmatmul.msk.bf16.gmra.mxu0 %vm2331_vm1, %v17169_v59  ;;  %11528 = vmatmul.msk.bf16.gmra.mxu1 %vm2331_vm1, %v17169_v59 }
 0x327   : > { %v3934_v26 = vadd.f32 %v3933_v43, %v3840_v6  ;;  %v4068_v54 = vadd.f32 %v4067_v30, %v3704_v10 }
 0x328   : > { %v3852_v63 = vmin.f32 %v3532_v28, 6.0  ;;  %v3853_v52 = vmin.f32 %v3533_v33, 6.0  ;;  %v2454_v40 = vpop.f32.mrf.mxu3  ;;  %v2775_v38 = vpop.f32.mrf.mxu2 }
 0x329   : > { %v2455_v39 = vadd.f32 %v2454_v40, %v17236_v57  ;;  %v2776_v13 = vadd.f32 %v2775_v38, %v17389_v7 }
 0x32a   : > { %v4009_v21 = vadd.f32 %v4008_v9, %v3852_v63  ;;  %v4046_v51 = vadd.f32 %v4045_v27, %v3853_v52 }
 0x32b   : > { %v3530_v31 = vmax.f32 %v2455_v39, 0.0  ;;  %v3394_v29 = vmax.f32 %v2776_v13, 0.0  ;;  %v2634_v12 = vpop.f32.mrf.mxu0  ;;  %v2723_v60 = vpop.f32.mrf.mxu1 }
 0x32c   : > { %v2635_v32 = vadd.f32 %v2634_v12, %v17220_v2  ;;  %v2724_v62 = vadd.f32 %v2723_v60, %v17223_v18 }
 0x32d   : > { %v3850_v61 = vmin.f32 %v3530_v31, 6.0  ;;  %v3714_v50 = vmin.f32 %v3394_v29, 6.0 }
 0x32e   : > { %v3542_v46 = vmax.f32 %v2635_v32, 0.0  ;;  %v3543_v3 = vmax.f32 %v2724_v62, 0.0 }
 0x32f   : > { %v3935_v45 = vadd.f32 %v3934_v26, %v3850_v61  ;;  %v4069_v43 = vadd.f32 %v4068_v54, %v3714_v50 }
 0x330   : > { %v3862_v30 = vmin.f32 %v3542_v46, 6.0  ;;  %v3863_v22 = vmin.f32 %v3543_v3, 6.0  ;;  %v2456_v56 = vpop.f32.mrf.mxu3  ;;  %v2777_v48 = vpop.f32.mrf.mxu2 }
 0x331   : > { %v2457_v55 = vadd.f32 %v2456_v56, %v17236_v57  ;;  %v2778_v53 = vadd.f32 %v2777_v48, %v17389_v7 }
 0x332   : > { %v4010_v47 = vadd.f32 %v4009_v21, %v3862_v30  ;;  %v4047_v9 = vadd.f32 %v4046_v51, %v3863_v22 }
 0x333   : > { %v3540_v27 = vmax.f32 %v2457_v55, 0.0  ;;  %v3404_v58 = vmax.f32 %v2778_v53, 0.0  ;;  %v2637_v5 = vpop.f32.mrf.mxu0  ;;  %v2726_v17 = vpop.f32.mrf.mxu1 }
 0x334   : > { %v2638_v14 = vadd.f32 %v2637_v5, %v17220_v2  ;;  %v2727_v49 = vadd.f32 %v2726_v17, %v17223_v18 }
 0x335   : > { %v3860_v0 = vmin.f32 %v3540_v27, 6.0  ;;  %v3724_v6 = vmin.f32 %v3404_v58, 6.0  ;;  %11433 = vmatmul.msk.bf16.gmra.mxu3 %vm2331_vm1, %v17189_v25  ;;  %11490 = vmatmul.msk.bf16.gmra.mxu2 %vm2331_vm1, %v17375_v41 }
 0x336   : > { %v3552_v10 = vmax.f32 %v2638_v14, 0.0  ;;  %v3553_v28 = vmax.f32 %v2727_v49, 0.0  ;;  %11513 = vmatmul.msk.bf16.gmra.mxu0 %vm2331_vm1, %v17189_v25  ;;  %11529 = vmatmul.msk.bf16.gmra.mxu1 %vm2331_vm1, %v17189_v25 }
 0x337   : > { %v3936_v33 = vadd.f32 %v3935_v45, %v3860_v0  ;;  %v4070_v26 = vadd.f32 %v4069_v43, %v3724_v6 }
 0x338   : > { %v3872_v54 = vmin.f32 %v3552_v10, 6.0  ;;  %v3873_v63 = vmin.f32 %v3553_v28, 6.0  ;;  %v2459_v52 = vpop.f32.mrf.mxu3  ;;  %v2780_v40 = vpop.f32.mrf.mxu2 }
 0x339   : > { %v2460_v38 = vadd.f32 %v2459_v52, %v17236_v57  ;;  %v2781_v39 = vadd.f32 %v2780_v40, %v17389_v7 }
 0x33a   : > { %v4011_v13 = vadd.f32 %v4010_v47, %v3872_v54  ;;  %v4048_v21 = vadd.f32 %v4047_v9, %v3873_v63 }
 0x33b   : > { %v3550_v51 = vmax.f32 %v2460_v38, 0.0  ;;  %v3414_v1 = vmax.f32 %v2781_v39, 0.0  ;;  %v2639_v42 = vpop.f32.mrf.mxu0  ;;  %v2728_v31 = vpop.f32.mrf.mxu1 }
 0x33c   : > { %v2640_v29 = vadd.f32 %v2639_v42, %v17220_v2  ;;  %v2729_v12 = vadd.f32 %v2728_v31, %v17223_v18 }
 0x33d   : > { %v3870_v60 = vmin.f32 %v3550_v51, 6.0  ;;  %v3734_v34 = vmin.f32 %v3414_v1, 6.0 }
 0x33e   : > { %v3562_v32 = vmax.f32 %v2640_v29, 0.0  ;;  %v3563_v62 = vmax.f32 %v2729_v12, 0.0 }
 0x33f   : > { %v3937_v61 = vadd.f32 %v3936_v33, %v3870_v60  ;;  %v4071_v50 = vadd.f32 %v4070_v26, %v3734_v34 }
 0x340   : > { %v3882_v46 = vmin.f32 %v3562_v32, 6.0  ;;  %v3883_v3 = vmin.f32 %v3563_v62, 6.0  ;;  %v2461_v45 = vpop.f32.mrf.mxu3  ;;  %v2782_v43 = vpop.f32.mrf.mxu2 }
 0x341   : > { %v2462_v30 = vadd.f32 %v2461_v45, %v17236_v57  ;;  %v2783_v22 = vadd.f32 %v2782_v43, %v17389_v7 }
 0x342   : > { %v4012_v56 = vadd.f32 %v4011_v13, %v3882_v46  ;;  %v4049_v48 = vadd.f32 %v4048_v21, %v3883_v3 }
 0x343   : > { %v3560_v55 = vmax.f32 %v2462_v30, 0.0  ;;  %v3424_v53 = vmax.f32 %v2783_v22, 0.0  ;;  %v2642_v47 = vpop.f32.mrf.mxu0  ;;  %v2731_v9 = vpop.f32.mrf.mxu1 }
 0x344   : > { %v2643_v27 = vadd.f32 %v2642_v47, %v17220_v2  ;;  %v2732_v58 = vadd.f32 %v2731_v9, %v17223_v18 }
 0x345   : > { %v3880_v5 = vmin.f32 %v3560_v55, 6.0  ;;  %v3744_v17 = vmin.f32 %v3424_v53, 6.0  ;;  %11434 = vmatmul.msk.bf16.gmra.mxu3 %vm2331_vm1, %v17200_v36  ;;  %11539 = vmatmul.msk.bf16.vlgmr.msra.gmra.mxu2 %vm2331_vm1, %v16927_v20 }
 0x346   : > { %v3572_v14 = vmax.f32 %v2643_v27, 0.0  ;;  %v3573_v49 = vmax.f32 %v2732_v58, 0.0  ;;  %11514 = vmatmul.msk.bf16.gmra.mxu0 %vm2331_vm1, %v17200_v36  ;;  %11530 = vmatmul.msk.bf16.gmra.mxu1 %vm2331_vm1, %v17200_v36 }
 0x347   : > { %v3938_v0 = vadd.f32 %v3937_v61, %v3880_v5  ;;  %v4072_v6 = vadd.f32 %v4071_v50, %v3744_v17 }
 0x348   : > { %v3892_v10 = vmin.f32 %v3572_v14, 6.0  ;;  %v3893_v28 = vmin.f32 %v3573_v49, 6.0  ;;  %v2464_v33 = vpop.f32.mrf.mxu3  ;;  %v2785_v26 = vpop.f32.mrf.mxu2 }
 0x349   : > { %v2465_v54 = vadd.f32 %v2464_v33, %v17236_v57  ;;  %v2786_v63 = vadd.f32 %v2785_v26, %v17389_v7 }
 0x34a   : > { %v4013_v52 = vadd.f32 %v4012_v56, %v3892_v10  ;;  %v4050_v40 = vadd.f32 %v4049_v48, %v3893_v28  ;;  %v16012_v56 = vld [vmem:[%s23850_s10] sm:$0xff] }
 0x34b   : > { %v3570_v38 = vmax.f32 %v2465_v54, 0.0  ;;  %v3434_v39 = vmax.f32 %v2786_v63, 0.0  ;;  %v2644_v13 = vpop.f32.mrf.mxu0  ;;  %v2733_v21 = vpop.f32.mrf.mxu1  ;;  %v17537_v48 = vperm.slane %v16012_v56, 6  ;;  %v17539_v55 = vperm.slane %v16012_v56, 7 }
 0x34c   : > { %v2645_v51 = vadd.f32 %v2644_v13, %v17220_v2  ;;  %v2734_v1 = vadd.f32 %v2733_v21, %v17223_v18  ;;  %v17553_v14 = vperm.slane %v16012_v56, 1 }
 0x34d   : > { %v3890_v42 = vmin.f32 %v3570_v38, 6.0  ;;  %v3754_v31 = vmin.f32 %v3434_v39, 6.0 }
 0x34e   : > { %v3582_v29 = vmax.f32 %v2645_v51, 0.0  ;;  %v3583_v12 = vmax.f32 %v2734_v1, 0.0 }
 0x34f   : > { %v3939_v60 = vadd.f32 %v3938_v0, %v3890_v42  ;;  %v4073_v34 = vadd.f32 %v4072_v6, %v3754_v31 }
 0x350   : > { %v3902_v32 = vmin.f32 %v3582_v29, 6.0  ;;  %v3903_v62 = vmin.f32 %v3583_v12, 6.0  ;;  %v2466_v61 = vpop.f32.mrf.mxu3  ;;  %v2787_v50 = vpop.f32.mrf.mxu2 }
 0x351   : > { %v2467_v46 = vadd.f32 %v2466_v61, %v17236_v57  ;;  %v2788_v3 = vadd.f32 %v2787_v50, %v17389_v7 }
 0x352   : > { %v17530_v45 = vadd.f32 %v4013_v52, %v3902_v32  ;;  %v17532_v43 = vadd.f32 %v4050_v40, %v3903_v62 }
 0x353   : > { %v3580_v2 = vmax.f32 %v2467_v46, 0.0  ;;  %v3444_v18 = vmax.f32 %v2788_v3, 0.0  ;;  %v2923_v30 = vpop.f32.mrf.mxu0  ;;  %v3012_v22 = vpop.f32.mrf.mxu1 }
 0x354   : > { %v2924_v27 = vadd.f32 %v2923_v30, %v17537_v48  ;;  %v3013_v58 = vadd.f32 %v3012_v22, %v17539_v55 }
 0x355   : > { %v3900_v53 = vmin.f32 %v3580_v2, 6.0  ;;  %v3764_v57 = vmin.f32 %v3444_v18, 6.0  ;;  %11435 = vmatmul.msk.bf16.gmra.mxu3 %vm2331_vm1, %v17217_v16  ;;  %11540 = vmatmul.msk.bf16.gmra.mxu2 %vm2331_vm1, %v16981_v23 }
 0x356   : > { %11515 = vmatmul.msk.bf16.gmra.mxu0 %vm2331_vm1, %v17217_v16  ;;  %11531 = vmatmul.msk.bf16.gmra.mxu1 %vm2331_vm1, %v17217_v16  ;;  %v3276_v28 = vmax.f32 %v2924_v27, 0.0  ;;  %v3277_v33 = vmax.f32 %v3013_v58, 0.0 }
 0x357   : > { %v17549_v47 = vadd.f32 %v3939_v60, %v3900_v53  ;;  %v4074_v9 = vadd.f32 %v4073_v34, %v3764_v57 }
 0x358   : > { %v2478_v5 = vpop.f32.mrf.mxu3  ;;  %v2790_v17 = vpop.f32.mrf.mxu2  ;;  %v3596_v13 = vmin.f32 %v3276_v28, 6.0  ;;  %v3597_v21 = vmin.f32 %v3277_v33, 6.0 }
 0x359   : > { %v2791_v49 = vadd.f32 %v2790_v17, %v17389_v7  ;;  %v2479_v63 = vadd.f32 %v2478_v5, %v17553_v14 }
 0x35b   : > { %v3454_v0 = vmax.f32 %v2791_v49, 0.0  ;;  %v2925_v6 = vpop.f32.mrf.mxu0  ;;  %v3014_v10 = vpop.f32.mrf.mxu1  ;;  %v3271_v29 = vmax.f32 %v2479_v63, 0.0 }
 0x35c   : > { %v2926_v26 = vadd.f32 %v2925_v6, %v17537_v48  ;;  %v3015_v54 = vadd.f32 %v3014_v10, %v17539_v55 }
 0x35d   : > { %v3774_v52 = vmin.f32 %v3454_v0, 6.0  ;;  %v3591_v18 = vmin.f32 %v3271_v29, 6.0 }
 0x35e   : > { %v3286_v40 = vmax.f32 %v2926_v26, 0.0  ;;  %v3287_v38 = vmax.f32 %v3015_v54, 0.0 }
 0x35f   : > { %v4075_v39 = vadd.f32 %v4074_v9, %v3774_v52 }
 0x360   : > { %v3606_v51 = vmin.f32 %v3286_v40, 6.0  ;;  %v3607_v1 = vmin.f32 %v3287_v38, 6.0  ;;  %v2480_v42 = vpop.f32.mrf.mxu3  ;;  %v2792_v31 = vpop.f32.mrf.mxu2 }
 0x361   : > { %v2481_v12 = vadd.f32 %v2480_v42, %v17553_v14  ;;  %v2793_v60 = vadd.f32 %v2792_v31, %v17389_v7 }
 0x362   : > { %v4132_v34 = vadd.f32 %v3606_v51, %v3596_v13  ;;  %v4169_v32 = vadd.f32 %v3607_v1, %v3597_v21 }
 0x363   : > { %v3281_v62 = vmax.f32 %v2481_v12, 0.0  ;;  %v3464_v61 = vmax.f32 %v2793_v60, 0.0  ;;  %v2928_v50 = vpop.f32.mrf.mxu0  ;;  %v3017_v46 = vpop.f32.mrf.mxu1 }
 0x364   : > { %v2929_v3 = vadd.f32 %v2928_v50, %v17537_v48  ;;  %v3018_v2 = vadd.f32 %v3017_v46, %v17539_v55 }
 0x365   : > { %v3601_v30 = vmin.f32 %v3281_v62, 6.0  ;;  %v3784_v22 = vmin.f32 %v3464_v61, 6.0  ;;  %11436 = vmatmul.msk.bf16.gmra.mxu3 %vm2331_vm1, %v17244_v11  ;;  %11541 = vmatmul.msk.bf16.gmra.mxu2 %vm2331_vm1, %v17035_v4 }
 0x366   : > { %v3296_v56 = vmax.f32 %v2929_v3, 0.0  ;;  %v3297_v53 = vmax.f32 %v3018_v2, 0.0  ;;  %11516 = vmatmul.msk.bf16.gmra.mxu0 %vm2331_vm1, %v17244_v11  ;;  %11532 = vmatmul.msk.bf16.gmra.mxu1 %vm2331_vm1, %v17244_v11 }
 0x367   : > { %v3947_v57 = vadd.f32 %v3601_v30, %v3591_v18  ;;  %v4076_v9 = vadd.f32 %v4075_v39, %v3784_v22 }
 0x368   : > { %v3616_v27 = vmin.f32 %v3296_v56, 6.0  ;;  %v3617_v58 = vmin.f32 %v3297_v53, 6.0  ;;  %v2483_v5 = vpop.f32.mrf.mxu3  ;;  %v2795_v17 = vpop.f32.mrf.mxu2 }
 0x369   : > { %v2484_v49 = vadd.f32 %v2483_v5, %v17553_v14  ;;  %v2796_v0 = vadd.f32 %v2795_v17, %v17389_v7 }
 0x36a   : > { %v4133_v6 = vadd.f32 %v4132_v34, %v3616_v27  ;;  %v4170_v10 = vadd.f32 %v4169_v32, %v3617_v58 }
 0x36b   : > { %v3291_v28 = vmax.f32 %v2484_v49, 0.0  ;;  %v3474_v33 = vmax.f32 %v2796_v0, 0.0  ;;  %v2930_v26 = vpop.f32.mrf.mxu0  ;;  %v3019_v54 = vpop.f32.mrf.mxu1 }
 0x36c   : > { %v2931_v63 = vadd.f32 %v2930_v26, %v17537_v48  ;;  %v3020_v52 = vadd.f32 %v3019_v54, %v17539_v55 }
 0x36d   : > { %v3611_v40 = vmin.f32 %v3291_v28, 6.0  ;;  %v3794_v38 = vmin.f32 %v3474_v33, 6.0 }
 0x36e   : > { %v3306_v39 = vmax.f32 %v2931_v63, 0.0  ;;  %v3307_v13 = vmax.f32 %v3020_v52, 0.0 }
 0x36f   : > { %v3948_v21 = vadd.f32 %v3947_v57, %v3611_v40  ;;  %v4077_v51 = vadd.f32 %v4076_v9, %v3794_v38 }
 0x370   : > { %v3626_v1 = vmin.f32 %v3306_v39, 6.0  ;;  %v3627_v42 = vmin.f32 %v3307_v13, 6.0  ;;  %v2485_v31 = vpop.f32.mrf.mxu3  ;;  %v2797_v29 = vpop.f32.mrf.mxu2 }
 0x371   : > { %v2486_v12 = vadd.f32 %v2485_v31, %v17553_v14  ;;  %v2798_v60 = vadd.f32 %v2797_v29, %v17389_v7 }
 0x372   : > { %v4134_v34 = vadd.f32 %v4133_v6, %v3626_v1  ;;  %v4171_v32 = vadd.f32 %v4170_v10, %v3627_v42 }
 0x373   : > { %v3301_v62 = vmax.f32 %v2486_v12, 0.0  ;;  %v3484_v61 = vmax.f32 %v2798_v60, 0.0  ;;  %v2933_v50 = vpop.f32.mrf.mxu0  ;;  %v3022_v46 = vpop.f32.mrf.mxu1 }
 0x374   : > { %v2934_v3 = vadd.f32 %v2933_v50, %v17537_v48  ;;  %v3023_v2 = vadd.f32 %v3022_v46, %v17539_v55 }
 0x375   : > { %v3621_v18 = vmin.f32 %v3301_v62, 6.0  ;;  %v3804_v30 = vmin.f32 %v3484_v61, 6.0  ;;  %11437 = vmatmul.msk.bf16.gmra.mxu3 %vm2331_vm1, %v17262_v35  ;;  %11542 = vmatmul.msk.bf16.gmra.mxu2 %vm2331_vm1, %v17086_v44 }
 0x376   : > { %v3316_v22 = vmax.f32 %v2934_v3, 0.0  ;;  %v3317_v56 = vmax.f32 %v3023_v2, 0.0  ;;  %11517 = vmatmul.msk.bf16.gmra.mxu0 %vm2331_vm1, %v17262_v35  ;;  %11533 = vmatmul.msk.bf16.gmra.mxu1 %vm2331_vm1, %v17262_v35 }
 0x377   : > { %v3949_v53 = vadd.f32 %v3948_v21, %v3621_v18  ;;  %v4078_v57 = vadd.f32 %v4077_v51, %v3804_v30 }
 0x378   : > { %v3636_v9 = vmin.f32 %v3316_v22, 6.0  ;;  %v3637_v27 = vmin.f32 %v3317_v56, 6.0  ;;  %v2488_v58 = vpop.f32.mrf.mxu3  ;;  %v2800_v5 = vpop.f32.mrf.mxu2 }
 0x379   : > { %v2489_v17 = vadd.f32 %v2488_v58, %v17553_v14  ;;  %v2801_v49 = vadd.f32 %v2800_v5, %v17389_v7 }
 0x37a   : > { %v4135_v0 = vadd.f32 %v4134_v34, %v3636_v9  ;;  %v4172_v6 = vadd.f32 %v4171_v32, %v3637_v27 }
 0x37b   : > { %v3311_v10 = vmax.f32 %v2489_v17, 0.0  ;;  %v3494_v28 = vmax.f32 %v2801_v49, 0.0  ;;  %v2935_v33 = vpop.f32.mrf.mxu0  ;;  %v3024_v26 = vpop.f32.mrf.mxu1 }
 0x37c   : > { %v2936_v54 = vadd.f32 %v2935_v33, %v17537_v48  ;;  %v3025_v63 = vadd.f32 %v3024_v26, %v17539_v55 }
 0x37d   : > { %v3631_v52 = vmin.f32 %v3311_v10, 6.0  ;;  %v3814_v40 = vmin.f32 %v3494_v28, 6.0 }
 0x37e   : > { %v3326_v38 = vmax.f32 %v2936_v54, 0.0  ;;  %v3327_v39 = vmax.f32 %v3025_v63, 0.0 }
 0x37f   : > { %v3950_v13 = vadd.f32 %v3949_v53, %v3631_v52  ;;  %v4079_v21 = vadd.f32 %v4078_v57, %v3814_v40 }
 0x380   : > { %v3646_v51 = vmin.f32 %v3326_v38, 6.0  ;;  %v3647_v1 = vmin.f32 %v3327_v39, 6.0  ;;  %v2490_v42 = vpop.f32.mrf.mxu3  ;;  %v2802_v31 = vpop.f32.mrf.mxu2 }
 0x381   : > { %v2491_v29 = vadd.f32 %v2490_v42, %v17553_v14  ;;  %v2803_v12 = vadd.f32 %v2802_v31, %v17389_v7 }
 0x382   : > { %v4136_v60 = vadd.f32 %v4135_v0, %v3646_v51  ;;  %v4173_v34 = vadd.f32 %v4172_v6, %v3647_v1  ;;  %v15186_v51 = vld [vmem:[%s23851_s11 + $0x290] sm:$0xf0] }
 0x383   : > { %v3321_v32 = vmax.f32 %v2491_v29, 0.0  ;;  %v3504_v62 = vmax.f32 %v2803_v12, 0.0  ;;  %v2938_v61 = vpop.f32.mrf.mxu0  ;;  %v3027_v50 = vpop.f32.mrf.mxu1 }
 0x384   : > { %v2939_v46 = vadd.f32 %v2938_v61, %v17537_v48  ;;  %v3028_v3 = vadd.f32 %v3027_v50, %v17539_v55  ;;  %v11837_v61 = vld [vmem:[%s23851_s11 + $0x210] sm:$0xf]  ;;  %v15175_v50 = vld [vmem:[%s23851_s11 + $0x238] sm:$0xf0] }
 0x385   : > { %v3641_v2 = vmin.f32 %v3321_v32, 6.0  ;;  %v3824_v18 = vmin.f32 %v3504_v62, 6.0  ;;  %11438 = vmatmul.msk.bf16.gmra.mxu3 %vm2331_vm1, %v17280_v8  ;;  %11543 = vmatmul.msk.bf16.gmra.mxu2 %vm2331_vm1, %v17136_v24 }
 0x386   : > { %v3336_v30 = vmax.f32 %v2939_v46, 0.0  ;;  %v3337_v22 = vmax.f32 %v3028_v3, 0.0  ;;  %11518 = vmatmul.msk.bf16.gmra.mxu0 %vm2331_vm1, %v17280_v8  ;;  %11534 = vmatmul.msk.bf16.gmra.mxu1 %vm2331_vm1, %v17280_v8 }
 0x387   : > { %v3951_v56 = vadd.f32 %v3950_v13, %v3641_v2  ;;  %v4080_v53 = vadd.f32 %v4079_v21, %v3824_v18  ;;  %v11881_v21 = vld [vmem:[%s23851_s11 + $0x268] sm:$0xf] }
 0x388   : > { %v3656_v57 = vmin.f32 %v3336_v30, 6.0  ;;  %v3657_v9 = vmin.f32 %v3337_v22, 6.0  ;;  %v2493_v27 = vpop.f32.mrf.mxu3  ;;  %v2805_v58 = vpop.f32.mrf.mxu2  ;;  %v11882_v12 = vor.u32 %v15186_v51, %v11881_v21  ;;  %v11838_v30 = vor.u32 %v15175_v50, %v11837_v61  ;;  %v15142_v61 = vld [vmem:[%s23851_s11 + $0x130] sm:$0xf0] }
 0x389   : > { %v2494_v5 = vadd.f32 %v2493_v27, %v17553_v14  ;;  %v2806_v17 = vadd.f32 %v2805_v58, %v17389_v7 }
 0x38a   : > { %v4137_v49 = vadd.f32 %v4136_v60, %v3656_v57  ;;  %v4174_v0 = vadd.f32 %v4173_v34, %v3657_v9  ;;  %9773 = vmatpush.bf16.msrb.mxu0 %v11882_v12 }
 0x38b   : > { %v3331_v6 = vmax.f32 %v2494_v5, 0.0  ;;  %v3514_v10 = vmax.f32 %v2806_v17, 0.0  ;;  %v2940_v28 = vpop.f32.mrf.mxu0  ;;  %v3029_v33 = vpop.f32.mrf.mxu1  ;;  %v11793_v17 = vld [vmem:[%s23851_s11 + $0x1b8] sm:$0xf] }
 0x38c   : > { %v2941_v26 = vadd.f32 %v2940_v28, %v17537_v48  ;;  %v3030_v54 = vadd.f32 %v3029_v33, %v17539_v55 }
 0x38d   : > { %v3651_v63 = vmin.f32 %v3331_v6, 6.0  ;;  %v3834_v52 = vmin.f32 %v3514_v10, 6.0 }
 0x38e   : > { %v3346_v40 = vmax.f32 %v2941_v26, 0.0  ;;  %v3347_v38 = vmax.f32 %v3030_v54, 0.0  ;;  %9774 = vmatpush.bf16.msrb.mxu0 %v11838_v30 }
 0x38f   : > { %v3952_v39 = vadd.f32 %v3951_v56, %v3651_v63  ;;  %v4081_v13 = vadd.f32 %v4080_v53, %v3834_v52 }
 0x390   : > { %v3666_v1 = vmin.f32 %v3346_v40, 6.0  ;;  %v3667_v42 = vmin.f32 %v3347_v38, 6.0  ;;  %v2495_v31 = vpop.f32.mrf.mxu3  ;;  %v2807_v29 = vpop.f32.mrf.mxu2  ;;  %v11749_v40 = vld [vmem:[%s23851_s11 + $0x160] sm:$0xf]  ;;  %v15153_v38 = vld [vmem:[%s23851_s11 + $0x188] sm:$0xf0] }
 0x391   : > { %v2496_v60 = vadd.f32 %v2495_v31, %v17553_v14  ;;  %v2808_v34 = vadd.f32 %v2807_v29, %v17389_v7 }
 0x392   : > { %v4138_v32 = vadd.f32 %v4137_v49, %v3666_v1  ;;  %v4175_v62 = vadd.f32 %v4174_v0, %v3667_v42  ;;  %v15164_v49 = vld [vmem:[%s23851_s11 + $0x1e0] sm:$0xf0]  ;;  %v11750_v1 = vor.u32 %v15153_v38, %v11749_v40 }
 0x393   : > { %v3341_v46 = vmax.f32 %v2496_v60, 0.0  ;;  %v3524_v3 = vmax.f32 %v2808_v34, 0.0  ;;  %v2943_v2 = vpop.f32.mrf.mxu0  ;;  %v3032_v18 = vpop.f32.mrf.mxu1  ;;  %v11794_v33 = vor.u32 %v15164_v49, %v11793_v17 }
 0x394   : > { %v2944_v22 = vadd.f32 %v2943_v2, %v17537_v48  ;;  %v3033_v56 = vadd.f32 %v3032_v18, %v17539_v55 }
 0x395   : > { %v3661_v53 = vmin.f32 %v3341_v46, 6.0  ;;  %v3844_v57 = vmin.f32 %v3524_v3, 6.0  ;;  %11439 = vmatmul.msk.bf16.gmra.mxu3 %vm2331_vm1, %v17303_v19  ;;  %11544 = vmatmul.msk.bf16.gmra.mxu2 %vm2331_vm1, %v17169_v59 }
 0x396   : > { %v3356_v9 = vmax.f32 %v2944_v22, 0.0  ;;  %v3357_v27 = vmax.f32 %v3033_v56, 0.0  ;;  %11519 = vmatmul.msk.bf16.gmra.mxu0 %vm2331_vm1, %v17303_v19  ;;  %11535 = vmatmul.msk.bf16.gmra.mxu1 %vm2331_vm1, %v17303_v19 }
 0x397   : > { %v3953_v58 = vadd.f32 %v3952_v39, %v3661_v53  ;;  %v4082_v5 = vadd.f32 %v4081_v13, %v3844_v57  ;;  %9775 = vmatpush.bf16.msrb.mxu0 %v11794_v33  ;;  %v11661_v53 = vld [vmem:[%s23851_s11 + $0xb0] sm:$0xf]  ;;  %v15131_v57 = vld [vmem:[%s23851_s11 + $0xd8] sm:$0xf0] }
 0x398   : > { %v3676_v0 = vmin.f32 %v3356_v9, 6.0  ;;  %v3677_v6 = vmin.f32 %v3357_v27, 6.0  ;;  %v2498_v10 = vpop.f32.mrf.mxu3  ;;  %v2810_v28 = vpop.f32.mrf.mxu2  ;;  %v11662_v17 = vor.u32 %v15131_v57, %v11661_v53 }
 0x399   : > { %v2499_v26 = vadd.f32 %v2498_v10, %v17553_v14  ;;  %v2811_v54 = vadd.f32 %v2810_v28, %v17389_v7 }
 0x39a   : > { %v4139_v63 = vadd.f32 %v4138_v32, %v3676_v0  ;;  %v4176_v52 = vadd.f32 %v4175_v62, %v3677_v6  ;;  %v11705_v62 = vld [vmem:[%s23851_s11 + $0x108] sm:$0xf] }
 0x39b   : > { %v3351_v39 = vmax.f32 %v2499_v26, 0.0  ;;  %v3534_v13 = vmax.f32 %v2811_v54, 0.0  ;;  %v2945_v21 = vpop.f32.mrf.mxu0  ;;  %v3034_v51 = vpop.f32.mrf.mxu1  ;;  %9776 = vmatpush.bf16.msrb.mxu0 %v11750_v1  ;;  %v11706_v18 = vor.u32 %v15142_v61, %v11705_v62 }
 0x39c   : > { %v2946_v42 = vadd.f32 %v2945_v21, %v17537_v48  ;;  %v3035_v31 = vadd.f32 %v3034_v51, %v17539_v55 }
 0x39d   : > { %v3671_v29 = vmin.f32 %v3351_v39, 6.0  ;;  %v3854_v12 = vmin.f32 %v3534_v13, 6.0 }
 0x39e   : > { %v3366_v60 = vmax.f32 %v2946_v42, 0.0  ;;  %v3367_v46 = vmax.f32 %v3035_v31, 0.0 }
 0x39f   : > { %v3954_v34 = vadd.f32 %v3953_v58, %v3671_v29  ;;  %v4083_v32 = vadd.f32 %v4082_v5, %v3854_v12  ;;  %9777 = vmatpush.bf16.msrb.mxu0 %v11706_v18 }
 0x3a0   : > { %v3686_v50 = vmin.f32 %v3366_v60, 6.0  ;;  %v2500_v3 = vpop.f32.mrf.mxu3  ;;  %v2812_v2 = vpop.f32.mrf.mxu2  ;;  %v3687_v49 = vmin.f32 %v3367_v46, 6.0 }
 0x3a1   : > { %v2501_v30 = vadd.f32 %v2500_v3, %v17553_v14  ;;  %v2813_v22 = vadd.f32 %v2812_v2, %v17389_v7 }
 0x3a2   : > { %v4140_v56 = vadd.f32 %v4139_v63, %v3686_v50  ;;  %v4177_v40 = vadd.f32 %v4176_v52, %v3687_v49  ;;  %v15120_v52 = vld [vmem:[%s23851_s11 + $0x80] sm:$0xf0] }
 0x3a3   : > { %v3361_v9 = vmax.f32 %v2501_v30, 0.0  ;;  %v3544_v27 = vmax.f32 %v2813_v22, 0.0  ;;  %v2948_v58 = vpop.f32.mrf.mxu0  ;;  %v3037_v5 = vpop.f32.mrf.mxu1  ;;  %9778 = vmatpush.bf16.msrb.mxu0 %v11662_v17  ;;  %v11573_v22 = vld [vmem:[%s23851_s11] sm:$0xf]  ;;  %v15450_v17 = vld [vmem:[%s23851_s11 + $0xad0] sm:$0xf0] }
 0x3a4   : > { %v2949_v0 = vadd.f32 %v2948_v58, %v17537_v48  ;;  %v3038_v6 = vadd.f32 %v3037_v5, %v17539_v55  ;;  %v12937_v5 = vld [vmem:[%s23851_s11 + $0xaa8] sm:$0xf] }
 0x3a5   : > { %v3681_v10 = vmin.f32 %v3361_v9, 6.0  ;;  %v3864_v28 = vmin.f32 %v3544_v27, 6.0  ;;  %11440 = vmatmul.msk.bf16.gmra.mxu3 %vm2331_vm1, %v17321_v15  ;;  %11545 = vmatmul.msk.bf16.gmra.mxu2 %vm2331_vm1, %v17189_v25 }
 0x3a6   : > { %v3376_v33 = vmax.f32 %v2949_v0, 0.0  ;;  %v3377_v26 = vmax.f32 %v3038_v6, 0.0  ;;  %11520 = vmatmul.msk.bf16.gmra.mxu0 %vm2331_vm1, %v17321_v15  ;;  %11536 = vmatmul.msk.bf16.gmra.mxu1 %vm2331_vm1, %v17321_v15  ;;  %v12938_v6 = vor.u32 %v15450_v17, %v12937_v5 }
 0x3a7   : > { %v3955_v54 = vadd.f32 %v3954_v34, %v3681_v10  ;;  %v4084_v63 = vadd.f32 %v4083_v32, %v3864_v28  ;;  %v11617_v34 = vld [vmem:[%s23851_s11 + $0x58] sm:$0xf] }
 0x3a8   : > { %v3696_v38 = vmin.f32 %v3376_v33, 6.0  ;;  %v3697_v39 = vmin.f32 %v3377_v26, 6.0  ;;  %v2503_v13 = vpop.f32.mrf.mxu3  ;;  %v2815_v21 = vpop.f32.mrf.mxu2  ;;  %v11618_v50 = vor.u32 %v15120_v52, %v11617_v34  ;;  %v12849_v52 = vld [vmem:[%s23851_s11 + $0x9f8] sm:$0xf] }
 0x3a9   : > { %v2504_v51 = vadd.f32 %v2503_v13, %v17553_v14  ;;  %v2816_v1 = vadd.f32 %v2815_v21, %v17389_v7  ;;  %v15439_v13 = vld [vmem:[%s23851_s11 + $0xa78] sm:$0xf0]  ;;  %v16028_v21 = vmov 256.0  }
 0x3aa   : > { %v4141_v42 = vadd.f32 %v4140_v56, %v3696_v38  ;;  %v4178_v31 = vadd.f32 %v4177_v40, %v3697_v39  ;;  %9779 = vmatpush.bf16.msrb.mxu0 %v11618_v50  ;;  %v15109_v56 = vld [vmem:[%s23851_s11 + $0x28] sm:$0xf0]  ;;  %v12893_v39 = vld [vmem:[%s23851_s11 + $0xa50] sm:$0xf]  ;;  %16004 = vrcp.f32 %v16028_v21 }
 0x3ab   : > { %v3371_v29 = vmax.f32 %v2504_v51, 0.0  ;;  %v3554_v12 = vmax.f32 %v2816_v1, 0.0  ;;  %v2950_v60 = vpop.f32.mrf.mxu0  ;;  %v3039_v62 = vpop.f32.mrf.mxu1  ;;  %v11574_v58 = vor.u32 %v15109_v56, %v11573_v22 }
 0x3ac   : > { %v2951_v32 = vadd.f32 %v2950_v60, %v17537_v48  ;;  %v3040_v61 = vadd.f32 %v3039_v62, %v17539_v55 }
 0x3ad   : > { %v3691_v46 = vmin.f32 %v3371_v29, 6.0  ;;  %v3874_v3 = vmin.f32 %v3554_v12, 6.0  ;;  %v3941_v29 = vrot.slane %v17549_v47, 4 }
 0x3ae   : > { %v3386_v2 = vmax.f32 %v2951_v32, 0.0  ;;  %v3387_v57 = vmax.f32 %v3040_v61, 0.0  ;;  %9780 = vmatpush.bf16.msrb.mxu0 %v11574_v58  ;;  %v15428_v32 = vld [vmem:[%s23851_s11 + $0xa20] sm:$0xf0]  ;;  %v15096_v61 = vld [vmem:[%s23849_s9 + $0x14] sm:$0xf] }
 0x3af   : > { %v3956_v18 = vadd.f32 %v3955_v54, %v3691_v46  ;;  %v4085_v30 = vadd.f32 %v4084_v63, %v3874_v3  ;;  %v15417_v58 = vld [vmem:[%s23851_s11 + $0x9c8] sm:$0xf0]  ;;  %v3942_v17 = vadd.f32 %v3941_v29, %v17549_v47 }
 0x3b0   : > { %v3706_v53 = vmin.f32 %v3386_v2, 6.0  ;;  %v2505_v9 = vpop.f32.mrf.mxu3  ;;  %v2817_v27 = vpop.f32.mrf.mxu2  ;;  %v3707_v63 = vmin.f32 %v3387_v57, 6.0 }
 0x3b1   : > { %v2506_v49 = vadd.f32 %v2505_v9, %v17553_v14  ;;  %v2818_v0 = vadd.f32 %v2817_v27, %v17389_v7  ;;  %v17736_v5 = vpop.eup %16004 }
 0x3b2   : > { %v4142_v10 = vadd.f32 %v4141_v42, %v3706_v53  ;;  %9812 = vmatpush.bf16.msra.mxu0 %v12938_v6  ;;  %v12894_v42 = vor.u32 %v15439_v13, %v12893_v39  ;;  %v4179_v50 = vadd.f32 %v4178_v31, %v3707_v63  ;;  %v12805_v31 = vld [vmem:[%s23851_s11 + $0x9a0] sm:$0xf]  ;;  %v15406_v63 = vld [vmem:[%s23851_s11 + $0x970] sm:$0xf0]  ;;  %v3943_v39 = vrot.slane %v3942_v17, 2 }
 0x3b3   : > { %v3381_v28 = vmax.f32 %v2506_v49, 0.0  ;;  %v3564_v33 = vmax.f32 %v2818_v0, 0.0  ;;  %v2953_v26 = vpop.f32.mrf.mxu0  ;;  %v3042_v54 = vpop.f32.mrf.mxu1  ;;  %vm4285_vm2 = vweird.f32 %v17736_v5 }
 0x3b4   : > { %v2954_v40 = vadd.f32 %v2953_v26, %v17537_v48  ;;  %v3043_v38 = vadd.f32 %v3042_v54, %v17539_v55  ;;  %v12761_v54 = vld [vmem:[%s23851_s11 + $0x948] sm:$0xf] }
 0x3b5   : > { %v3701_v51 = vmin.f32 %v3381_v28, 6.0  ;;  %v3884_v1 = vmin.f32 %v3564_v33, 6.0  ;;  %11441 = vmatmul.msk.bf16.gmra.mxu3 %vm2331_vm1, %v17339_v37  ;;  %11546 = vmatmul.msk.bf16.gmra.mxu2 %vm2331_vm1, %v17200_v36 }
 0x3b6   : > { %v3396_v12 = vmax.f32 %v2954_v40, 0.0  ;;  %v3397_v60 = vmax.f32 %v3043_v38, 0.0  ;;  %11521 = vmatmul.msk.bf16.gmra.mxu0 %vm2331_vm1, %v17339_v37  ;;  %11537 = vmatmul.msk.bf16.gmra.mxu1 %vm2331_vm1, %v17339_v37  ;;  %v4281_v38 = vmul.f32 256.0, %v17736_v5 }
 0x3b7   : > { %v3957_v62 = vadd.f32 %v3956_v18, %v3701_v51  ;;  %v4086_v34 = vadd.f32 %v4085_v30, %v3884_v1  ;;  %9813 = vmatpush.bf16.msra.mxu0 %v12894_v42  ;;  %v12850_v18 = vor.u32 %v15428_v32, %v12849_v52  ;;  %v11391_v30 = vld [vmem:[%s23849_s9 + $0x38] sm:$0xf0]  ;;  %v12762_v51 = vor.u32 %v15406_v63, %v12761_v54 }
 0x3b8   : > { %v3716_v46 = vmin.f32 %v3396_v12, 6.0  ;;  %v3717_v3 = vmin.f32 %v3397_v60, 6.0  ;;  %v2508_v2 = vpop.f32.mrf.mxu3  ;;  %v2820_v22 = vpop.f32.mrf.mxu2  ;;  %v11394_v57 = vor.u32 %v15096_v61, %v11391_v30  ;;  %v4282_v32 = vsub.f32 1.0, %v4281_v38  ;;  %v12717_v61 = vld [vmem:[%s23851_s11 + $0x8f0] sm:$0xf] }
 0x3b9   : > { %v2509_v56 = vadd.f32 %v2508_v2, %v17553_v14  ;;  %v2821_v53 = vadd.f32 %v2820_v22, %v17389_v7 }
 0x3ba   : > { %v17726_v9 = vadd.f32 %v4142_v10, %v3716_v46  ;;  %v17728_v27 = vadd.f32 %v4179_v50, %v3717_v3  ;;  %2832 = vmatpush.bf16.msra.mxu3 %v11394_v57  ;;  %v12806_v10 = vor.u32 %v15417_v58, %v12805_v31  ;;  %v15384_v57 = vld [vmem:[%s23851_s11 + $0x8c0] sm:$0xf0] }
 0x3bb   : > { %v3391_v49 = vmax.f32 %v2509_v56, 0.0  ;;  %v3574_v0 = vmax.f32 %v2821_v53, 0.0  ;;  %v2955_v6 = vpop.f32.mrf.mxu0  ;;  %v3044_v28 = vpop.f32.mrf.mxu1  ;;  %9814 = vmatpush.bf16.msra.mxu0 %v12850_v18  ;;  %v12673_v53 = vld [vmem:[%s23851_s11 + $0x898] sm:$0xf] }
 0x3bc   : > { %v2956_v33 = vadd.f32 %v2955_v6, %v17537_v48  ;;  %v3045_v26 = vadd.f32 %v3044_v28, %v17539_v55  ;;  %v2258_v28 = vld [vmem:[%s23850_s10 + $0x8] sm:$0x3]  ;;  %v12674_v54 = vor.u32 %v15384_v57, %v12673_v53 }
 0x3bd   : > { %v3711_v47 = vmin.f32 %v3391_v49, 6.0  ;;  %v3894_v40 = vmin.f32 %v3574_v0, 6.0  ;;  %v4052_v49 = vrot.slane %v17532_v43, 4 }
 0x3be   : > { %v3406_v1 = vmax.f32 %v2956_v33, 0.0  ;;  %v3407_v42 = vmax.f32 %v3045_v26, 0.0 }
 0x3bf   : > { %v3958_v13 = vadd.f32 %v3957_v62, %v3711_v47  ;;  %v4087_v21 = vadd.f32 %v4086_v34, %v3894_v40  ;;  %9815 = vmatpush.bf16.msra.mxu0 %v12806_v10  ;;  %v15395_v62 = vld [vmem:[%s23851_s11 + $0x918] sm:$0xf0]  ;;  %v3944_v34 = vadd.f32 %v3943_v39, %v3942_v17  ;;  %v4283_v17 = vmul.f32 %v17736_v5, %v4282_v32 }
 0x3c0   : > { %v2510_v29 = vpop.f32.mrf.mxu3  ;;  %v2822_v12 = vpop.f32.mrf.mxu2  ;;  %v12718_v22 = vor.u32 %v15395_v62, %v12717_v61  ;;  %v3726_v18 = vmin.f32 %v3406_v1, 6.0  ;;  %v3727_v30 = vmin.f32 %v3407_v42, 6.0  ;;  %v17782_v42 = vperm.slane %v2258_v28, 0 }
 0x3c1   : > { %v2511_v60 = vadd.f32 %v2510_v29, %v17553_v14  ;;  %v2823_v52 = vadd.f32 %v2822_v12, %v17389_v7  ;;  %v3945_v10 = vrot.slane %v3944_v34, 1  ;;  %v4284_v29 = vadd.f32 %v17736_v5, %v4283_v17 }
 0x3c2   : > { %v4144_v63 = vadd.f32 %v17726_v9, %v3726_v18  ;;  %v4181_v47 = vadd.f32 %v17728_v27, %v3727_v30  ;;  %v12629_v9 = vld [vmem:[%s23851_s11 + $0x840] sm:$0xf]  ;;  %v15373_v27 = vld [vmem:[%s23851_s11 + $0x868] sm:$0xf0]  ;;  %v4053_v12 = vadd.f32 %v4052_v49, %v17532_v43 }
 0x3c3   : > { %v3401_v50 = vmax.f32 %v2511_v60, 0.0  ;;  %v3584_v46 = vmax.f32 %v2823_v52, 0.0  ;;  %v2958_v3 = vpop.f32.mrf.mxu0  ;;  %v3047_v2 = vpop.f32.mrf.mxu1  ;;  %9816 = vmatpush.bf16.msra.mxu0 %v12762_v51  ;;  %v3946_v60 = vadd.f32 %v3945_v10, %v3944_v34  ;;  %v12630_v62 = vor.u32 %v15373_v27, %v12629_v9 }
 0x3c4   : > { %v2959_v7 = vadd.f32 %v2958_v3, %v17537_v48  ;;  %v3048_v56 = vadd.f32 %v3047_v2, %v17539_v55  ;;  %v4054_v18 = vrot.slane %v4053_v12, 2 }
 0x3c5   : > { %v3721_v31 = vmin.f32 %v3401_v50, 6.0  ;;  %v3904_v58 = vmin.f32 %v3584_v46, 6.0  ;;  %11442 = vmatmul.msk.bf16.gmra.mxu3 %vm2331_vm1, %v17375_v41  ;;  %11547 = vmatmul.msk.bf16.gmra.mxu2 %vm2331_vm1, %v17217_v16 }
 0x3c6   : > { %v3416_v0 = vmax.f32 %v2959_v7, 0.0  ;;  %v3417_v6 = vmax.f32 %v3048_v56, 0.0  ;;  %11522 = vmatmul.msk.bf16.gmra.mxu0 %vm2331_vm1, %v17375_v41  ;;  %11538 = vmatmul.msk.bf16.gmra.mxu1 %vm2331_vm1, %v17375_v41  ;;  %v4055_v17 = vadd.f32 %v4054_v18, %v4053_v12 }
 0x3c7   : > { %v3959_v33 = vadd.f32 %v3958_v13, %v3721_v31  ;;  %v17777_v26 = vadd.f32 %v4087_v21, %v3904_v58  ;;  %9817 = vmatpush.bf16.msra.mxu0 %v12718_v22  ;;  %v17799_v22 = vsel %vm4285_vm2, %v17736_v5, %v4284_v29 }
 0x3c8   : > { %v3736_v40 = vmin.f32 %v3416_v0, 6.0  ;;  %v3737_v38 = vmin.f32 %v3417_v6, 6.0  ;;  %v2513_v39 = vpop.f32.mrf.mxu3  ;;  %v3101_v51 = vpop.f32.mrf.mxu2  ;;  %v4287_v43 = vmul.f32 %v17799_v22, %v3946_v60 }
 0x3c9   : > { %v2514_v1 = vadd.f32 %v2513_v39, %v17553_v14  ;;  %v3102_v2 = vadd.f32 %v3101_v51, %v17782_v42 }
 0x3ca   : > { %v4145_v13 = vadd.f32 %v4144_v63, %v3736_v40  ;;  %v4182_v21 = vadd.f32 %v4181_v47, %v3737_v38  ;;  %v17804_v49 = vpack.c.bf16 %v4287_v43, %v4287_v43 }
 0x3cb   : > { %v3411_v52 = vmax.f32 %v2514_v1, 0.0  ;;  %v2960_v32 = vpop.f32.mrf.mxu0  ;;  %v3049_v61 = vpop.f32.mrf.mxu1  ;;  %9818 = vmatpush.bf16.msra.mxu0 %v12674_v54  ;;  %v3278_v57 = vmax.f32 %v3102_v2, 0.0  ;;  %v4056_v1 = vrot.slane %v4055_v17, 1 }
 0x3cc   : > { %v2961_v50 = vadd.f32 %v2960_v32, %v17537_v48  ;;  %v3050_v46 = vadd.f32 %v3049_v61, %v17539_v55 }
 0x3cd   : > { %v3731_v3 = vmin.f32 %v3411_v52, 6.0  ;;  %v3598_v47 = vmin.f32 %v3278_v57, 6.0  ;;  %v4057_v2 = vadd.f32 %v4056_v1, %v4055_v17 }
 0x3ce   : > { %v3426_v30 = vmax.f32 %v2961_v50, 0.0  ;;  %v3427_v7 = vmax.f32 %v3050_v46, 0.0 }
 0x3cf   : > { %v3960_v34 = vadd.f32 %v3959_v33, %v3731_v3  ;;  %9819 = vmatpush.bf16.msra.mxu0 %v12630_v62 }
 0x3d0   : > { %v2515_v56 = vpop.f32.mrf.mxu3  ;;  %v3103_v53 = vpop.f32.mrf.mxu2  ;;  %v3746_v10 = vmin.f32 %v3426_v30, 6.0  ;;  %v3747_v54 = vmin.f32 %v3427_v7, 6.0 }
 0x3d1   : > { %v2516_v31 = vadd.f32 %v2515_v56, %v17553_v14  ;;  %v3104_v58 = vadd.f32 %v3103_v53, %v17782_v42  ;;  %v4290_v53 = vmul.f32 %v17799_v22, %v4057_v2 }
 0x3d2   : > { %v4146_v27 = vadd.f32 %v4145_v13, %v3746_v10  ;;  %v4183_v12 = vadd.f32 %v4182_v21, %v3747_v54 }
 0x3d3   : > { %v3421_v0 = vmax.f32 %v2516_v31, 0.0  ;;  %v3288_v5 = vmax.f32 %v3104_v58, 0.0  ;;  %v2963_v6 = vpop.f32.mrf.mxu0  ;;  %v3052_v28 = vpop.f32.mrf.mxu1  ;;  %v17820_v10 = vpack.c.bf16 %v4290_v53, %v4290_v53 }
 0x3d4   : > { %v2964_v33 = vadd.f32 %v2963_v6, %v17537_v48  ;;  %v3053_v63 = vadd.f32 %v3052_v28, %v17539_v55 }
 0x3d5   : > { %v3741_v40 = vmin.f32 %v3421_v0, 6.0  ;;  %v3608_v38 = vmin.f32 %v3288_v5, 6.0  ;;  %11491 = vmatmul.msk.bf16.vlgmr.msra.gmra.mxu3 %vm2331_vm1, %v16927_v20  ;;  %11548 = vmatmul.msk.bf16.gmra.mxu2 %vm2331_vm1, %v17244_v11 }
 0x3d6   : > { %v3436_v39 = vmax.f32 %v2964_v33, 0.0  ;;  %v3437_v51 = vmax.f32 %v3053_v63, 0.0  ;;  %9781 = vmatmul.bf16.vlgmr.msrb.gmra.mxu0 %v17804_v49 }
 0x3d7   : > { %v3961_v29 = vadd.f32 %v3960_v34, %v3741_v40  ;;  %v4206_v9 = vadd.f32 %v3608_v38, %v3598_v47 }
 0x3d8   : > { %v3756_v60 = vmin.f32 %v3436_v39, 6.0  ;;  %v3757_v52 = vmin.f32 %v3437_v51, 6.0  ;;  %v2518_v32 = vpop.f32.mrf.mxu3  ;;  %v3106_v61 = vpop.f32.mrf.mxu2 }
 0x3d9   : > { %v2519_v62 = vadd.f32 %v2518_v32, %v17553_v14  ;;  %v3107_v50 = vadd.f32 %v3106_v61, %v17782_v42 }
 0x3da   : > { %v4147_v46 = vadd.f32 %v4146_v27, %v3756_v60  ;;  %v4184_v3 = vadd.f32 %v4183_v12, %v3757_v52 }
 0x3db   : > { %v3431_v18 = vmax.f32 %v2519_v62, 0.0  ;;  %v3298_v43 = vmax.f32 %v3107_v50, 0.0  ;;  %v2965_v30 = vpop.f32.mrf.mxu0  ;;  %v3054_v7 = vpop.f32.mrf.mxu1 }
 0x3dc   : > { %v2966_v34 = vadd.f32 %v2965_v30, %v17537_v48  ;;  %v3055_v13 = vadd.f32 %v3054_v7, %v17539_v55 }
 0x3dd   : > { %v3751_v21 = vmin.f32 %v3431_v18, 6.0  ;;  %v3618_v56 = vmin.f32 %v3298_v43, 6.0 }
 0x3de   : > { %v3446_v58 = vmax.f32 %v2966_v34, 0.0  ;;  %v3447_v0 = vmax.f32 %v3055_v13, 0.0 }
 0x3df   : > { %v3962_v57 = vadd.f32 %v3961_v29, %v3751_v21  ;;  %v4207_v31 = vadd.f32 %v4206_v9, %v3618_v56 }
 0x3e0   : > { %v2520_v5 = vpop.f32.mrf.mxu3  ;;  %v3108_v6 = vpop.f32.mrf.mxu2  ;;  %v3766_v40 = vmin.f32 %v3446_v58, 6.0  ;;  %v3767_v38 = vmin.f32 %v3447_v0, 6.0 }
 0x3e1   : > { %v2521_v17 = vadd.f32 %v2520_v5, %v17553_v14  ;;  %v3109_v28 = vadd.f32 %v3108_v6, %v17782_v42 }
 0x3e2   : > { %v4148_v52 = vadd.f32 %v4147_v46, %v3766_v40  ;;  %v4185_v32 = vadd.f32 %v4184_v3, %v3767_v38 }
 0x3e3   : > { %v3441_v54 = vmax.f32 %v2521_v17, 0.0  ;;  %v3308_v33 = vmax.f32 %v3109_v28, 0.0  ;;  %v2968_v63 = vpop.f32.mrf.mxu0  ;;  %v3057_v47 = vpop.f32.mrf.mxu1 }
 0x3e4   : > { %v2969_v39 = vadd.f32 %v2968_v63, %v17537_v48  ;;  %v3058_v51 = vadd.f32 %v3057_v47, %v17539_v55 }
 0x3e5   : > { %v3761_v1 = vmin.f32 %v3441_v54, 6.0  ;;  %v3628_v29 = vmin.f32 %v3308_v33, 6.0  ;;  %11492 = vmatmul.msk.bf16.gmra.mxu3 %vm2331_vm1, %v16981_v23  ;;  %11549 = vmatmul.msk.bf16.gmra.mxu2 %vm2331_vm1, %v17262_v35 }
 0x3e6   : > { %v3456_v9 = vmax.f32 %v2969_v39, 0.0  ;;  %v3457_v27 = vmax.f32 %v3058_v51, 0.0  ;;  %9820 = vmatmul.bf16.vlgmr.msra.gmra.mxu0 %v17820_v10 }
 0x3e7   : > { %v3963_v12 = vadd.f32 %v3962_v57, %v3761_v1  ;;  %v4208_v60 = vadd.f32 %v4207_v31, %v3628_v29 }
 0x3e8   : > { %v3776_v61 = vmin.f32 %v3456_v9, 6.0  ;;  %v3777_v62 = vmin.f32 %v3457_v27, 6.0  ;;  %v2523_v50 = vpop.f32.mrf.mxu3  ;;  %v3111_v2 = vpop.f32.mrf.mxu2 }
 0x3e9   : > { %v2524_v18 = vadd.f32 %v2523_v50, %v17553_v14  ;;  %v3112_v43 = vadd.f32 %v3111_v2, %v17782_v42 }
 0x3ea   : > { %v4149_v30 = vadd.f32 %v4148_v52, %v3776_v61  ;;  %v4186_v7 = vadd.f32 %v4185_v32, %v3777_v62 }
 0x3eb   : > { %v3451_v34 = vmax.f32 %v2524_v18, 0.0  ;;  %v3318_v13 = vmax.f32 %v3112_v43, 0.0  ;;  %v2970_v21 = vpop.f32.mrf.mxu0  ;;  %v3059_v56 = vpop.f32.mrf.mxu1 }
 0x3ec   : > { %v2971_v53 = vadd.f32 %v2970_v21, %v17537_v48  ;;  %v3060_v57 = vadd.f32 %v3059_v56, %v17539_v55 }
 0x3ed   : > { %v3771_v46 = vmin.f32 %v3451_v34, 6.0  ;;  %v3638_v3 = vmin.f32 %v3318_v13, 6.0 }
 0x3ee   : > { %v3466_v0 = vmax.f32 %v2971_v53, 0.0  ;;  %v3467_v5 = vmax.f32 %v3060_v57, 0.0 }
 0x3ef   : > { %v3964_v31 = vadd.f32 %v3963_v12, %v3771_v46  ;;  %v4209_v58 = vadd.f32 %v4208_v60, %v3638_v3 }
 0x3f0   : > { %v2525_v6 = vpop.f32.mrf.mxu3  ;;  %v3113_v17 = vpop.f32.mrf.mxu2  ;;  %v3786_v38 = vmin.f32 %v3466_v0, 6.0  ;;  %v3787_v39 = vmin.f32 %v3467_v5, 6.0 }
 0x3f1   : > { %v2526_v28 = vadd.f32 %v2525_v6, %v17553_v14  ;;  %v3114_v54 = vadd.f32 %v3113_v17, %v17782_v42 }
 0x3f2   : > { %v4150_v32 = vadd.f32 %v4149_v30, %v3786_v38  ;;  %v4187_v61 = vadd.f32 %v4186_v7, %v3787_v39  ;;  %v12585_v38 = vld [vmem:[%s23851_s11 + $0x7e8] sm:$0xf]  ;;  %v15362_v39 = vld [vmem:[%s23851_s11 + $0x810] sm:$0xf0] }
 0x3f3   : > { %v3461_v33 = vmax.f32 %v2526_v28, 0.0  ;;  %v3328_v63 = vmax.f32 %v3114_v54, 0.0  ;;  %v2973_v47 = vpop.f32.mrf.mxu0  ;;  %v3062_v40 = vpop.f32.mrf.mxu1 }
 0x3f4   : > { %v2974_v51 = vadd.f32 %v2973_v47, %v17537_v48  ;;  %v3063_v1 = vadd.f32 %v3062_v40, %v17539_v55 }
 0x3f5   : > { %v3781_v29 = vmin.f32 %v3461_v33, 6.0  ;;  %v3648_v9 = vmin.f32 %v3328_v63, 6.0  ;;  %11493 = vmatmul.msk.bf16.gmra.mxu3 %vm2331_vm1, %v17035_v4  ;;  %11550 = vmatmul.msk.bf16.gmra.mxu2 %vm2331_vm1, %v17280_v8 }
 0x3f6   : > { %v3476_v27 = vmax.f32 %v2974_v51, 0.0  ;;  %v3477_v12 = vmax.f32 %v3063_v1, 0.0 }
 0x3f7   : > { %v3965_v60 = vadd.f32 %v3964_v31, %v3781_v29  ;;  %v4210_v52 = vadd.f32 %v4209_v58, %v3648_v9  ;;  %v12586_v9 = vor.u32 %v15362_v39, %v12585_v38  ;;  %v12189_v38 = vld [vmem:[%s23851_s11 + $0x4d0] sm:$0xf]  ;;  %v4015_v39 = vrot.slane %v17530_v45, 4 }
 0x3f8   : > { %v3796_v62 = vmin.f32 %v3476_v27, 6.0  ;;  %v3797_v50 = vmin.f32 %v3477_v12, 6.0  ;;  %v2528_v2 = vpop.f32.mrf.mxu3  ;;  %v3116_v18 = vpop.f32.mrf.mxu2 }
 0x3f9   : > { %v2529_v43 = vadd.f32 %v2528_v2, %v17553_v14  ;;  %v3117_v34 = vadd.f32 %v3116_v18, %v17782_v42  ;;  %9799 = vmatpush.bf16.msrb.mxu2 %v12586_v9 }
 0x3fa   : > { %v17843_v13 = vadd.f32 %v4150_v32, %v3796_v62  ;;  %v17845_v21 = vadd.f32 %v4187_v61, %v3797_v50  ;;  %v12541_v61 = vld [vmem:[%s23851_s11 + $0x790] sm:$0xf]  ;;  %v15351_v62 = vld [vmem:[%s23851_s11 + $0x7b8] sm:$0xf0]  ;;  %v12497_v50 = vld [vmem:[%s23851_s11 + $0x738] sm:$0xf] }
 0x3fb   : > { %v3471_v56 = vmax.f32 %v2529_v43, 0.0  ;;  %v3338_v53 = vmax.f32 %v3117_v34, 0.0  ;;  %v17847_v57 = vpop.f32.mrf.mxu0  ;;  %v17849_v46 = vpop.f32.mrf.mxu1  ;;  %v12542_v34 = vor.u32 %v15351_v62, %v12541_v61  ;;  %v15318_v62 = vld [vmem:[%s23851_s11 + $0x6b0] sm:$0xf0] }
 0x3fd   : > { %v3791_v30 = vmin.f32 %v3471_v56, 6.0  ;;  %v3658_v7 = vmin.f32 %v3338_v53, 6.0  ;;  %v15340_v56 = vld [vmem:[%s23851_s11 + $0x760] sm:$0xf0]  ;;  %v12233_v53 = vld [vmem:[%s23851_s11 + $0x528] sm:$0xf]  ;;  %9800 = vmatpush.bf16.msrb.mxu2 %v12542_v34 }
 0x3ff   : > { %v17851_v3 = vadd.f32 %v3965_v60, %v3791_v30  ;;  %v4211_v31 = vadd.f32 %v4210_v52, %v3658_v7  ;;  %v15274_v30 = vld [vmem:[%s23851_s11 + $0x550] sm:$0xf0] }
 0x400   : > { %v17853_v58 = vpop.f32.mrf.mxu3  ;;  %v3118_v0 = vpop.f32.mrf.mxu2 }
 0x401   : > { %v3119_v5 = vadd.f32 %v3118_v0, %v17782_v42  ;;  %v12498_v0 = vor.u32 %v15340_v56, %v12497_v50  ;;  %v12145_v50 = vld [vmem:[%s23851_s11 + $0x478] sm:$0xf] }
 0x403   : > { %v3348_v6 = vmax.f32 %v3119_v5, 0.0  ;;  %v17856_v17 = vpop.f32.mrf.mxu0  ;;  %v17858_v28 = vpop.f32.mrf.mxu1  ;;  %9801 = vmatpush.bf16.msrb.mxu2 %v12498_v0 }
 0x405   : > { %v3668_v54 = vmin.f32 %v3348_v6, 6.0  ;;  %11494 = vmatmul.msk.bf16.gmra.mxu3 %vm2331_vm1, %v17086_v44  ;;  %11551 = vmatmul.msk.bf16.gmra.mxu2 %vm2331_vm1, %v17303_v19 }
 0x407   : > { %v4212_v33 = vadd.f32 %v4211_v31, %v3668_v54  ;;  %v12234_v31 = vor.u32 %v15274_v30, %v12233_v53  ;;  %v4016_v30 = vadd.f32 %v4015_v39, %v17530_v45  ;;  %v12101_v45 = vld [vmem:[%s23851_s11 + $0x420] sm:$0xf]  ;;  %v15241_v39 = vld [vmem:[%s23851_s11 + $0x448] sm:$0xf0] }
 0x408   : > { %v17864_v63 = vpop.f32.mrf.mxu3  ;;  %v3121_v47 = vpop.f32.mrf.mxu2 }
 0x409   : > { %v3122_v40 = vadd.f32 %v3121_v47, %v17782_v42  ;;  %9786 = vmatpush.bf16.msra.mxu1 %v12234_v31  ;;  %v12453_v47 = vld [vmem:[%s23851_s11 + $0x6e0] sm:$0xf] }
 0x40b   : > { %v3358_v51 = vmax.f32 %v3122_v40, 0.0  ;;  %v17873_v1 = vpop.f32.mrf.mxu0  ;;  %v17875_v29 = vpop.f32.mrf.mxu1  ;;  %v15329_v40 = vld [vmem:[%s23851_s11 + $0x708] sm:$0xf0] }
 0x40d   : > { %v3678_v27 = vmin.f32 %v3358_v51, 6.0 }
 0x40f   : > { %v4213_v12 = vadd.f32 %v4212_v33, %v3678_v27 }
 0x410   : > { %v17877_v60 = vpop.f32.mrf.mxu3  ;;  %v3123_v52 = vpop.f32.mrf.mxu2 }
 0x411   : > { %v3124_v32 = vadd.f32 %v3123_v52, %v17782_v42  ;;  %v15263_v52 = vld [vmem:[%s23851_s11 + $0x4f8] sm:$0xf0] }
 0x412   : > { %v12190_v61 = vor.u32 %v15263_v52, %v12189_v38  ;;  %v15296_v52 = vld [vmem:[%s23851_s11 + $0x600] sm:$0xf0] }
 0x413   : > { %v3368_v2 = vmax.f32 %v3124_v32, 0.0  ;;  %v17889_v18 = vpop.f32.mrf.mxu0  ;;  %v17891_v43 = vpop.f32.mrf.mxu1  ;;  %v12409_v32 = vld [vmem:[%s23851_s11 + $0x688] sm:$0xf] }
 0x414   : > { %9787 = vmatpush.bf16.msra.mxu1 %v12190_v61  ;;  %v12410_v56 = vor.u32 %v15318_v62, %v12409_v32  ;;  %v12057_v32 = vld [vmem:[%s23851_s11 + $0x3c8] sm:$0xf]  ;;  %v15230_v61 = vld [vmem:[%s23851_s11 + $0x3f0] sm:$0xf0] }
 0x415   : > { %v3688_v7 = vmin.f32 %v3368_v2, 6.0  ;;  %11495 = vmatmul.msk.bf16.gmra.mxu3 %vm2331_vm1, %v17136_v24  ;;  %11552 = vmatmul.msk.bf16.gmra.mxu2 %vm2331_vm1, %v17321_v15  ;;  %v15252_v2 = vld [vmem:[%s23851_s11 + $0x4a0] sm:$0xf0]  ;;  %v2534_v24 = vadd.f32 %v17864_v63, %v17553_v14 }
 0x416   : > { %v12146_v53 = vor.u32 %v15252_v2, %v12145_v50 }
 0x417   : > { %v4214_v5 = vadd.f32 %v4213_v12, %v3688_v7  ;;  %v12454_v12 = vor.u32 %v15329_v40, %v12453_v47  ;;  %v15307_v47 = vld [vmem:[%s23851_s11 + $0x658] sm:$0xf0] }
 0x418   : > { %v17906_v6 = vpop.f32.mrf.mxu3  ;;  %v3126_v54 = vpop.f32.mrf.mxu2  ;;  %9788 = vmatpush.bf16.msra.mxu1 %v12146_v53 }
 0x419   : > { %v3127_v33 = vadd.f32 %v3126_v54, %v17782_v42  ;;  %9802 = vmatpush.bf16.msrb.mxu2 %v12454_v12  ;;  %v12102_v12 = vor.u32 %v15241_v39, %v12101_v45  ;;  %v12277_v45 = vld [vmem:[%s23851_s11 + $0x580] sm:$0xf] }
 0x41b   : > { %v3378_v51 = vmax.f32 %v3127_v33, 0.0  ;;  %v17919_v9 = vpop.f32.mrf.mxu0  ;;  %v17921_v27 = vpop.f32.mrf.mxu1  ;;  %v12365_v33 = vld [vmem:[%s23851_s11 + $0x630] sm:$0xf] }
 0x41c   : > { %v12366_v38 = vor.u32 %v15307_v47, %v12365_v33  ;;  %9789 = vmatpush.bf16.msra.mxu1 %v12102_v12 }
 0x41d   : > { %v3698_v34 = vmin.f32 %v3378_v51, 6.0  ;;  %9803 = vmatpush.bf16.msrb.mxu2 %v12410_v56  ;;  %v12321_v51 = vld [vmem:[%s23851_s11 + $0x5d8] sm:$0xf] }
 0x41e   : > { %v12322_v2 = vor.u32 %v15296_v52, %v12321_v51  ;;  %v13993_v52 = vld [vmem:[%s23851_s11 + $0x12e8] sm:$0xf] }
 0x41f   : > { %v4215_v7 = vadd.f32 %v4214_v5, %v3698_v34  ;;  %v4017_v5 = vrot.slane %v4016_v30, 2  ;;  %v12058_v34 = vor.u32 %v15230_v61, %v12057_v32  ;;  %v3065_v32 = vadd.f32 %v17849_v46, %v17539_v55 }
 0x420   : > { %v17939_v31 = vpop.f32.mrf.mxu3  ;;  %v3128_v0 = vpop.f32.mrf.mxu2 }
 0x421   : > { %v3129_v54 = vadd.f32 %v3128_v0, %v17782_v42  ;;  %9804 = vmatpush.bf16.msrb.mxu2 %v12366_v38  ;;  %v4018_v56 = vadd.f32 %v4017_v5, %v4016_v30  ;;  %9790 = vmatpush.bf16.msra.mxu1 %v12058_v34  ;;  %v15285_v38 = vld [vmem:[%s23851_s11 + $0x5a8] sm:$0xf0]  ;;  %v12013_v30 = vld [vmem:[%s23851_s11 + $0x370] sm:$0xf]  ;;  %v15208_v34 = vld [vmem:[%s23851_s11 + $0x340] sm:$0xf0] }
 0x422   : > { %v12278_v12 = vor.u32 %v15285_v38, %v12277_v45 }
 0x423   : > { %v17951_v40 = vpop.f32.mrf.mxu0  ;;  %v3388_v62 = vmax.f32 %v3129_v54, 0.0  ;;  %v17968_v50 = vpop.f32.mrf.mxu1  ;;  %v2976_v54 = vadd.f32 %v17847_v57, %v17537_v48  ;;  %v4019_v5 = vrot.slane %v4018_v56, 1  ;;  %v15219_v57 = vld [vmem:[%s23851_s11 + $0x398] sm:$0xf0] }
 0x424   : > { %v12014_v61 = vor.u32 %v15219_v57, %v12013_v30  ;;  %v2979_v30 = vadd.f32 %v17856_v17, %v17537_v48  ;;  %v3068_v57 = vadd.f32 %v17858_v28, %v17539_v55  ;;  %v15703_v17 = vld [vmem:[%s23851_s11 + $0x12b8] sm:$0xf0]  ;;  %v3487_v28 = vmax.f32 %v3065_v32, 0.0 }
 0x425   : > { %11496 = vmatmul.msk.bf16.gmra.mxu3 %vm2331_vm1, %v17169_v59  ;;  %11553 = vmatmul.msk.bf16.gmra.mxu2 %vm2331_vm1, %v17339_v37  ;;  %v3708_v33 = vmin.f32 %v3388_v62, 6.0  ;;  %v15714_v62 = vld [vmem:[%s23851_s11 + $0x1310] sm:$0xf0]  ;;  %v3486_v46 = vmax.f32 %v2976_v54, 0.0 }
 0x426   : > { %9805 = vmatpush.bf16.msrb.mxu2 %v12322_v2  ;;  %v11969_v2 = vld [vmem:[%s23851_s11 + $0x318] sm:$0xf]  ;;  %v13994_v38 = vor.u32 %v15714_v62, %v13993_v52  ;;  %9791 = vmatpush.bf16.msra.mxu1 %v12014_v61  ;;  %v3496_v62 = vmax.f32 %v2979_v30, 0.0 }
 0x427   : > { %v11970_v59 = vor.u32 %v15208_v34, %v11969_v2  ;;  %v3806_v61 = vmin.f32 %v3486_v46, 6.0  ;;  %v3497_v2 = vmax.f32 %v3068_v57, 0.0  ;;  %v3491_v34 = vmax.f32 %v2534_v24, 0.0  ;;  %v13289_v57 = vld [vmem:[%s23851_s11 + $0xd68] sm:$0xf] }
 0x428   : > { %v17974_v53 = vpop.f32.mrf.mxu3  ;;  %v3131_v0 = vpop.f32.mrf.mxu2  ;;  %9851 = vmatpush.bf16.msrb.mxu0 %v13994_v38  ;;  %v3816_v46 = vmin.f32 %v3496_v62, 6.0 }
 0x429   : > { %v3132_v47 = vadd.f32 %v3131_v0, %v17782_v42  ;;  %v2531_v0 = vadd.f32 %v17853_v58, %v17553_v14  ;;  %v13949_v58 = vld [vmem:[%s23851_s11 + $0x1290] sm:$0xf]  ;;  %v4152_v38 = vadd.f32 %v17843_v13, %v3806_v61  ;;  %v18054_v30 = vmin.f32 %v3497_v2, 6.0  ;;  %v13905_v13 = vld [vmem:[%s23851_s11 + $0x1238] sm:$0xf] }
 0x42a   : > { %9806 = vmatpush.bf16.msrb.mxu2 %v12278_v12  ;;  %v13950_v54 = vor.u32 %v15703_v17, %v13949_v58  ;;  %9792 = vmatpush.bf16.msra.mxu1 %v11970_v59  ;;  %v2986_v59 = vadd.f32 %v17919_v9, %v17537_v48  ;;  %v15538_v58 = vld [vmem:[%s23851_s11 + $0xd90] sm:$0xf0]  ;;  %v3811_v17 = vmin.f32 %v3491_v34, 6.0  ;;  %v2989_v34 = vadd.f32 %v17951_v40, %v17537_v48  ;;  %v13245_v40 = vld [vmem:[%s23851_s11 + $0xd10] sm:$0xf] }
 0x42b   : > { %v3398_v39 = vmax.f32 %v3132_v47, 0.0  ;;  %v17988_v51 = vpop.f32.mrf.mxu0  ;;  %v4216_v47 = vadd.f32 %v4215_v7, %v3708_v33  ;;  %v18017_v4 = vpop.f32.mrf.mxu1  ;;  %v2981_v7 = vadd.f32 %v17873_v1, %v17537_v48  ;;  %v3481_v12 = vmax.f32 %v2531_v0, 0.0 }
 0x42c   : > { %9852 = vmatpush.bf16.msrb.mxu0 %v13950_v54  ;;  %v18034_v1 = vmin.f32 %v3487_v28, 6.0  ;;  %v18064_v28 = vadd.f32 %v17875_v29, %v17539_v55  ;;  %v15692_v54 = vld [vmem:[%s23851_s11 + $0x1260] sm:$0xf0]  ;;  %v3526_v2 = vmax.f32 %v2986_v59, 0.0  ;;  %v15527_v59 = vld [vmem:[%s23851_s11 + $0xd38] sm:$0xf0] }
 0x42d   : > { %v3718_v45 = vmin.f32 %v3398_v39, 6.0  ;;  %v4020_v39 = vadd.f32 %v4019_v5, %v4018_v56  ;;  %v2536_v56 = vadd.f32 %v17877_v60, %v17553_v14  ;;  %v3801_v0 = vmin.f32 %v3481_v12, 6.0  ;;  %v15197_v60 = vld [vmem:[%s23851_s11 + $0x2e8] sm:$0xf0] }
 0x42e   : > { %v13906_v29 = vor.u32 %v15692_v54, %v13905_v13  ;;  %v3536_v54 = vmax.f32 %v2989_v34, 0.0 }
 0x42f   : > { %v18015_v44 = vadd.f32 %v4216_v47, %v3718_v45  ;;  %v2984_v47 = vadd.f32 %v17889_v18, %v17537_v48  ;;  %v3506_v45 = vmax.f32 %v2981_v7, 0.0  ;;  %v18039_v5 = vmul.f32 %v17799_v22, %v4020_v39  ;;  %v11925_v18 = vld [vmem:[%s23851_s11 + $0x2c0] sm:$0xf] }
 0x430   : > { %v18027_v33 = vpop.f32.mrf.mxu3  ;;  %v3133_v63 = vpop.f32.mrf.mxu2  ;;  %v11926_v9 = vor.u32 %v15197_v60, %v11925_v18  ;;  %v3501_v12 = vmax.f32 %v2536_v56, 0.0  ;;  %v4153_v56 = vadd.f32 %v4152_v38, %v3816_v46  ;;  %9853 = vmatpush.bf16.msrb.mxu0 %v13906_v29  ;;  %v13246_v46 = vor.u32 %v15527_v59, %v13245_v40 }
 0x431   : > { %v3134_v52 = vadd.f32 %v3133_v63, %v17782_v42  ;;  %v3516_v7 = vmax.f32 %v2984_v47, 0.0  ;;  %v13290_v63 = vor.u32 %v15538_v58, %v13289_v57  ;;  %v3826_v39 = vmin.f32 %v3506_v45, 6.0 }
 0x432   : > { %9793 = vmatpush.bf16.msra.mxu1 %v11926_v9  ;;  %v3967_v45 = vadd.f32 %v17851_v3, %v3801_v0  ;;  %v2541_v9 = vadd.f32 %v17939_v31, %v17553_v14  ;;  %v13861_v3 = vld [vmem:[%s23851_s11 + $0x11e0] sm:$0xf]  ;;  %v15681_v31 = vld [vmem:[%s23851_s11 + $0x1208] sm:$0xf0]  ;;  %v3846_v59 = vmin.f32 %v3526_v2, 6.0 }
 0x433   : > { %v18032_v32 = vpop.f32.mrf.mxu0  ;;  %v3408_v24 = vmax.f32 %v3134_v52, 0.0  ;;  %v2539_v52 = vadd.f32 %v17906_v6, %v17553_v14  ;;  %v18078_v18 = vpop.f32.mrf.mxu1  ;;  %v18084_v6 = vadd.f32 %v17891_v43, %v17539_v55  ;;  %v3836_v43 = vmin.f32 %v3516_v7, 6.0 }
 0x434   : > { %v4154_v57 = vadd.f32 %v4153_v56, %v3826_v39  ;;  %v13862_v13 = vor.u32 %v15681_v31, %v13861_v3  ;;  %v3521_v0 = vmax.f32 %v2541_v9, 0.0  ;;  %v13201_v39 = vld [vmem:[%s23851_s11 + $0xcb8] sm:$0xf]  ;;  %v18126_v31 = vpack.c.bf16 %v18039_v5, %v18039_v5  ;;  %v13773_v5 = vld [vmem:[%s23851_s11 + $0x1130] sm:$0xf] }
 0x435   : > { %11497 = vmatmul.msk.bf16.gmra.mxu3 %vm2331_vm1, %v17189_v25  ;;  %11554 = vmatmul.msk.bf16.gmra.mxu2 %vm2331_vm1, %v17375_v41  ;;  %v3728_v47 = vmin.f32 %v3408_v24, 6.0  ;;  %v3511_v58 = vmax.f32 %v2539_v52, 0.0  ;;  %v3517_v40 = vmax.f32 %v18084_v6, 0.0 }
 0x436   : > { %9825 = vmatpush.bf16.msrb.mxu1 %v13290_v63  ;;  %v2991_v63 = vadd.f32 %v17988_v51, %v17537_v48  ;;  %9854 = vmatpush.bf16.msrb.mxu0 %v13862_v13  ;;  %v3968_v51 = vadd.f32 %v3967_v45, %v3811_v17  ;;  %v4155_v52 = vadd.f32 %v4154_v57, %v3836_v43  ;;  %v3856_v43 = vmin.f32 %v3536_v54, 6.0 }
 0x437   : > { %v4218_v29 = vadd.f32 %v18015_v44, %v3728_v47  ;;  %v15516_v44 = vld [vmem:[%s23851_s11 + $0xce0] sm:$0xf0]  ;;  %v2994_v47 = vadd.f32 %v18032_v32, %v17537_v48  ;;  %v3831_v3 = vmin.f32 %v3511_v58, 6.0  ;;  %v2546_v57 = vadd.f32 %v18027_v33, %v17553_v14  ;;  %v13157_v32 = vld [vmem:[%s23851_s11 + $0xc60] sm:$0xf] }
 0x438   : > { %v18074_v61 = vpop.f32.mrf.mxu3  ;;  %v3136_v62 = vpop.f32.mrf.mxu2  ;;  %v3546_v2 = vmax.f32 %v2991_v63, 0.0  ;;  %v13202_v56 = vor.u32 %v15516_v44, %v13201_v39  ;;  %v15505_v58 = vld [vmem:[%s23851_s11 + $0xc88] sm:$0xf0]  ;;  %v4156_v54 = vadd.f32 %v4155_v52, %v3846_v59 }
 0x439   : > { %v3137_v60 = vadd.f32 %v3136_v62, %v17782_v42  ;;  %v2544_v62 = vadd.f32 %v17974_v53, %v17553_v14  ;;  %v13817_v53 = vld [vmem:[%s23851_s11 + $0x1188] sm:$0xf]  ;;  %v3556_v44 = vmax.f32 %v2994_v47, 0.0  ;;  %v15494_v47 = vld [vmem:[%s23851_s11 + $0xc30] sm:$0xf0] }
 0x43a   : > { %9826 = vmatpush.bf16.msrb.mxu1 %v13246_v46  ;;  %v3866_v39 = vmin.f32 %v3546_v2, 6.0  ;;  %v13113_v2 = vld [vmem:[%s23851_s11 + $0xc08] sm:$0xf] }
 0x43b   : > { %v3418_v24 = vmax.f32 %v3137_v60, 0.0  ;;  %v2995_v38 = vpop.f32.mrf.mxu0  ;;  %v3821_v60 = vmin.f32 %v3501_v12, 6.0  ;;  %v15670_v12 = vld [vmem:[%s23851_s11 + $0x11b0] sm:$0xf0]  ;;  %v18140_v33 = vpop.f32.mrf.mxu1 }
 0x43c   : > { %v13818_v9 = vor.u32 %v15670_v12, %v13817_v53  ;;  %v2996_v63 = vadd.f32 %v2995_v38, %v17537_v48 }
 0x43d   : > { %v3738_v7 = vmin.f32 %v3418_v24, 6.0  ;;  %v3531_v24 = vmax.f32 %v2544_v62, 0.0  ;;  %v3969_v13 = vadd.f32 %v3968_v51, %v3821_v60  ;;  %v3841_v62 = vmin.f32 %v3521_v0, 6.0 }
 0x43e   : > { %9827 = vmatpush.bf16.msrb.mxu1 %v13202_v56  ;;  %9855 = vmatpush.bf16.msrb.mxu0 %v13818_v9  ;;  %v2549_v60 = vadd.f32 %v18074_v61, %v17553_v14  ;;  %v4157_v0 = vadd.f32 %v4156_v54, %v3856_v43  ;;  %v3541_v51 = vmax.f32 %v2546_v57, 0.0  ;;  %v3566_v52 = vmax.f32 %v2996_v63, 0.0  ;;  %v13729_v43 = vld [vmem:[%s23851_s11 + $0x10d8] sm:$0xf]  ;;  %v13069_v57 = vld [vmem:[%s23851_s11 + $0xbb0] sm:$0xf] }
 0x43f   : > { %v18110_v34 = vadd.f32 %v4218_v29, %v3738_v7  ;;  %v13158_v29 = vor.u32 %v15505_v58, %v13157_v32  ;;  %v15659_v7 = vld [vmem:[%s23851_s11 + $0x1158] sm:$0xf0]  ;;  %v3851_v56 = vmin.f32 %v3531_v24, 6.0  ;;  %v4189_v61 = vadd.f32 %v17845_v21, %v18034_v1 }
 0x440   : > { %v2550_v17 = vpop.f32.mrf.mxu3  ;;  %v3138_v45 = vpop.f32.mrf.mxu2  ;;  %v13774_v12 = vor.u32 %v15659_v7, %v13773_v5  ;;  %v13114_v24 = vor.u32 %v15494_v47, %v13113_v2  ;;  %v4158_v63 = vadd.f32 %v4157_v0, %v3866_v39  ;;  %v3876_v32 = vmin.f32 %v3556_v44, 6.0  ;;  %v15637_v7 = vld [vmem:[%s23851_s11 + $0x10a8] sm:$0xf0]  ;;  %v13025_v47 = vld [vmem:[%s23851_s11 + $0xb58] sm:$0xf] }
 0x441   : > { %v3139_v46 = vadd.f32 %v3138_v45, %v17782_v42  ;;  %v3970_v45 = vadd.f32 %v3969_v13, %v3831_v3  ;;  %v2551_v3 = vadd.f32 %v2550_v17, %v17553_v14  ;;  %v15483_v17 = vld [vmem:[%s23851_s11 + $0xbd8] sm:$0xf0]  ;;  %v13685_v13 = vld [vmem:[%s23851_s11 + $0x1080] sm:$0xf]  ;;  %v3551_v54 = vmax.f32 %v2549_v60, 0.0 }
 0x442   : > { %9828 = vmatpush.bf16.msrb.mxu1 %v13158_v29  ;;  %9856 = vmatpush.bf16.msrb.mxu0 %v13774_v12  ;;  %v3861_v39 = vmin.f32 %v3541_v51, 6.0  ;;  %v3886_v44 = vmin.f32 %v3566_v52, 6.0  ;;  %v13686_v12 = vor.u32 %v15637_v7, %v13685_v13  ;;  %v3075_v60 = vadd.f32 %v17921_v27, %v17539_v55  ;;  %v15472_v51 = vld [vmem:[%s23851_s11 + $0xb80] sm:$0xf0] }
 0x443   : > { %v2998_v38 = vpop.f32.mrf.mxu0  ;;  %v3428_v59 = vmax.f32 %v3139_v46, 0.0  ;;  %v3971_v9 = vadd.f32 %v3970_v45, %v3841_v62  ;;  %v15648_v46 = vld [vmem:[%s23851_s11 + $0x1100] sm:$0xf0]  ;;  %v4190_v45 = vadd.f32 %v4189_v61, %v18054_v30  ;;  %v3871_v30 = vmin.f32 %v3551_v54, 6.0  ;;  %v3087_v27 = vpop.f32.mrf.mxu1 }
 0x444   : > { %v2999_v53 = vadd.f32 %v2998_v38, %v17537_v48  ;;  %v13730_v5 = vor.u32 %v15648_v46, %v13729_v43  ;;  %v13026_v13 = vor.u32 %v15472_v51, %v13025_v47  ;;  %v3083_v51 = vadd.f32 %v18078_v18, %v17539_v55 }
 0x445   : > { %11498 = vmatmul.msk.bf16.gmra.mxu3 %vm2331_vm1, %v17200_v36  ;;  %9807 = vmatmul.bf16.vlgmr.msrb.gmra.mxu2 %v18126_v31  ;;  %v3748_v62 = vmin.f32 %v3428_v59, 6.0  ;;  %v3561_v59 = vmax.f32 %v2551_v3, 0.0  ;;  %v3972_v52 = vadd.f32 %v3971_v9, %v3851_v56 }
 0x446   : > { %v3576_v58 = vmax.f32 %v2999_v53, 0.0  ;;  %9829 = vmatpush.bf16.msrb.mxu1 %v13114_v24  ;;  %9857 = vmatpush.bf16.msrb.mxu0 %v13730_v5  ;;  %v13070_v53 = vor.u32 %v15483_v17, %v13069_v57  ;;  %v4159_v24 = vadd.f32 %v4158_v63, %v3876_v32  ;;  %v3078_v32 = vadd.f32 %v17968_v50, %v17539_v55 }
 0x447   : > { %v4220_v61 = vadd.f32 %v18110_v34, %v3748_v62  ;;  %v3973_v56 = vadd.f32 %v3972_v52, %v3861_v39  ;;  %v3881_v9 = vmin.f32 %v3561_v59, 6.0  ;;  %v15461_v34 = vld [vmem:[%s23851_s11 + $0xb28] sm:$0xf0] }
 0x448   : > { %v2553_v21 = vpop.f32.mrf.mxu3  ;;  %v3141_v1 = vpop.f32.mrf.mxu2  ;;  %v3896_v43 = vmin.f32 %v3576_v58, 6.0  ;;  %v4160_v5 = vadd.f32 %v4159_v24, %v3886_v44  ;;  %v3537_v47 = vmax.f32 %v3078_v32, 0.0 }
 0x449   : > { %v2554_v38 = vadd.f32 %v2553_v21, %v17553_v14  ;;  %v3142_v29 = vadd.f32 %v3141_v1, %v17782_v42  ;;  %v23862_v21 = vmax.f32 %v18064_v28, 0.0  ;;  %v3837_v28 = vmin.f32 %v3517_v40, 6.0 }
 0x44a   : > { %9830 = vmatpush.bf16.msrb.mxu1 %v13070_v53  ;;  %9858 = vmatpush.bf16.msrb.mxu0 %v13686_v12  ;;  %v4161_v58 = vadd.f32 %v4160_v5, %v3896_v43  ;;  %v3974_v7 = vadd.f32 %v3973_v56, %v3871_v30  ;;  %v3080_v12 = vadd.f32 %v18017_v4, %v17539_v55  ;;  %v3857_v18 = vmin.f32 %v3537_v47, 6.0 }
 0x44b   : > { %v3438_v0 = vmax.f32 %v3142_v29, 0.0  ;;  %v3000_v2 = vpop.f32.mrf.mxu0  ;;  %v3571_v3 = vmax.f32 %v2554_v38, 0.0  ;;  %v3827_v1 = vmin.f32 %v23862_v21, 6.0  ;;  %v3527_v29 = vmax.f32 %v3075_v60, 0.0 }
 0x44c   : > { %v3001_v46 = vadd.f32 %v3000_v2, %v17537_v48  ;;  %v12981_v48 = vld [vmem:[%s23851_s11 + $0xb00] sm:$0xf]  ;;  %v3547_v4 = vmax.f32 %v3080_v12, 0.0  ;;  %v3088_v5 = vadd.f32 %v3087_v27, %v17539_v55 }
 0x44d   : > { %v3758_v57 = vmin.f32 %v3438_v0, 6.0  ;;  %v3891_v39 = vmin.f32 %v3571_v3, 6.0  ;;  %v12982_v6 = vor.u32 %v15461_v34, %v12981_v48  ;;  %v4191_v40 = vadd.f32 %v4190_v45, %v3827_v1 }
 0x44e   : > { %v3586_v17 = vmax.f32 %v3001_v46, 0.0  ;;  %9831 = vmatpush.bf16.msrb.mxu1 %v13026_v13  ;;  %v3847_v59 = vmin.f32 %v3527_v29, 6.0  ;;  %v3975_v0 = vadd.f32 %v3974_v7, %v3881_v9  ;;  %v3085_v45 = vadd.f32 %v18140_v33, %v17539_v55  ;;  %v16013_v33 = vld [vmem:[%s23850_s10] sm:$0xff] }
 0x44f   : > { %v4221_v63 = vadd.f32 %v4220_v61, %v3758_v57  ;;  %v4089_v61 = vrot.slane %v17777_v26, 4  ;;  %v3089_v57 = vpop.f32.mrf.mxu1  ;;  %v3557_v1 = vmax.f32 %v3083_v51, 0.0  ;;  %v18220_v48 = vperm.slane %v16013_v33, 5 }
 0x450   : > { %v3906_v54 = vmin.f32 %v3586_v17, 6.0  ;;  %v2555_v62 = vpop.f32.mrf.mxu3  ;;  %v3143_v38 = vpop.f32.mrf.mxu2  ;;  %v3976_v24 = vadd.f32 %v3975_v0, %v3891_v39  ;;  %v3567_v32 = vmax.f32 %v3085_v45, 0.0 }
 0x451   : > { %v2556_v44 = vadd.f32 %v2555_v62, %v17553_v14  ;;  %v3144_v53 = vadd.f32 %v3143_v38, %v17782_v42  ;;  %v4192_v14 = vadd.f32 %v4191_v40, %v3837_v28  ;;  %v3867_v28 = vmin.f32 %v3547_v4, 6.0 }
 0x452   : > { %v4162_v60 = vadd.f32 %v4161_v58, %v3906_v54  ;;  %9832 = vmatpush.bf16.msrb.mxu1 %v12982_v6  ;;  %v3090_v54 = vadd.f32 %v3089_v57, %v17539_v55  ;;  %v4090_v27 = vadd.f32 %v4089_v61, %v17777_v26 }
 0x453   : > { %v3581_v50 = vmax.f32 %v2556_v44, 0.0  ;;  %v18207_v2 = vpop.f32.mrf.mxu0  ;;  %v3448_v46 = vmax.f32 %v3144_v53, 0.0  ;;  %v4193_v3 = vadd.f32 %v4192_v14, %v3847_v59  ;;  %v3877_v44 = vmin.f32 %v3557_v1, 6.0 }
 0x454   : > { %v4163_v52 = vrot.slane %v4162_v60, 4  ;;  %v3577_v53 = vmax.f32 %v3088_v5, 0.0  ;;  %v3587_v51 = vmax.f32 %v3090_v54, 0.0  ;;  %v4091_v61 = vrot.slane %v4090_v27, 2 }
 0x455   : > { %v3901_v43 = vmin.f32 %v3581_v50, 6.0  ;;  %11499 = vmatmul.msk.bf16.gmra.mxu3 %vm2331_vm1, %v17217_v16  ;;  %v3768_v9 = vmin.f32 %v3448_v46, 6.0  ;;  %v4194_v39 = vadd.f32 %v4193_v3, %v3857_v18  ;;  %v3887_v50 = vmin.f32 %v3567_v32, 6.0 }
 0x456   : > { %v4164_v30 = vadd.f32 %v4163_v52, %v4162_v60  ;;  %v3897_v26 = vmin.f32 %v3577_v53, 6.0 }
 0x457   : > { %v3977_v21 = vadd.f32 %v3976_v24, %v3901_v43  ;;  %v4222_v6 = vadd.f32 %v4221_v63, %v3768_v9  ;;  %v4195_v0 = vadd.f32 %v4194_v39, %v3867_v28  ;;  %v4092_v28 = vadd.f32 %v4091_v61, %v4090_v27 }
 0x458   : > { %v4165_v17 = vrot.slane %v4164_v30, 2  ;;  %v2834_v13 = vpop.f32.mrf.mxu3  ;;  %v3146_v29 = vpop.f32.mrf.mxu2 }
 0x459   : > { %v3978_v56 = vrot.slane %v3977_v21, 4  ;;  %v3147_v34 = vadd.f32 %v3146_v29, %v17782_v42  ;;  %v2835_v40 = vadd.f32 %v2834_v13, %v18220_v48  ;;  %v4196_v14 = vadd.f32 %v4195_v0, %v3877_v44  ;;  %v15802_v13 = vld [vmem:[%s23851_s11 + $0x15d0] sm:$0xf0] }
 0x45a   : > { %v4166_v58 = vadd.f32 %v4165_v17, %v4164_v30  ;;  %v14345_v17 = vld [vmem:[%s23851_s11 + $0x15a8] sm:$0xf] }
 0x45b   : > { %v3979_v62 = vadd.f32 %v3978_v56, %v3977_v21  ;;  %v3458_v38 = vmax.f32 %v3147_v34, 0.0  ;;  %v9784_v7 = vpop.f32.mrf.mxu0  ;;  %v3275_v45 = vmax.f32 %v2835_v40, 0.0  ;;  %v4197_v3 = vadd.f32 %v4196_v14, %v3887_v50 }
 0x45c   : > { %v4167_v12 = vrot.slane %v4166_v58, 1  ;;  %v3907_v21 = vmin.f32 %v3587_v51, 6.0  ;;  %v15791_v7 = vld [vmem:[%s23851_s11 + $0x1578] sm:$0xf0]  ;;  %v15780_v51 = vld [vmem:[%s23851_s11 + $0x1520] sm:$0xf0] }
 0x45d   : > { %v3980_v60 = vrot.slane %v3979_v62, 2  ;;  %v3778_v59 = vmin.f32 %v3458_v38, 6.0  ;;  %v4198_v29 = vadd.f32 %v4197_v3, %v3897_v26  ;;  %v3595_v9 = vmin.f32 %v3275_v45, 6.0  ;;  %v14301_v38 = vld [vmem:[%s23851_s11 + $0x1550] sm:$0xf] }
 0x45e   : > { %v4168_v47 = vadd.f32 %v4167_v12, %v4166_v58  ;;  %v14346_v58 = vor.u32 %v15802_v13, %v14345_v17  ;;  %v14302_v40 = vor.u32 %v15791_v7, %v14301_v38  ;;  %v15747_v38 = vld [vmem:[%s23851_s11 + $0x1418] sm:$0xf0] }
 0x45f   : > { %v3981_v52 = vadd.f32 %v3980_v60, %v3979_v62  ;;  %v4223_v55 = vadd.f32 %v4222_v6, %v3778_v59  ;;  %v4199_v32 = vadd.f32 %v4198_v29, %v3907_v21  ;;  %v4093_v60 = vrot.slane %v4092_v28, 1  ;;  %v14169_v29 = vld [vmem:[%s23851_s11 + $0x1448] sm:$0xf] }
 0x460   : > { %v4293_v24 = vmul.f32 %v17799_v22, %v4168_v47  ;;  %v2836_v43 = vpop.f32.mrf.mxu3  ;;  %v3148_v46 = vpop.f32.mrf.mxu2  ;;  %v14257_v47 = vld [vmem:[%s23851_s11 + $0x14f8] sm:$0xf] }
 0x461   : > { %v3982_v4 = vrot.slane %v3981_v52, 1  ;;  %v2837_v30 = vadd.f32 %v2836_v43, %v18220_v48  ;;  %v3149_v63 = vadd.f32 %v3148_v46, %v17782_v42  ;;  %v4200_v6 = vrot.slane %v4199_v32, 4 }
 0x462   : > { %v18229_v57 = vpack.c.bf16 %v4293_v24, %v4293_v24  ;;  %v14258_v43 = vor.u32 %v15780_v51, %v14257_v47  ;;  %v4094_v46 = vadd.f32 %v4093_v60, %v4092_v28 }
 0x463   : > { %v3983_v18 = vadd.f32 %v3982_v4, %v3981_v52  ;;  %v3285_v1 = vmax.f32 %v2837_v30, 0.0  ;;  %v18231_v5 = vpop.f32.mrf.mxu0  ;;  %v3468_v34 = vmax.f32 %v3149_v63, 0.0  ;;  %v4201_v24 = vadd.f32 %v4200_v6, %v4199_v32  ;;  %v14213_v30 = vld [vmem:[%s23851_s11 + $0x14a0] sm:$0xf]  ;;  %v15769_v63 = vld [vmem:[%s23851_s11 + $0x14c8] sm:$0xf0] }
 0x464   : > { %9859 = vmatmul.bf16.vlgmr.msrb.gmra.mxu0 %v18229_v57  ;;  %v4291_v17 = vmul.f32 %v17799_v22, %v4094_v46  ;;  %v15725_v46 = vld [vmem:[%s23851_s11 + $0x1368] sm:$0xf0] }
 0x465   : > { %v4288_v56 = vmul.f32 %v17799_v22, %v3983_v18  ;;  %v3605_v33 = vmin.f32 %v3285_v1, 6.0  ;;  %11500 = vmatmul.msk.bf16.gmra.mxu3 %vm2331_vm1, %v17244_v11  ;;  %v3788_v53 = vmin.f32 %v3468_v34, 6.0  ;;  %v4202_v18 = vrot.slane %v4201_v24, 2 }
 0x466   : > { %v14214_v1 = vor.u32 %v15769_v63, %v14213_v30  ;;  %v18277_v32 = vpack.c.bf16 %v4291_v17, %v4291_v17  ;;  %v11883_v63 = vld [vmem:[%s23851_s11 + $0x294] sm:$0xf0]  ;;  %v15170_v17 = vld [vmem:[%s23851_s11 + $0x214] sm:$0xf] }
 0x467   : > { %v18243_v54 = vpack.c.bf16 %v4288_v56, %v4288_v56  ;;  %v4095_v62 = vadd.f32 %v3605_v33, %v3595_v9  ;;  %v4224_v52 = vadd.f32 %v4223_v55, %v3788_v53  ;;  %v15758_v56 = vld [vmem:[%s23851_s11 + $0x1470] sm:$0xf0]  ;;  %v4203_v34 = vadd.f32 %v4202_v18, %v4201_v24 }
 0x468   : > { %v2839_v39 = vpop.f32.mrf.mxu3  ;;  %v3151_v44 = vpop.f32.mrf.mxu2  ;;  %v14170_v28 = vor.u32 %v15758_v56, %v14169_v29 }
 0x469   : > { %v2840_v12 = vadd.f32 %v2839_v39, %v18220_v48  ;;  %v3152_v27 = vadd.f32 %v3151_v44, %v17782_v42  ;;  %9794 = vmatmul.bf16.vlgmr.msra.gmra.mxu1 %v18243_v54 }
 0x46a   : > { %9864 = vmatpush.bf16.msra.mxu1 %v14346_v58 }
 0x46b   : > { %v3295_v59 = vmax.f32 %v2840_v12, 0.0  ;;  %v3478_v0 = vmax.f32 %v3152_v27, 0.0  ;;  %v9823_v50 = vpop.f32.mrf.mxu0  ;;  %v4204_v27 = vrot.slane %v4203_v34, 1 }
 0x46d   : > { %v3615_v14 = vmin.f32 %v3295_v59, 6.0  ;;  %v3798_v26 = vmin.f32 %v3478_v0, 6.0  ;;  %v14081_v59 = vld [vmem:[%s23851_s11 + $0x1398] sm:$0xf]  ;;  %v15736_v0 = vld [vmem:[%s23851_s11 + $0x13c0] sm:$0xf0] }
 0x46e   : > { %9865 = vmatpush.bf16.msra.mxu1 %v14302_v40 }
 0x46f   : > { %v4096_v4 = vadd.f32 %v4095_v62, %v3615_v14  ;;  %v4225_v45 = vadd.f32 %v4224_v52, %v3798_v26  ;;  %v14125_v62 = vld [vmem:[%s23851_s11 + $0x13f0] sm:$0xf]  ;;  %v14082_v52 = vor.u32 %v15736_v0, %v14081_v59  ;;  %v4205_v14 = vadd.f32 %v4204_v27, %v4203_v34 }
 0x470   : > { %v2841_v61 = vpop.f32.mrf.mxu3  ;;  %v3153_v3 = vpop.f32.mrf.mxu2  ;;  %v14126_v60 = vor.u32 %v15747_v38, %v14125_v62  ;;  %v15159_v62 = vld [vmem:[%s23851_s11 + $0x1bc] sm:$0xf]  ;;  %v11795_v38 = vld [vmem:[%s23851_s11 + $0x1e4] sm:$0xf0] }
 0x471   : > { %v2842_v55 = vadd.f32 %v2841_v61, %v18220_v48  ;;  %v3154_v21 = vadd.f32 %v3153_v3, %v17782_v42  ;;  %v11798_v27 = vor.u32 %v15159_v62, %v11795_v38  ;;  %v15104_v62 = vld [vmem:[%s23851_s11 + $0x4] sm:$0xf]  ;;  %v11575_v38 = vld [vmem:[%s23851_s11 + $0x2c] sm:$0xf0] }
 0x472   : > { %9866 = vmatpush.bf16.msra.mxu1 %v14258_v43  ;;  %v14037_v43 = vld [vmem:[%s23851_s11 + $0x1340] sm:$0xf] }
 0x473   : > { %v3305_v13 = vmax.f32 %v2842_v55, 0.0  ;;  %v3488_v33 = vmax.f32 %v3154_v21, 0.0  ;;  %v14038_v55 = vor.u32 %v15725_v46, %v14037_v43  ;;  %v4294_v21 = vmul.f32 %v17799_v22, %v4205_v14  ;;  %v11707_v43 = vld [vmem:[%s23851_s11 + $0x134] sm:$0xf0] }
 0x475   : > { %v3625_v9 = vmin.f32 %v3305_v13, 6.0  ;;  %11501 = vmatmul.msk.bf16.gmra.mxu3 %vm2331_vm1, %v17262_v35  ;;  %v3808_v44 = vmin.f32 %v3488_v33, 6.0  ;;  %v11839_v13 = vld [vmem:[%s23851_s11 + $0x23c] sm:$0xf0] }
 0x476   : > { %9867 = vmatpush.bf16.msra.mxu1 %v14214_v1  ;;  %v11842_v34 = vor.u32 %v15170_v17, %v11839_v13  ;;  %v15115_v17 = vld [vmem:[%s23851_s11 + $0x5c] sm:$0xf]  ;;  %v11619_v13 = vld [vmem:[%s23851_s11 + $0x84] sm:$0xf0] }
 0x477   : > { %v4097_v58 = vadd.f32 %v4096_v4, %v3625_v9  ;;  %v4226_v50 = vadd.f32 %v4225_v45, %v3808_v44  ;;  %v15181_v45 = vld [vmem:[%s23851_s11 + $0x26c] sm:$0xf]  ;;  %v18317_v9 = vpack.c.bf16 %v4294_v21, %v4294_v21 }
 0x478   : > { %v2844_v7 = vpop.f32.mrf.mxu3  ;;  %v3156_v39 = vpop.f32.mrf.mxu2  ;;  %v11886_v1 = vor.u32 %v15181_v45, %v11883_v63  ;;  %v15126_v45 = vld [vmem:[%s23851_s11 + $0xb4] sm:$0xf]  ;;  %v11663_v63 = vld [vmem:[%s23851_s11 + $0xdc] sm:$0xf0] }
 0x479   : > { %v2845_v53 = vadd.f32 %v2844_v7, %v18220_v48  ;;  %v3157_v12 = vadd.f32 %v3156_v39, %v17782_v42  ;;  %9833 = vmatmul.bf16.vlgmr.msrb.gmra.mxu1 %v18277_v32  ;;  %v11666_v21 = vor.u32 %v15126_v45, %v11663_v63 }
 0x47a   : > { %9868 = vmatpush.bf16.msra.mxu1 %v14170_v28 }
 0x47b   : > { %v3315_v6 = vmax.f32 %v2845_v53, 0.0  ;;  %v3498_v40 = vmax.f32 %v3157_v12, 0.0 }
 0x47d   : > { %v3635_v47 = vmin.f32 %v3315_v6, 6.0  ;;  %v3818_v51 = vmin.f32 %v3498_v40, 6.0  ;;  %v11751_v6 = vld [vmem:[%s23851_s11 + $0x18c] sm:$0xf0] }
 0x47e   : > { %9869 = vmatpush.bf16.msra.mxu1 %v14126_v60  ;;  %v15148_v60 = vld [vmem:[%s23851_s11 + $0x164] sm:$0xf] }
 0x47f   : > { %v4098_v26 = vadd.f32 %v4097_v58, %v3635_v47  ;;  %v4227_v24 = vadd.f32 %v4226_v50, %v3818_v51  ;;  %v11754_v51 = vor.u32 %v15148_v60, %v11751_v6  ;;  %v11578_v6 = vor.u32 %v15104_v62, %v11575_v38 }
 0x480   : > { %v2846_v4 = vpop.f32.mrf.mxu3  ;;  %v3158_v30 = vpop.f32.mrf.mxu2 }
 0x481   : > { %v2847_v61 = vadd.f32 %v2846_v4, %v18220_v48  ;;  %v3159_v3 = vadd.f32 %v3158_v30, %v17782_v42 }
 0x482   : > { %9870 = vmatpush.bf16.msra.mxu1 %v14082_v52 }
 0x483   : > { %v3325_v18 = vmax.f32 %v2847_v61, 0.0  ;;  %v3508_v56 = vmax.f32 %v3159_v3, 0.0 }
 0x485   : > { %v3645_v29 = vmin.f32 %v3325_v18, 6.0  ;;  %11502 = vmatmul.msk.bf16.gmra.mxu3 %vm2331_vm1, %v17280_v8  ;;  %v3828_v7 = vmin.f32 %v3508_v56, 6.0 }
 0x486   : > { %9871 = vmatpush.bf16.msra.mxu1 %v14038_v55 }
 0x487   : > { %v4099_v33 = vadd.f32 %v4098_v26, %v3645_v29  ;;  %v4228_v40 = vadd.f32 %v4227_v24, %v3828_v7  ;;  %v15137_v26 = vld [vmem:[%s23851_s11 + $0x10c] sm:$0xf] }
 0x488   : > { %v2849_v28 = vpop.f32.mrf.mxu3  ;;  %v3161_v58 = vpop.f32.mrf.mxu2  ;;  %v11710_v30 = vor.u32 %v15137_v26, %v11707_v43 }
 0x489   : > { %v2850_v39 = vadd.f32 %v2849_v28, %v18220_v48  ;;  %v3162_v44 = vadd.f32 %v3161_v58, %v17782_v42  ;;  %9872 = vmatmul.bf16.vlgmr.msra.gmra.mxu1 %v18317_v9  ;;  %v11622_v58 = vor.u32 %v15115_v17, %v11619_v13 }
 0x48a   : > { %9903 = vmatpush.bf16.msrb.mxu1 %v11886_v1 }
 0x48b   : > { %v3335_v53 = vmax.f32 %v2850_v39, 0.0  ;;  %v3518_v12 = vmax.f32 %v3162_v44, 0.0 }
 0x48d   : > { %v3655_v59 = vmin.f32 %v3335_v53, 6.0  ;;  %v3838_v0 = vmin.f32 %v3518_v12, 6.0  ;;  %v15445_v53 = vld [vmem:[%s23851_s11 + $0xaac] sm:$0xf]  ;;  %v12939_v12 = vld [vmem:[%s23851_s11 + $0xad4] sm:$0xf0] }
 0x48e   : > { %9904 = vmatpush.bf16.msrb.mxu1 %v11842_v34 }
 0x48f   : > { %v4100_v50 = vadd.f32 %v4099_v33, %v3655_v59  ;;  %v4229_v47 = vadd.f32 %v4228_v40, %v3838_v0  ;;  %v12942_v0 = vor.u32 %v15445_v53, %v12939_v12 }
 0x490   : > { %v2851_v52 = vpop.f32.mrf.mxu3  ;;  %v3163_v14 = vpop.f32.mrf.mxu2 }
 0x491   : > { %v2852_v46 = vadd.f32 %v2851_v52, %v18220_v48  ;;  %v3164_v24 = vadd.f32 %v3163_v14, %v17782_v42  ;;  %v12895_v52 = vld [vmem:[%s23851_s11 + $0xa7c] sm:$0xf0] }
 0x492   : > { %9905 = vmatpush.bf16.msrb.mxu1 %v11798_v27 }
 0x493   : > { %v3345_v4 = vmax.f32 %v2852_v46, 0.0  ;;  %v3528_v3 = vmax.f32 %v3164_v24, 0.0  ;;  %v15423_v24 = vld [vmem:[%s23851_s11 + $0x9fc] sm:$0xf] }
 0x495   : > { %v3665_v61 = vmin.f32 %v3345_v4, 6.0  ;;  %11503 = vmatmul.msk.bf16.gmra.mxu3 %vm2331_vm1, %v17303_v19  ;;  %v3848_v29 = vmin.f32 %v3528_v3, 6.0  ;;  %v12851_v4 = vld [vmem:[%s23851_s11 + $0xa24] sm:$0xf0] }
 0x496   : > { %9906 = vmatpush.bf16.msrb.mxu1 %v11754_v51  ;;  %v15434_v51 = vld [vmem:[%s23851_s11 + $0xa54] sm:$0xf] }
 0x497   : > { %v4101_v55 = vadd.f32 %v4100_v50, %v3665_v61  ;;  %v4230_v7 = vadd.f32 %v4229_v47, %v3848_v29  ;;  %v12898_v26 = vor.u32 %v15434_v51, %v12895_v52  ;;  %v12854_v61 = vor.u32 %v15423_v24, %v12851_v4  ;;  %v15098_v52 = vld [vmem:[%s23849_s9 + $0x24] sm:$0xf] }
 0x498   : > { %v2854_v18 = vpop.f32.mrf.mxu3  ;;  %v3166_v1 = vpop.f32.mrf.mxu2 }
 0x499   : > { %v2855_v56 = vadd.f32 %v2854_v18, %v18220_v48  ;;  %v3167_v33 = vadd.f32 %v3166_v1, %v17782_v42  ;;  %v15412_v18 = vld [vmem:[%s23851_s11 + $0x9a4] sm:$0xf]  ;;  %v12807_v1 = vld [vmem:[%s23851_s11 + $0x9cc] sm:$0xf0] }
 0x49a   : > { %9907 = vmatpush.bf16.msrb.mxu1 %v11710_v30  ;;  %v12810_v29 = vor.u32 %v15412_v18, %v12807_v1 }
 0x49b   : > { %v3355_v34 = vmax.f32 %v2855_v56, 0.0  ;;  %v3538_v28 = vmax.f32 %v3167_v33, 0.0 }
 0x49d   : > { %v3675_v39 = vmin.f32 %v3355_v34, 6.0  ;;  %v3858_v44 = vmin.f32 %v3538_v28, 6.0  ;;  %v15401_v28 = vld [vmem:[%s23851_s11 + $0x94c] sm:$0xf] }
 0x49e   : > { %9908 = vmatpush.bf16.msrb.mxu1 %v11666_v21 }
 0x49f   : > { %v4102_v27 = vadd.f32 %v4101_v55, %v3675_v39  ;;  %v4231_v60 = vadd.f32 %v4230_v7, %v3858_v44 }
 0x4a0   : > { %v2856_v40 = vpop.f32.mrf.mxu3  ;;  %v3168_v59 = vpop.f32.mrf.mxu2 }
 0x4a1   : > { %v2857_v50 = vadd.f32 %v2856_v40, %v18220_v48  ;;  %v3169_v47 = vadd.f32 %v3168_v59, %v17782_v42 }
 0x4a2   : > { %9909 = vmatpush.bf16.msrb.mxu1 %v11622_v58  ;;  %v12763_v58 = vld [vmem:[%s23851_s11 + $0x974] sm:$0xf0] }
 0x4a3   : > { %v3365_v14 = vmax.f32 %v2857_v50, 0.0  ;;  %v3548_v46 = vmax.f32 %v3169_v47, 0.0  ;;  %v12766_v44 = vor.u32 %v15401_v28, %v12763_v58  ;;  %v15379_v50 = vld [vmem:[%s23851_s11 + $0x89c] sm:$0xf]  ;;  %v12675_v47 = vld [vmem:[%s23851_s11 + $0x8c4] sm:$0xf0] }
 0x4a5   : > { %v3685_v43 = vmin.f32 %v3365_v14, 6.0  ;;  %11504 = vmatmul.msk.bf16.gmra.mxu3 %vm2331_vm1, %v17321_v15  ;;  %v3868_v3 = vmin.f32 %v3548_v46, 6.0  ;;  %v11407_v46 = vld [vmem:[%s23849_s9 + $0x48] sm:$0xf0] }
 0x4a6   : > { %9910 = vmatpush.bf16.msrb.mxu1 %v11578_v6 }
 0x4a7   : > { %v4103_v30 = vadd.f32 %v4102_v27, %v3685_v43  ;;  %v4232_v56 = vadd.f32 %v4231_v60, %v3868_v3  ;;  %v15390_v27 = vld [vmem:[%s23851_s11 + $0x8f4] sm:$0xf]  ;;  %v12719_v60 = vld [vmem:[%s23851_s11 + $0x91c] sm:$0xf0]  ;;  %v12678_v43 = vor.u32 %v15379_v50, %v12675_v47  ;;  %v15709_v3 = vld [vmem:[%s23851_s11 + $0x12ec] sm:$0xf] }
 0x4a8   : > { %v2859_v45 = vpop.f32.mrf.mxu3  ;;  %v3171_v63 = vpop.f32.mrf.mxu2  ;;  %v12722_v40 = vor.u32 %v15390_v27, %v12719_v60 }
 0x4a9   : > { %9911 = vmatmul.bf16.vlgmr.msrb.gmra.mxu1 %v17804_v49  ;;  %v2860_v55 = vadd.f32 %v2859_v45, %v18220_v48  ;;  %v3172_v21 = vadd.f32 %v3171_v63, %v17782_v42  ;;  %v15368_v45 = vld [vmem:[%s23851_s11 + $0x844] sm:$0xf]  ;;  %v12631_v63 = vld [vmem:[%s23851_s11 + $0x86c] sm:$0xf0] }
 0x4aa   : > { %9942 = vmatpush.bf16.msra.mxu1 %v12942_v0  ;;  %v12634_v1 = vor.u32 %v15368_v45, %v12631_v63 }
 0x4ab   : > { %v3375_v17 = vmax.f32 %v2860_v55, 0.0  ;;  %v3558_v13 = vmax.f32 %v3172_v21, 0.0  ;;  %v13995_v55 = vld [vmem:[%s23851_s11 + $0x1314] sm:$0xf0] }
 0x4ad   : > { %v3695_v33 = vmin.f32 %v3375_v17, 6.0  ;;  %v3878_v34 = vmin.f32 %v3558_v13, 6.0 }
 0x4ae   : > { %9943 = vmatpush.bf16.msra.mxu1 %v12898_v26 }
 0x4af   : > { %v4104_v62 = vadd.f32 %v4103_v30, %v3695_v33  ;;  %v4233_v38 = vadd.f32 %v4232_v56, %v3878_v34  ;;  %v13998_v56 = vor.u32 %v15709_v3, %v13995_v55  ;;  %v15698_v33 = vld [vmem:[%s23851_s11 + $0x1294] sm:$0xf]  ;;  %v13951_v34 = vld [vmem:[%s23851_s11 + $0x12bc] sm:$0xf0]  ;;  %v15643_v55 = vld [vmem:[%s23851_s11 + $0x10dc] sm:$0xf] }
 0x4b0   : > { %v2861_v7 = vpop.f32.mrf.mxu3  ;;  %v3173_v39 = vpop.f32.mrf.mxu2 }
 0x4b1   : > { %v2862_v53 = vadd.f32 %v2861_v7, %v18220_v48  ;;  %v3174_v12 = vadd.f32 %v3173_v39, %v17782_v42  ;;  %v13954_v39 = vor.u32 %v15698_v33, %v13951_v34 }
 0x4b2   : > { %9944 = vmatpush.bf16.msra.mxu1 %v12854_v61  ;;  %v11410_v61 = vor.u32 %v15098_v52, %v11407_v46  ;;  %v15665_v52 = vld [vmem:[%s23851_s11 + $0x118c] sm:$0xf] }
 0x4b3   : > { %v3385_v6 = vmax.f32 %v2862_v53, 0.0  ;;  %v3568_v0 = vmax.f32 %v3174_v12, 0.0  ;;  %v13907_v53 = vld [vmem:[%s23851_s11 + $0x1264] sm:$0xf0] }
 0x4b4   : > { %3188 = vmatpush.bf16.msrb.mxu3 %v11410_v61 }
 0x4b5   : > { %v3705_v59 = vmin.f32 %v3385_v6, 6.0  ;;  %11505 = vmatmul.msk.bf16.gmra.mxu3 %vm2331_vm1, %v17339_v37  ;;  %v3888_v24 = vmin.f32 %v3568_v0, 6.0  ;;  %v15676_v6 = vld [vmem:[%s23851_s11 + $0x11e4] sm:$0xf] }
 0x4b6   : > { %9945 = vmatpush.bf16.msra.mxu1 %v12810_v29 }
 0x4b7   : > { %v4105_v51 = vadd.f32 %v4104_v62, %v3705_v59  ;;  %v4234_v17 = vadd.f32 %v4233_v38, %v3888_v24  ;;  %v15654_v24 = vld [vmem:[%s23851_s11 + $0x1134] sm:$0xf] }
 0x4b8   : > { %v2864_v14 = vpop.f32.mrf.mxu3  ;;  %v3176_v26 = vpop.f32.mrf.mxu2 }
 0x4b9   : > { %v2865_v4 = vadd.f32 %v2864_v14, %v18220_v48  ;;  %v3177_v30 = vadd.f32 %v3176_v26, %v17782_v42  ;;  %v13819_v14 = vld [vmem:[%s23851_s11 + $0x11b4] sm:$0xf0] }
 0x4ba   : > { %9946 = vmatpush.bf16.msra.mxu1 %v12766_v44  ;;  %v15687_v44 = vld [vmem:[%s23851_s11 + $0x123c] sm:$0xf]  ;;  %v13822_v46 = vor.u32 %v15665_v52, %v13819_v14 }
 0x4bb   : > { %v3395_v21 = vmax.f32 %v2865_v4, 0.0  ;;  %v3578_v18 = vmax.f32 %v3177_v30, 0.0  ;;  %v13910_v60 = vor.u32 %v15687_v44, %v13907_v53  ;;  %v13775_v4 = vld [vmem:[%s23851_s11 + $0x115c] sm:$0xf0] }
 0x4bc   : > { %v13778_v3 = vor.u32 %v15654_v24, %v13775_v4 }
 0x4bd   : > { %v3715_v13 = vmin.f32 %v3395_v21, 6.0  ;;  %v3898_v29 = vmin.f32 %v3578_v18, 6.0  ;;  %v13731_v21 = vld [vmem:[%s23851_s11 + $0x1104] sm:$0xf0] }
 0x4be   : > { %9947 = vmatpush.bf16.msra.mxu1 %v12722_v40  ;;  %v13863_v40 = vld [vmem:[%s23851_s11 + $0x120c] sm:$0xf0] }
 0x4bf   : > { %v4106_v28 = vadd.f32 %v4105_v51, %v3715_v13  ;;  %v18443_v58 = vadd.f32 %v4234_v17, %v3898_v29  ;;  %v13866_v51 = vor.u32 %v15676_v6, %v13863_v40  ;;  %v13734_v17 = vor.u32 %v15643_v55, %v13731_v21  ;;  %v15632_v13 = vld [vmem:[%s23851_s11 + $0x1084] sm:$0xf]  ;;  %v13687_v29 = vld [vmem:[%s23851_s11 + $0x10ac] sm:$0xf0] }
 0x4c0   : > { %v2866_v62 = vpop.f32.mrf.mxu3  ;;  %v18445_v7 = vpop.f32.mrf.mxu2 }
 0x4c1   : > { %v2867_v38 = vadd.f32 %v2866_v62, %v18220_v48 }
 0x4c2   : > { %9948 = vmatpush.bf16.msra.mxu1 %v12678_v43 }
 0x4c3   : > { %v3405_v12 = vmax.f32 %v2867_v38, 0.0 }
 0x4c5   : > { %v3725_v27 = vmin.f32 %v3405_v12, 6.0  ;;  %11506 = vmatmul.msk.bf16.gmra.mxu3 %vm2331_vm1, %v17375_v41 }
 0x4c6   : > { %9949 = vmatpush.bf16.msra.mxu1 %v12634_v1 }
 0x4c7   : > { %v4107_v59 = vadd.f32 %v4106_v28, %v3725_v27  ;;  %v13690_v28 = vor.u32 %v15632_v13, %v13687_v29 }
 0x4c8   : > { %v2869_v0 = vpop.f32.mrf.mxu3  ;;  %v9808_v50 = vpop.f32.mrf.mxu2 }
 0x4c9   : > { %9950 = vmatmul.bf16.vlgmr.msra.gmra.mxu1 %v17820_v10  ;;  %v2870_v47 = vadd.f32 %v2869_v0, %v18220_v48 }
 0x4ca   : > { %9981 = vmatpush.bf16.msrb.mxu1 %v13998_v56 }
 0x4cb   : > { %v3415_v26 = vmax.f32 %v2870_v47, 0.0 }
 0x4cd   : > { %v3735_v43 = vmin.f32 %v3415_v26, 6.0 }
 0x4ce   : > { %9982 = vmatpush.bf16.msrb.mxu1 %v13954_v39 }
 0x4cf   : > { %v4108_v30 = vadd.f32 %v4107_v59, %v3735_v43 }
 0x4d0   : > { %v2871_v45 = vpop.f32.mrf.mxu3  ;;  %v9810_v63 = vpop.f32.mrf.mxu2 }
 0x4d1   : > { %v2872_v61 = vadd.f32 %v2871_v45, %v18220_v48 }
 0x4d2   : > { %9983 = vmatpush.bf16.msrb.mxu1 %v13910_v60 }
 0x4d3   : > { %v3425_v18 = vmax.f32 %v2872_v61, 0.0  ;;  %v23863_v61 = vld [vmem:[#allocation3_spill] sm:$0xff] }
 0x4d5   : > { %v3745_v1 = vmin.f32 %v3425_v18, 6.0  ;;  %11555 = vmatmul.msk.bf16.vlgmr.msrb.gmra.mxu3 %vm2331_vm1, %v16927_v20  ;;  %v5267_v20 = vld [vmem:[%s23852_s12] sm:$0xff] }
 0x4d6   : > { %9984 = vmatpush.bf16.msrb.mxu1 %v13866_v51  ;;  %v9751_v53 = vperm.slane %v5267_v20, 0 }
 0x4d7   : > { %v4109_v56 = vadd.f32 %v4108_v30, %v3745_v1 }
 0x4d8   : > { %v2874_v33 = vpop.f32.mrf.mxu3  ;;  %v9783_v6 = vadd.f32 %v18207_v2, %v9751_v53  ;;  %v13597_v53 = vld [vmem:[%s23851_s11 + $0xfd0] sm:$0xf] }
 0x4d9   : > { %v2875_v34 = vadd.f32 %v2874_v33, %v18220_v48  ;;  %v23864_v33 = vld [vmem:[#allocation4_spill] sm:$0xff] }
 0x4da   : > { %9985 = vmatpush.bf16.msrb.mxu1 %v13822_v46 }
 0x4db   : > { %v3435_v62 = vmax.f32 %v2875_v34, 0.0 }
 0x4dd   : > { %v3755_v38 = vmin.f32 %v3435_v62, 6.0  ;;  %v13641_v62 = vld [vmem:[%s23851_s11 + $0x1028] sm:$0xf] }
 0x4de   : > { %9986 = vmatpush.bf16.msrb.mxu1 %v13778_v3 }
 0x4df   : > { %v4110_v39 = vadd.f32 %v4109_v56, %v3755_v38  ;;  %v15626_v38 = vld [vmem:[%s23851_s11 + $0x1050] sm:$0xf0] }
 0x4e0   : > { %v2876_v44 = vpop.f32.mrf.mxu3 }
 0x4e1   : > { %v2877_v12 = vadd.f32 %v2876_v44, %v18220_v48  ;;  %v18497_v27 = vpop.f32.mrf.mxu0  ;;  %v23865_v44 = vld [vmem:[#allocation5_spill] sm:$0xff] }
 0x4e2   : > { %9987 = vmatpush.bf16.msrb.mxu1 %v13734_v17 }
 0x4e3   : > { %v3445_v60 = vmax.f32 %v2877_v12, 0.0  ;;  %v15615_v12 = vld [vmem:[%s23851_s11 + $0xff8] sm:$0xf0] }
 0x4e5   : > { %v3765_v40 = vmin.f32 %v3445_v60, 6.0  ;;  %11556 = vmatmul.msk.bf16.gmra.mxu3 %vm2331_vm1, %v16981_v23  ;;  %v13553_v60 = vld [vmem:[%s23851_s11 + $0xf78] sm:$0xf] }
 0x4e6   : > { %9988 = vmatpush.bf16.msrb.mxu1 %v13690_v28  ;;  %v9795_v59 = vpop.f32.mrf.mxu1 }
 0x4e7   : > { %v4111_v0 = vadd.f32 %v4110_v39, %v3765_v40  ;;  %v9796_v47 = vadd.f32 %v9795_v59, %v9783_v6  ;;  %v13642_v39 = vor.u32 %v15626_v38, %v13641_v62  ;;  %v13598_v40 = vor.u32 %v15615_v12, %v13597_v53  ;;  %v15604_v59 = vld [vmem:[%s23851_s11 + $0xfa0] sm:$0xf0]  ;;  %v14653_v12 = vld [vmem:[%s23851_s11 + $0x1810] sm:$0xf] }
 0x4e8   : > { %v2879_v51 = vpop.f32.mrf.mxu3 }
 0x4e9   : > { %9989 = vmatmul.bf16.vlgmr.msrb.gmra.mxu1 %v18229_v57  ;;  %v9809_v52 = vadd.f32 %v9808_v50, %v9796_v47  ;;  %v2880_v14 = vadd.f32 %v2879_v51, %v18220_v48  ;;  %v9862_v26 = vpop.f32.mrf.mxu0  ;;  %9838 = vmatpush.bf16.msra.mxu2 %v13642_v39  ;;  %v13509_v47 = vld [vmem:[%s23851_s11 + $0xf20] sm:$0xf]  ;;  %v15593_v51 = vld [vmem:[%s23851_s11 + $0xf48] sm:$0xf0] }
 0x4ea   : > { %v13510_v26 = vor.u32 %v15593_v51, %v13509_v47 }
 0x4eb   : > { %v3455_v43 = vmax.f32 %v2880_v14, 0.0  ;;  %v9822_v23 = vadd.f32 %v18231_v5, %v9809_v52  ;;  %v13465_v52 = vld [vmem:[%s23851_s11 + $0xec8] sm:$0xf] }
 0x4ed   : > { %v3775_v46 = vmin.f32 %v3455_v43, 6.0  ;;  %9839 = vmatpush.bf16.msra.mxu2 %v13598_v40  ;;  %v15582_v43 = vld [vmem:[%s23851_s11 + $0xef0] sm:$0xf0] }
 0x4ee   : > { %v9797_v24 = vpop.f32.mrf.mxu1 }
 0x4ef   : > { %v4112_v4 = vadd.f32 %v4111_v0, %v3775_v46  ;;  %v13554_v0 = vor.u32 %v15604_v59, %v13553_v60  ;;  %v13466_v46 = vor.u32 %v15582_v43, %v13465_v52  ;;  %v15879_v60 = vld [vmem:[%s23851_s11 + $0x1838] sm:$0xf0] }
 0x4f0   : > { %v2881_v30 = vpop.f32.mrf.mxu3  ;;  %v14654_v40 = vor.u32 %v15879_v60, %v14653_v12 }
 0x4f1   : > { %v2882_v45 = vadd.f32 %v2881_v30, %v18220_v48  ;;  %9840 = vmatpush.bf16.msra.mxu2 %v13554_v0  ;;  %v13421_v30 = vld [vmem:[%s23851_s11 + $0xe70] sm:$0xf] }
 0x4f3   : > { %v3465_v2 = vmax.f32 %v2882_v45, 0.0  ;;  %v15571_v45 = vld [vmem:[%s23851_s11 + $0xe98] sm:$0xf0] }
 0x4f5   : > { %v3785_v63 = vmin.f32 %v3465_v2, 6.0  ;;  %11557 = vmatmul.msk.bf16.gmra.mxu3 %vm2331_vm1, %v23863_v61  ;;  %9841 = vmatpush.bf16.msra.mxu2 %v13510_v26  ;;  %v13377_v2 = vld [vmem:[%s23851_s11 + $0xe18] sm:$0xf]  ;;  %v13422_v61 = vor.u32 %v15571_v45, %v13421_v30  ;;  %v14565_v45 = vld [vmem:[%s23851_s11 + $0x1760] sm:$0xf] }
 0x4f6   : > { %v9834_v3 = vpop.f32.mrf.mxu1 }
 0x4f7   : > { %v4113_v55 = vadd.f32 %v4112_v4, %v3785_v63  ;;  %v18507_v50 = vadd.f32 %v9834_v3, %v9822_v23  ;;  %v23866_v4 = vld [vmem:[#allocation6_spill] sm:$0xff]  ;;  %v15560_v23 = vld [vmem:[%s23851_s11 + $0xe40] sm:$0xf0] }
 0x4f8   : > { %v2884_v21 = vpop.f32.mrf.mxu3  ;;  %v13378_v3 = vor.u32 %v15560_v23, %v13377_v2 }
 0x4f9   : > { %v2885_v18 = vadd.f32 %v2884_v21, %v18220_v48  ;;  %9842 = vmatpush.bf16.msra.mxu2 %v13466_v46  ;;  %v13333_v21 = vld [vmem:[%s23851_s11 + $0xdc0] sm:$0xf] }
 0x4fb   : > { %v3475_v1 = vmax.f32 %v2885_v18, 0.0  ;;  %v15549_v18 = vld [vmem:[%s23851_s11 + $0xde8] sm:$0xf0] }
 0x4fd   : > { %v3795_v17 = vmin.f32 %v3475_v1, 6.0  ;;  %9843 = vmatpush.bf16.msra.mxu2 %v13422_v61  ;;  %v14697_v1 = vld [vmem:[%s23851_s11 + $0x1868] sm:$0xf] }
 0x4fe   : > { %v9836_v13 = vpop.f32.mrf.mxu1 }
 0x4ff   : > { %v18510_v29 = vadd.f32 %v4113_v55, %v3795_v17  ;;  %v13334_v13 = vor.u32 %v15549_v18, %v13333_v21  ;;  %v14521_v18 = vld [vmem:[%s23851_s11 + $0x1708] sm:$0xf] }
 0x500   : > { %v2886_v56 = vpop.f32.mrf.mxu3 }
 0x501   : > { %9844 = vmatpush.bf16.msra.mxu2 %v13378_v3  ;;  %v2887_v62 = vadd.f32 %v2886_v56, %v18220_v48 }
 0x505   : > { %11558 = vmatmul.msk.bf16.gmra.mxu3 %vm2331_vm1, %v23864_v33  ;;  %v15890_v33 = vld [vmem:[%s23851_s11 + $0x1890] sm:$0xf0]  ;;  %9845 = vmatpush.bf16.msra.mxu2 %v13334_v13 }
 0x506   : > { %v18514_v34 = vpop.f32.mrf.mxu1 }
 0x508   : > { %v2889_v28 = vpop.f32.mrf.mxu3 }
 0x509   : > { %v2890_v38 = vadd.f32 %v2889_v28, %v18220_v48  ;;  %v14609_v28 = vld [vmem:[%s23851_s11 + $0x17b8] sm:$0xf] }
 0x50b   : > { %v3495_v59 = vmax.f32 %v2890_v38, 0.0 }
 0x50d   : > { %v3815_v52 = vmin.f32 %v3495_v59, 6.0  ;;  %v14433_v59 = vld [vmem:[%s23851_s11 + $0x1658] sm:$0xf] }
 0x50e   : > { %v9875_v5 = vpop.f32.mrf.mxu1 }
 0x50f   : > { %v14698_v5 = vor.u32 %v15890_v33, %v14697_v1  ;;  %v15846_v1 = vld [vmem:[%s23851_s11 + $0x1730] sm:$0xf0] }
 0x510   : > { %v2891_v20 = vpop.f32.mrf.mxu3 }
 0x511   : > { %9877 = vmatpush.bf16.msrb.mxu2 %v14698_v5  ;;  %v2892_v53 = vadd.f32 %v2891_v20, %v18220_v48  ;;  %v15868_v20 = vld [vmem:[%s23851_s11 + $0x17e0] sm:$0xf0]  ;;  %v14522_v5 = vor.u32 %v15846_v1, %v14521_v18 }
 0x512   : > { %v14610_v51 = vor.u32 %v15868_v20, %v14609_v28 }
 0x513   : > { %v3505_v0 = vmax.f32 %v2892_v53, 0.0 }
 0x515   : > { %11559 = vmatmul.msk.bf16.gmra.mxu3 %vm2331_vm1, %v23865_v44  ;;  %v3485_v44 = vmax.f32 %v2887_v62, 0.0  ;;  %9878 = vmatpush.bf16.msrb.mxu2 %v14654_v40  ;;  %v3825_v30 = vmin.f32 %v3505_v0, 6.0  ;;  %v14477_v62 = vld [vmem:[%s23851_s11 + $0x16b0] sm:$0xf] }
 0x517   : > { %v3805_v56 = vmin.f32 %v3485_v44, 6.0 }
 0x518   : > { %v2894_v6 = vpop.f32.mrf.mxu3 }
 0x519   : > { %9879 = vmatpush.bf16.msrb.mxu2 %v14610_v51 }
 0x520   : > { %v2896_v14 = vpop.f32.mrf.mxu3 }
 0x521   : > { %v2897_v47 = vadd.f32 %v2896_v14, %v18220_v48  ;;  %v15857_v14 = vld [vmem:[%s23851_s11 + $0x1788] sm:$0xf0] }
 0x522   : > { %v14566_v23 = vor.u32 %v15857_v14, %v14565_v45  ;;  %v15813_v45 = vld [vmem:[%s23851_s11 + $0x1628] sm:$0xf0] }
 0x523   : > { %v3525_v2 = vmax.f32 %v2897_v47, 0.0 }
 0x524   : > { %9880 = vmatpush.bf16.msrb.mxu2 %v14566_v23 }
 0x525   : > { %11560 = vmatmul.msk.bf16.gmra.mxu3 %vm2331_vm1, %v23866_v4  ;;  %v4115_v4 = vadd.f32 %v18510_v29, %v3805_v56  ;;  %v3179_v56 = vadd.f32 %v18445_v7, %v17782_v42 }
 0x526   : > { %v18548_v24 = vpop.f32.mrf.mxu1 }
 0x527   : > { %v4116_v3 = vadd.f32 %v4115_v4, %v3815_v52 }
 0x528   : > { %v2899_v63 = vpop.f32.mrf.mxu3  ;;  %9881 = vmatpush.bf16.msrb.mxu2 %v14522_v5 }
 0x529   : > { %v4117_v29 = vadd.f32 %v4116_v3, %v3825_v30  ;;  %v14389_v30 = vld [vmem:[%s23851_s11 + $0x1600] sm:$0xf] }
 0x52e   : > { %v9914_v55 = vpop.f32.mrf.mxu1 }
 0x530   : > { %v2901_v17 = vpop.f32.mrf.mxu3 }
 0x531   : > { %v2902_v61 = vadd.f32 %v2901_v17, %v18220_v48  ;;  %v3845_v17 = vmin.f32 %v3525_v2, 6.0 }
 0x533   : > { %v3545_v13 = vmax.f32 %v2902_v61, 0.0  ;;  %v14390_v61 = vor.u32 %v15813_v45, %v14389_v30 }
 0x535   : > { %11561 = vmatmul.msk.bf16.gmra.mxu3 %vm2331_vm1, %v17189_v25  ;;  %v2895_v25 = vadd.f32 %v2894_v6, %v18220_v48  ;;  %v2900_v6 = vadd.f32 %v2899_v63, %v18220_v48  ;;  %v3865_v28 = vmin.f32 %v3545_v13, 6.0 }
 0x537   : > { %v3515_v26 = vmax.f32 %v2895_v25, 0.0  ;;  %v3535_v21 = vmax.f32 %v2900_v6, 0.0  ;;  %v15824_v25 = vld [vmem:[%s23851_s11 + $0x1680] sm:$0xf0] }
 0x538   : > { %v2904_v39 = vpop.f32.mrf.mxu3 }
 0x539   : > { %v3835_v55 = vmin.f32 %v3515_v26, 6.0  ;;  %v2905_v63 = vadd.f32 %v2904_v39, %v18220_v48  ;;  %v3855_v53 = vmin.f32 %v3535_v21, 6.0  ;;  %v14434_v26 = vor.u32 %v15824_v25, %v14433_v59  ;;  %v15269_v25 = vld [vmem:[%s23851_s11 + $0x52c] sm:$0xf] }
 0x53b   : > { %v4118_v38 = vadd.f32 %v4117_v29, %v3835_v55  ;;  %v3555_v12 = vmax.f32 %v2905_v63, 0.0 }
 0x53d   : > { %v4119_v0 = vadd.f32 %v4118_v38, %v3845_v17  ;;  %v3875_v51 = vmin.f32 %v3555_v12, 6.0 }
 0x53f   : > { %v4120_v47 = vadd.f32 %v4119_v0, %v3855_v53 }
 0x540   : > { %v2906_v46 = vpop.f32.mrf.mxu3 }
 0x541   : > { %v2907_v33 = vadd.f32 %v2906_v46, %v18220_v48  ;;  %v3588_v46 = vmax.f32 %v3179_v56, 0.0  ;;  %v4121_v6 = vadd.f32 %v4120_v47, %v3865_v28  ;;  %v12235_v56 = vld [vmem:[%s23851_s11 + $0x554] sm:$0xf0] }
 0x543   : > { %v3565_v20 = vmax.f32 %v2907_v33, 0.0  ;;  %v4122_v7 = vadd.f32 %v4121_v6, %v3875_v51  ;;  %v3908_v23 = vmin.f32 %v3588_v46, 6.0  ;;  %v12238_v51 = vor.u32 %v15269_v25, %v12235_v56  ;;  %v15258_v6 = vld [vmem:[%s23851_s11 + $0x4d4] sm:$0xf] }
 0x545   : > { %11562 = vmatmul.msk.bf16.gmra.mxu3 %vm2331_vm1, %v17200_v36  ;;  %v15835_v36 = vld [vmem:[%s23851_s11 + $0x16d8] sm:$0xf0]  ;;  %v3885_v4 = vmin.f32 %v3565_v20, 6.0  ;;  %v4236_v29 = vadd.f32 %v18443_v58, %v3908_v23 }
 0x546   : > { %v18595_v43 = vpop.f32.mrf.mxu1  ;;  %v14478_v40 = vor.u32 %v15835_v36, %v14477_v62 }
 0x547   : > { %v4123_v3 = vadd.f32 %v4122_v7, %v3885_v4  ;;  %v4237_v33 = vrot.slane %v4236_v29, 4  ;;  %v12191_v4 = vld [vmem:[%s23851_s11 + $0x4fc] sm:$0xf0] }
 0x548   : > { %v2909_v44 = vpop.f32.mrf.mxu3  ;;  %9882 = vmatpush.bf16.msrb.mxu2 %v14478_v40 }
 0x549   : > { %v2910_v60 = vadd.f32 %v2909_v44, %v18220_v48 }
 0x54b   : > { %v3575_v52 = vmax.f32 %v2910_v60, 0.0 }
 0x54c   : > { %9883 = vmatpush.bf16.msrb.mxu2 %v14434_v26 }
 0x54d   : > { %v3895_v14 = vmin.f32 %v3575_v52, 6.0 }
 0x54e   : > { %v9953_v39 = vpop.f32.mrf.mxu1 }
 0x54f   : > { %v4124_v21 = vadd.f32 %v4123_v3, %v3895_v14  ;;  %v15247_v14 = vld [vmem:[%s23851_s11 + $0x47c] sm:$0xf] }
 0x550   : > { %v2911_v42 = vpop.f32.mrf.mxu3  ;;  %9884 = vmatpush.bf16.msrb.mxu2 %v14390_v61 }
 0x551   : > { %v2912_v2 = vadd.f32 %v2911_v42, %v18220_v48  ;;  %v16014_v48 = vld [vmem:[%s23850_s10 + $0x8] sm:$0x3] }
 0x552   : > { %v18644_v13 = vperm.slane %v16014_v48, 1 }
 0x553   : > { %v3585_v55 = vmax.f32 %v2912_v2, 0.0  ;;  %v12147_v2 = vld [vmem:[%s23851_s11 + $0x4a4] sm:$0xf0] }
 0x554   : > { %v12150_v23 = vor.u32 %v15247_v14, %v12147_v2 }
 0x555   : > { %v3905_v63 = vmin.f32 %v3585_v55, 6.0  ;;  %11563 = vmatmul.msk.bf16.gmra.mxu3 %vm2331_vm1, %v17217_v16  ;;  %v4238_v16 = vadd.f32 %v4237_v33, %v4236_v29  ;;  %v15225_v33 = vld [vmem:[%s23851_s11 + $0x3cc] sm:$0xf] }
 0x557   : > { %v4125_v18 = vadd.f32 %v4124_v21, %v3905_v63  ;;  %v4239_v60 = vrot.slane %v4238_v16, 2  ;;  %v15236_v21 = vld [vmem:[%s23851_s11 + $0x424] sm:$0xf]  ;;  %v12103_v63 = vld [vmem:[%s23851_s11 + $0x44c] sm:$0xf0] }
 0x558   : > { %v3190_v1 = vpop.f32.mrf.mxu3 }
 0x559   : > { %v4126_v17 = vrot.slane %v4125_v18, 4  ;;  %v3191_v36 = vadd.f32 %v3190_v1, %v18644_v13  ;;  %v4240_v52 = vadd.f32 %v4239_v60, %v4238_v16  ;;  %v12106_v1 = vor.u32 %v15236_v21, %v12103_v63  ;;  %v15511_v63 = vld [vmem:[%s23851_s11 + $0xcbc] sm:$0xf] }
 0x55b   : > { %v4127_v5 = vadd.f32 %v4126_v17, %v4125_v18  ;;  %v3279_v53 = vmax.f32 %v3191_v36, 0.0  ;;  %v4241_v42 = vrot.slane %v4240_v52, 1 }
 0x55d   : > { %v4128_v62 = vrot.slane %v4127_v5, 2  ;;  %v3599_v28 = vmin.f32 %v3279_v53, 6.0  ;;  %v4242_v3 = vadd.f32 %v4241_v42, %v4240_v52  ;;  %v15533_v52 = vld [vmem:[%s23851_s11 + $0xd6c] sm:$0xf] }
 0x55f   : > { %v4129_v39 = vadd.f32 %v4128_v62, %v4127_v5  ;;  %v4295_v17 = vmul.f32 %v17799_v22, %v4242_v3  ;;  %v12059_v5 = vld [vmem:[%s23851_s11 + $0x3f4] sm:$0xf0] }
 0x560   : > { %v3192_v44 = vpop.f32.mrf.mxu3  ;;  %v12062_v36 = vor.u32 %v15225_v33, %v12059_v5  ;;  %v13165_v33 = vld [vmem:[%s23851_s11 + $0xc68] sm:$0xf]  ;;  %v15506_v5 = vld [vmem:[%s23851_s11 + $0xc90] sm:$0xf0] }
 0x561   : > { %v4130_v58 = vrot.slane %v4129_v39, 1  ;;  %v3193_v12 = vadd.f32 %v3192_v44, %v18644_v13  ;;  %v18691_v16 = vpack.c.bf16 %v4295_v17, %v4295_v17  ;;  %v15214_v44 = vld [vmem:[%s23851_s11 + $0x374] sm:$0xf] }
 0x563   : > { %v4131_v40 = vadd.f32 %v4130_v58, %v4129_v39  ;;  %v3289_v59 = vmax.f32 %v3193_v12, 0.0  ;;  %v12015_v58 = vld [vmem:[%s23851_s11 + $0x39c] sm:$0xf0] }
 0x565   : > { %v4292_v0 = vmul.f32 %v17799_v22, %v4131_v40  ;;  %v3609_v20 = vmin.f32 %v3289_v59, 6.0  ;;  %11564 = vmatmul.msk.bf16.gmra.mxu3 %vm2331_vm1, %v17244_v11  ;;  %v12194_v11 = vor.u32 %v15258_v6, %v12191_v4  ;;  %v15203_v40 = vld [vmem:[%s23851_s11 + $0x31c] sm:$0xf]  ;;  %v11971_v59 = vld [vmem:[%s23851_s11 + $0x344] sm:$0xf0] }
 0x566   : > { %v18647_v38 = vpop.f32.mrf.mxu1  ;;  %v11974_v56 = vor.u32 %v15203_v40, %v11971_v59  ;;  %v15539_v6 = vld [vmem:[%s23851_s11 + $0xd98] sm:$0xf0]  ;;  %v15489_v59 = vld [vmem:[%s23851_s11 + $0xc0c] sm:$0xf] }
 0x567   : > { %v18659_v26 = vpack.c.bf16 %v4292_v0, %v4292_v0  ;;  %v4243_v46 = vadd.f32 %v3609_v20, %v3599_v28  ;;  %v15192_v28 = vld [vmem:[%s23851_s11 + $0x2c4] sm:$0xf]  ;;  %v11927_v20 = vld [vmem:[%s23851_s11 + $0x2ec] sm:$0xf0] }
 0x568   : > { %v3195_v30 = vpop.f32.mrf.mxu3  ;;  %v11930_v42 = vor.u32 %v15192_v28, %v11927_v20  ;;  %v13077_v20 = vld [vmem:[%s23851_s11 + $0xbb8] sm:$0xf] }
 0x569   : > { %v3196_v45 = vadd.f32 %v3195_v30, %v18644_v13  ;;  %9846 = vmatmul.bf16.vlgmr.msra.gmra.mxu2 %v18659_v26 }
 0x56a   : > { %9916 = vmatpush.bf16.msra.mxu2 %v12238_v51 }
 0x56b   : > { %v3299_v7 = vmax.f32 %v3196_v45, 0.0  ;;  %v13253_v45 = vld [vmem:[%s23851_s11 + $0xd18] sm:$0xf] }
 0x56d   : > { %v3619_v61 = vmin.f32 %v3299_v7, 6.0 }
 0x56e   : > { %v9992_v47 = vpop.f32.mrf.mxu1  ;;  %9917 = vmatpush.bf16.msra.mxu2 %v12194_v11  ;;  %v15528_v11 = vld [vmem:[%s23851_s11 + $0xd40] sm:$0xf0] }
 0x56f   : > { %v4244_v55 = vadd.f32 %v4243_v46, %v3619_v61  ;;  %v13297_v47 = vld [vmem:[%s23851_s11 + $0xd70] sm:$0xf]  ;;  %v13291_v46 = vld [vmem:[%s23851_s11 + $0xd94] sm:$0xf0]  ;;  %v13254_v2 = vor.u32 %v15528_v11, %v13253_v45  ;;  %v15522_v61 = vld [vmem:[%s23851_s11 + $0xd14] sm:$0xf] }
 0x570   : > { %v3197_v29 = vpop.f32.mrf.mxu3  ;;  %v13298_v30 = vor.u32 %v15539_v6, %v13297_v47  ;;  %v13294_v14 = vor.u32 %v15533_v52, %v13291_v46  ;;  %v15484_v47 = vld [vmem:[%s23851_s11 + $0xbe0] sm:$0xf0]  ;;  %v15478_v6 = vld [vmem:[%s23851_s11 + $0xbb4] sm:$0xf] }
 0x571   : > { %v3198_v18 = vadd.f32 %v3197_v29, %v18644_v13  ;;  %v13078_v46 = vor.u32 %v15484_v47, %v13077_v20  ;;  %v14259_v20 = vld [vmem:[%s23851_s11 + $0x1524] sm:$0xf0] }
 0x572   : > { %9918 = vmatpush.bf16.msra.mxu2 %v12150_v23  ;;  %10085 = vmatpush.bf16.msra.mxu3 %v13298_v30  ;;  %v13247_v23 = vld [vmem:[%s23851_s11 + $0xd3c] sm:$0xf0] }
 0x573   : > { %v3309_v48 = vmax.f32 %v3198_v18, 0.0  ;;  %v13250_v21 = vor.u32 %v15522_v61, %v13247_v23  ;;  %v13203_v18 = vld [vmem:[%s23851_s11 + $0xce4] sm:$0xf0] }
 0x575   : > { %v3629_v62 = vmin.f32 %v3309_v48, 6.0  ;;  %11565 = vmatmul.msk.bf16.gmra.mxu3 %vm2331_vm1, %v17262_v35  ;;  %v12018_v35 = vor.u32 %v15214_v44, %v12015_v58  ;;  %v15500_v44 = vld [vmem:[%s23851_s11 + $0xc64] sm:$0xf]  ;;  %v13159_v58 = vld [vmem:[%s23851_s11 + $0xc8c] sm:$0xf0] }
 0x576   : > { %9919 = vmatpush.bf16.msra.mxu2 %v12106_v1  ;;  %10086 = vmatpush.bf16.msra.mxu3 %v13254_v2  ;;  %v13209_v1 = vld [vmem:[%s23851_s11 + $0xcc0] sm:$0xf]  ;;  %v13027_v2 = vld [vmem:[%s23851_s11 + $0xb84] sm:$0xf0] }
 0x577   : > { %v4245_v39 = vadd.f32 %v4244_v55, %v3629_v62 }
 0x578   : > { %v3200_v53 = vpop.f32.mrf.mxu3 }
 0x579   : > { %v3201_v12 = vadd.f32 %v3200_v53, %v18644_v13  ;;  %9885 = vmatmul.bf16.vlgmr.msrb.gmra.mxu2 %v18691_v16 }
 0x57a   : > { %9920 = vmatpush.bf16.msra.mxu2 %v12062_v36  ;;  %v13206_v36 = vor.u32 %v15511_v63, %v13203_v18  ;;  %v15456_v18 = vld [vmem:[%s23851_s11 + $0xb04] sm:$0xf] }
 0x57b   : > { %v3319_v60 = vmax.f32 %v3201_v12, 0.0 }
 0x57d   : > { %v3639_v25 = vmin.f32 %v3319_v60, 6.0  ;;  %v13121_v60 = vld [vmem:[%s23851_s11 + $0xc10] sm:$0xf] }
 0x57e   : > { %9921 = vmatpush.bf16.msra.mxu2 %v12018_v35  ;;  %v13162_v35 = vor.u32 %v15500_v44, %v13159_v58 }
 0x57f   : > { %v4246_v0 = vadd.f32 %v4245_v39, %v3639_v25  ;;  %v13166_v39 = vor.u32 %v15506_v5, %v13165_v33  ;;  %v13115_v25 = vld [vmem:[%s23851_s11 + $0xc34] sm:$0xf0] }
 0x580   : > { %v3202_v51 = vpop.f32.mrf.mxu3  ;;  %v13118_v52 = vor.u32 %v15489_v59, %v13115_v25 }
 0x581   : > { %v3203_v4 = vadd.f32 %v3202_v51, %v18644_v13 }
 0x582   : > { %9922 = vmatpush.bf16.msra.mxu2 %v11974_v56  ;;  %v15495_v56 = vld [vmem:[%s23851_s11 + $0xc38] sm:$0xf0] }
 0x583   : > { %v3329_v7 = vmax.f32 %v3203_v4, 0.0  ;;  %v13122_v28 = vor.u32 %v15495_v56, %v13121_v60  ;;  %v13071_v4 = vld [vmem:[%s23851_s11 + $0xbdc] sm:$0xf0]  ;;  %v15786_v60 = vld [vmem:[%s23851_s11 + $0x1554] sm:$0xf] }
 0x584   : > { %v13074_v11 = vor.u32 %v15478_v6, %v13071_v4  ;;  %v15869_v6 = vld [vmem:[%s23851_s11 + $0x17e8] sm:$0xf0] }
 0x585   : > { %v3649_v3 = vmin.f32 %v3329_v7, 6.0  ;;  %11566 = vmatmul.msk.bf16.gmra.mxu3 %vm2331_vm1, %v17280_v8  ;;  %v15517_v8 = vld [vmem:[%s23851_s11 + $0xce8] sm:$0xf0] }
 0x586   : > { %9923 = vmatpush.bf16.msra.mxu2 %v11930_v42  ;;  %v13210_v48 = vor.u32 %v15517_v8, %v13209_v1  ;;  %v13033_v42 = vld [vmem:[%s23851_s11 + $0xb60] sm:$0xf]  ;;  %v12983_v1 = vld [vmem:[%s23851_s11 + $0xb2c] sm:$0xf0] }
 0x587   : > { %v4247_v55 = vadd.f32 %v4246_v0, %v3649_v3  ;;  %v12989_v3 = vld [vmem:[%s23851_s11 + $0xb08] sm:$0xf]  ;;  %v12986_v5 = vor.u32 %v15456_v18, %v12983_v1  ;;  %v15847_v18 = vld [vmem:[%s23851_s11 + $0x1738] sm:$0xf0] }
 0x588   : > { %v3205_v29 = vpop.f32.mrf.mxu3  ;;  %10087 = vmatpush.bf16.msra.mxu3 %v13210_v48  ;;  %v14347_v48 = vld [vmem:[%s23851_s11 + $0x15d4] sm:$0xf0] }
 0x589   : > { %v3206_v17 = vadd.f32 %v3205_v29, %v18644_v13  ;;  %9924 = vmatmul.bf16.vlgmr.msra.gmra.mxu2 %v18243_v54 }
 0x58a   : > { %9955 = vmatpush.bf16.msrb.mxu2 %v13294_v14  ;;  %v15467_v14 = vld [vmem:[%s23851_s11 + $0xb5c] sm:$0xf] }
 0x58b   : > { %v3339_v62 = vmax.f32 %v3206_v17, 0.0  ;;  %v13030_v63 = vor.u32 %v15467_v14, %v13027_v2  ;;  %v15797_v17 = vld [vmem:[%s23851_s11 + $0x15ac] sm:$0xf] }
 0x58c   : > { %10088 = vmatpush.bf16.msra.mxu3 %v13166_v39  ;;  %v14350_v44 = vor.u32 %v15797_v17, %v14347_v48  ;;  %v14485_v48 = vld [vmem:[%s23851_s11 + $0x16b8] sm:$0xf] }
 0x58d   : > { %v3659_v53 = vmin.f32 %v3339_v62, 6.0  ;;  %v14705_v62 = vld [vmem:[%s23851_s11 + $0x1870] sm:$0xf] }
 0x58e   : > { %9956 = vmatpush.bf16.msrb.mxu2 %v13250_v21 }
 0x58f   : > { %v4248_v12 = vadd.f32 %v4247_v55, %v3659_v53  ;;  %v15462_v55 = vld [vmem:[%s23851_s11 + $0xb30] sm:$0xf0]  ;;  %v14661_v53 = vld [vmem:[%s23851_s11 + $0x1818] sm:$0xf] }
 0x590   : > { %v3207_v40 = vpop.f32.mrf.mxu3  ;;  %10089 = vmatpush.bf16.msra.mxu3 %v13122_v28  ;;  %v12990_v29 = vor.u32 %v15462_v55, %v12989_v3  ;;  %v15775_v28 = vld [vmem:[%s23851_s11 + $0x14fc] sm:$0xf]  ;;  %v14529_v55 = vld [vmem:[%s23851_s11 + $0x1710] sm:$0xf] }
 0x591   : > { %v3208_v0 = vadd.f32 %v3207_v40, %v18644_v13  ;;  %v14303_v40 = vld [vmem:[%s23851_s11 + $0x157c] sm:$0xf0]  ;;  %v14530_v17 = vor.u32 %v15847_v18, %v14529_v55  ;;  %v15154_v55 = vld [vmem:[%s23851_s11 + $0x190] sm:$0xf0] }
 0x592   : > { %9957 = vmatpush.bf16.msrb.mxu2 %v13206_v36  ;;  %v15891_v36 = vld [vmem:[%s23851_s11 + $0x1898] sm:$0xf0]  ;;  %v14306_v56 = vor.u32 %v15786_v60, %v14303_v40  ;;  %v15825_v40 = vld [vmem:[%s23851_s11 + $0x1688] sm:$0xf0] }
 0x593   : > { %v3349_v51 = vmax.f32 %v3208_v0, 0.0  ;;  %v14706_v58 = vor.u32 %v15891_v36, %v14705_v62 }
 0x594   : > { %10090 = vmatpush.bf16.msra.mxu3 %v13078_v46  ;;  %v14262_v46 = vor.u32 %v15775_v28, %v14259_v20  ;;  %v15814_v28 = vld [vmem:[%s23851_s11 + $0x1630] sm:$0xf0]  ;;  %v11889_v20 = vld [vmem:[%s23851_s11 + $0x270] sm:$0xf] }
 0x595   : > { %v3669_v30 = vmin.f32 %v3349_v51, 6.0  ;;  %11567 = vmatmul.msk.bf16.gmra.mxu3 %vm2331_vm1, %v17303_v19  ;;  %v15473_v19 = vld [vmem:[%s23851_s11 + $0xb88] sm:$0xf0]  ;;  %v14617_v51 = vld [vmem:[%s23851_s11 + $0x17c0] sm:$0xf] }
 0x596   : > { %9958 = vmatpush.bf16.msrb.mxu2 %v13162_v35  ;;  %v13034_v23 = vor.u32 %v15473_v19, %v13033_v42  ;;  %v15858_v42 = vld [vmem:[%s23851_s11 + $0x1790] sm:$0xf0] }
 0x597   : > { %v4249_v45 = vadd.f32 %v4248_v12, %v3669_v30  ;;  %v15880_v12 = vld [vmem:[%s23851_s11 + $0x1840] sm:$0xf0]  ;;  %v14215_v30 = vld [vmem:[%s23851_s11 + $0x14cc] sm:$0xf0] }
 0x598   : > { %v3210_v7 = vpop.f32.mrf.mxu3  ;;  %10091 = vmatpush.bf16.msra.mxu3 %v13034_v23  ;;  %v14662_v59 = vor.u32 %v15880_v12, %v14661_v53  ;;  %v14171_v23 = vld [vmem:[%s23851_s11 + $0x1474] sm:$0xf0]  ;;  %v14441_v12 = vld [vmem:[%s23851_s11 + $0x1660] sm:$0xf] }
 0x599   : > { %v3211_v61 = vadd.f32 %v3210_v7, %v18644_v13 }
 0x59a   : > { %9959 = vmatpush.bf16.msrb.mxu2 %v13118_v52 }
 0x59b   : > { %v3359_v21 = vmax.f32 %v3211_v61, 0.0  ;;  %v15753_v61 = vld [vmem:[%s23851_s11 + $0x144c] sm:$0xf] }
 0x59c   : > { %10092 = vmatpush.bf16.msra.mxu3 %v12990_v29  ;;  %v15742_v29 = vld [vmem:[%s23851_s11 + $0x13f4] sm:$0xf] }
 0x59d   : > { %v3679_v8 = vmin.f32 %v3359_v21, 6.0 }
 0x59e   : > { %9960 = vmatpush.bf16.msrb.mxu2 %v13074_v11  ;;  %v14573_v11 = vld [vmem:[%s23851_s11 + $0x1768] sm:$0xf] }
 0x59f   : > { %v4250_v33 = vadd.f32 %v4249_v45, %v3679_v8  ;;  %v14618_v45 = vor.u32 %v15869_v6, %v14617_v51  ;;  %v14574_v14 = vor.u32 %v15858_v42, %v14573_v11  ;;  %v14127_v8 = vld [vmem:[%s23851_s11 + $0x141c] sm:$0xf0] }
 0x5a0   : > { %v3212_v39 = vpop.f32.mrf.mxu3  ;;  %10137 = vmatpush.bf16.msrb.mxu3 %v14706_v58  ;;  %v14130_v36 = vor.u32 %v15742_v29, %v14127_v8  ;;  %v14083_v58 = vld [vmem:[%s23851_s11 + $0x13c4] sm:$0xf0] }
 0x5a1   : > { %v3213_v35 = vadd.f32 %v3212_v39, %v18644_v13 }
 0x5a2   : > { %9961 = vmatpush.bf16.msrb.mxu2 %v13030_v63  ;;  %v14174_v63 = vor.u32 %v15753_v61, %v14171_v23 }
 0x5a3   : > { %v3369_v25 = vmax.f32 %v3213_v35, 0.0 }
 0x5a4   : > { %10138 = vmatpush.bf16.msrb.mxu3 %v14662_v59 }
 0x5a5   : > { %v3689_v0 = vmin.f32 %v3369_v25, 6.0  ;;  %11568 = vmatmul.msk.bf16.gmra.mxu3 %vm2331_vm1, %v17321_v15  ;;  %v15764_v15 = vld [vmem:[%s23851_s11 + $0x14a4] sm:$0xf]  ;;  %v14039_v25 = vld [vmem:[%s23851_s11 + $0x136c] sm:$0xf0] }
 0x5a6   : > { %9962 = vmatpush.bf16.msrb.mxu2 %v12986_v5  ;;  %v14218_v2 = vor.u32 %v15764_v15, %v14215_v30  ;;  %v15176_v30 = vld [vmem:[%s23851_s11 + $0x240] sm:$0xf0] }
 0x5a7   : > { %v4251_v47 = vadd.f32 %v4250_v33, %v3689_v0  ;;  %v15836_v33 = vld [vmem:[%s23851_s11 + $0x16e0] sm:$0xf0]  ;;  %v14397_v0 = vld [vmem:[%s23851_s11 + $0x1608] sm:$0xf] }
 0x5a8   : > { %v3215_v52 = vpop.f32.mrf.mxu3  ;;  %10139 = vmatpush.bf16.msrb.mxu3 %v14618_v45  ;;  %v14486_v62 = vor.u32 %v15836_v33, %v14485_v48  ;;  %v11669_v33 = vld [vmem:[%s23851_s11 + $0xb8] sm:$0xf] }
 0x5a9   : > { %9963 = vmatmul.bf16.vlgmr.msrb.gmra.mxu2 %v18277_v32  ;;  %v3216_v4 = vadd.f32 %v3215_v52, %v18644_v13  ;;  %v14398_v52 = vor.u32 %v15814_v28, %v14397_v0  ;;  %v11581_v0 = vld [vmem:[%s23851_s11 + $0x8] sm:$0xf]  ;;  %v15110_v28 = vld [vmem:[%s23851_s11 + $0x30] sm:$0xf0] }
 0x5aa   : > { %9994 = vmatpush.bf16.msra.mxu2 %v14350_v44  ;;  %v15731_v44 = vld [vmem:[%s23851_s11 + $0x139c] sm:$0xf] }
 0x5ab   : > { %v3379_v7 = vmax.f32 %v3216_v4, 0.0  ;;  %v14086_v60 = vor.u32 %v15731_v44, %v14083_v58  ;;  %v11845_v4 = vld [vmem:[%s23851_s11 + $0x218] sm:$0xf] }
 0x5ac   : > { %10140 = vmatpush.bf16.msrb.mxu3 %v14574_v14  ;;  %v11801_v14 = vld [vmem:[%s23851_s11 + $0x1c0] sm:$0xf] }
 0x5ad   : > { %v3699_v19 = vmin.f32 %v3379_v7, 6.0  ;;  %v11846_v7 = vor.u32 %v15176_v30, %v11845_v4  ;;  %v11582_v4 = vor.u32 %v15110_v28, %v11581_v0  ;;  %v15396_v0 = vld [vmem:[%s23851_s11 + $0x920] sm:$0xf0] }
 0x5ae   : > { %9995 = vmatpush.bf16.msra.mxu2 %v14306_v56  ;;  %v14442_v56 = vor.u32 %v15825_v40, %v14441_v12  ;;  %v12551_v40 = vld [vmem:[%s23851_s11 + $0x7c4] sm:$0xf0] }
 0x5af   : > { %v4252_v3 = vadd.f32 %v4251_v47, %v3699_v19  ;;  %v15187_v47 = vld [vmem:[%s23851_s11 + $0x298] sm:$0xf0] }
 0x5b0   : > { %v3217_v21 = vpop.f32.mrf.mxu3  ;;  %10141 = vmatpush.bf16.msrb.mxu3 %v14530_v17  ;;  %v11890_v6 = vor.u32 %v15187_v47, %v11889_v20  ;;  %v12945_v20 = vld [vmem:[%s23851_s11 + $0xab0] sm:$0xf]  ;;  %v15451_v47 = vld [vmem:[%s23851_s11 + $0xad8] sm:$0xf0] }
 0x5b1   : > { %v3218_v1 = vadd.f32 %v3217_v21, %v18644_v13  ;;  %v12946_v30 = vor.u32 %v15451_v47, %v12945_v20  ;;  %v15281_v20 = vld [vmem:[%s23851_s11 + $0x58c] sm:$0xf]  ;;  %v12287_v47 = vld [vmem:[%s23851_s11 + $0x5b4] sm:$0xf0] }
 0x5b2   : > { %9996 = vmatpush.bf16.msra.mxu2 %v14262_v46 }
 0x5b3   : > { %v3389_v5 = vmax.f32 %v3218_v1, 0.0  ;;  %v11713_v1 = vld [vmem:[%s23851_s11 + $0x110] sm:$0xf] }
 0x5b4   : > { %10142 = vmatpush.bf16.msrb.mxu3 %v14486_v62 }
 0x5b5   : > { %v3709_v39 = vmin.f32 %v3389_v5, 6.0  ;;  %11569 = vmatmul.msk.bf16.gmra.mxu3 %vm2331_vm1, %v17339_v37  ;;  %v15720_v37 = vld [vmem:[%s23851_s11 + $0x1344] sm:$0xf] }
 0x5b6   : > { %9997 = vmatpush.bf16.msra.mxu2 %v14218_v2  ;;  %v14042_v46 = vor.u32 %v15720_v37, %v14039_v25  ;;  %v15165_v2 = vld [vmem:[%s23851_s11 + $0x1e8] sm:$0xf0]  ;;  %v15132_v5 = vld [vmem:[%s23851_s11 + $0xe0] sm:$0xf0]  ;;  %v15347_v37 = vld [vmem:[%s23851_s11 + $0x79c] sm:$0xf] }
 0x5b7   : > { %v4253_v53 = vadd.f32 %v4252_v3, %v3709_v39  ;;  %v11802_v23 = vor.u32 %v15165_v2, %v11801_v14  ;;  %v11757_v3 = vld [vmem:[%s23851_s11 + $0x168] sm:$0xf]  ;;  %v12595_v39 = vld [vmem:[%s23851_s11 + $0x81c] sm:$0xf0]  ;;  %v15325_v14 = vld [vmem:[%s23851_s11 + $0x6ec] sm:$0xf] }
 0x5b8   : > { %v3220_v35 = vpop.f32.mrf.mxu3  ;;  %10143 = vmatpush.bf16.msrb.mxu3 %v14442_v56  ;;  %v11758_v18 = vor.u32 %v15154_v55, %v11757_v3  ;;  %v12554_v56 = vor.u32 %v15347_v37, %v12551_v40  ;;  %v12463_v2 = vld [vmem:[%s23851_s11 + $0x714] sm:$0xf0]  ;;  %v12857_v55 = vld [vmem:[%s23851_s11 + $0xa00] sm:$0xf] }
 0x5b9   : > { %v3221_v59 = vadd.f32 %v3220_v35, %v18644_v13  ;;  %v11625_v35 = vld [vmem:[%s23851_s11 + $0x60] sm:$0xf]  ;;  %v12466_v3 = vor.u32 %v15325_v14, %v12463_v2  ;;  %v15385_v14 = vld [vmem:[%s23851_s11 + $0x8c8] sm:$0xf0] }
 0x5ba   : > { %9998 = vmatpush.bf16.msra.mxu2 %v14174_v63 }
 0x5bb   : > { %v3399_v51 = vmax.f32 %v3221_v59, 0.0 }
 0x5bc   : > { %10144 = vmatpush.bf16.msrb.mxu3 %v14398_v52  ;;  %v12507_v52 = vld [vmem:[%s23851_s11 + $0x76c] sm:$0xf0] }
 0x5bd   : > { %v3719_v15 = vmin.f32 %v3399_v51, 6.0  ;;  %v15336_v51 = vld [vmem:[%s23851_s11 + $0x744] sm:$0xf] }
 0x5be   : > { %9999 = vmatpush.bf16.msra.mxu2 %v14130_v36  ;;  %v15358_v36 = vld [vmem:[%s23851_s11 + $0x7f4] sm:$0xf] }
 0x5bf   : > { %v4254_v45 = vadd.f32 %v4253_v53, %v3719_v15  ;;  %v11670_v53 = vor.u32 %v15132_v5, %v11669_v33  ;;  %v12598_v12 = vor.u32 %v15358_v36, %v12595_v39  ;;  %v15418_v33 = vld [vmem:[%s23851_s11 + $0x9d0] sm:$0xf0]  ;;  %v15303_v5 = vld [vmem:[%s23851_s11 + $0x63c] sm:$0xf] }
 0x5c0   : > { %v3222_v11 = vpop.f32.mrf.mxu3 }
 0x5c1   : > { %v3223_v42 = vadd.f32 %v3222_v11, %v18644_v13  ;;  %v12901_v11 = vld [vmem:[%s23851_s11 + $0xa58] sm:$0xf] }
 0x5c2   : > { %10000 = vmatpush.bf16.msra.mxu2 %v14086_v60  ;;  %v15121_v60 = vld [vmem:[%s23851_s11 + $0x88] sm:$0xf0] }
 0x5c3   : > { %v3409_v19 = vmax.f32 %v3223_v42, 0.0  ;;  %v11626_v25 = vor.u32 %v15121_v60, %v11625_v35  ;;  %v15440_v42 = vld [vmem:[%s23851_s11 + $0xa80] sm:$0xf0]  ;;  %v12331_v35 = vld [vmem:[%s23851_s11 + $0x60c] sm:$0xf0] }
 0x5c5   : > { %v3729_v61 = vmin.f32 %v3409_v19, 6.0  ;;  %11570 = vmatmul.msk.bf16.gmra.mxu3 %vm2331_vm1, %v17375_v41  ;;  %v15143_v41 = vld [vmem:[%s23851_s11 + $0x138] sm:$0xf0] }
 0x5c6   : > { %10001 = vmatpush.bf16.msra.mxu2 %v14042_v46  ;;  %v11714_v48 = vor.u32 %v15143_v41, %v11713_v1 }
 0x5c7   : > { %v4255_v21 = vadd.f32 %v4254_v45, %v3729_v61  ;;  %v12510_v45 = vor.u32 %v15336_v51, %v12507_v52  ;;  %v15710_v52 = vld [vmem:[%s23851_s11 + $0x12f4] sm:$0xf] }
 0x5c8   : > { %v3225_v63 = vpop.f32.mrf.mxu3 }
 0x5c9   : > { %10002 = vmatmul.bf16.vlgmr.msra.gmra.mxu2 %v18317_v9  ;;  %v3226_v29 = vadd.f32 %v3225_v63, %v18644_v13  ;;  %v15429_v63 = vld [vmem:[%s23851_s11 + $0xa28] sm:$0xf0] }
 0x5ca   : > { %10033 = vmatpush.bf16.msrb.mxu2 %v11890_v6 }
 0x5cb   : > { %v3419_v8 = vmax.f32 %v3226_v29, 0.0  ;;  %v15314_v29 = vld [vmem:[%s23851_s11 + $0x694] sm:$0xf] }
 0x5cd   : > { %v3739_v17 = vmin.f32 %v3419_v8, 6.0  ;;  %v12858_v8 = vor.u32 %v15429_v63, %v12857_v55  ;;  %v12637_v55 = vld [vmem:[%s23851_s11 + $0x848] sm:$0xf]  ;;  %v14353_v63 = vld [vmem:[%s23851_s11 + $0x15b0] sm:$0xf] }
 0x5ce   : > { %10034 = vmatpush.bf16.msrb.mxu2 %v11846_v7 }
 0x5cf   : > { %v4256_v62 = vadd.f32 %v4255_v21, %v3739_v17 }
 0x5d0   : > { %v3227_v44 = vpop.f32.mrf.mxu3 }
 0x5d1   : > { %v3228_v58 = vadd.f32 %v3227_v44, %v18644_v13 }
 0x5d2   : > { %10035 = vmatpush.bf16.msrb.mxu2 %v11802_v23  ;;  %v12902_v23 = vor.u32 %v15440_v42, %v12901_v11 }
 0x5d3   : > { %v3429_v59 = vmax.f32 %v3228_v58, 0.0  ;;  %v12769_v58 = vld [vmem:[%s23851_s11 + $0x950] sm:$0xf] }
 0x5d5   : > { %10093 = vmatmul.bf16.vlgmr.msra.gmra.mxu3 %v18277_v32  ;;  %v3749_v15 = vmin.f32 %v3429_v59, 6.0 }
 0x5d6   : > { %10036 = vmatpush.bf16.msrb.mxu2 %v11758_v18  ;;  %10189 = vmatpush.bf16.msra.mxu3 %v12598_v12  ;;  %v12419_v18 = vld [vmem:[%s23851_s11 + $0x6bc] sm:$0xf0]  ;;  %v15292_v12 = vld [vmem:[%s23851_s11 + $0x5e4] sm:$0xf] }
 0x5d7   : > { %v4257_v19 = vadd.f32 %v4256_v62, %v3749_v15  ;;  %v12422_v17 = vor.u32 %v15314_v29, %v12419_v18  ;;  %v12375_v62 = vld [vmem:[%s23851_s11 + $0x664] sm:$0xf0]  ;;  %v15803_v18 = vld [vmem:[%s23851_s11 + $0x15d8] sm:$0xf0] }
 0x5d8   : > { %v3230_v46 = vpop.f32.mrf.mxu3  ;;  %v12378_v44 = vor.u32 %v15303_v5, %v12375_v62  ;;  %v14309_v62 = vld [vmem:[%s23851_s11 + $0x1558] sm:$0xf] }
 0x5d9   : > { %v3231_v6 = vadd.f32 %v3230_v46, %v18644_v13  ;;  %v14003_v46 = vld [vmem:[%s23851_s11 + $0x131c] sm:$0xf0] }
 0x5da   : > { %10037 = vmatpush.bf16.msrb.mxu2 %v11714_v48  ;;  %10190 = vmatpush.bf16.msra.mxu3 %v12554_v56  ;;  %v12813_v48 = vld [vmem:[%s23851_s11 + $0x9a8] sm:$0xf]  ;;  %v12725_v56 = vld [vmem:[%s23851_s11 + $0x8f8] sm:$0xf]  ;;  %v14006_v42 = vor.u32 %v15710_v52, %v14003_v46 }
 0x5db   : > { %v3439_v7 = vmax.f32 %v3231_v6, 0.0  ;;  %v12814_v39 = vor.u32 %v15418_v33, %v12813_v48  ;;  %v14354_v33 = vor.u32 %v15803_v18, %v14353_v63  ;;  %v14221_v46 = vld [vmem:[%s23851_s11 + $0x14a8] sm:$0xf]  ;;  %v15748_v63 = vld [vmem:[%s23851_s11 + $0x1420] sm:$0xf0] }
 0x5dc   : > { %v13695_v18 = vld [vmem:[%s23851_s11 + $0x10b4] sm:$0xf0] }
 0x5dd   : > { %v3759_v61 = vmin.f32 %v3439_v7, 6.0  ;;  %v12681_v7 = vld [vmem:[%s23851_s11 + $0x8a0] sm:$0xf] }
 0x5de   : > { %10038 = vmatpush.bf16.msrb.mxu2 %v11670_v53  ;;  %10191 = vmatpush.bf16.msra.mxu3 %v12510_v45  ;;  %v15407_v53 = vld [vmem:[%s23851_s11 + $0x978] sm:$0xf0]  ;;  %v12290_v45 = vor.u32 %v15281_v20, %v12287_v47 }
 0x5df   : > { %v4258_v21 = vadd.f32 %v4257_v19, %v3759_v61  ;;  %v12770_v59 = vor.u32 %v15407_v53, %v12769_v58  ;;  %v15699_v19 = vld [vmem:[%s23851_s11 + $0x129c] sm:$0xf] }
 0x5e0   : > { %v3232_v1 = vpop.f32.mrf.mxu3 }
 0x5e1   : > { %v3233_v41 = vadd.f32 %v3232_v1, %v18644_v13  ;;  %v15688_v1 = vld [vmem:[%s23851_s11 + $0x1244] sm:$0xf] }
 0x5e2   : > { %10039 = vmatpush.bf16.msrb.mxu2 %v11626_v25  ;;  %10192 = vmatpush.bf16.msra.mxu3 %v12466_v3  ;;  %v12334_v25 = vor.u32 %v15292_v12, %v12331_v35 }
 0x5e3   : > { %v3449_v36 = vmax.f32 %v3233_v41, 0.0  ;;  %v13915_v41 = vld [vmem:[%s23851_s11 + $0x126c] sm:$0xf0] }
 0x5e4   : > { %v13918_v5 = vor.u32 %v15688_v1, %v13915_v41  ;;  %v11897_v1 = vld [vmem:[%s23851_s11 + $0x278] sm:$0xf]  ;;  %v15188_v41 = vld [vmem:[%s23851_s11 + $0x2a0] sm:$0xf0] }
 0x5e5   : > { %10145 = vmatmul.bf16.vlgmr.msrb.gmra.mxu3 %v18691_v16  ;;  %v3769_v37 = vmin.f32 %v3449_v36, 6.0 }
 0x5e6   : > { %10040 = vmatpush.bf16.msrb.mxu2 %v11582_v4  ;;  %10193 = vmatpush.bf16.msra.mxu3 %v12422_v17 }
 0x5e7   : > { %v4259_v15 = vadd.f32 %v4258_v21, %v3769_v37  ;;  %v15374_v21 = vld [vmem:[%s23851_s11 + $0x870] sm:$0xf0] }
 0x5e8   : > { %v3235_v60 = vpop.f32.mrf.mxu3  ;;  %v12638_v17 = vor.u32 %v15374_v21, %v12637_v55  ;;  %v14133_v55 = vld [vmem:[%s23851_s11 + $0x13f8] sm:$0xf] }
 0x5e9   : > { %10041 = vmatmul.bf16.vlgmr.msrb.gmra.mxu2 %v17804_v49  ;;  %v3236_v40 = vadd.f32 %v3235_v60, %v18644_v13 }
 0x5ea   : > { %10072 = vmatpush.bf16.msra.mxu2 %v12946_v30  ;;  %10194 = vmatpush.bf16.msra.mxu3 %v12378_v44  ;;  %v12726_v30 = vor.u32 %v15396_v0, %v12725_v56  ;;  %v15677_v44 = vld [vmem:[%s23851_s11 + $0x11ec] sm:$0xf]  ;;  %v15666_v56 = vld [vmem:[%s23851_s11 + $0x1194] sm:$0xf]  ;;  %v13827_v0 = vld [vmem:[%s23851_s11 + $0x11bc] sm:$0xf0] }
 0x5eb   : > { %v3459_v28 = vmax.f32 %v3236_v40, 0.0  ;;  %v14265_v40 = vld [vmem:[%s23851_s11 + $0x1500] sm:$0xf]  ;;  %v13830_v52 = vor.u32 %v15666_v56, %v13827_v0  ;;  %v15978_v56 = vld [vmem:[%s23851_s11 + $0x1b50] sm:$0xf0] }
 0x5ec   : > { %v9847_v51 = vpop.f32.mrf.mxu2  ;;  %v15973_v0 = vld [vmem:[%s23851_s11 + $0x1b2c] sm:$0xf] }
 0x5ed   : > { %v3779_v6 = vmin.f32 %v3459_v28, 6.0  ;;  %v9848_v4 = vadd.f32 %v9847_v51, %v18507_v50  ;;  %v13959_v50 = vld [vmem:[%s23851_s11 + $0x12c4] sm:$0xf0] }
 0x5ee   : > { %10073 = vmatpush.bf16.msra.mxu2 %v12902_v23  ;;  %10195 = vmatpush.bf16.msra.mxu3 %v12334_v25  ;;  %v12682_v23 = vor.u32 %v15385_v14, %v12681_v7  ;;  %v13962_v3 = vor.u32 %v15699_v19, %v13959_v50  ;;  %v15781_v25 = vld [vmem:[%s23851_s11 + $0x1528] sm:$0xf0]  ;;  %v15759_v14 = vld [vmem:[%s23851_s11 + $0x1478] sm:$0xf0]  ;;  %v13739_v19 = vld [vmem:[%s23851_s11 + $0x110c] sm:$0xf0] }
 0x5ef   : > { %v4260_v11 = vadd.f32 %v4259_v15, %v3779_v6  ;;  %v9861_v48 = vadd.f32 %v18497_v27, %v9848_v4  ;;  %v13871_v27 = vld [vmem:[%s23851_s11 + $0x1214] sm:$0xf0]  ;;  %v14266_v51 = vor.u32 %v15781_v25, %v14265_v40  ;;  %v15770_v6 = vld [vmem:[%s23851_s11 + $0x14d0] sm:$0xf0]  ;;  %v15655_v4 = vld [vmem:[%s23851_s11 + $0x113c] sm:$0xf] }
 0x5f0   : > { %v3237_v2 = vpop.f32.mrf.mxu3  ;;  %v13874_v37 = vor.u32 %v15677_v44, %v13871_v27  ;;  %v16015_v50 = vld [vmem:[%s23852_s12] sm:$0xff]  ;;  %v15177_v44 = vld [vmem:[%s23851_s11 + $0x248] sm:$0xf0]  ;;  %v11809_v40 = vld [vmem:[%s23851_s11 + $0x1c8] sm:$0xf] }
 0x5f1   : > { %v3238_v61 = vadd.f32 %v3237_v2, %v18644_v13  ;;  %v9874_v35 = vadd.f32 %v18514_v34, %v9861_v48  ;;  %v15644_v2 = vld [vmem:[%s23851_s11 + $0x10e4] sm:$0xf]  ;;  %v15049_v25 = vld [vmem:[%s23851_s11 + $0x1b28] sm:$0xf] }
 0x5f2   : > { %10074 = vmatpush.bf16.msra.mxu2 %v12858_v8  ;;  %10196 = vmatpush.bf16.msra.mxu3 %v12290_v45  ;;  %v14222_v45 = vor.u32 %v15770_v6, %v14221_v46 }
 0x5f3   : > { %v3469_v8 = vmax.f32 %v3238_v61, 0.0  ;;  %v9752_v61 = vperm.slane %v16015_v50, 1 }
 0x5f4   : > { %v9849_v29 = vpop.f32.mrf.mxu2 }
 0x5f5   : > { %10197 = vmatmul.bf16.vlgmr.msra.gmra.mxu3 %v18126_v31  ;;  %v3789_v58 = vmin.f32 %v3469_v8, 6.0  ;;  %v15633_v29 = vld [vmem:[%s23851_s11 + $0x108c] sm:$0xf]  ;;  %v9913_v8 = vadd.f32 %v18548_v24, %v9752_v61  ;;  %v11853_v24 = vld [vmem:[%s23851_s11 + $0x220] sm:$0xf] }
 0x5f6   : > { %10075 = vmatpush.bf16.msra.mxu2 %v12814_v39  ;;  %10241 = vmatpush.bf16.msrb.mxu3 %v14006_v42  ;;  %v15792_v39 = vld [vmem:[%s23851_s11 + $0x1580] sm:$0xf0]  ;;  %v14177_v42 = vld [vmem:[%s23851_s11 + $0x1450] sm:$0xf]  ;;  %v13698_v48 = vor.u32 %v15633_v29, %v13695_v18  ;;  %v15967_v61 = vld [vmem:[%s23851_s11 + $0x1af8] sm:$0xf0] }
 0x5f7   : > { %v14310_v60 = vor.u32 %v15792_v39, %v14309_v62  ;;  %v4261_v34 = vadd.f32 %v4260_v11, %v3789_v58  ;;  %v14089_v62 = vld [vmem:[%s23851_s11 + $0x13a0] sm:$0xf]  ;;  %v14045_v58 = vld [vmem:[%s23851_s11 + $0x1348] sm:$0xf]  ;;  %v15144_v29 = vld [vmem:[%s23851_s11 + $0x140] sm:$0xf0] }
 0x5f8   : > { %v3240_v36 = vpop.f32.mrf.mxu3 }
 0x5f9   : > { %v3241_v53 = vadd.f32 %v3240_v36, %v18644_v13  ;;  %v15737_v36 = vld [vmem:[%s23851_s11 + $0x13c8] sm:$0xf0] }
 0x5fa   : > { %10076 = vmatpush.bf16.msra.mxu2 %v12770_v59  ;;  %10242 = vmatpush.bf16.msrb.mxu3 %v13962_v3  ;;  %v13742_v3 = vor.u32 %v15644_v2, %v13739_v19  ;;  %v14090_v27 = vor.u32 %v15737_v36, %v14089_v62  ;;  %v15951_v62 = vld [vmem:[%s23851_s11 + $0x1a7c] sm:$0xf]  ;;  %v14963_v36 = vld [vmem:[%s23851_s11 + $0x1aa4] sm:$0xf0] }
 0x5fb   : > { %v3479_v12 = vmax.f32 %v3241_v53, 0.0  ;;  %v15726_v53 = vld [vmem:[%s23851_s11 + $0x1370] sm:$0xf0] }
 0x5fc   : > { %v9886_v59 = vpop.f32.mrf.mxu2 }
 0x5fd   : > { %v3799_v28 = vmin.f32 %v3479_v12, 6.0  ;;  %v19133_v20 = vadd.f32 %v9886_v59, %v9874_v35  ;;  %v15270_v12 = vld [vmem:[%s23851_s11 + $0x534] sm:$0xf] }
 0x5fe   : > { %10077 = vmatpush.bf16.msra.mxu2 %v12726_v30  ;;  %10243 = vmatpush.bf16.msrb.mxu3 %v13918_v5  ;;  %v13783_v30 = vld [vmem:[%s23851_s11 + $0x1164] sm:$0xf0]  ;;  %v11898_v5 = vor.u32 %v15188_v41, %v11897_v1  ;;  %v15166_v59 = vld [vmem:[%s23851_s11 + $0x1f0] sm:$0xf0]  ;;  %v14961_v41 = vld [vmem:[%s23851_s11 + $0x1a78] sm:$0xf] }
 0x5ff   : > { %v19136_v47 = vadd.f32 %v4261_v34, %v3799_v28  ;;  %v13786_v11 = vor.u32 %v15655_v4, %v13783_v30  ;;  %v15050_v34 = vor.u32 %v15978_v56, %v15049_v25  ;;  %v15051_v28 = vld [vmem:[%s23851_s11 + $0x1b54] sm:$0xf0]  ;;  %v11810_v4 = vor.u32 %v15166_v59, %v11809_v40  ;;  %v15259_v30 = vld [vmem:[%s23851_s11 + $0x4dc] sm:$0xf]  ;;  %v11633_v59 = vld [vmem:[%s23851_s11 + $0x68] sm:$0xf] }
 0x600   : > { %v19141_v15 = vpop.f32.mrf.mxu3  ;;  %v14917_v25 = vld [vmem:[%s23851_s11 + $0x1a20] sm:$0xf]  ;;  %v15945_v56 = vld [vmem:[%s23851_s11 + $0x1a48] sm:$0xf0] }
 0x601   : > { %9890 = vmatpush.bf16.msra.mxu0 %v15050_v34  ;;  %v14918_v34 = vor.u32 %v15945_v56, %v14917_v25  ;;  %v15193_v25 = vld [vmem:[%s23851_s11 + $0x2cc] sm:$0xf]  ;;  %v11935_v56 = vld [vmem:[%s23851_s11 + $0x2f4] sm:$0xf0] }
 0x602   : > { %10078 = vmatpush.bf16.msra.mxu2 %v12682_v23  ;;  %10244 = vmatpush.bf16.msrb.mxu3 %v13874_v37  ;;  %v14178_v23 = vor.u32 %v15759_v14, %v14177_v42  ;;  %v12243_v37 = vld [vmem:[%s23851_s11 + $0x55c] sm:$0xf0]  ;;  %v15155_v42 = vld [vmem:[%s23851_s11 + $0x198] sm:$0xf0]  ;;  %v15005_v14 = vld [vmem:[%s23851_s11 + $0x1ad0] sm:$0xf] }
 0x603   : > { %v12246_v6 = vor.u32 %v15270_v12, %v12243_v37  ;;  %v15006_v18 = vor.u32 %v15967_v61, %v15005_v14  ;;  %v12067_v12 = vld [vmem:[%s23851_s11 + $0x3fc] sm:$0xf0]  ;;  %v12023_v14 = vld [vmem:[%s23851_s11 + $0x3a4] sm:$0xf0] }
 0x604   : > { %v9888_v7 = vpop.f32.mrf.mxu2 }
 0x605   : > { %v15248_v7 = vld [vmem:[%s23851_s11 + $0x484] sm:$0xf]  ;;  %9891 = vmatpush.bf16.msra.mxu0 %v15006_v18 }
 0x606   : > { %10079 = vmatpush.bf16.msra.mxu2 %v12638_v17  ;;  %10245 = vmatpush.bf16.msrb.mxu3 %v13830_v52  ;;  %v14134_v17 = vor.u32 %v15748_v63, %v14133_v55  ;;  %v15054_v52 = vor.u32 %v15973_v0, %v15051_v28  ;;  %v12155_v55 = vld [vmem:[%s23851_s11 + $0x4ac] sm:$0xf0]  ;;  %v11721_v63 = vld [vmem:[%s23851_s11 + $0x118] sm:$0xf]  ;;  %v15122_v0 = vld [vmem:[%s23851_s11 + $0x90] sm:$0xf0] }
 0x607   : > { %v15940_v28 = vld [vmem:[%s23851_s11 + $0x1a24] sm:$0xf] }
 0x608   : > { %v19170_v21 = vpop.f32.mrf.mxu3  ;;  %10020 = vmatpush.bf16.msra.mxu1 %v15054_v52  ;;  %v15204_v18 = vld [vmem:[%s23851_s11 + $0x324] sm:$0xf] }
 0x609   : > { %10080 = vmatmul.bf16.vlgmr.msra.gmra.mxu2 %v17820_v10 }
 0x60a   : > { %10124 = vmatpush.bf16.msrb.mxu2 %v14354_v33  ;;  %10246 = vmatpush.bf16.msrb.mxu3 %v13786_v11  ;;  %v11765_v11 = vld [vmem:[%s23851_s11 + $0x170] sm:$0xf] }
 0x60b   : > { %v11766_v50 = vor.u32 %v15155_v42, %v11765_v11  ;;  %v15929_v42 = vld [vmem:[%s23851_s11 + $0x19cc] sm:$0xf] }
 0x60c   : > { %v9925_v33 = vpop.f32.mrf.mxu2 }
 0x60d   : > { %v19194_v39 = vadd.f32 %v9925_v33, %v9913_v8  ;;  %v15956_v8 = vld [vmem:[%s23851_s11 + $0x1aa0] sm:$0xf0]  ;;  %v15237_v33 = vld [vmem:[%s23851_s11 + $0x42c] sm:$0xf] }
 0x60e   : > { %10125 = vmatpush.bf16.msrb.mxu2 %v14310_v60  ;;  %10247 = vmatpush.bf16.msrb.mxu3 %v13742_v3  ;;  %v11854_v60 = vor.u32 %v15177_v44, %v11853_v24  ;;  %v15007_v3 = vld [vmem:[%s23851_s11 + $0x1afc] sm:$0xf0]  ;;  %v12111_v24 = vld [vmem:[%s23851_s11 + $0x454] sm:$0xf0] }
 0x60f   : > { %v11677_v44 = vld [vmem:[%s23851_s11 + $0xc0] sm:$0xf]  ;;  %v12114_v37 = vor.u32 %v15237_v33, %v12111_v24  ;;  %v15529_v24 = vld [vmem:[%s23851_s11 + $0xd48] sm:$0xf0] }
 0x610   : > { %v19211_v35 = vpop.f32.mrf.mxu3 }
 0x612   : > { %10126 = vmatpush.bf16.msrb.mxu2 %v14266_v51  ;;  %10248 = vmatpush.bf16.msrb.mxu3 %v13698_v48  ;;  %v14046_v51 = vor.u32 %v15726_v53, %v14045_v58  ;;  %v11722_v48 = vor.u32 %v15144_v29, %v11721_v63  ;;  %v14966_v58 = vor.u32 %v15951_v62, %v14963_v36  ;;  %v15226_v53 = vld [vmem:[%s23851_s11 + $0x3d4] sm:$0xf]  ;;  %v14831_v62 = vld [vmem:[%s23851_s11 + $0x199c] sm:$0xf0] }
 0x613   : > { %v13261_v36 = vld [vmem:[%s23851_s11 + $0xd20] sm:$0xf] }
 0x614   : > { %v9927_v46 = vpop.f32.mrf.mxu2 }
 0x615   : > { %10249 = vmatmul.bf16.vlgmr.msrb.gmra.mxu3 %v18229_v57  ;;  %v14873_v46 = vld [vmem:[%s23851_s11 + $0x19c8] sm:$0xf] }
 0x616   : > { %10127 = vmatpush.bf16.msrb.mxu2 %v14222_v45  ;;  %10293 = vmatpush.bf16.msra.mxu3 %v11898_v5  ;;  %v12199_v45 = vld [vmem:[%s23851_s11 + $0x504] sm:$0xf0]  ;;  %v14962_v5 = vor.u32 %v15956_v8, %v14961_v41  ;;  %v15923_v41 = vld [vmem:[%s23851_s11 + $0x1998] sm:$0xf0] }
 0x617   : > { %v12202_v19 = vor.u32 %v15259_v30, %v12199_v45  ;;  %v11634_v30 = vor.u32 %v15122_v0, %v11633_v59  ;;  %v15215_v45 = vld [vmem:[%s23851_s11 + $0x37c] sm:$0xf]  ;;  %v13262_v59 = vor.u32 %v15529_v24, %v13261_v36  ;;  %v15622_v0 = vld [vmem:[%s23851_s11 + $0x1034] sm:$0xf]  ;;  %v13563_v36 = vld [vmem:[%s23851_s11 + $0xfac] sm:$0xf0] }
 0x618   : > { %v19253_v2 = vpop.f32.mrf.mxu3  ;;  %9892 = vmatpush.bf16.msra.mxu0 %v14962_v5  ;;  %v12026_v63 = vor.u32 %v15215_v45, %v12023_v14  ;;  %v15918_v5 = vld [vmem:[%s23851_s11 + $0x1974] sm:$0xf]  ;;  %v13173_v45 = vld [vmem:[%s23851_s11 + $0xc70] sm:$0xf]  ;;  %v13129_v24 = vld [vmem:[%s23851_s11 + $0xc18] sm:$0xf] }
 0x61a   : > { %10128 = vmatpush.bf16.msrb.mxu2 %v14178_v23  ;;  %10294 = vmatpush.bf16.msra.mxu3 %v11854_v60  ;;  %v15962_v23 = vld [vmem:[%s23851_s11 + $0x1ad4] sm:$0xf] }
 0x61b   : > { %v15010_v1 = vor.u32 %v15962_v23, %v15007_v3  ;;  %v13305_v23 = vld [vmem:[%s23851_s11 + $0xd78] sm:$0xf]  ;;  %v15540_v3 = vld [vmem:[%s23851_s11 + $0xda0] sm:$0xf0] }
 0x61c   : > { %9893 = vmatpush.bf16.msra.mxu0 %v14918_v34 }
 0x61d   : > { %10021 = vmatpush.bf16.msra.mxu1 %v15010_v1  ;;  %v14829_v1 = vld [vmem:[%s23851_s11 + $0x1970] sm:$0xf] }
 0x61e   : > { %10129 = vmatpush.bf16.msrb.mxu2 %v14134_v17  ;;  %10295 = vmatpush.bf16.msra.mxu3 %v11810_v4  ;;  %v12158_v17 = vor.u32 %v15248_v7, %v12155_v55  ;;  %v12070_v4 = vor.u32 %v15226_v53, %v12067_v12  ;;  %v14875_v7 = vld [vmem:[%s23851_s11 + $0x19f4] sm:$0xf0]  ;;  %v14830_v33 = vor.u32 %v15923_v41, %v14829_v1 }
 0x61f   : > { %v14878_v61 = vor.u32 %v15929_v42, %v14875_v7 }
 0x620   : > { %v19304_v60 = vpop.f32.mrf.mxu3 }
 0x621   : > { %10022 = vmatpush.bf16.msra.mxu1 %v14966_v58  ;;  %v15912_v58 = vld [vmem:[%s23851_s11 + $0x1940] sm:$0xf0] }
 0x622   : > { %10130 = vmatpush.bf16.msrb.mxu2 %v14090_v27  ;;  %10296 = vmatpush.bf16.msra.mxu3 %v11766_v50  ;;  %v15133_v27 = vld [vmem:[%s23851_s11 + $0xe8] sm:$0xf0]  ;;  %v15111_v50 = vld [vmem:[%s23851_s11 + $0x38] sm:$0xf0] }
 0x623   : > { %v11678_v40 = vor.u32 %v15133_v27, %v11677_v44  ;;  %v14834_v44 = vor.u32 %v15918_v5, %v14831_v62  ;;  %v14785_v27 = vld [vmem:[%s23851_s11 + $0x1918] sm:$0xf] }
 0x624   : > { %v14786_v12 = vor.u32 %v15912_v58, %v14785_v27  ;;  %v3246_v58 = vadd.f32 %v19170_v21, %v18644_v13  ;;  %v13085_v21 = vld [vmem:[%s23851_s11 + $0xbc0] sm:$0xf] }
 0x626   : > { %10131 = vmatpush.bf16.msrb.mxu2 %v14046_v51  ;;  %10297 = vmatpush.bf16.msra.mxu3 %v11722_v48  ;;  %v14919_v51 = vld [vmem:[%s23851_s11 + $0x1a4c] sm:$0xf0] }
 0x627   : > { %v14922_v52 = vor.u32 %v15940_v28, %v14919_v51  ;;  %v11979_v48 = vld [vmem:[%s23851_s11 + $0x34c] sm:$0xf0]  ;;  %v13651_v28 = vld [vmem:[%s23851_s11 + $0x105c] sm:$0xf0]  ;;  %v13217_v51 = vld [vmem:[%s23851_s11 + $0xcc8] sm:$0xf] }
 0x628   : > { %v19354_v55 = vpop.f32.mrf.mxu3  ;;  %v11982_v53 = vor.u32 %v15204_v18, %v11979_v48  ;;  %v13654_v7 = vor.u32 %v15622_v0, %v13651_v28  ;;  %v3243_v18 = vadd.f32 %v19141_v15, %v18644_v13  ;;  %v15363_v48 = vld [vmem:[%s23851_s11 + $0x818] sm:$0xf0]  ;;  %v15600_v15 = vld [vmem:[%s23851_s11 + $0xf84] sm:$0xf]  ;;  %v12543_v0 = vld [vmem:[%s23851_s11 + $0x7bc] sm:$0xf0] }
 0x629   : > { %10132 = vmatmul.bf16.vlgmr.msrb.gmra.mxu2 %v18317_v9  ;;  %10023 = vmatpush.bf16.msra.mxu1 %v14922_v52  ;;  %v15518_v52 = vld [vmem:[%s23851_s11 + $0xcf0] sm:$0xf0] }
 0x62a   : > { %10176 = vmatpush.bf16.msra.mxu2 %v12246_v6  ;;  %v15934_v6 = vld [vmem:[%s23851_s11 + $0x19f0] sm:$0xf0]  ;;  %10298 = vmatpush.bf16.msra.mxu3 %v11678_v40  ;;  %v14787_v40 = vld [vmem:[%s23851_s11 + $0x1944] sm:$0xf0]  ;;  %v13218_v14 = vor.u32 %v15518_v52, %v13217_v51  ;;  %v3489_v27 = vmax.f32 %v3243_v18, 0.0  ;;  %v3499_v51 = vmax.f32 %v3246_v58, 0.0 }
 0x62b   : > { %v14874_v11 = vor.u32 %v15934_v6, %v14873_v46  ;;  %v11938_v6 = vor.u32 %v15193_v25, %v11935_v56  ;;  %v13519_v25 = vld [vmem:[%s23851_s11 + $0xf54] sm:$0xf0]  ;;  %v15346_v56 = vld [vmem:[%s23851_s11 + $0x794] sm:$0xf]  ;;  %v15341_v18 = vld [vmem:[%s23851_s11 + $0x768] sm:$0xf0] }
 0x62c   : > { %v19365_v8 = vpop.f32.mrf.mxu2  ;;  %v3809_v28 = vmin.f32 %v3489_v27, 6.0  ;;  %v15463_v27 = vld [vmem:[%s23851_s11 + $0xb38] sm:$0xf0]  ;;  %v12455_v58 = vld [vmem:[%s23851_s11 + $0x70c] sm:$0xf0] }
 0x62d   : > { %9894 = vmatpush.bf16.msra.mxu0 %v14874_v11  ;;  %10024 = vmatpush.bf16.msra.mxu1 %v14878_v61  ;;  %v15507_v11 = vld [vmem:[%s23851_s11 + $0xc98] sm:$0xf0]  ;;  %v15896_v61 = vld [vmem:[%s23851_s11 + $0x18c4] sm:$0xf] }
 0x62e   : > { %10177 = vmatpush.bf16.msra.mxu2 %v12202_v19  ;;  %v11589_v19 = vld [vmem:[%s23851_s11 + $0x10] sm:$0xf]  ;;  %10299 = vmatpush.bf16.msra.mxu3 %v11634_v30  ;;  %v13607_v30 = vld [vmem:[%s23851_s11 + $0x1004] sm:$0xf0]  ;;  %v13174_v62 = vor.u32 %v15507_v11, %v13173_v45  ;;  %v3253_v45 = vadd.f32 %v19304_v60, %v18644_v13  ;;  %v3256_v11 = vadd.f32 %v19354_v55, %v18644_v13  ;;  %v15474_v60 = vld [vmem:[%s23851_s11 + $0xb90] sm:$0xf0] }
 0x62f   : > { %v11590_v29 = vor.u32 %v15111_v50, %v11589_v19  ;;  %v14741_v19 = vld [vmem:[%s23851_s11 + $0x18c0] sm:$0xf]  ;;  %v15901_v50 = vld [vmem:[%s23851_s11 + $0x18e8] sm:$0xf0]  ;;  %v15335_v55 = vld [vmem:[%s23851_s11 + $0x73c] sm:$0xf] }
 0x630   : > { %v19413_v46 = vpop.f32.mrf.mxu3 }
 0x631   : > { %9895 = vmatpush.bf16.msra.mxu0 %v14830_v33  ;;  %10025 = vmatpush.bf16.msra.mxu1 %v14834_v44  ;;  %v15496_v44 = vld [vmem:[%s23851_s11 + $0xc40] sm:$0xf0] }
 0x632   : > { %10178 = vmatpush.bf16.msra.mxu2 %v12158_v17  ;;  %v13306_v17 = vor.u32 %v15540_v3, %v13305_v23  ;;  %10300 = vmatpush.bf16.msra.mxu3 %v11590_v29  ;;  %v14742_v23 = vor.u32 %v15901_v50, %v14741_v19  ;;  %v14743_v3 = vld [vmem:[%s23851_s11 + $0x18ec] sm:$0xf0]  ;;  %v12587_v29 = vld [vmem:[%s23851_s11 + $0x814] sm:$0xf0]  ;;  %v13475_v50 = vld [vmem:[%s23851_s11 + $0xefc] sm:$0xf0] }
 0x633   : > { %v14746_v1 = vor.u32 %v15896_v61, %v14743_v3  ;;  %v12499_v61 = vld [vmem:[%s23851_s11 + $0x764] sm:$0xf0]  ;;  %v3819_v3 = vmin.f32 %v3499_v51, 6.0 }
 0x634   : > { %v9966_v42 = vpop.f32.mrf.mxu2 }
 0x635   : > { %10301 = vmatmul.bf16.vlgmr.msra.gmra.mxu3 %v17804_v49  ;;  %9896 = vmatpush.bf16.msra.mxu0 %v14786_v12  ;;  %v15578_v42 = vld [vmem:[%s23851_s11 + $0xed4] sm:$0xf] }
 0x636   : > { %10179 = vmatpush.bf16.msra.mxu2 %v12114_v37  ;;  %v15907_v37 = vld [vmem:[%s23851_s11 + $0x191c] sm:$0xf]  ;;  %10345 = vmatpush.bf16.msrb.mxu3 %v13306_v17  ;;  %v12593_v17 = vld [vmem:[%s23851_s11 + $0x7f0] sm:$0xf] }
 0x637   : > { %v14790_v34 = vor.u32 %v15907_v37, %v14787_v40  ;;  %v12594_v33 = vor.u32 %v15363_v48, %v12593_v17  ;;  %v15589_v37 = vld [vmem:[%s23851_s11 + $0xf2c] sm:$0xf]  ;;  %v13566_v40 = vor.u32 %v15600_v15, %v13563_v36  ;;  %v3539_v17 = vmax.f32 %v3256_v11, 0.0 }
 0x638   : > { %v3260_v12 = vpop.f32.mrf.mxu3  ;;  %v13478_v15 = vor.u32 %v15578_v42, %v13475_v50  ;;  %v15313_v42 = vld [vmem:[%s23851_s11 + $0x68c] sm:$0xf] }
 0x639   : > { %10026 = vmatpush.bf16.msra.mxu1 %v14790_v34  ;;  %9897 = vmatpush.bf16.msra.mxu0 %v14742_v23  ;;  %v12549_v34 = vld [vmem:[%s23851_s11 + $0x798] sm:$0xf]  ;;  %v12505_v23 = vld [vmem:[%s23851_s11 + $0x740] sm:$0xf] }
 0x63a   : > { %10180 = vmatpush.bf16.msra.mxu2 %v12070_v4  ;;  %v15611_v4 = vld [vmem:[%s23851_s11 + $0xfdc] sm:$0xf]  ;;  %10346 = vmatpush.bf16.msrb.mxu3 %v13262_v59  ;;  %v13130_v59 = vor.u32 %v15496_v44, %v13129_v24  ;;  %v13431_v24 = vld [vmem:[%s23851_s11 + $0xea4] sm:$0xf0]  ;;  %v12997_v44 = vld [vmem:[%s23851_s11 + $0xb10] sm:$0xf] }
 0x63b   : > { %v13610_v5 = vor.u32 %v15611_v4, %v13607_v30  ;;  %v15352_v4 = vld [vmem:[%s23851_s11 + $0x7c0] sm:$0xf0]  ;;  %v3251_v30 = vadd.f32 %v19253_v2, %v18644_v13  ;;  %v13041_v2 = vld [vmem:[%s23851_s11 + $0xb68] sm:$0xf] }
 0x63c   : > { %v13042_v36 = vor.u32 %v15474_v60, %v13041_v2  ;;  %v15881_v60 = vld [vmem:[%s23851_s11 + $0x1848] sm:$0xf0] }
 0x63d   : > { %10027 = vmatpush.bf16.msra.mxu1 %v14746_v1  ;;  %v3519_v1 = vmax.f32 %v3251_v30, 0.0 }
 0x63e   : > { %10181 = vmatpush.bf16.msra.mxu2 %v12026_v63  ;;  %v15357_v63 = vld [vmem:[%s23851_s11 + $0x7ec] sm:$0xf]  ;;  %10347 = vmatpush.bf16.msrb.mxu3 %v13218_v14  ;;  %v13522_v14 = vor.u32 %v15589_v37, %v13519_v25  ;;  %v14713_v25 = vld [vmem:[%s23851_s11 + $0x1878] sm:$0xf] }
 0x63f   : > { %v12590_v41 = vor.u32 %v15357_v63, %v12587_v29  ;;  %v12502_v29 = vor.u32 %v15335_v55, %v12499_v61  ;;  %v15319_v61 = vld [vmem:[%s23851_s11 + $0x6b8] sm:$0xf0] }
 0x640   : > { %v3262_v48 = vpop.f32.mrf.mxu3 }
 0x641   : > { %9929 = vmatpush.bf16.msrb.mxu0 %v12590_v41  ;;  %10059 = vmatpush.bf16.msrb.mxu1 %v12594_v33  ;;  %v3529_v41 = vmax.f32 %v3253_v45, 0.0  ;;  %v15567_v33 = vld [vmem:[%s23851_s11 + $0xe7c] sm:$0xf]  ;;  %v3263_v2 = vadd.f32 %v3262_v48, %v18644_v13  ;;  %v12367_v48 = vld [vmem:[%s23851_s11 + $0x65c] sm:$0xf0] }
 0x642   : > { %10182 = vmatpush.bf16.msra.mxu2 %v11982_v53  ;;  %v3248_v53 = vadd.f32 %v19211_v35, %v18644_v13  ;;  %10348 = vmatpush.bf16.msrb.mxu3 %v13174_v62  ;;  %v15485_v35 = vld [vmem:[%s23851_s11 + $0xbe8] sm:$0xf0]  ;;  %v4263_v62 = vadd.f32 %v19136_v47, %v3809_v28  ;;  %v15324_v47 = vld [vmem:[%s23851_s11 + $0x6e4] sm:$0xf]  ;;  %v3859_v28 = vmin.f32 %v3539_v17, 6.0 }
 0x643   : > { %v13086_v19 = vor.u32 %v15485_v35, %v13085_v21  ;;  %v15892_v21 = vld [vmem:[%s23851_s11 + $0x18a0] sm:$0xf0]  ;;  %v12458_v35 = vor.u32 %v15324_v47, %v12455_v58  ;;  %v3569_v58 = vmax.f32 %v3263_v2, 0.0  ;;  %v12285_v2 = vld [vmem:[%s23851_s11 + $0x588] sm:$0xf] }
 0x644   : > { %v3509_v52 = vmax.f32 %v3248_v53, 0.0  ;;  %v12461_v53 = vld [vmem:[%s23851_s11 + $0x6e8] sm:$0xf]  ;;  %v4264_v37 = vadd.f32 %v4263_v62, %v3819_v3  ;;  %v14714_v11 = vor.u32 %v15892_v21, %v14713_v25  ;;  %v15545_v3 = vld [vmem:[%s23851_s11 + $0xdcc] sm:$0xf] }
 0x645   : > { %v12329_v25 = vld [vmem:[%s23851_s11 + $0x5e0] sm:$0xf]  ;;  %v15297_v21 = vld [vmem:[%s23851_s11 + $0x608] sm:$0xf0] }
 0x646   : > { %10183 = vmatpush.bf16.msra.mxu2 %v11938_v6  ;;  %v12546_v6 = vor.u32 %v15346_v56, %v12543_v0  ;;  %10349 = vmatpush.bf16.msrb.mxu3 %v13130_v59  ;;  %v3829_v63 = vmin.f32 %v3509_v52, 6.0  ;;  %v3261_v59 = vadd.f32 %v3260_v12, %v18644_v13  ;;  %v15330_v56 = vld [vmem:[%s23851_s11 + $0x710] sm:$0xf0]  ;;  %v3839_v0 = vmin.f32 %v3519_v1, 6.0  ;;  %v15556_v52 = vld [vmem:[%s23851_s11 + $0xe24] sm:$0xf] }
 0x647   : > { %v12462_v51 = vor.u32 %v15330_v56, %v12461_v53  ;;  %v12998_v12 = vor.u32 %v15463_v27, %v12997_v44  ;;  %v15870_v53 = vld [vmem:[%s23851_s11 + $0x17f0] sm:$0xf0] }
 0x648   : > { %9930 = vmatpush.bf16.msrb.mxu0 %v12546_v6  ;;  %v13387_v6 = vld [vmem:[%s23851_s11 + $0xe4c] sm:$0xf0]  ;;  %v4265_v30 = vadd.f32 %v4264_v37, %v3829_v63  ;;  %v3559_v50 = vmax.f32 %v3261_v59, 0.0  ;;  %v13343_v63 = vld [vmem:[%s23851_s11 + $0xdf4] sm:$0xf0] }
 0x649   : > { %10184 = vmatmul.bf16.vlgmr.msra.gmra.mxu2 %v18243_v54  ;;  %v13390_v17 = vor.u32 %v15556_v52, %v13387_v6  ;;  %v12323_v59 = vld [vmem:[%s23851_s11 + $0x604] sm:$0xf0]  ;;  %v15963_v52 = vld [vmem:[%s23851_s11 + $0x1adc] sm:$0xf] }
 0x64a   : > { %10228 = vmatpush.bf16.msrb.mxu2 %v13654_v7  ;;  %v12550_v7 = vor.u32 %v15352_v4, %v12549_v34  ;;  %10350 = vmatpush.bf16.msrb.mxu3 %v13086_v19  ;;  %v3849_v34 = vmin.f32 %v3529_v41, 6.0  ;;  %v14669_v4 = vld [vmem:[%s23851_s11 + $0x1820] sm:$0xf]  ;;  %v4266_v1 = vadd.f32 %v4265_v30, %v3839_v0  ;;  %v3879_v56 = vmin.f32 %v3559_v50, 6.0  ;;  %v15015_v6 = vld [vmem:[%s23851_s11 + $0x1b04] sm:$0xf0] }
 0x64b   : > { %v14670_v62 = vor.u32 %v15881_v60, %v14669_v4  ;;  %v3889_v30 = vmin.f32 %v3569_v58, 6.0  ;;  %v12279_v50 = vld [vmem:[%s23851_s11 + $0x5ac] sm:$0xf0]  ;;  %v15286_v60 = vld [vmem:[%s23851_s11 + $0x5b0] sm:$0xf0] }
 0x64c   : > { %10060 = vmatpush.bf16.msrb.mxu1 %v12550_v7  ;;  %9931 = vmatpush.bf16.msrb.mxu0 %v12502_v29  ;;  %v19567_v45 = vpop.f32.mrf.mxu2  ;;  %v12411_v7 = vld [vmem:[%s23851_s11 + $0x6b4] sm:$0xf0]  ;;  %v4267_v27 = vadd.f32 %v4266_v1, %v3849_v34  ;;  %v13346_v34 = vor.u32 %v15545_v3, %v13343_v63  ;;  %v15018_v3 = vor.u32 %v15963_v52, %v15015_v6  ;;  %v15837_v58 = vld [vmem:[%s23851_s11 + $0x16e8] sm:$0xf0]  ;;  %v14839_v6 = vld [vmem:[%s23851_s11 + $0x19a4] sm:$0xf0] }
 0x64d   : > { %v12414_v55 = vor.u32 %v15313_v42, %v12411_v7  ;;  %v12330_v7 = vor.u32 %v15297_v21, %v12329_v25  ;;  %v15930_v25 = vld [vmem:[%s23851_s11 + $0x19d4] sm:$0xf] }
 0x64e   : > { %10229 = vmatpush.bf16.msrb.mxu2 %v13610_v5  ;;  %v12506_v5 = vor.u32 %v15341_v18, %v12505_v23  ;;  %10351 = vmatpush.bf16.msrb.mxu3 %v13042_v36  ;;  %v3265_v23 = vpop.f32.mrf.mxu3  ;;  %v15302_v18 = vld [vmem:[%s23851_s11 + $0x634] sm:$0xf]  ;;  %v15059_v36 = vld [vmem:[%s23851_s11 + $0x1b5c] sm:$0xf0] }
 0x64f   : > { %v3266_v41 = vadd.f32 %v3265_v23, %v18644_v13  ;;  %v12370_v44 = vor.u32 %v15302_v18, %v12367_v48  ;;  %v14971_v18 = vld [vmem:[%s23851_s11 + $0x1aac] sm:$0xf0] }
 0x650   : > { %10061 = vmatpush.bf16.msrb.mxu1 %v12506_v5  ;;  %9932 = vmatpush.bf16.msrb.mxu0 %v12458_v35  ;;  %v15308_v5 = vld [vmem:[%s23851_s11 + $0x660] sm:$0xf0]  ;;  %v4268_v35 = vadd.f32 %v4267_v27, %v3859_v28  ;;  %v14581_v28 = vld [vmem:[%s23851_s11 + $0x1770] sm:$0xf]  ;;  %v14927_v27 = vld [vmem:[%s23851_s11 + $0x1a54] sm:$0xf0] }
 0x651   : > { %v3579_v0 = vmax.f32 %v3266_v41, 0.0 }
 0x652   : > { %10230 = vmatpush.bf16.msrb.mxu2 %v13566_v40  ;;  %v3258_v40 = vadd.f32 %v19413_v46, %v18644_v13  ;;  %v13434_v46 = vor.u32 %v15567_v33, %v13431_v24  ;;  %10352 = vmatpush.bf16.msrb.mxu3 %v12998_v12  ;;  %v12373_v33 = vld [vmem:[%s23851_s11 + $0x638] sm:$0xf]  ;;  %v14625_v24 = vld [vmem:[%s23851_s11 + $0x17c8] sm:$0xf] }
 0x653   : > { %v12374_v37 = vor.u32 %v15308_v5, %v12373_v33  ;;  %v14626_v12 = vor.u32 %v15870_v53, %v14625_v24  ;;  %v12286_v33 = vor.u32 %v15286_v60, %v12285_v2  ;;  %v15941_v24 = vld [vmem:[%s23851_s11 + $0x1a2c] sm:$0xf] }
 0x654   : > { %10062 = vmatpush.bf16.msrb.mxu1 %v12462_v51  ;;  %v3549_v19 = vmax.f32 %v3258_v40, 0.0  ;;  %9933 = vmatpush.bf16.msrb.mxu0 %v12414_v55  ;;  %v15291_v40 = vld [vmem:[%s23851_s11 + $0x5dc] sm:$0xf]  ;;  %v10005_v51 = vpop.f32.mrf.mxu2 }
 0x655   : > { %10353 = vmatmul.bf16.vlgmr.msrb.gmra.mxu3 %v18277_v32  ;;  %v12326_v42 = vor.u32 %v15291_v40, %v12323_v59  ;;  %v14930_v40 = vor.u32 %v15941_v24, %v14927_v27  ;;  %v14751_v27 = vld [vmem:[%s23851_s11 + $0x18f4] sm:$0xf0] }
 0x656   : > { %10231 = vmatpush.bf16.msrb.mxu2 %v13522_v14  ;;  %v12417_v14 = vld [vmem:[%s23851_s11 + $0x690] sm:$0xf]  ;;  %10397 = vmatpush.bf16.msra.mxu3 %v14714_v11  ;;  %v3869_v47 = vmin.f32 %v3549_v19, 6.0  ;;  %v15859_v11 = vld [vmem:[%s23851_s11 + $0x1798] sm:$0xf0]  ;;  %v3267_v19 = vpop.f32.mrf.mxu3 }
 0x657   : > { %v12418_v29 = vor.u32 %v15319_v61, %v12417_v14  ;;  %v15280_v14 = vld [vmem:[%s23851_s11 + $0x584] sm:$0xf]  ;;  %v3899_v61 = vmin.f32 %v3579_v0, 6.0  ;;  %v3268_v23 = vadd.f32 %v3267_v19, %v18644_v13  ;;  %v14582_v63 = vor.u32 %v15859_v11, %v14581_v28  ;;  %v15826_v0 = vld [vmem:[%s23851_s11 + $0x1690] sm:$0xf0] }
 0x658   : > { %9934 = vmatpush.bf16.msrb.mxu0 %v12370_v44  ;;  %v4269_v4 = vadd.f32 %v4268_v35, %v3869_v47  ;;  %v15848_v13 = vld [vmem:[%s23851_s11 + $0x1740] sm:$0xf0]  ;;  %v12282_v48 = vor.u32 %v15280_v14, %v12279_v50  ;;  %v14493_v47 = vld [vmem:[%s23851_s11 + $0x16c0] sm:$0xf]  ;;  %v14405_v28 = vld [vmem:[%s23851_s11 + $0x1610] sm:$0xf] }
 0x659   : > { %10063 = vmatpush.bf16.msrb.mxu1 %v12418_v29  ;;  %v15952_v29 = vld [vmem:[%s23851_s11 + $0x1a84] sm:$0xf]  ;;  %v3589_v41 = vmax.f32 %v3268_v23, 0.0  ;;  %v14494_v59 = vor.u32 %v15837_v58, %v14493_v47  ;;  %v14883_v35 = vld [vmem:[%s23851_s11 + $0x19fc] sm:$0xf0] }
 0x65a   : > { %10232 = vmatpush.bf16.msrb.mxu2 %v13478_v15  ;;  %v15974_v15 = vld [vmem:[%s23851_s11 + $0x1b34] sm:$0xf]  ;;  %10398 = vmatpush.bf16.msra.mxu3 %v14670_v62  ;;  %v4270_v55 = vadd.f32 %v4269_v4, %v3879_v56  ;;  %v14449_v56 = vld [vmem:[%s23851_s11 + $0x1668] sm:$0xf]  ;;  %v14886_v51 = vor.u32 %v15930_v25, %v14883_v35  ;;  %v15815_v4 = vld [vmem:[%s23851_s11 + $0x1638] sm:$0xf0] }
 0x65b   : > { %v3909_v62 = vmin.f32 %v3589_v41, 6.0  ;;  %v15359_v11 = vld [vmem:[%s23851_s11 + $0x7fc] sm:$0xf]  ;;  %v14406_v19 = vor.u32 %v15815_v4, %v14405_v28  ;;  %v14001_v23 = vld [vmem:[%s23851_s11 + $0x12f0] sm:$0xf] }
 0x65c   : > { %v4271_v1 = vadd.f32 %v4270_v55, %v3889_v30  ;;  %9935 = vmatpush.bf16.msrb.mxu0 %v12326_v42  ;;  %v12603_v42 = vld [vmem:[%s23851_s11 + $0x824] sm:$0xf0]  ;;  %v15621_v55 = vld [vmem:[%s23851_s11 + $0x102c] sm:$0xf]  ;;  %v12559_v41 = vld [vmem:[%s23851_s11 + $0x7cc] sm:$0xf0] }
 0x65d   : > { %10064 = vmatpush.bf16.msrb.mxu1 %v12374_v37  ;;  %v12606_v60 = vor.u32 %v15359_v11, %v12603_v42  ;;  %v12953_v47 = vld [vmem:[%s23851_s11 + $0xab8] sm:$0xf]  ;;  %v15452_v58 = vld [vmem:[%s23851_s11 + $0xae0] sm:$0xf0]  ;;  %v15326_v28 = vld [vmem:[%s23851_s11 + $0x6f4] sm:$0xf] }
 0x65e   : > { %10233 = vmatpush.bf16.msrb.mxu2 %v13434_v46  ;;  %v15062_v46 = vor.u32 %v15974_v15, %v15059_v36  ;;  %10399 = vmatpush.bf16.msra.mxu3 %v14626_v12  ;;  %v4272_v5 = vadd.f32 %v4271_v1, %v3899_v61  ;;  %v14974_v15 = vor.u32 %v15952_v29, %v14971_v18  ;;  %v19679_v53 = vpop.f32.mrf.mxu3  ;;  %v15919_v12 = vld [vmem:[%s23851_s11 + $0x197c] sm:$0xf]  ;;  %v13643_v61 = vld [vmem:[%s23851_s11 + $0x1054] sm:$0xf0]  ;;  %v14795_v29 = vld [vmem:[%s23851_s11 + $0x194c] sm:$0xf0] }
 0x65f   : > { %v14842_v14 = vor.u32 %v15919_v12, %v14839_v6  ;;  %v15348_v1 = vld [vmem:[%s23851_s11 + $0x7a4] sm:$0xf]  ;;  %v15693_v12 = vld [vmem:[%s23851_s11 + $0x1268] sm:$0xf0]  ;;  %v12471_v4 = vld [vmem:[%s23851_s11 + $0x71c] sm:$0xf0] }
 0x660   : > { %v4273_v44 = vadd.f32 %v4272_v5, %v3909_v62  ;;  %9936 = vmatpush.bf16.msrb.mxu0 %v12282_v48  ;;  %v13599_v5 = vld [vmem:[%s23851_s11 + $0xffc] sm:$0xf0]  ;;  %v13957_v62 = vld [vmem:[%s23851_s11 + $0x1298] sm:$0xf]  ;;  %v12562_v24 = vor.u32 %v15348_v1, %v12559_v41  ;;  %v15441_v6 = vld [vmem:[%s23851_s11 + $0xa88] sm:$0xf0] }
 0x661   : > { %10065 = vmatpush.bf16.msrb.mxu1 %v12330_v7  ;;  %v15588_v42 = vld [vmem:[%s23851_s11 + $0xf24] sm:$0xf]  ;;  %v15577_v1 = vld [vmem:[%s23851_s11 + $0xecc] sm:$0xf]  ;;  %v13467_v41 = vld [vmem:[%s23851_s11 + $0xef4] sm:$0xf0] }
 0x662   : > { %10234 = vmatpush.bf16.msrb.mxu2 %v13390_v17  ;;  %v14537_v17 = vld [vmem:[%s23851_s11 + $0x1718] sm:$0xf]  ;;  %10400 = vmatpush.bf16.msra.mxu3 %v14582_v63  ;;  %v4274_v37 = vrot.slane %v4273_v44, 4  ;;  %v15908_v63 = vld [vmem:[%s23851_s11 + $0x1924] sm:$0xf] }
 0x663   : > { %v14538_v36 = vor.u32 %v15848_v13, %v14537_v17  ;;  %v13646_v17 = vor.u32 %v15621_v55, %v13643_v61  ;;  %v15610_v13 = vld [vmem:[%s23851_s11 + $0xfd4] sm:$0xf]  ;;  %v12865_v61 = vld [vmem:[%s23851_s11 + $0xa08] sm:$0xf] }
 0x664   : > { %v4275_v21 = vadd.f32 %v4274_v37, %v4273_v44  ;;  %v15897_v44 = vld [vmem:[%s23851_s11 + $0x18cc] sm:$0xf]  ;;  %v15682_v55 = vld [vmem:[%s23851_s11 + $0x1210] sm:$0xf0] }
 0x665   : > { %10066 = vmatpush.bf16.msrb.mxu1 %v12286_v33  ;;  %v15337_v37 = vld [vmem:[%s23851_s11 + $0x74c] sm:$0xf]  ;;  %v14754_v35 = vor.u32 %v15897_v44, %v14751_v27  ;;  %v13470_v44 = vor.u32 %v15577_v1, %v13467_v41  ;;  %v15638_v41 = vld [vmem:[%s23851_s11 + $0x10b0] sm:$0xf0] }
 0x666   : > { %10235 = vmatpush.bf16.msrb.mxu2 %v13346_v34  ;;  %10401 = vmatpush.bf16.msra.mxu3 %v14538_v36  ;;  %v4276_v34 = vrot.slane %v4275_v21, 2  ;;  %v10096_v30 = vpop.f32.mrf.mxu3 }
 0x668   : > { %v4277_v52 = vadd.f32 %v4276_v34, %v4275_v21  ;;  %v12954_v34 = vor.u32 %v15452_v58, %v12953_v47  ;;  %v15566_v47 = vld [vmem:[%s23851_s11 + $0xe74] sm:$0xf]  ;;  %v13423_v58 = vld [vmem:[%s23851_s11 + $0xe9c] sm:$0xf0] }
 0x669   : > { %10236 = vmatmul.bf16.vlgmr.msrb.gmra.mxu2 %v18659_v26 }
 0x66a   : > { %10280 = vmatpush.bf16.msra.mxu2 %v15062_v46  ;;  %10402 = vmatpush.bf16.msra.mxu3 %v14494_v59  ;;  %v14450_v46 = vor.u32 %v15826_v0, %v14449_v56  ;;  %v4278_v7 = vrot.slane %v4277_v52, 1  ;;  %v13602_v59 = vor.u32 %v15610_v13, %v13599_v5  ;;  %v15599_v56 = vld [vmem:[%s23851_s11 + $0xf7c] sm:$0xf]  ;;  %v13555_v0 = vld [vmem:[%s23851_s11 + $0xfa4] sm:$0xf0] }
 0x66b   : > { %v13558_v30 = vor.u32 %v15599_v56, %v13555_v0  ;;  %v12821_v5 = vld [vmem:[%s23851_s11 + $0x9b0] sm:$0xf]  ;;  %v15408_v56 = vld [vmem:[%s23851_s11 + $0x980] sm:$0xf0]  ;;  %v15293_v0 = vld [vmem:[%s23851_s11 + $0x5ec] sm:$0xf] }
 0x66c   : > { %v4279_v50 = vadd.f32 %v4278_v7, %v4277_v52  ;;  %v19711_v2 = vpop.f32.mrf.mxu2  ;;  %v12909_v52 = vld [vmem:[%s23851_s11 + $0xa60] sm:$0xf]  ;;  %v13511_v7 = vld [vmem:[%s23851_s11 + $0xf4c] sm:$0xf0] }
 0x66e   : > { %10281 = vmatpush.bf16.msra.mxu2 %v15018_v3  ;;  %10403 = vmatpush.bf16.msra.mxu3 %v14450_v46  ;;  %v15715_v3 = vld [vmem:[%s23851_s11 + $0x1318] sm:$0xf0]  ;;  %v4296_v18 = vmul.f32 %v17799_v22, %v4279_v50  ;;  %v14798_v22 = vor.u32 %v15908_v63, %v14795_v29  ;;  %v19752_v36 = vpop.f32.mrf.mxu3  ;;  %v13913_v46 = vld [vmem:[%s23851_s11 + $0x1240] sm:$0xf]  ;;  %v12474_v50 = vor.u32 %v15326_v28, %v12471_v4  ;;  %v12427_v63 = vld [vmem:[%s23851_s11 + $0x6c4] sm:$0xf0] }
 0x66f   : > { %v14002_v33 = vor.u32 %v15715_v3, %v14001_v23  ;;  %v13914_v11 = vor.u32 %v15693_v12, %v13913_v46  ;;  %v15430_v23 = vld [vmem:[%s23851_s11 + $0xa30] sm:$0xf0]  ;;  %v15315_v3 = vld [vmem:[%s23851_s11 + $0x69c] sm:$0xf]  ;;  %v13514_v29 = vor.u32 %v15588_v42, %v13511_v7  ;;  %v13737_v4 = vld [vmem:[%s23851_s11 + $0x10e0] sm:$0xf] }
 0x670   : > { %v19741_v48 = vpack.c.bf16 %v4296_v18, %v4296_v18  ;;  %v12430_v13 = vor.u32 %v15315_v3, %v12427_v63  ;;  %v15555_v12 = vld [vmem:[%s23851_s11 + $0xe1c] sm:$0xf]  ;;  %v15397_v42 = vld [vmem:[%s23851_s11 + $0x928] sm:$0xf0]  ;;  %v15282_v7 = vld [vmem:[%s23851_s11 + $0x594] sm:$0xf] }
 0x671   : > { %v13693_v3 = vld [vmem:[%s23851_s11 + $0x1088] sm:$0xf] }
 0x672   : > { %10282 = vmatpush.bf16.msra.mxu2 %v14974_v15  ;;  %10404 = vmatpush.bf16.msra.mxu3 %v14406_v19  ;;  %v15704_v15 = vld [vmem:[%s23851_s11 + $0x12c0] sm:$0xf0]  ;;  %v12910_v19 = vor.u32 %v15441_v6, %v12909_v52  ;;  %v13379_v52 = vld [vmem:[%s23851_s11 + $0xe44] sm:$0xf0] }
 0x673   : > { %9898 = vmatmul.bf16.vlgmr.msra.gmra.mxu0 %v19741_v48  ;;  %10028 = vmatmul.bf16.vlgmr.msra.gmra.mxu1 %v19741_v48  ;;  %v13958_v21 = vor.u32 %v15704_v15, %v13957_v62  ;;  %v15419_v62 = vld [vmem:[%s23851_s11 + $0x9d8] sm:$0xf0]  ;;  %v15304_v15 = vld [vmem:[%s23851_s11 + $0x644] sm:$0xf] }
 0x674   : > { %9968 = vmatpush.bf16.msra.mxu0 %v13646_v17  ;;  %10111 = vmatpush.bf16.msra.mxu1 %v14002_v33  ;;  %v10044_v25 = vpop.f32.mrf.mxu2  ;;  %v12866_v17 = vor.u32 %v15430_v23, %v12865_v61  ;;  %v13825_v33 = vld [vmem:[%s23851_s11 + $0x1190] sm:$0xf]  ;;  %v15544_v61 = vld [vmem:[%s23851_s11 + $0xdc4] sm:$0xf] }
 0x675   : > { %10405 = vmatmul.bf16.vlgmr.msra.gmra.mxu3 %v18691_v16  ;;  %v13781_v25 = vld [vmem:[%s23851_s11 + $0x1138] sm:$0xf]  ;;  %v13335_v23 = vld [vmem:[%s23851_s11 + $0xdec] sm:$0xf0] }
 0x676   : > { %10283 = vmatpush.bf16.msra.mxu2 %v14930_v40  ;;  %10449 = vmatpush.bf16.msrb.mxu3 %v12606_v60  ;;  %v12515_v40 = vld [vmem:[%s23851_s11 + $0x774] sm:$0xf0]  ;;  %v13869_v60 = vld [vmem:[%s23851_s11 + $0x11e8] sm:$0xf] }
 0x677   : > { %v13870_v18 = vor.u32 %v15682_v55, %v13869_v60  ;;  %v14011_v60 = vld [vmem:[%s23851_s11 + $0x1324] sm:$0xf0] }
 0x678   : > { %9969 = vmatpush.bf16.msra.mxu0 %v13602_v59  ;;  %10112 = vmatpush.bf16.msra.mxu1 %v13958_v21  ;;  %v15660_v21 = vld [vmem:[%s23851_s11 + $0x1160] sm:$0xf0] }
 0x679   : > { %v13782_v46 = vor.u32 %v15660_v21, %v13781_v25  ;;  %v14655_v25 = vld [vmem:[%s23851_s11 + $0x183c] sm:$0xf0] }
 0x67a   : > { %10284 = vmatpush.bf16.msra.mxu2 %v14886_v51  ;;  %10450 = vmatpush.bf16.msrb.mxu3 %v12562_v24  ;;  %v12518_v51 = vor.u32 %v15337_v37, %v12515_v40  ;;  %v12383_v24 = vld [vmem:[%s23851_s11 + $0x66c] sm:$0xf0]  ;;  %v12822_v40 = vor.u32 %v15419_v62, %v12821_v5  ;;  %v11891_v5 = vld [vmem:[%s23851_s11 + $0x29c] sm:$0xf0]  ;;  %v12689_v62 = vld [vmem:[%s23851_s11 + $0x8a8] sm:$0xf] }
 0x67b   : > { %v12386_v59 = vor.u32 %v15304_v15, %v12383_v24  ;;  %v13338_v15 = vor.u32 %v15544_v61, %v13335_v23  ;;  %v15386_v24 = vld [vmem:[%s23851_s11 + $0x8d0] sm:$0xf0]  ;;  %v13879_v61 = vld [vmem:[%s23851_s11 + $0x121c] sm:$0xf0] }
 0x67c   : > { %9970 = vmatpush.bf16.msra.mxu0 %v13558_v30  ;;  %10113 = vmatpush.bf16.msra.mxu1 %v13914_v11  ;;  %v15649_v30 = vld [vmem:[%s23851_s11 + $0x1108] sm:$0xf0]  ;;  %v12733_v11 = vld [vmem:[%s23851_s11 + $0x900] sm:$0xf]  ;;  %v12690_v21 = vor.u32 %v15386_v24, %v12689_v62  ;;  %v13835_v62 = vld [vmem:[%s23851_s11 + $0x11c4] sm:$0xf0] }
 0x67d   : > { %v13738_v55 = vor.u32 %v15649_v30, %v13737_v4  ;;  %v14317_v23 = vld [vmem:[%s23851_s11 + $0x1560] sm:$0xf]  ;;  %v15782_v24 = vld [vmem:[%s23851_s11 + $0x1530] sm:$0xf0] }
 0x67e   : > { %10285 = vmatpush.bf16.msra.mxu2 %v14842_v14  ;;  %10451 = vmatpush.bf16.msrb.mxu3 %v12518_v51  ;;  %v10148_v14 = vpop.f32.mrf.mxu3  ;;  %v13426_v51 = vor.u32 %v15566_v47, %v13423_v58  ;;  %v13694_v47 = vor.u32 %v15638_v41, %v13693_v3  ;;  %v15793_v3 = vld [vmem:[%s23851_s11 + $0x1588] sm:$0xf0]  ;;  %v15852_v41 = vld [vmem:[%s23851_s11 + $0x1764] sm:$0xf] }
 0x67f   : > { %v12295_v14 = vld [vmem:[%s23851_s11 + $0x5bc] sm:$0xf0] }
 0x680   : > { %9971 = vmatpush.bf16.msra.mxu0 %v13514_v29  ;;  %10114 = vmatpush.bf16.msra.mxu1 %v13870_v18  ;;  %v12734_v18 = vor.u32 %v15397_v42, %v12733_v11  ;;  %v12298_v1 = vor.u32 %v15282_v7, %v12295_v14  ;;  %v15863_v7 = vld [vmem:[%s23851_s11 + $0x17bc] sm:$0xf]  ;;  %v14611_v14 = vld [vmem:[%s23851_s11 + $0x17e4] sm:$0xf0] }
 0x682   : > { %10286 = vmatpush.bf16.msra.mxu2 %v14798_v22  ;;  %10452 = vmatpush.bf16.msrb.mxu3 %v12474_v50  ;;  %v15671_v22 = vld [vmem:[%s23851_s11 + $0x11b8] sm:$0xf0] }
 0x683   : > { %v13826_v27 = vor.u32 %v15671_v22, %v13825_v33  ;;  %9937 = vmatmul.bf16.vlgmr.msrb.gmra.mxu0 %v18126_v31  ;;  %10067 = vmatmul.bf16.vlgmr.msrb.gmra.mxu1 %v18126_v31  ;;  %v15711_v50 = vld [vmem:[%s23851_s11 + $0x12fc] sm:$0xf]  ;;  %v15182_v22 = vld [vmem:[%s23851_s11 + $0x274] sm:$0xf] }
 0x684   : > { %9972 = vmatpush.bf16.msra.mxu0 %v13470_v44  ;;  %v14014_v33 = vor.u32 %v15711_v50, %v14011_v60  ;;  %v15700_v44 = vld [vmem:[%s23851_s11 + $0x12a4] sm:$0xf]  ;;  %v11803_v60 = vld [vmem:[%s23851_s11 + $0x1ec] sm:$0xf0] }
 0x685   : > { %10115 = vmatpush.bf16.msra.mxu1 %v13826_v27  ;;  %v13967_v27 = vld [vmem:[%s23851_s11 + $0x12cc] sm:$0xf0] }
 0x686   : > { %10287 = vmatpush.bf16.msra.mxu2 %v14754_v35  ;;  %10453 = vmatpush.bf16.msrb.mxu3 %v12430_v13  ;;  %v19854_v37 = vpop.f32.mrf.mxu3  ;;  %v12777_v35 = vld [vmem:[%s23851_s11 + $0x958] sm:$0xf] }
 0x687   : > { %v12778_v6 = vor.u32 %v15408_v56, %v12777_v35  ;;  %v14699_v13 = vld [vmem:[%s23851_s11 + $0x1894] sm:$0xf0]  ;;  %v13970_v35 = vor.u32 %v15700_v44, %v13967_v27  ;;  %v15171_v56 = vld [vmem:[%s23851_s11 + $0x21c] sm:$0xf] }
 0x688   : > { %9973 = vmatpush.bf16.msra.mxu0 %v13426_v51  ;;  %v15375_v51 = vld [vmem:[%s23851_s11 + $0x878] sm:$0xf0] }
 0x689   : > { %10288 = vmatmul.bf16.vlgmr.msra.gmra.mxu2 %v19741_v48  ;;  %10116 = vmatpush.bf16.msra.mxu1 %v13782_v46  ;;  %v15689_v46 = vld [vmem:[%s23851_s11 + $0x124c] sm:$0xf] }
 0x68a   : > { %10332 = vmatpush.bf16.msrb.mxu2 %v12954_v34  ;;  %v12339_v34 = vld [vmem:[%s23851_s11 + $0x614] sm:$0xf0]  ;;  %10454 = vmatpush.bf16.msrb.mxu3 %v12386_v59  ;;  %v15874_v59 = vld [vmem:[%s23851_s11 + $0x1814] sm:$0xf] }
 0x68b   : > { %v12342_v28 = vor.u32 %v15293_v0, %v12339_v34  ;;  %v11847_v0 = vld [vmem:[%s23851_s11 + $0x244] sm:$0xf0]  ;;  %v12645_v34 = vld [vmem:[%s23851_s11 + $0x850] sm:$0xf]  ;;  %v14658_v4 = vor.u32 %v15874_v59, %v14655_v25  ;;  %v15138_v59 = vld [vmem:[%s23851_s11 + $0x114] sm:$0xf] }
 0x68c   : > { %v19915_v63 = vpop.f32.mrf.mxu2  ;;  %v11850_v30 = vor.u32 %v15171_v56, %v11847_v0  ;;  %v12646_v11 = vor.u32 %v15375_v51, %v12645_v34  ;;  %v13791_v56 = vld [vmem:[%s23851_s11 + $0x116c] sm:$0xf0]  ;;  %v15771_v34 = vld [vmem:[%s23851_s11 + $0x14d8] sm:$0xf0] }
 0x68d   : > { %10117 = vmatpush.bf16.msra.mxu1 %v13738_v55  ;;  %v15678_v55 = vld [vmem:[%s23851_s11 + $0x11f4] sm:$0xf]  ;;  %v14229_v0 = vld [vmem:[%s23851_s11 + $0x14b0] sm:$0xf] }
 0x68e   : > { %10333 = vmatpush.bf16.msrb.mxu2 %v12910_v19  ;;  %v13382_v19 = vor.u32 %v15555_v12, %v13379_v52  ;;  %10455 = vmatpush.bf16.msrb.mxu3 %v12342_v28  ;;  %v10200_v29 = vpop.f32.mrf.mxu3  ;;  %v13923_v12 = vld [vmem:[%s23851_s11 + $0x1274] sm:$0xf0] }
 0x68f   : > { %v14361_v52 = vld [vmem:[%s23851_s11 + $0x15b8] sm:$0xf]  ;;  %v13926_v42 = vor.u32 %v15689_v46, %v13923_v12  ;;  %v14614_v29 = vor.u32 %v15863_v7, %v14611_v14 }
 0x690   : > { %9974 = vmatpush.bf16.msra.mxu0 %v13382_v19  ;;  %v15160_v19 = vld [vmem:[%s23851_s11 + $0x1c4] sm:$0xf]  ;;  %v13747_v7 = vld [vmem:[%s23851_s11 + $0x1114] sm:$0xf0] }
 0x691   : > { %10118 = vmatpush.bf16.msra.mxu1 %v13694_v47  ;;  %v14185_v14 = vld [vmem:[%s23851_s11 + $0x1458] sm:$0xf] }
 0x692   : > { %10334 = vmatpush.bf16.msrb.mxu2 %v12866_v17  ;;  %v15885_v17 = vld [vmem:[%s23851_s11 + $0x186c] sm:$0xf]  ;;  %10456 = vmatpush.bf16.msrb.mxu3 %v12298_v1  ;;  %v13882_v1 = vor.u32 %v15678_v55, %v13879_v61 }
 0x693   : > { %v14702_v58 = vor.u32 %v15885_v17, %v14699_v13  ;;  %v14567_v17 = vld [vmem:[%s23851_s11 + $0x178c] sm:$0xf0]  ;;  %v15149_v13 = vld [vmem:[%s23851_s11 + $0x16c] sm:$0xf] }
 0x694   : > { %9975 = vmatpush.bf16.msra.mxu0 %v13338_v15  ;;  %v10083_v28 = vpop.f32.mrf.mxu2  ;;  %10119 = vmatmul.bf16.vlgmr.msra.gmra.mxu1 %v18229_v57  ;;  %v14273_v15 = vld [vmem:[%s23851_s11 + $0x1508] sm:$0xf]  ;;  %v14570_v44 = vor.u32 %v15852_v41, %v14567_v17  ;;  %v15634_v41 = vld [vmem:[%s23851_s11 + $0x1094] sm:$0xf]  ;;  %v13703_v17 = vld [vmem:[%s23851_s11 + $0x10bc] sm:$0xf0] }
 0x695   : > { %10457 = vmatmul.bf16.vlgmr.msrb.gmra.mxu3 %v18126_v31  ;;  %v14274_v25 = vor.u32 %v15782_v24, %v14273_v15  ;;  %v14479_v28 = vld [vmem:[%s23851_s11 + $0x16dc] sm:$0xf0] }
 0x696   : > { %10335 = vmatpush.bf16.msrb.mxu2 %v12822_v40  ;;  %v11894_v40 = vor.u32 %v15182_v22, %v11891_v5  ;;  %10501 = vmatpush.bf16.msra.mxu3 %v14014_v33  ;;  %v14318_v33 = vor.u32 %v15793_v3, %v14317_v23  ;;  %v11759_v22 = vld [vmem:[%s23851_s11 + $0x194] sm:$0xf0]  ;;  %v15667_v5 = vld [vmem:[%s23851_s11 + $0x119c] sm:$0xf]  ;;  %v14435_v23 = vld [vmem:[%s23851_s11 + $0x1684] sm:$0xf0] }
 0x697   : > { %9976 = vmatmul.bf16.vlgmr.msra.gmra.mxu0 %v18659_v26  ;;  %v11762_v27 = vor.u32 %v15149_v13, %v11759_v22  ;;  %v13838_v47 = vor.u32 %v15667_v5, %v13835_v62  ;;  %v15116_v3 = vld [vmem:[%s23851_s11 + $0x64] sm:$0xf]  ;;  %v15749_v13 = vld [vmem:[%s23851_s11 + $0x1428] sm:$0xf0] }
 0x698   : > { %10007 = vmatpush.bf16.msrb.mxu0 %v14702_v58  ;;  %10163 = vmatpush.bf16.msrb.mxu1 %v11894_v40  ;;  %v15841_v58 = vld [vmem:[%s23851_s11 + $0x170c] sm:$0xf]  ;;  %v14523_v40 = vld [vmem:[%s23851_s11 + $0x1734] sm:$0xf0]  ;;  %v20050_v46 = vpop.f32.mrf.mxu3  ;;  %v15808_v62 = vld [vmem:[%s23851_s11 + $0x1604] sm:$0xf] }
 0x699   : > { %v14526_v51 = vor.u32 %v15841_v58, %v14523_v40  ;;  %v15189_v22 = vld [vmem:[%s23851_s11 + $0x2a8] sm:$0xf0]  ;;  %v11583_v40 = vld [vmem:[%s23851_s11 + $0x34] sm:$0xf0] }
 0x69a   : > { %10336 = vmatpush.bf16.msrb.mxu2 %v12778_v6  ;;  %v15804_v6 = vld [vmem:[%s23851_s11 + $0x15e0] sm:$0xf0]  ;;  %10502 = vmatpush.bf16.msra.mxu3 %v13970_v35  ;;  %v15105_v58 = vld [vmem:[%s23851_s11 + $0xc] sm:$0xf] }
 0x69b   : > { %v14362_v50 = vor.u32 %v15804_v6, %v14361_v52  ;;  %v15656_v35 = vld [vmem:[%s23851_s11 + $0x1144] sm:$0xf]  ;;  %v15830_v6 = vld [vmem:[%s23851_s11 + $0x16b4] sm:$0xf] }
 0x69c   : > { %10008 = vmatpush.bf16.msrb.mxu0 %v14658_v4  ;;  %10164 = vmatpush.bf16.msrb.mxu1 %v11850_v30  ;;  %v13794_v52 = vor.u32 %v15656_v35, %v13791_v56  ;;  %v15127_v4 = vld [vmem:[%s23851_s11 + $0xbc] sm:$0xf]  ;;  %v14230_v30 = vor.u32 %v15771_v34, %v14229_v0  ;;  %v15534_v56 = vld [vmem:[%s23851_s11 + $0xd74] sm:$0xf]  ;;  %v13299_v0 = vld [vmem:[%s23851_s11 + $0xd9c] sm:$0xf0] }
 0x69d   : > { %v15275_v35 = vld [vmem:[%s23851_s11 + $0x558] sm:$0xf0]  ;;  %v14097_v34 = vld [vmem:[%s23851_s11 + $0x13a8] sm:$0xf] }
 0x69e   : > { %10337 = vmatpush.bf16.msrb.mxu2 %v12734_v18  ;;  %10503 = vmatpush.bf16.msra.mxu3 %v13926_v42  ;;  %v11806_v18 = vor.u32 %v15160_v19, %v11803_v60  ;;  %v15645_v42 = vld [vmem:[%s23851_s11 + $0x10ec] sm:$0xf]  ;;  %v15760_v19 = vld [vmem:[%s23851_s11 + $0x1480] sm:$0xf0]  ;;  %v15819_v60 = vld [vmem:[%s23851_s11 + $0x165c] sm:$0xf] }
 0x69f   : > { %v13750_v61 = vor.u32 %v15645_v42, %v13747_v7  ;;  %v14438_v5 = vor.u32 %v15819_v60, %v14435_v23  ;;  %v15264_v7 = vld [vmem:[%s23851_s11 + $0x500] sm:$0xf0]  ;;  %v14053_v60 = vld [vmem:[%s23851_s11 + $0x1350] sm:$0xf]  ;;  %v12251_v23 = vld [vmem:[%s23851_s11 + $0x564] sm:$0xf0] }
 0x6a0   : > { %10009 = vmatpush.bf16.msrb.mxu0 %v14614_v29  ;;  %10165 = vmatpush.bf16.msrb.mxu1 %v11806_v18  ;;  %v11627_v29 = vld [vmem:[%s23851_s11 + $0x8c] sm:$0xf0]  ;;  %v14186_v18 = vor.u32 %v15760_v19, %v14185_v14  ;;  %v10252_v24 = vpop.f32.mrf.mxu3  ;;  %v15523_v14 = vld [vmem:[%s23851_s11 + $0xd1c] sm:$0xf]  ;;  %v13255_v19 = vld [vmem:[%s23851_s11 + $0xd44] sm:$0xf0] }
 0x6a1   : > { %v13211_v24 = vld [vmem:[%s23851_s11 + $0xcec] sm:$0xf0] }
 0x6a2   : > { %10338 = vmatpush.bf16.msrb.mxu2 %v12690_v21  ;;  %10504 = vmatpush.bf16.msra.mxu3 %v13882_v1  ;;  %v11715_v21 = vld [vmem:[%s23851_s11 + $0x13c] sm:$0xf0] }
 0x6a3   : > { %v11718_v12 = vor.u32 %v15138_v59, %v11715_v21  ;;  %v14141_v1 = vld [vmem:[%s23851_s11 + $0x1400] sm:$0xf]  ;;  %v12241_v21 = vld [vmem:[%s23851_s11 + $0x530] sm:$0xf] }
 0x6a4   : > { %10010 = vmatpush.bf16.msrb.mxu0 %v14570_v44  ;;  %10166 = vmatpush.bf16.msrb.mxu1 %v11762_v27  ;;  %v11630_v44 = vor.u32 %v15116_v3, %v11627_v29  ;;  %v13706_v27 = vor.u32 %v15634_v41, %v13703_v17  ;;  %v14142_v59 = vor.u32 %v15749_v13, %v14141_v1  ;;  %v11817_v3 = vld [vmem:[%s23851_s11 + $0x1d0] sm:$0xf]  ;;  %v15167_v29 = vld [vmem:[%s23851_s11 + $0x1f8] sm:$0xf0]  ;;  %v12153_v13 = vld [vmem:[%s23851_s11 + $0x480] sm:$0xf] }
 0x6a5   : > { %v13258_v41 = vor.u32 %v15523_v14, %v13255_v19  ;;  %v15490_v14 = vld [vmem:[%s23851_s11 + $0xc14] sm:$0xf]  ;;  %v13123_v19 = vld [vmem:[%s23851_s11 + $0xc3c] sm:$0xf0] }
 0x6a6   : > { %10339 = vmatpush.bf16.msrb.mxu2 %v12646_v11  ;;  %10505 = vmatpush.bf16.msra.mxu3 %v13838_v47  ;;  %v11671_v11 = vld [vmem:[%s23851_s11 + $0xe4] sm:$0xf0]  ;;  %v14391_v47 = vld [vmem:[%s23851_s11 + $0x162c] sm:$0xf0] }
 0x6a7   : > { %v11674_v55 = vor.u32 %v15127_v4, %v11671_v11  ;;  %v12242_v4 = vor.u32 %v15275_v35, %v12241_v21  ;;  %v13302_v11 = vor.u32 %v15534_v56, %v13299_v0  ;;  %v15242_v21 = vld [vmem:[%s23851_s11 + $0x450] sm:$0xf0]  ;;  %v15501_v0 = vld [vmem:[%s23851_s11 + $0xc6c] sm:$0xf] }
 0x6a8   : > { %10011 = vmatpush.bf16.msrb.mxu0 %v14526_v51  ;;  %10167 = vmatpush.bf16.msrb.mxu1 %v11718_v12  ;;  %v15738_v51 = vld [vmem:[%s23851_s11 + $0x13d0] sm:$0xf0]  ;;  %v14394_v12 = vor.u32 %v15808_v62, %v14391_v47  ;;  %v15512_v62 = vld [vmem:[%s23851_s11 + $0xcc4] sm:$0xf]  ;;  %v11773_v47 = vld [vmem:[%s23851_s11 + $0x178] sm:$0xf] }
 0x6a9   : > { %10340 = vmatmul.bf16.vlgmr.msrb.gmra.mxu2 %v17820_v10  ;;  %v14098_v42 = vor.u32 %v15738_v51, %v14097_v34  ;;  %v13167_v34 = vld [vmem:[%s23851_s11 + $0xc94] sm:$0xf0]  ;;  %v15249_v51 = vld [vmem:[%s23851_s11 + $0x48c] sm:$0xf] }
 0x6aa   : > { %10384 = vmatpush.bf16.msra.mxu2 %v14362_v50  ;;  %v14482_v50 = vor.u32 %v15830_v6, %v14479_v28  ;;  %10506 = vmatpush.bf16.msra.mxu3 %v13794_v52  ;;  %v11861_v52 = vld [vmem:[%s23851_s11 + $0x228] sm:$0xf]  ;;  %v15178_v6 = vld [vmem:[%s23851_s11 + $0x250] sm:$0xf0]  ;;  %v11586_v28 = vor.u32 %v15105_v58, %v11583_v40  ;;  %v15156_v58 = vld [vmem:[%s23851_s11 + $0x1a0] sm:$0xf0] }
 0x6ab   : > { %v11774_v56 = vor.u32 %v15156_v58, %v11773_v47  ;;  %v11977_v47 = vld [vmem:[%s23851_s11 + $0x320] sm:$0xf]  ;;  %v15209_v58 = vld [vmem:[%s23851_s11 + $0x348] sm:$0xf0] }
 0x6ac   : > { %10012 = vmatpush.bf16.msrb.mxu0 %v14482_v50  ;;  %10168 = vmatpush.bf16.msrb.mxu1 %v11674_v55  ;;  %v20109_v15 = vpop.f32.mrf.mxu2  ;;  %v11862_v50 = vor.u32 %v15178_v6, %v11861_v52  ;;  %v15727_v55 = vld [vmem:[%s23851_s11 + $0x1378] sm:$0xf0]  ;;  %v11729_v52 = vld [vmem:[%s23851_s11 + $0x120] sm:$0xf]  ;;  %v15145_v6 = vld [vmem:[%s23851_s11 + $0x148] sm:$0xf0] }
 0x6ad   : > { %v14054_v17 = vor.u32 %v15727_v55, %v14053_v60  ;;  %v12119_v60 = vld [vmem:[%s23851_s11 + $0x45c] sm:$0xf0]  ;;  %v11685_v55 = vld [vmem:[%s23851_s11 + $0xc8] sm:$0xf] }
 0x6ae   : > { %10385 = vmatpush.bf16.msra.mxu2 %v14318_v33  ;;  %v11905_v33 = vld [vmem:[%s23851_s11 + $0x280] sm:$0xf]  ;;  %10507 = vmatpush.bf16.msra.mxu3 %v13750_v61  ;;  %v15271_v61 = vld [vmem:[%s23851_s11 + $0x53c] sm:$0xf] }
 0x6b0   : > { %10013 = vmatpush.bf16.msrb.mxu0 %v14438_v5  ;;  %10169 = vmatpush.bf16.msrb.mxu1 %v11630_v44  ;;  %v11818_v5 = vor.u32 %v15167_v29, %v11817_v3  ;;  %v15260_v44 = vld [vmem:[%s23851_s11 + $0x4e4] sm:$0xf]  ;;  %v13126_v29 = vor.u32 %v15490_v14, %v13123_v19  ;;  %v12991_v19 = vld [vmem:[%s23851_s11 + $0xb34] sm:$0xf0] }
 0x6b2   : > { %10386 = vmatpush.bf16.msra.mxu2 %v14274_v25  ;;  %v11906_v25 = vor.u32 %v15189_v22, %v11905_v33  ;;  %10508 = vmatpush.bf16.msra.mxu3 %v13706_v27  ;;  %v15253_v33 = vld [vmem:[%s23851_s11 + $0x4a8] sm:$0xf0]  ;;  %v12254_v22 = vor.u32 %v15271_v61, %v12251_v23  ;;  %v12207_v27 = vld [vmem:[%s23851_s11 + $0x50c] sm:$0xf0]  ;;  %v15134_v61 = vld [vmem:[%s23851_s11 + $0xf0] sm:$0xf0] }
 0x6b3   : > { %v12154_v40 = vor.u32 %v15253_v33, %v12153_v13  ;;  %v12210_v35 = vor.u32 %v15260_v44, %v12207_v27  ;;  %v15479_v13 = vld [vmem:[%s23851_s11 + $0xbbc] sm:$0xf]  ;;  %v13079_v33 = vld [vmem:[%s23851_s11 + $0xbe4] sm:$0xf0] }
 0x6b4   : > { %10014 = vmatpush.bf16.msrb.mxu0 %v14394_v12  ;;  %10170 = vmatpush.bf16.msrb.mxu1 %v11586_v28  ;;  %v12163_v12 = vld [vmem:[%s23851_s11 + $0x4b4] sm:$0xf0]  ;;  %v13082_v27 = vor.u32 %v15479_v13, %v13079_v33 }
 0x6b5   : > { %10509 = vmatmul.bf16.vlgmr.msra.gmra.mxu3 %v18229_v57 }
 0x6b6   : > { %10387 = vmatpush.bf16.msra.mxu2 %v14230_v30  ;;  %v12197_v30 = vld [vmem:[%s23851_s11 + $0x4d8] sm:$0xf]  ;;  %10553 = vmatpush.bf16.msrb.mxu3 %v11906_v25  ;;  %v12109_v25 = vld [vmem:[%s23851_s11 + $0x428] sm:$0xf] }
 0x6b7   : > { %v12198_v1 = vor.u32 %v15264_v7, %v12197_v30  ;;  %10015 = vmatmul.bf16.vlgmr.msrb.gmra.mxu0 %v18691_v16  ;;  %10171 = vmatmul.bf16.vlgmr.msrb.gmra.mxu1 %v17804_v49  ;;  %v12110_v28 = vor.u32 %v15242_v21, %v12109_v25  ;;  %v12065_v30 = vld [vmem:[%s23851_s11 + $0x3d0] sm:$0xf]  ;;  %v11730_v7 = vor.u32 %v15145_v6, %v11729_v52  ;;  %v15468_v25 = vld [vmem:[%s23851_s11 + $0xb64] sm:$0xf]  ;;  %v15541_v52 = vld [vmem:[%s23851_s11 + $0xda8] sm:$0xf0] }
 0x6b8   : > { %10046 = vmatpush.bf16.msra.mxu0 %v12242_v4  ;;  %10215 = vmatpush.bf16.msra.mxu1 %v13302_v11  ;;  %v13170_v4 = vor.u32 %v15501_v0, %v13167_v34  ;;  %v15231_v11 = vld [vmem:[%s23851_s11 + $0x3f8] sm:$0xf0]  ;;  %v20250_v3 = vpop.f32.mrf.mxu3  ;;  %v13035_v21 = vld [vmem:[%s23851_s11 + $0xb8c] sm:$0xf0]  ;;  %v11597_v0 = vld [vmem:[%s23851_s11 + $0x18] sm:$0xf] }
 0x6b9   : > { %v12066_v23 = vor.u32 %v15231_v11, %v12065_v30  ;;  %v15112_v34 = vld [vmem:[%s23851_s11 + $0x40] sm:$0xf0]  ;;  %v11933_v30 = vld [vmem:[%s23851_s11 + $0x2c8] sm:$0xf]  ;;  %v15198_v11 = vld [vmem:[%s23851_s11 + $0x2f0] sm:$0xf0] }
 0x6ba   : > { %10388 = vmatpush.bf16.msra.mxu2 %v14186_v18  ;;  %v10135_v18 = vpop.f32.mrf.mxu2  ;;  %10554 = vmatpush.bf16.msrb.mxu3 %v11862_v50  ;;  %v15238_v50 = vld [vmem:[%s23851_s11 + $0x434] sm:$0xf]  ;;  %v11598_v14 = vor.u32 %v15112_v34, %v11597_v0 }
 0x6bb   : > { %v12021_v18 = vld [vmem:[%s23851_s11 + $0x378] sm:$0xf] }
 0x6bc   : > { %10047 = vmatpush.bf16.msra.mxu0 %v12198_v1  ;;  %10216 = vmatpush.bf16.msra.mxu1 %v13258_v41  ;;  %v15220_v1 = vld [vmem:[%s23851_s11 + $0x3a0] sm:$0xf0]  ;;  %v12122_v41 = vor.u32 %v15238_v50, %v12119_v60  ;;  %v13649_v50 = vld [vmem:[%s23851_s11 + $0x1030] sm:$0xf]  ;;  %v15627_v60 = vld [vmem:[%s23851_s11 + $0x1058] sm:$0xf0] }
 0x6bd   : > { %v12022_v44 = vor.u32 %v15220_v1, %v12021_v18  ;;  %v11934_v18 = vor.u32 %v15198_v11, %v11933_v30  ;;  %v11987_v1 = vld [vmem:[%s23851_s11 + $0x354] sm:$0xf0]  ;;  %v13650_v33 = vor.u32 %v15627_v60, %v13649_v50  ;;  %v14619_v11 = vld [vmem:[%s23851_s11 + $0x17ec] sm:$0xf0] }
 0x6be   : > { %10389 = vmatpush.bf16.msra.mxu2 %v14142_v59  ;;  %v13214_v59 = vor.u32 %v15512_v62, %v13211_v24  ;;  %10555 = vmatpush.bf16.msrb.mxu3 %v11818_v5  ;;  %v12075_v5 = vld [vmem:[%s23851_s11 + $0x404] sm:$0xf0]  ;;  %v11641_v62 = vld [vmem:[%s23851_s11 + $0x70] sm:$0xf]  ;;  %v15123_v24 = vld [vmem:[%s23851_s11 + $0x98] sm:$0xf0] }
 0x6c0   : > { %10048 = vmatpush.bf16.msra.mxu0 %v12154_v40  ;;  %10217 = vmatpush.bf16.msra.mxu1 %v13214_v59  ;;  %v11642_v59 = vor.u32 %v15123_v24, %v11641_v62  ;;  %v15616_v62 = vld [vmem:[%s23851_s11 + $0x1000] sm:$0xf0] }
 0x6c2   : > { %10390 = vmatpush.bf16.msra.mxu2 %v14098_v42  ;;  %10556 = vmatpush.bf16.msrb.mxu3 %v11774_v56  ;;  %v12166_v42 = vor.u32 %v15249_v51, %v12163_v12  ;;  %v12031_v56 = vld [vmem:[%s23851_s11 + $0x3ac] sm:$0xf0]  ;;  %v11978_v51 = vor.u32 %v15209_v58, %v11977_v47  ;;  %v13313_v12 = vld [vmem:[%s23851_s11 + $0xd80] sm:$0xf]  ;;  %v14663_v47 = vld [vmem:[%s23851_s11 + $0x1844] sm:$0xf0] }
 0x6c3   : > { %v15194_v58 = vld [vmem:[%s23851_s11 + $0x2d4] sm:$0xf] }
 0x6c4   : > { %10049 = vmatpush.bf16.msra.mxu0 %v12110_v28  ;;  %10218 = vmatpush.bf16.msra.mxu1 %v13170_v4  ;;  %v10304_v28 = vpop.f32.mrf.mxu3  ;;  %v13038_v4 = vor.u32 %v15468_v25, %v13035_v21  ;;  %v15519_v25 = vld [vmem:[%s23851_s11 + $0xcf8] sm:$0xf0] }
 0x6c5   : > { %v15605_v28 = vld [vmem:[%s23851_s11 + $0xfa8] sm:$0xf0] }
 0x6c6   : > { %10391 = vmatpush.bf16.msra.mxu2 %v14054_v17  ;;  %10557 = vmatpush.bf16.msrb.mxu3 %v11730_v7  ;;  %v11686_v17 = vor.u32 %v15134_v61, %v11685_v55  ;;  %v13314_v55 = vor.u32 %v15541_v52, %v13313_v12  ;;  %v15886_v61 = vld [vmem:[%s23851_s11 + $0x1874] sm:$0xf]  ;;  %v13561_v52 = vld [vmem:[%s23851_s11 + $0xf80] sm:$0xf] }
 0x6c7   : > { %v13562_v50 = vor.u32 %v15605_v28, %v13561_v52  ;;  %v15831_v52 = vld [vmem:[%s23851_s11 + $0x16bc] sm:$0xf] }
 0x6c8   : > { %10050 = vmatpush.bf16.msra.mxu0 %v12066_v23  ;;  %10219 = vmatpush.bf16.msra.mxu1 %v13126_v29  ;;  %v14707_v23 = vld [vmem:[%s23851_s11 + $0x189c] sm:$0xf0]  ;;  %v15205_v29 = vld [vmem:[%s23851_s11 + $0x32c] sm:$0xf] }
 0x6c9   : > { %10392 = vmatmul.bf16.vlgmr.msra.gmra.mxu2 %v18317_v9  ;;  %v11990_v24 = vor.u32 %v15205_v29, %v11987_v1  ;;  %v15853_v29 = vld [vmem:[%s23851_s11 + $0x176c] sm:$0xf]  ;;  %v14575_v1 = vld [vmem:[%s23851_s11 + $0x1794] sm:$0xf0] }
 0x6ca   : > { %10436 = vmatpush.bf16.msrb.mxu2 %v12254_v22  ;;  %v15227_v22 = vld [vmem:[%s23851_s11 + $0x3dc] sm:$0xf]  ;;  %10558 = vmatpush.bf16.msrb.mxu3 %v11686_v17  ;;  %v15530_v17 = vld [vmem:[%s23851_s11 + $0xd50] sm:$0xf0] }
 0x6cb   : > { %v12078_v40 = vor.u32 %v15227_v22, %v12075_v5  ;;  %v14710_v22 = vor.u32 %v15886_v61, %v14707_v23  ;;  %v13605_v5 = vld [vmem:[%s23851_s11 + $0xfd8] sm:$0xf]  ;;  %v13517_v61 = vld [vmem:[%s23851_s11 + $0xf28] sm:$0xf]  ;;  %v15594_v23 = vld [vmem:[%s23851_s11 + $0xf50] sm:$0xf0] }
 0x6cc   : > { %10051 = vmatpush.bf16.msra.mxu0 %v12022_v44  ;;  %10220 = vmatpush.bf16.msra.mxu1 %v13082_v27  ;;  %v20306_v6 = vpop.f32.mrf.mxu2  ;;  %v15875_v27 = vld [vmem:[%s23851_s11 + $0x181c] sm:$0xf]  ;;  %v13606_v0 = vor.u32 %v15616_v62, %v13605_v5  ;;  %v14578_v5 = vor.u32 %v15853_v29, %v14575_v1  ;;  %v13005_v1 = vld [vmem:[%s23851_s11 + $0xb18] sm:$0xf] }
 0x6cd   : > { %v14666_v34 = vor.u32 %v15875_v27, %v14663_v47  ;;  %v15842_v27 = vld [vmem:[%s23851_s11 + $0x1714] sm:$0xf] }
 0x6ce   : > { %10437 = vmatpush.bf16.msrb.mxu2 %v12210_v35  ;;  %v15216_v35 = vld [vmem:[%s23851_s11 + $0x384] sm:$0xf]  ;;  %10559 = vmatpush.bf16.msrb.mxu3 %v11642_v59  ;;  %v13225_v59 = vld [vmem:[%s23851_s11 + $0xcd0] sm:$0xf] }
 0x6cf   : > { %v12034_v7 = vor.u32 %v15216_v35, %v12031_v56  ;;  %v15623_v35 = vld [vmem:[%s23851_s11 + $0x103c] sm:$0xf]  ;;  %v13659_v56 = vld [vmem:[%s23851_s11 + $0x1064] sm:$0xf0]  ;;  %v13226_v12 = vor.u32 %v15519_v25, %v13225_v59  ;;  %v15486_v59 = vld [vmem:[%s23851_s11 + $0xbf0] sm:$0xf0] }
 0x6d0   : > { %10052 = vmatpush.bf16.msra.mxu0 %v11978_v51  ;;  %10221 = vmatpush.bf16.msra.mxu1 %v13038_v4  ;;  %v15864_v4 = vld [vmem:[%s23851_s11 + $0x17c4] sm:$0xf]  ;;  %v13662_v30 = vor.u32 %v15623_v35, %v13659_v56  ;;  %v15590_v25 = vld [vmem:[%s23851_s11 + $0xf34] sm:$0xf] }
 0x6d1   : > { %v14622_v60 = vor.u32 %v15864_v4, %v14619_v11  ;;  %v14487_v4 = vld [vmem:[%s23851_s11 + $0x16e4] sm:$0xf0]  ;;  %v15475_v11 = vld [vmem:[%s23851_s11 + $0xb98] sm:$0xf0] }
 0x6d2   : > { %10438 = vmatpush.bf16.msrb.mxu2 %v12166_v42  ;;  %v15457_v42 = vld [vmem:[%s23851_s11 + $0xb0c] sm:$0xf]  ;;  %10560 = vmatpush.bf16.msrb.mxu3 %v11598_v14  ;;  %v15612_v14 = vld [vmem:[%s23851_s11 + $0xfe4] sm:$0xf] }
 0x6d3   : > { %v12994_v13 = vor.u32 %v15457_v42, %v12991_v19  ;;  %v13181_v42 = vld [vmem:[%s23851_s11 + $0xc78] sm:$0xf]  ;;  %v13615_v19 = vld [vmem:[%s23851_s11 + $0x100c] sm:$0xf0] }
 0x6d4   : > { %10053 = vmatpush.bf16.msra.mxu0 %v11934_v18  ;;  %v10187_v21 = vpop.f32.mrf.mxu2  ;;  %v13618_v18 = vor.u32 %v15612_v14, %v13615_v19  ;;  %v13385_v19 = vld [vmem:[%s23851_s11 + $0xe20] sm:$0xf] }
 0x6d5   : > { %10222 = vmatpush.bf16.msra.mxu1 %v12994_v13  ;;  %10561 = vmatmul.bf16.vlgmr.msrb.gmra.mxu3 %v17804_v49  ;;  %v15601_v13 = vld [vmem:[%s23851_s11 + $0xf8c] sm:$0xf]  ;;  %v13527_v21 = vld [vmem:[%s23851_s11 + $0xf5c] sm:$0xf0] }
 0x6d6   : > { %10439 = vmatpush.bf16.msrb.mxu2 %v12122_v41  ;;  %v13269_v41 = vld [vmem:[%s23851_s11 + $0xd28] sm:$0xf]  ;;  %10605 = vmatpush.bf16.msra.mxu3 %v13314_v55  ;;  %v13530_v28 = vor.u32 %v15590_v25, %v13527_v21  ;;  %v15057_v21 = vld [vmem:[%s23851_s11 + $0x1b30] sm:$0xf] }
 0x6d7   : > { %v13270_v44 = vor.u32 %v15530_v17, %v13269_v41  ;;  %10054 = vmatmul.bf16.vlgmr.msra.gmra.mxu0 %v18243_v54  ;;  %v13137_v41 = vld [vmem:[%s23851_s11 + $0xc20] sm:$0xf]  ;;  %v15497_v17 = vld [vmem:[%s23851_s11 + $0xc48] sm:$0xf0] }
 0x6d8   : > { %10098 = vmatpush.bf16.msrb.mxu0 %v13650_v33  ;;  %10223 = vmatmul.bf16.vlgmr.msra.gmra.mxu1 %v18277_v32  ;;  %v13571_v33 = vld [vmem:[%s23851_s11 + $0xfb4] sm:$0xf0]  ;;  %v13138_v62 = vor.u32 %v15497_v17, %v13137_v41  ;;  %v20450_v35 = vpop.f32.mrf.mxu3  ;;  %v15464_v41 = vld [vmem:[%s23851_s11 + $0xb40] sm:$0xf0]  ;;  %v13439_v17 = vld [vmem:[%s23851_s11 + $0xeac] sm:$0xf0] }
 0x6d9   : > { %10267 = vmatpush.bf16.msrb.mxu1 %v14710_v22  ;;  %v13518_v22 = vor.u32 %v15594_v23, %v13517_v61  ;;  %v13574_v47 = vor.u32 %v15601_v13, %v13571_v33  ;;  %v15820_v61 = vld [vmem:[%s23851_s11 + $0x1664] sm:$0xf]  ;;  %v14443_v23 = vld [vmem:[%s23851_s11 + $0x168c] sm:$0xf0]  ;;  %v14721_v13 = vld [vmem:[%s23851_s11 + $0x1880] sm:$0xf] }
 0x6da   : > { %10440 = vmatpush.bf16.msrb.mxu2 %v12078_v40  ;;  %v11943_v40 = vld [vmem:[%s23851_s11 + $0x2fc] sm:$0xf0]  ;;  %10606 = vmatpush.bf16.msra.mxu3 %v13270_v44  ;;  %v15583_v44 = vld [vmem:[%s23851_s11 + $0xef8] sm:$0xf0]  ;;  %v15893_v33 = vld [vmem:[%s23851_s11 + $0x18a8] sm:$0xf0] }
 0x6db   : > { %v11946_v51 = vor.u32 %v15194_v58, %v11943_v40  ;;  %v14531_v58 = vld [vmem:[%s23851_s11 + $0x173c] sm:$0xf0]  ;;  %v13093_v40 = vld [vmem:[%s23851_s11 + $0xbc8] sm:$0xf]  ;;  %v14722_v25 = vor.u32 %v15893_v33, %v14721_v13 }
 0x6dc   : > { %10099 = vmatpush.bf16.msrb.mxu0 %v13606_v0  ;;  %v14534_v0 = vor.u32 %v15842_v27, %v14531_v58  ;;  %v13006_v27 = vor.u32 %v15464_v41, %v13005_v1  ;;  %v15809_v58 = vld [vmem:[%s23851_s11 + $0x160c] sm:$0xf]  ;;  %v15067_v1 = vld [vmem:[%s23851_s11 + $0x1b64] sm:$0xf0]  ;;  %v14633_v41 = vld [vmem:[%s23851_s11 + $0x17d0] sm:$0xf] }
 0x6dd   : > { %10268 = vmatpush.bf16.msrb.mxu1 %v14666_v34  ;;  %v13094_v34 = vor.u32 %v15486_v59, %v13093_v40  ;;  %v14399_v40 = vld [vmem:[%s23851_s11 + $0x1634] sm:$0xf0] }
 0x6de   : > { %10441 = vmatpush.bf16.msrb.mxu2 %v12034_v7  ;;  %v15508_v7 = vld [vmem:[%s23851_s11 + $0xca0] sm:$0xf0]  ;;  %10607 = vmatpush.bf16.msra.mxu3 %v13226_v12 }
 0x6df   : > { %v13182_v55 = vor.u32 %v15508_v7, %v13181_v42  ;;  %v15572_v12 = vld [vmem:[%s23851_s11 + $0xea0] sm:$0xf0]  ;;  %v15579_v42 = vld [vmem:[%s23851_s11 + $0xedc] sm:$0xf]  ;;  %v13483_v7 = vld [vmem:[%s23851_s11 + $0xf04] sm:$0xf0] }
 0x6e0   : > { %10100 = vmatpush.bf16.msrb.mxu0 %v13562_v50  ;;  %v14490_v50 = vor.u32 %v15831_v52, %v14487_v4  ;;  %v13486_v29 = vor.u32 %v15579_v42, %v13483_v7  ;;  %v15882_v4 = vld [vmem:[%s23851_s11 + $0x1850] sm:$0xf0]  ;;  %v15013_v42 = vld [vmem:[%s23851_s11 + $0x1ad8] sm:$0xf] }
 0x6e1   : > { %10269 = vmatpush.bf16.msrb.mxu1 %v14622_v60 }
 0x6e2   : > { %10442 = vmatpush.bf16.msrb.mxu2 %v11990_v24  ;;  %10608 = vmatpush.bf16.msra.mxu3 %v13182_v55  ;;  %v13473_v24 = vld [vmem:[%s23851_s11 + $0xed0] sm:$0xf]  ;;  %v15561_v55 = vld [vmem:[%s23851_s11 + $0xe48] sm:$0xf0] }
 0x6e3   : > { %v13474_v56 = vor.u32 %v15583_v44, %v13473_v24  ;;  %v13341_v24 = vld [vmem:[%s23851_s11 + $0xdc8] sm:$0xf]  ;;  %v14446_v44 = vor.u32 %v15820_v61, %v14443_v23  ;;  %v15546_v61 = vld [vmem:[%s23851_s11 + $0xdd4] sm:$0xf]  ;;  %v13351_v23 = vld [vmem:[%s23851_s11 + $0xdfc] sm:$0xf0] }
 0x6e4   : > { %10101 = vmatpush.bf16.msrb.mxu0 %v13518_v22 }
 0x6e5   : > { %10270 = vmatpush.bf16.msrb.mxu1 %v14578_v5  ;;  %v10356_v5 = vpop.f32.mrf.mxu3 }
 0x6e6   : > { %10443 = vmatpush.bf16.msrb.mxu2 %v11946_v51  ;;  %10609 = vmatpush.bf16.msra.mxu3 %v13138_v62  ;;  %v13429_v51 = vld [vmem:[%s23851_s11 + $0xe78] sm:$0xf]  ;;  %v13386_v62 = vor.u32 %v15561_v55, %v13385_v19  ;;  %v15968_v19 = vld [vmem:[%s23851_s11 + $0x1b00] sm:$0xf0]  ;;  %v13354_v5 = vor.u32 %v15546_v61, %v13351_v23  ;;  %v15935_v61 = vld [vmem:[%s23851_s11 + $0x19f8] sm:$0xf0] }
 0x6e7   : > { %v13430_v14 = vor.u32 %v15572_v12, %v13429_v51  ;;  %v15557_v51 = vld [vmem:[%s23851_s11 + $0xe2c] sm:$0xf]  ;;  %v13395_v12 = vld [vmem:[%s23851_s11 + $0xe54] sm:$0xf0]  ;;  %v15014_v13 = vor.u32 %v15968_v19, %v15013_v42  ;;  %v14545_v19 = vld [vmem:[%s23851_s11 + $0x1720] sm:$0xf] }
 0x6e8   : > { %10102 = vmatpush.bf16.msrb.mxu0 %v13474_v56  ;;  %v15979_v56 = vld [vmem:[%s23851_s11 + $0x1b58] sm:$0xf0] }
 0x6e9   : > { %10444 = vmatmul.bf16.vlgmr.msrb.gmra.mxu2 %v18243_v54  ;;  %10271 = vmatpush.bf16.msrb.mxu1 %v14534_v0  ;;  %v12601_v0 = vld [vmem:[%s23851_s11 + $0x7f8] sm:$0xf] }
 0x6ea   : > { %10488 = vmatpush.bf16.msra.mxu2 %v13662_v30  ;;  %v13049_v30 = vld [vmem:[%s23851_s11 + $0xb70] sm:$0xf]  ;;  %10610 = vmatpush.bf16.msra.mxu3 %v13094_v34  ;;  %v15364_v34 = vld [vmem:[%s23851_s11 + $0x820] sm:$0xf0] }
 0x6eb   : > { %v13050_v60 = vor.u32 %v15475_v11, %v13049_v30  ;;  %v14402_v30 = vor.u32 %v15809_v58, %v14399_v40  ;;  %v15058_v11 = vor.u32 %v15979_v56, %v15057_v21  ;;  %v12602_v7 = vor.u32 %v15364_v34, %v12601_v0  ;;  %v15342_v58 = vld [vmem:[%s23851_s11 + $0x770] sm:$0xf0]  ;;  %v15964_v40 = vld [vmem:[%s23851_s11 + $0x1ae4] sm:$0xf]  ;;  %v14925_v34 = vld [vmem:[%s23851_s11 + $0x1a28] sm:$0xf] }
 0x6ec   : > { %10103 = vmatpush.bf16.msrb.mxu0 %v13430_v14  ;;  %v20506_v22 = vpop.f32.mrf.mxu2  ;;  %v13398_v14 = vor.u32 %v15557_v51, %v13395_v12  ;;  %v15860_v21 = vld [vmem:[%s23851_s11 + $0x17a0] sm:$0xf0]  ;;  %v15946_v51 = vld [vmem:[%s23851_s11 + $0x1a50] sm:$0xf0] }
 0x6ed   : > { %10272 = vmatpush.bf16.msrb.mxu1 %v14490_v50  ;;  %v12557_v50 = vld [vmem:[%s23851_s11 + $0x7a0] sm:$0xf] }
 0x6ee   : > { %10489 = vmatpush.bf16.msra.mxu2 %v13618_v18  ;;  %v15568_v18 = vld [vmem:[%s23851_s11 + $0xe84] sm:$0xf]  ;;  %10611 = vmatpush.bf16.msra.mxu3 %v13050_v60  ;;  %v15353_v60 = vld [vmem:[%s23851_s11 + $0x7c8] sm:$0xf0] }
 0x6ef   : > { %v13442_v59 = vor.u32 %v15568_v18, %v13439_v17  ;;  %v15871_v17 = vld [vmem:[%s23851_s11 + $0x17f8] sm:$0xf0]  ;;  %v12558_v33 = vor.u32 %v15353_v60, %v12557_v50  ;;  %v15849_v50 = vld [vmem:[%s23851_s11 + $0x1748] sm:$0xf0]  ;;  %v14926_v60 = vor.u32 %v15946_v51, %v14925_v34  ;;  %v14457_v34 = vld [vmem:[%s23851_s11 + $0x1670] sm:$0xf] }
 0x6f0   : > { %10104 = vmatpush.bf16.msrb.mxu0 %v13386_v62  ;;  %v14969_v62 = vld [vmem:[%s23851_s11 + $0x1a80] sm:$0xf]  ;;  %v9899_v12 = vpop.f32.mrf.mxu0  ;;  %v15827_v51 = vld [vmem:[%s23851_s11 + $0x1698] sm:$0xf0] }
 0x6f1   : > { %10273 = vmatpush.bf16.msrb.mxu1 %v14446_v44  ;;  %v20617_v42 = vadd.f32 %v9899_v12, %v19133_v20 }
 0x6f2   : > { %10490 = vmatpush.bf16.msra.mxu2 %v13574_v47  ;;  %v15550_v47 = vld [vmem:[%s23851_s11 + $0xdf0] sm:$0xf0]  ;;  %10612 = vmatpush.bf16.msra.mxu3 %v13006_v27  ;;  %v14634_v27 = vor.u32 %v15871_v17, %v14633_v41  ;;  %v14935_v17 = vld [vmem:[%s23851_s11 + $0x1a5c] sm:$0xf0] }
 0x6f3   : > { %v13342_v52 = vor.u32 %v15550_v47, %v13341_v24  ;;  %v15957_v24 = vld [vmem:[%s23851_s11 + $0x1aa8] sm:$0xf0]  ;;  %v12513_v47 = vld [vmem:[%s23851_s11 + $0x748] sm:$0xf]  ;;  %v15942_v41 = vld [vmem:[%s23851_s11 + $0x1a34] sm:$0xf] }
 0x6f4   : > { %v10239_v18 = vpop.f32.mrf.mxu2  ;;  %v14970_v56 = vor.u32 %v15957_v24, %v14969_v62  ;;  %v12514_v0 = vor.u32 %v15342_v58, %v12513_v47  ;;  %v14938_v58 = vor.u32 %v15942_v41, %v14935_v17  ;;  %v14749_v17 = vld [vmem:[%s23851_s11 + $0x18c8] sm:$0xf] }
 0x6f5   : > { %10105 = vmatpush.bf16.msrb.mxu0 %v13342_v52  ;;  %10613 = vmatmul.bf16.vlgmr.msra.gmra.mxu3 %v18277_v32  ;;  %v12425_v18 = vld [vmem:[%s23851_s11 + $0x698] sm:$0xf] }
 0x6f6   : > { %10491 = vmatpush.bf16.msra.mxu2 %v13530_v28  ;;  %v14677_v28 = vld [vmem:[%s23851_s11 + $0x1828] sm:$0xf]  ;;  %10657 = vmatpush.bf16.msrb.mxu3 %v14722_v25  ;;  %v14589_v25 = vld [vmem:[%s23851_s11 + $0x1778] sm:$0xf] }
 0x6f7   : > { %v14678_v55 = vor.u32 %v15882_v4, %v14677_v28  ;;  %10274 = vmatpush.bf16.msrb.mxu1 %v14402_v30  ;;  %v14590_v28 = vor.u32 %v15860_v21, %v14589_v25  ;;  %v12469_v4 = vld [vmem:[%s23851_s11 + $0x6f0] sm:$0xf]  ;;  %v15331_v30 = vld [vmem:[%s23851_s11 + $0x718] sm:$0xf0]  ;;  %v15309_v25 = vld [vmem:[%s23851_s11 + $0x668] sm:$0xf0] }
 0x6f8   : > { %10106 = vmatmul.bf16.vlgmr.msrb.gmra.mxu0 %v18659_v26  ;;  %v12470_v20 = vor.u32 %v15331_v30, %v12469_v4  ;;  %v9901_v47 = vpop.f32.mrf.mxu0  ;;  %v15931_v21 = vld [vmem:[%s23851_s11 + $0x19dc] sm:$0xf]  ;;  %v15913_v4 = vld [vmem:[%s23851_s11 + $0x1948] sm:$0xf0] }
 0x6f9   : > { %10150 = vmatpush.bf16.msra.mxu0 %v15058_v11  ;;  %v15953_v11 = vld [vmem:[%s23851_s11 + $0x1a8c] sm:$0xf]  ;;  %v15446_v47 = vld [vmem:[%s23851_s11 + $0xab4] sm:$0xf] }
 0x6fa   : > { %10492 = vmatpush.bf16.msra.mxu2 %v13486_v29  ;;  %v15975_v29 = vld [vmem:[%s23851_s11 + $0x1b3c] sm:$0xf]  ;;  %10658 = vmatpush.bf16.msrb.mxu3 %v14678_v55  ;;  %v14881_v55 = vld [vmem:[%s23851_s11 + $0x19d0] sm:$0xf] }
 0x6fb   : > { %10319 = vmatpush.bf16.msra.mxu1 %v12602_v7  ;;  %v15070_v44 = vor.u32 %v15975_v29, %v15067_v1  ;;  %v20619_v7 = vpop.f32.mrf.mxu1  ;;  %v14546_v29 = vor.u32 %v15849_v50, %v14545_v19  ;;  %v15320_v1 = vld [vmem:[%s23851_s11 + $0x6c0] sm:$0xf0]  ;;  %v14882_v62 = vor.u32 %v15935_v61, %v14881_v55  ;;  %v15298_v19 = vld [vmem:[%s23851_s11 + $0x610] sm:$0xf0] }
 0x6fc   : > { %10275 = vmatmul.bf16.vlgmr.msrb.gmra.mxu1 %v18691_v16  ;;  %v12426_v24 = vor.u32 %v15320_v1, %v12425_v18  ;;  %v15920_v50 = vld [vmem:[%s23851_s11 + $0x1984] sm:$0xf]  ;;  %v12611_v18 = vld [vmem:[%s23851_s11 + $0x82c] sm:$0xf0] }
 0x6fd   : > { %10151 = vmatpush.bf16.msra.mxu0 %v15014_v13  ;;  %v14501_v13 = vld [vmem:[%s23851_s11 + $0x16c8] sm:$0xf]  ;;  %v15816_v55 = vld [vmem:[%s23851_s11 + $0x1640] sm:$0xf0] }
 0x6fe   : > { %10493 = vmatpush.bf16.msra.mxu2 %v13442_v59  ;;  %v15023_v59 = vld [vmem:[%s23851_s11 + $0x1b0c] sm:$0xf0]  ;;  %10659 = vmatpush.bf16.msrb.mxu3 %v14634_v27  ;;  %v15924_v27 = vld [vmem:[%s23851_s11 + $0x19a0] sm:$0xf0] }
 0x6ff   : > { %10320 = vmatpush.bf16.msra.mxu1 %v12558_v33  ;;  %v15026_v52 = vor.u32 %v15964_v40, %v15023_v59  ;;  %v15838_v33 = vld [vmem:[%s23851_s11 + $0x16f0] sm:$0xf0]  ;;  %v12381_v59 = vld [vmem:[%s23851_s11 + $0x640] sm:$0xf] }
 0x700   : > { %v14502_v40 = vor.u32 %v15838_v33, %v14501_v13  ;;  %v15902_v13 = vld [vmem:[%s23851_s11 + $0x18f0] sm:$0xf0]  ;;  %v12293_v33 = vld [vmem:[%s23851_s11 + $0x590] sm:$0xf] }
 0x701   : > { %10152 = vmatpush.bf16.msra.mxu0 %v14970_v56 }
 0x702   : > { %10494 = vmatpush.bf16.msra.mxu2 %v13398_v14  ;;  %v14979_v14 = vld [vmem:[%s23851_s11 + $0x1ab4] sm:$0xf0]  ;;  %10660 = vmatpush.bf16.msrb.mxu3 %v14590_v28  ;;  %v14793_v28 = vld [vmem:[%s23851_s11 + $0x1920] sm:$0xf] }
 0x703   : > { %10321 = vmatpush.bf16.msra.mxu1 %v12514_v0  ;;  %v14982_v23 = vor.u32 %v15953_v11, %v14979_v14  ;;  %v10031_v56 = vpop.f32.mrf.mxu1  ;;  %v14891_v0 = vld [vmem:[%s23851_s11 + $0x1a04] sm:$0xf0]  ;;  %v14458_v11 = vor.u32 %v15827_v51, %v14457_v34  ;;  %v14750_v34 = vor.u32 %v15902_v13, %v14749_v17  ;;  %v15349_v51 = vld [vmem:[%s23851_s11 + $0x7ac] sm:$0xf] }
 0x704   : > { %v14894_v30 = vor.u32 %v15931_v21, %v14891_v0  ;;  %v12337_v14 = vld [vmem:[%s23851_s11 + $0x5e8] sm:$0xf]  ;;  %v14009_v21 = vld [vmem:[%s23851_s11 + $0x12f8] sm:$0xf]  ;;  %v15716_v56 = vld [vmem:[%s23851_s11 + $0x1320] sm:$0xf0] }
 0x705   : > { %10153 = vmatpush.bf16.msra.mxu0 %v14926_v60  ;;  %v14847_v60 = vld [vmem:[%s23851_s11 + $0x19ac] sm:$0xf0]  ;;  %v12338_v41 = vor.u32 %v15298_v19, %v12337_v14  ;;  %v15909_v0 = vld [vmem:[%s23851_s11 + $0x192c] sm:$0xf] }
 0x706   : > { %10495 = vmatpush.bf16.msra.mxu2 %v13354_v5  ;;  %v20655_v5 = vpop.f32.mrf.mxu3  ;;  %10661 = vmatpush.bf16.msrb.mxu3 %v14546_v29  ;;  %v15360_v29 = vld [vmem:[%s23851_s11 + $0x804] sm:$0xf] }
 0x707   : > { %10322 = vmatpush.bf16.msra.mxu1 %v12470_v20  ;;  %v14413_v20 = vld [vmem:[%s23851_s11 + $0x1618] sm:$0xf] }
 0x709   : > { %10496 = vmatmul.bf16.vlgmr.msra.gmra.mxu2 %v18659_v26  ;;  %10154 = vmatpush.bf16.msra.mxu0 %v14882_v62  ;;  %v9938_v62 = vpop.f32.mrf.mxu0 }
 0x70a   : > { %10540 = vmatpush.bf16.msrb.mxu2 %v15070_v44  ;;  %v14837_v44 = vld [vmem:[%s23851_s11 + $0x1978] sm:$0xf]  ;;  %10662 = vmatpush.bf16.msrb.mxu3 %v14502_v40  ;;  %v9939_v40 = vadd.f32 %v9938_v62, %v19194_v39 }
 0x70b   : > { %v14838_v12 = vor.u32 %v15924_v27, %v14837_v44  ;;  %10323 = vmatpush.bf16.msra.mxu1 %v12426_v24  ;;  %v14850_v24 = vor.u32 %v15920_v50, %v14847_v60  ;;  %v14414_v44 = vor.u32 %v15816_v55, %v14413_v20  ;;  %v15287_v27 = vld [vmem:[%s23851_s11 + $0x5b8] sm:$0xf0]  ;;  %v14803_v39 = vld [vmem:[%s23851_s11 + $0x1954] sm:$0xf0]  ;;  %v13965_v50 = vld [vmem:[%s23851_s11 + $0x12a0] sm:$0xf] }
 0x70c   : > { %v20711_v1 = vpop.f32.mrf.mxu2  ;;  %v14806_v14 = vor.u32 %v15909_v0, %v14803_v39  ;;  %v15705_v60 = vld [vmem:[%s23851_s11 + $0x12c8] sm:$0xf0]  ;;  %v15898_v20 = vld [vmem:[%s23851_s11 + $0x18d4] sm:$0xf]  ;;  %v14759_v55 = vld [vmem:[%s23851_s11 + $0x18fc] sm:$0xf0] }
 0x70d   : > { %10155 = vmatpush.bf16.msra.mxu0 %v14838_v12  ;;  %v12567_v12 = vld [vmem:[%s23851_s11 + $0x7d4] sm:$0xf0]  ;;  %v12479_v0 = vld [vmem:[%s23851_s11 + $0x724] sm:$0xf0]  ;;  %v15442_v39 = vld [vmem:[%s23851_s11 + $0xa90] sm:$0xf0] }
 0x70e   : > { %10541 = vmatpush.bf16.msrb.mxu2 %v15026_v52  ;;  %v12382_v52 = vor.u32 %v15309_v25, %v12381_v59  ;;  %v10408_v61 = vpop.f32.mrf.mxu3  ;;  %10663 = vmatpush.bf16.msrb.mxu3 %v14458_v11  ;;  %v20732_v59 = vpop.f32.mrf.mxu1  ;;  %v12614_v25 = vor.u32 %v15360_v29, %v12611_v18  ;;  %v12903_v11 = vld [vmem:[%s23851_s11 + $0xa84] sm:$0xf0]  ;;  %v12570_v19 = vor.u32 %v15349_v51, %v12567_v12  ;;  %v12961_v18 = vld [vmem:[%s23851_s11 + $0xac0] sm:$0xf] }
 0x70f   : > { %v15338_v61 = vld [vmem:[%s23851_s11 + $0x754] sm:$0xf]  ;;  %v9952_v51 = vadd.f32 %v18595_v43, %v9939_v40  ;;  %v15683_v40 = vld [vmem:[%s23851_s11 + $0x1218] sm:$0xf0] }
 0x710   : > { %10324 = vmatpush.bf16.msra.mxu1 %v12382_v52  ;;  %v12294_v52 = vor.u32 %v15287_v27, %v12293_v33  ;;  %v13966_v33 = vor.u32 %v15705_v60, %v13965_v50  ;;  %v15424_v27 = vld [vmem:[%s23851_s11 + $0xa04] sm:$0xf]  ;;  %v12873_v50 = vld [vmem:[%s23851_s11 + $0xa10] sm:$0xf]  ;;  %v15431_v60 = vld [vmem:[%s23851_s11 + $0xa38] sm:$0xf0] }
 0x711   : > { %v9940_v17 = vpop.f32.mrf.mxu0 }
 0x712   : > { %10542 = vmatpush.bf16.msrb.mxu2 %v14982_v23  ;;  %v14794_v23 = vor.u32 %v15913_v4, %v14793_v28  ;;  %10664 = vmatpush.bf16.msrb.mxu3 %v14414_v44  ;;  %v14010_v4 = vor.u32 %v15716_v56, %v14009_v21  ;;  %v15694_v21 = vld [vmem:[%s23851_s11 + $0x1270] sm:$0xf0]  ;;  %v15327_v56 = vld [vmem:[%s23851_s11 + $0x6fc] sm:$0xf]  ;;  %v12771_v17 = vld [vmem:[%s23851_s11 + $0x97c] sm:$0xf0] }
 0x714   : > { %10156 = vmatpush.bf16.msra.mxu0 %v14794_v23  ;;  %10325 = vmatpush.bf16.msra.mxu1 %v12338_v41  ;;  %v12523_v23 = vld [vmem:[%s23851_s11 + $0x77c] sm:$0xf0]  ;;  %v10291_v29 = vpop.f32.mrf.mxu2  ;;  %v15453_v41 = vld [vmem:[%s23851_s11 + $0xae8] sm:$0xf0] }
 0x715   : > { %10665 = vmatmul.bf16.vlgmr.msrb.gmra.mxu3 %v18691_v16  ;;  %v12526_v44 = vor.u32 %v15338_v61, %v12523_v23 }
 0x716   : > { %10543 = vmatpush.bf16.msrb.mxu2 %v14938_v58  ;;  %v12947_v58 = vld [vmem:[%s23851_s11 + $0xadc] sm:$0xf0]  ;;  %10709 = vmatpush.bf16.msra.mxu3 %v12614_v25  ;;  %v10070_v62 = vpop.f32.mrf.mxu1  ;;  %v12962_v25 = vor.u32 %v15453_v41, %v12961_v18  ;;  %v15402_v41 = vld [vmem:[%s23851_s11 + $0x954] sm:$0xf] }
 0x717   : > { %v12950_v28 = vor.u32 %v15446_v47, %v12947_v58  ;;  %v12859_v47 = vld [vmem:[%s23851_s11 + $0xa2c] sm:$0xf0]  ;;  %v13921_v58 = vld [vmem:[%s23851_s11 + $0x1248] sm:$0xf]  ;;  %v15672_v62 = vld [vmem:[%s23851_s11 + $0x11c0] sm:$0xf0] }
 0x718   : > { %10157 = vmatpush.bf16.msra.mxu0 %v14750_v34  ;;  %10326 = vmatpush.bf16.msra.mxu1 %v12294_v52  ;;  %v12917_v34 = vld [vmem:[%s23851_s11 + $0xa68] sm:$0xf]  ;;  %v12862_v12 = vor.u32 %v15424_v27, %v12859_v47  ;;  %v13922_v52 = vor.u32 %v15694_v21, %v13921_v58  ;;  %v12829_v27 = vld [vmem:[%s23851_s11 + $0x9b8] sm:$0xf]  ;;  %v15420_v47 = vld [vmem:[%s23851_s11 + $0x9e0] sm:$0xf0]  ;;  %v20864_v58 = vpop.f32.mrf.mxu3 }
 0x719   : > { %v12918_v43 = vor.u32 %v15442_v39, %v12917_v34  ;;  %v9977_v61 = vpop.f32.mrf.mxu0  ;;  %v12727_v34 = vld [vmem:[%s23851_s11 + $0x924] sm:$0xf0]  ;;  %v13789_v39 = vld [vmem:[%s23851_s11 + $0x1140] sm:$0xf] }
 0x71a   : > { %10544 = vmatpush.bf16.msrb.mxu2 %v14894_v30  ;;  %v15435_v30 = vld [vmem:[%s23851_s11 + $0xa5c] sm:$0xf]  ;;  %10710 = vmatpush.bf16.msra.mxu3 %v12570_v19  ;;  %v12435_v19 = vld [vmem:[%s23851_s11 + $0x6cc] sm:$0xf0] }
 0x71b   : > { %v12906_v13 = vor.u32 %v15435_v30, %v12903_v11  ;;  %10158 = vmatmul.bf16.vlgmr.msra.gmra.mxu0 %v19741_v48  ;;  %10327 = vmatmul.bf16.vlgmr.msra.gmra.mxu1 %v18126_v31  ;;  %v12815_v30 = vld [vmem:[%s23851_s11 + $0x9d4] sm:$0xf0]  ;;  %v13877_v11 = vld [vmem:[%s23851_s11 + $0x11f0] sm:$0xf] }
 0x71c   : > { %10202 = vmatpush.bf16.msrb.mxu0 %v12950_v28  ;;  %10371 = vmatpush.bf16.msrb.mxu1 %v14010_v4  ;;  %v12482_v28 = vor.u32 %v15327_v56, %v12479_v0  ;;  %v15413_v4 = vld [vmem:[%s23851_s11 + $0x9ac] sm:$0xf]  ;;  %v13878_v29 = vor.u32 %v15683_v40, %v13877_v11  ;;  %v15391_v0 = vld [vmem:[%s23851_s11 + $0x8fc] sm:$0xf] }
 0x71d   : > { %v12730_v11 = vor.u32 %v15391_v0, %v12727_v34  ;;  %v15639_v0 = vld [vmem:[%s23851_s11 + $0x10b8] sm:$0xf0] }
 0x71e   : > { %10545 = vmatpush.bf16.msrb.mxu2 %v14850_v24  ;;  %v14762_v24 = vor.u32 %v15898_v20, %v14759_v55  ;;  %10711 = vmatpush.bf16.msra.mxu3 %v12526_v44  ;;  %v9965_v20 = vadd.f32 %v19365_v8, %v9952_v51  ;;  %v12818_v55 = vor.u32 %v15413_v4, %v12815_v30  ;;  %v20836_v23 = vpop.f32.mrf.mxu1  ;;  %v13833_v8 = vld [vmem:[%s23851_s11 + $0x1198] sm:$0xf]  ;;  %v12785_v4 = vld [vmem:[%s23851_s11 + $0x960] sm:$0xf]  ;;  %v15409_v30 = vld [vmem:[%s23851_s11 + $0x988] sm:$0xf0] }
 0x71f   : > { %v12391_v44 = vld [vmem:[%s23851_s11 + $0x674] sm:$0xf0]  ;;  %v13834_v21 = vor.u32 %v15672_v62, %v13833_v8  ;;  %v12830_v51 = vor.u32 %v15420_v47, %v12829_v27  ;;  %v15712_v8 = vld [vmem:[%s23851_s11 + $0x1304] sm:$0xf] }
 0x720   : > { %10203 = vmatpush.bf16.msrb.mxu0 %v12906_v13  ;;  %10372 = vmatpush.bf16.msrb.mxu1 %v13966_v33  ;;  %v20847_v13 = vadd.f32 %v9977_v61, %v9965_v20  ;;  %v12874_v33 = vor.u32 %v15431_v60, %v12873_v50  ;;  %v12683_v60 = vld [vmem:[%s23851_s11 + $0x8cc] sm:$0xf0]  ;;  %v13745_v20 = vld [vmem:[%s23851_s11 + $0x10e8] sm:$0xf]  ;;  %v12786_v61 = vor.u32 %v15409_v30, %v12785_v4  ;;  %v10460_v62 = vpop.f32.mrf.mxu3  ;;  %v15387_v30 = vld [vmem:[%s23851_s11 + $0x8d8] sm:$0xf0] }
 0x721   : > { %v9979_v40 = vpop.f32.mrf.mxu0  ;;  %v12697_v4 = vld [vmem:[%s23851_s11 + $0x8b0] sm:$0xf]  ;;  %v15690_v62 = vld [vmem:[%s23851_s11 + $0x1254] sm:$0xf] }
 0x722   : > { %10546 = vmatpush.bf16.msrb.mxu2 %v14806_v14  ;;  %v15316_v14 = vld [vmem:[%s23851_s11 + $0x6a4] sm:$0xf]  ;;  %10712 = vmatpush.bf16.msra.mxu3 %v12482_v28  ;;  %v12347_v28 = vld [vmem:[%s23851_s11 + $0x61c] sm:$0xf0]  ;;  %v13975_v40 = vld [vmem:[%s23851_s11 + $0x12d4] sm:$0xf0] }
 0x723   : > { %v12438_v18 = vor.u32 %v15316_v14, %v12435_v19 }
 0x724   : > { %10204 = vmatpush.bf16.msrb.mxu0 %v12862_v12  ;;  %10373 = vmatpush.bf16.msrb.mxu1 %v13922_v52  ;;  %v15661_v12 = vld [vmem:[%s23851_s11 + $0x1168] sm:$0xf0]  ;;  %v15294_v52 = vld [vmem:[%s23851_s11 + $0x5f4] sm:$0xf] }
 0x725   : > { %v13790_v19 = vor.u32 %v15661_v12, %v13789_v39  ;;  %v12350_v50 = vor.u32 %v15294_v52, %v12347_v28  ;;  %v14355_v12 = vld [vmem:[%s23851_s11 + $0x15dc] sm:$0xf0]  ;;  %v15183_v52 = vld [vmem:[%s23851_s11 + $0x27c] sm:$0xf]  ;;  %v11899_v28 = vld [vmem:[%s23851_s11 + $0x2a4] sm:$0xf0] }
 0x726   : > { %10547 = vmatpush.bf16.msrb.mxu2 %v14762_v24  ;;  %v15305_v24 = vld [vmem:[%s23851_s11 + $0x64c] sm:$0xf]  ;;  %10713 = vmatpush.bf16.msra.mxu3 %v12438_v18  ;;  %v10122_v14 = vpop.f32.mrf.mxu1  ;;  %v15283_v18 = vld [vmem:[%s23851_s11 + $0x59c] sm:$0xf] }
 0x727   : > { %v12394_v56 = vor.u32 %v15305_v24, %v12391_v44  ;;  %v15369_v44 = vld [vmem:[%s23851_s11 + $0x84c] sm:$0xf] }
 0x728   : > { %10205 = vmatpush.bf16.msrb.mxu0 %v12818_v55  ;;  %10374 = vmatpush.bf16.msrb.mxu1 %v13878_v29  ;;  %v15650_v55 = vld [vmem:[%s23851_s11 + $0x1110] sm:$0xf0]  ;;  %v12741_v29 = vld [vmem:[%s23851_s11 + $0x908] sm:$0xf] }
 0x729   : > { %10548 = vmatmul.bf16.vlgmr.msrb.gmra.mxu2 %v19741_v48  ;;  %v13746_v47 = vor.u32 %v15650_v55, %v13745_v20  ;;  %v12698_v20 = vor.u32 %v15387_v30, %v12697_v4  ;;  %v14311_v55 = vld [vmem:[%s23851_s11 + $0x1584] sm:$0xf0]  ;;  %v15679_v4 = vld [vmem:[%s23851_s11 + $0x11fc] sm:$0xf] }
 0x72a   : > { %10592 = vmatpush.bf16.msra.mxu2 %v12962_v25  ;;  %v12774_v25 = vor.u32 %v15402_v41, %v12771_v17  ;;  %10714 = vmatpush.bf16.msra.mxu3 %v12394_v56  ;;  %v12303_v41 = vld [vmem:[%s23851_s11 + $0x5c4] sm:$0xf0]  ;;  %v15398_v17 = vld [vmem:[%s23851_s11 + $0x930] sm:$0xf0]  ;;  %v13701_v56 = vld [vmem:[%s23851_s11 + $0x1090] sm:$0xf] }
 0x72b   : > { %v12742_v34 = vor.u32 %v15398_v17, %v12741_v29  ;;  %v13702_v14 = vor.u32 %v15639_v0, %v13701_v56  ;;  %v11855_v29 = vld [vmem:[%s23851_s11 + $0x24c] sm:$0xf0]  ;;  %v15376_v17 = vld [vmem:[%s23851_s11 + $0x880] sm:$0xf0]  ;;  %v13887_v30 = vld [vmem:[%s23851_s11 + $0x1224] sm:$0xf0] }
 0x72c   : > { %10206 = vmatpush.bf16.msrb.mxu0 %v12774_v25  ;;  %10375 = vmatpush.bf16.msrb.mxu1 %v13834_v21  ;;  %v20923_v27 = vpop.f32.mrf.mxu2  ;;  %v12306_v25 = vor.u32 %v15283_v18, %v12303_v41  ;;  %v12639_v21 = vld [vmem:[%s23851_s11 + $0x874] sm:$0xf0]  ;;  %v15776_v56 = vld [vmem:[%s23851_s11 + $0x1504] sm:$0xf]  ;;  %v14267_v0 = vld [vmem:[%s23851_s11 + $0x152c] sm:$0xf0] }
 0x72d   : > { %v12653_v41 = vld [vmem:[%s23851_s11 + $0x858] sm:$0xf] }
 0x72e   : > { %10593 = vmatpush.bf16.msra.mxu2 %v12918_v43  ;;  %v15380_v43 = vld [vmem:[%s23851_s11 + $0x8a4] sm:$0xf]  ;;  %10715 = vmatpush.bf16.msra.mxu3 %v12350_v50  ;;  %v15787_v50 = vld [vmem:[%s23851_s11 + $0x155c] sm:$0xf] }
 0x72f   : > { %v12686_v24 = vor.u32 %v15380_v43, %v12683_v60  ;;  %v15701_v43 = vld [vmem:[%s23851_s11 + $0x12ac] sm:$0xf]  ;;  %v11902_v60 = vor.u32 %v15183_v52, %v11899_v28  ;;  %v14325_v52 = vld [vmem:[%s23851_s11 + $0x1568] sm:$0xf]  ;;  %v15794_v28 = vld [vmem:[%s23851_s11 + $0x1590] sm:$0xf0] }
 0x730   : > { %10207 = vmatpush.bf16.msrb.mxu0 %v12730_v11  ;;  %10376 = vmatpush.bf16.msrb.mxu1 %v13790_v19  ;;  %v12642_v11 = vor.u32 %v15369_v44, %v12639_v21  ;;  %v13978_v18 = vor.u32 %v15701_v43, %v13975_v40  ;;  %v12654_v21 = vor.u32 %v15376_v17, %v12653_v41 }
 0x731   : > { %v14270_v43 = vor.u32 %v15776_v56, %v14267_v0  ;;  %v14237_v56 = vld [vmem:[%s23851_s11 + $0x14b8] sm:$0xf]  ;;  %v15772_v0 = vld [vmem:[%s23851_s11 + $0x14e0] sm:$0xf0] }
 0x732   : > { %10594 = vmatpush.bf16.msra.mxu2 %v12874_v33  ;;  %v14019_v33 = vld [vmem:[%s23851_s11 + $0x132c] sm:$0xf0]  ;;  %10716 = vmatpush.bf16.msra.mxu3 %v12306_v25 }
 0x733   : > { %v14022_v39 = vor.u32 %v15712_v8, %v14019_v33  ;;  %v14369_v8 = vld [vmem:[%s23851_s11 + $0x15c0] sm:$0xf]  ;;  %v15805_v33 = vld [vmem:[%s23851_s11 + $0x15e8] sm:$0xf0] }
 0x734   : > { %10208 = vmatpush.bf16.msrb.mxu0 %v12686_v24  ;;  %10377 = vmatpush.bf16.msrb.mxu1 %v13746_v47  ;;  %v13931_v24 = vld [vmem:[%s23851_s11 + $0x127c] sm:$0xf0]  ;;  %v10343_v44 = vpop.f32.mrf.mxu2  ;;  %v14314_v47 = vor.u32 %v15787_v50, %v14311_v55  ;;  %v14326_v50 = vor.u32 %v15794_v28, %v14325_v52  ;;  %v15783_v55 = vld [vmem:[%s23851_s11 + $0x1538] sm:$0xf0]  ;;  %v10016_v17 = vpop.f32.mrf.mxu0 }
 0x735   : > { %10717 = vmatmul.bf16.vlgmr.msra.gmra.mxu3 %v18126_v31  ;;  %v21049_v44 = vpop.f32.mrf.mxu1 }
 0x736   : > { %10595 = vmatpush.bf16.msra.mxu2 %v12830_v51  ;;  %v15798_v51 = vld [vmem:[%s23851_s11 + $0x15b4] sm:$0xf]  ;;  %10761 = vmatpush.bf16.msrb.mxu3 %v14022_v39  ;;  %v13934_v39 = vor.u32 %v15690_v62, %v13931_v24  ;;  %v14179_v62 = vld [vmem:[%s23851_s11 + $0x147c] sm:$0xf0] }
 0x737   : > { %v14358_v19 = vor.u32 %v15798_v51, %v14355_v12  ;;  %v15161_v51 = vld [vmem:[%s23851_s11 + $0x1cc] sm:$0xf]  ;;  %v11811_v12 = vld [vmem:[%s23851_s11 + $0x1f4] sm:$0xf0] }
 0x738   : > { %10209 = vmatpush.bf16.msrb.mxu0 %v12642_v11  ;;  %10378 = vmatpush.bf16.msrb.mxu1 %v13702_v14  ;;  %v9991_v11 = vadd.f32 %v18647_v38, %v20847_v13  ;;  %v11814_v40 = vor.u32 %v15161_v51, %v11811_v12  ;;  %v15765_v14 = vld [vmem:[%s23851_s11 + $0x14ac] sm:$0xf]  ;;  %v15150_v38 = vld [vmem:[%s23851_s11 + $0x174] sm:$0xf]  ;;  %v11767_v13 = vld [vmem:[%s23851_s11 + $0x19c] sm:$0xf0]  ;;  %v21070_v12 = vpop.f32.mrf.mxu3 }
 0x73a   : > { %10596 = vmatpush.bf16.msra.mxu2 %v12786_v61  ;;  %v15172_v61 = vld [vmem:[%s23851_s11 + $0x224] sm:$0xf]  ;;  %10762 = vmatpush.bf16.msrb.mxu3 %v13978_v18  ;;  %v10004_v18 = vadd.f32 %v19567_v45, %v9991_v11  ;;  %v15139_v45 = vld [vmem:[%s23851_s11 + $0x11c] sm:$0xf] }
 0x73b   : > { %v11858_v25 = vor.u32 %v15172_v61, %v11855_v29  ;;  %10210 = vmatmul.bf16.vlgmr.msrb.gmra.mxu0 %v17820_v10  ;;  %10379 = vmatmul.bf16.vlgmr.msrb.gmra.mxu1 %v18229_v57  ;;  %v15668_v61 = vld [vmem:[%s23851_s11 + $0x11a4] sm:$0xf]  ;;  %v13843_v29 = vld [vmem:[%s23851_s11 + $0x11cc] sm:$0xf0] }
 0x73c   : > { %10254 = vmatpush.bf16.msra.mxu0 %v14358_v19  ;;  %10423 = vmatpush.bf16.msra.mxu1 %v11902_v60  ;;  %v14223_v19 = vld [vmem:[%s23851_s11 + $0x14d4] sm:$0xf0]  ;;  %v13890_v60 = vor.u32 %v15679_v4, %v13887_v30  ;;  %v10017_v24 = vadd.f32 %v10016_v17, %v10004_v18  ;;  %v15743_v4 = vld [vmem:[%s23851_s11 + $0x13fc] sm:$0xf]  ;;  %v14135_v30 = vld [vmem:[%s23851_s11 + $0x1424] sm:$0xf0] }
 0x73d   : > { %v14226_v41 = vor.u32 %v15765_v14, %v14223_v19  ;;  %v15128_v11 = vld [vmem:[%s23851_s11 + $0xc4] sm:$0xf]  ;;  %v11679_v14 = vld [vmem:[%s23851_s11 + $0xec] sm:$0xf0]  ;;  %v14193_v19 = vld [vmem:[%s23851_s11 + $0x1460] sm:$0xf] }
 0x73e   : > { %10597 = vmatpush.bf16.msra.mxu2 %v12742_v34  ;;  %v14370_v34 = vor.u32 %v15805_v33, %v14369_v8  ;;  %10763 = vmatpush.bf16.msrb.mxu3 %v13934_v39  ;;  %v11770_v8 = vor.u32 %v15150_v38, %v11767_v13  ;;  %v15754_v33 = vld [vmem:[%s23851_s11 + $0x1454] sm:$0xf]  ;;  %v13799_v39 = vld [vmem:[%s23851_s11 + $0x1174] sm:$0xf0]  ;;  %v10030_v51 = vadd.f32 %v20619_v7, %v10017_v24  ;;  %v13755_v38 = vld [vmem:[%s23851_s11 + $0x111c] sm:$0xf0] }
 0x73f   : > { %v14182_v52 = vor.u32 %v15754_v33, %v14179_v62  ;;  %v14091_v18 = vld [vmem:[%s23851_s11 + $0x13cc] sm:$0xf0]  ;;  %v11635_v33 = vld [vmem:[%s23851_s11 + $0x94] sm:$0xf0]  ;;  %v14149_v62 = vld [vmem:[%s23851_s11 + $0x1408] sm:$0xf] }
 0x740   : > { %10255 = vmatpush.bf16.msra.mxu0 %v14314_v47  ;;  %10424 = vmatpush.bf16.msra.mxu1 %v11858_v25  ;;  %v13846_v25 = vor.u32 %v15668_v61, %v13843_v29  ;;  %v11214_v7 = vrot.slane %v10030_v51, 7  ;;  %v11682_v61 = vor.u32 %v15128_v11, %v11679_v14  ;;  %v15732_v29 = vld [vmem:[%s23851_s11 + $0x13a4] sm:$0xf]  ;;  %v15750_v24 = vld [vmem:[%s23851_s11 + $0x1430] sm:$0xf0] }
 0x741   : > { %v15721_v51 = vld [vmem:[%s23851_s11 + $0x134c] sm:$0xf]  ;;  %v11591_v11 = vld [vmem:[%s23851_s11 + $0x3c] sm:$0xf0]  ;;  %v15535_v14 = vld [vmem:[%s23851_s11 + $0xd7c] sm:$0xf] }
 0x742   : > { %10598 = vmatpush.bf16.msra.mxu2 %v12698_v20  ;;  %v14281_v20 = vld [vmem:[%s23851_s11 + $0x1510] sm:$0xf]  ;;  %10764 = vmatpush.bf16.msrb.mxu3 %v13890_v60  ;;  %v15646_v60 = vld [vmem:[%s23851_s11 + $0x10f4] sm:$0xf]  ;;  %v21098_v13 = vsel %vm11223_vm3, %v20617_v42, %v11214_v7  ;;  %v15117_v42 = vld [vmem:[%s23851_s11 + $0x6c] sm:$0xf] }
 0x743   : > { %v14282_v47 = vor.u32 %v15783_v55, %v14281_v20  ;;  %v14138_v20 = vor.u32 %v15743_v4, %v14135_v30  ;;  %v10018_v55 = vpop.f32.mrf.mxu0  ;;  %v14150_v4 = vor.u32 %v15750_v24, %v14149_v62  ;;  %v12249_v7 = vld [vmem:[%s23851_s11 + $0x538] sm:$0xf]  ;;  %v13263_v62 = vld [vmem:[%s23851_s11 + $0xd4c] sm:$0xf0] }
 0x744   : > { %10256 = vmatpush.bf16.msra.mxu0 %v14270_v43  ;;  %10425 = vmatpush.bf16.msra.mxu1 %v11814_v40  ;;  %v14238_v43 = vor.u32 %v15772_v0, %v14237_v56  ;;  %v11913_v56 = vld [vmem:[%s23851_s11 + $0x288] sm:$0xf]  ;;  %v15190_v0 = vld [vmem:[%s23851_s11 + $0x2b0] sm:$0xf0]  ;;  %v15179_v55 = vld [vmem:[%s23851_s11 + $0x258] sm:$0xf0] }
 0x745   : > { %v14061_v24 = vld [vmem:[%s23851_s11 + $0x1358] sm:$0xf] }
 0x746   : > { %10599 = vmatpush.bf16.msra.mxu2 %v12654_v21  ;;  %v11723_v21 = vld [vmem:[%s23851_s11 + $0x144] sm:$0xf0]  ;;  %10765 = vmatpush.bf16.msrb.mxu3 %v13846_v25 }
 0x747   : > { %v11726_v28 = vor.u32 %v15139_v45, %v11723_v21  ;;  %v13711_v25 = vld [vmem:[%s23851_s11 + $0x10c4] sm:$0xf0]  ;;  %v10512_v45 = vpop.f32.mrf.mxu3  ;;  %v14094_v21 = vor.u32 %v15732_v29, %v14091_v18 }
 0x748   : > { %10257 = vmatpush.bf16.msra.mxu0 %v14226_v41  ;;  %10426 = vmatpush.bf16.msra.mxu1 %v11770_v8  ;;  %v10174_v41 = vpop.f32.mrf.mxu1  ;;  %v13758_v8 = vor.u32 %v15646_v60, %v13755_v38  ;;  %v15739_v38 = vld [vmem:[%s23851_s11 + $0x13d8] sm:$0xf0]  ;;  %v15168_v45 = vld [vmem:[%s23851_s11 + $0x200] sm:$0xf0] }
 0x749   : > { %10600 = vmatmul.bf16.vlgmr.msra.gmra.mxu2 %v17820_v10  ;;  %v12205_v41 = vld [vmem:[%s23851_s11 + $0x4e0] sm:$0xf] }
 0x74a   : > { %10644 = vmatpush.bf16.msrb.mxu2 %v14370_v34  ;;  %v15657_v34 = vld [vmem:[%s23851_s11 + $0x114c] sm:$0xf] }
 0x74b   : > { %v13802_v40 = vor.u32 %v15657_v34, %v13799_v39  ;;  %v11638_v39 = vor.u32 %v15117_v42, %v11635_v33  ;;  %v15524_v33 = vld [vmem:[%s23851_s11 + $0xd24] sm:$0xf] }
 0x74c   : > { %10258 = vmatpush.bf16.msra.mxu0 %v14182_v52  ;;  %10427 = vmatpush.bf16.msra.mxu1 %v11726_v28  ;;  %v21130_v34 = vpop.f32.mrf.mxu2  ;;  %v14047_v52 = vld [vmem:[%s23851_s11 + $0x1374] sm:$0xf0]  ;;  %v15106_v28 = vld [vmem:[%s23851_s11 + $0x14] sm:$0xf] }
 0x74d   : > { %10766 = vmatpush.bf16.msrb.mxu3 %v13802_v40  ;;  %v11914_v40 = vor.u32 %v15190_v0, %v11913_v56  ;;  %v14050_v60 = vor.u32 %v15721_v51, %v14047_v52  ;;  %v15272_v56 = vld [vmem:[%s23851_s11 + $0x544] sm:$0xf]  ;;  %v12259_v0 = vld [vmem:[%s23851_s11 + $0x56c] sm:$0xf0]  ;;  %v13266_v51 = vor.u32 %v15524_v33, %v13263_v62  ;;  %v15146_v33 = vld [vmem:[%s23851_s11 + $0x150] sm:$0xf0] }
 0x74e   : > { %10645 = vmatpush.bf16.msrb.mxu2 %v14326_v50  ;;  %v15761_v50 = vld [vmem:[%s23851_s11 + $0x1488] sm:$0xf0]  ;;  %v15250_v62 = vld [vmem:[%s23851_s11 + $0x494] sm:$0xf] }
 0x74f   : > { %v14194_v17 = vor.u32 %v15761_v50, %v14193_v19  ;;  %v13307_v19 = vld [vmem:[%s23851_s11 + $0xda4] sm:$0xf0]  ;;  %v14105_v50 = vld [vmem:[%s23851_s11 + $0x13b0] sm:$0xf] }
 0x750   : > { %10259 = vmatpush.bf16.msra.mxu0 %v14138_v20  ;;  %10428 = vmatpush.bf16.msra.mxu1 %v11682_v61  ;;  %v11869_v20 = vld [vmem:[%s23851_s11 + $0x230] sm:$0xf]  ;;  %v11594_v61 = vor.u32 %v15106_v28, %v11591_v11  ;;  %v13310_v18 = vor.u32 %v15535_v14, %v13307_v19  ;;  %v15513_v11 = vld [vmem:[%s23851_s11 + $0xccc] sm:$0xf] }
 0x751   : > { %10767 = vmatpush.bf16.msrb.mxu3 %v13758_v8  ;;  %v14106_v8 = vor.u32 %v15739_v38, %v14105_v50  ;;  %v11870_v42 = vor.u32 %v15179_v55, %v11869_v20  ;;  %v15157_v14 = vld [vmem:[%s23851_s11 + $0x1a8] sm:$0xf0]  ;;  %v12215_v50 = vld [vmem:[%s23851_s11 + $0x514] sm:$0xf0] }
 0x752   : > { %10646 = vmatpush.bf16.msrb.mxu2 %v14282_v47  ;;  %v15635_v47 = vld [vmem:[%s23851_s11 + $0x109c] sm:$0xf]  ;;  %v15261_v19 = vld [vmem:[%s23851_s11 + $0x4ec] sm:$0xf] }
 0x753   : > { %v13714_v30 = vor.u32 %v15635_v47, %v13711_v25  ;;  %v15728_v47 = vld [vmem:[%s23851_s11 + $0x1380] sm:$0xf0]  ;;  %v11825_v25 = vld [vmem:[%s23851_s11 + $0x1d8] sm:$0xf] }
 0x754   : > { %10260 = vmatpush.bf16.msra.mxu0 %v14094_v21  ;;  %10429 = vmatpush.bf16.msra.mxu1 %v11638_v39  ;;  %v10395_v21 = vpop.f32.mrf.mxu2  ;;  %v14062_v52 = vor.u32 %v15728_v47, %v14061_v24  ;;  %v11826_v28 = vor.u32 %v15168_v45, %v11825_v25  ;;  %v12171_v24 = vld [vmem:[%s23851_s11 + $0x4bc] sm:$0xf0]  ;;  %v10055_v45 = vpop.f32.mrf.mxu0 }
 0x755   : > { %10768 = vmatpush.bf16.msrb.mxu3 %v13714_v30  ;;  %v15254_v30 = vld [vmem:[%s23851_s11 + $0x4b0] sm:$0xf0]  ;;  %v21257_v21 = vpop.f32.mrf.mxu1 }
 0x756   : > { %10647 = vmatpush.bf16.msrb.mxu2 %v14238_v43  ;;  %v15276_v43 = vld [vmem:[%s23851_s11 + $0x560] sm:$0xf0] }
 0x757   : > { %v12250_v29 = vor.u32 %v15276_v43, %v12249_v7  ;;  %v12262_v7 = vor.u32 %v15272_v56, %v12259_v0  ;;  %v13219_v43 = vld [vmem:[%s23851_s11 + $0xcf4] sm:$0xf0] }
 0x758   : > { %10261 = vmatpush.bf16.msra.mxu0 %v14050_v60  ;;  %10430 = vmatpush.bf16.msra.mxu1 %v11594_v61  ;;  %v21228_v60 = vld [vmem:[%s23852_s12] sm:$0xff]  ;;  %v13222_v55 = vor.u32 %v15513_v11, %v13219_v43  ;;  %v15135_v11 = vld [vmem:[%s23851_s11 + $0xf8] sm:$0xf0]  ;;  %v12127_v43 = vld [vmem:[%s23851_s11 + $0x464] sm:$0xf0] }
 0x759   : > { %10813 = vmatpush.bf16.msra.mxu3 %v11914_v40  ;;  %v11781_v40 = vld [vmem:[%s23851_s11 + $0x180] sm:$0xf]  ;;  %v9753_v38 = vperm.slane %v21228_v60, 2 }
 0x75a   : > { %10648 = vmatpush.bf16.msrb.mxu2 %v14194_v17  ;;  %v15265_v17 = vld [vmem:[%s23851_s11 + $0x508] sm:$0xf0]  ;;  %10769 = vmatmul.bf16.vlgmr.msrb.gmra.mxu3 %v18229_v57  ;;  %v11782_v61 = vor.u32 %v15157_v14, %v11781_v40  ;;  %v21285_v40 = vpop.f32.mrf.mxu3 }
 0x75b   : > { %v12206_v39 = vor.u32 %v15265_v17, %v12205_v41  ;;  %10262 = vmatmul.bf16.vlgmr.msra.gmra.mxu0 %v18317_v9  ;;  %10431 = vmatmul.bf16.vlgmr.msra.gmra.mxu1 %v17804_v49  ;;  %v15502_v41 = vld [vmem:[%s23851_s11 + $0xc74] sm:$0xf]  ;;  %v12218_v17 = vor.u32 %v15261_v19, %v12215_v50  ;;  %v10043_v47 = vadd.f32 %v19711_v2, %v9753_v38  ;;  %v15491_v2 = vld [vmem:[%s23851_s11 + $0xc1c] sm:$0xf]  ;;  %v12029_v38 = vld [vmem:[%s23851_s11 + $0x380] sm:$0xf] }
 0x75c   : > { %10306 = vmatpush.bf16.msrb.mxu0 %v12250_v29  ;;  %10475 = vmatpush.bf16.msrb.mxu1 %v13310_v18  ;;  %v12117_v29 = vld [vmem:[%s23851_s11 + $0x430] sm:$0xf]  ;;  %v15243_v18 = vld [vmem:[%s23851_s11 + $0x458] sm:$0xf0] }
 0x75d   : > { %10814 = vmatpush.bf16.msra.mxu3 %v11870_v42  ;;  %v11737_v42 = vld [vmem:[%s23851_s11 + $0x128] sm:$0xf]  ;;  %v12118_v25 = vor.u32 %v15243_v18, %v12117_v29  ;;  %v13087_v29 = vld [vmem:[%s23851_s11 + $0xbec] sm:$0xf0]  ;;  %v11649_v18 = vld [vmem:[%s23851_s11 + $0x78] sm:$0xf] }
 0x75e   : > { %10649 = vmatpush.bf16.msrb.mxu2 %v14150_v4  ;;  %v12161_v4 = vld [vmem:[%s23851_s11 + $0x488] sm:$0xf]  ;;  %v11738_v0 = vor.u32 %v15146_v33, %v11737_v42 }
 0x75f   : > { %v12162_v20 = vor.u32 %v15254_v30, %v12161_v4  ;;  %v13131_v4 = vld [vmem:[%s23851_s11 + $0xc44] sm:$0xf0]  ;;  %v11693_v30 = vld [vmem:[%s23851_s11 + $0xd0] sm:$0xf] }
 0x760   : > { %10307 = vmatpush.bf16.msrb.mxu0 %v12206_v39  ;;  %10476 = vmatpush.bf16.msrb.mxu1 %v13266_v51  ;;  %v12073_v39 = vld [vmem:[%s23851_s11 + $0x3d8] sm:$0xf]  ;;  %v15232_v51 = vld [vmem:[%s23851_s11 + $0x400] sm:$0xf0]  ;;  %v13134_v19 = vor.u32 %v15491_v2, %v13131_v4  ;;  %v11694_v50 = vor.u32 %v15135_v11, %v11693_v30  ;;  %v11985_v33 = vld [vmem:[%s23851_s11 + $0x328] sm:$0xf] }
 0x761   : > { %10815 = vmatpush.bf16.msra.mxu3 %v11826_v28  ;;  %v12174_v28 = vor.u32 %v15250_v62, %v12171_v24  ;;  %v12074_v14 = vor.u32 %v15232_v51, %v12073_v39  ;;  %v10057_v62 = vpop.f32.mrf.mxu0  ;;  %v10226_v24 = vpop.f32.mrf.mxu1  ;;  %v15217_v51 = vld [vmem:[%s23851_s11 + $0x38c] sm:$0xf]  ;;  %v11605_v2 = vld [vmem:[%s23851_s11 + $0x20] sm:$0xf]  ;;  %v12039_v4 = vld [vmem:[%s23851_s11 + $0x3b4] sm:$0xf0] }
 0x762   : > { %10650 = vmatpush.bf16.msrb.mxu2 %v14106_v8  ;;  %v13175_v8 = vld [vmem:[%s23851_s11 + $0xc9c] sm:$0xf0]  ;;  %v13321_v30 = vld [vmem:[%s23851_s11 + $0xd88] sm:$0xf]  ;;  %v15542_v11 = vld [vmem:[%s23851_s11 + $0xdb0] sm:$0xf0] }
 0x763   : > { %v13178_v56 = vor.u32 %v15502_v41, %v13175_v8  ;;  %v15124_v41 = vld [vmem:[%s23851_s11 + $0xa0] sm:$0xf0]  ;;  %v12083_v8 = vld [vmem:[%s23851_s11 + $0x40c] sm:$0xf0]  ;;  %v11995_v62 = vld [vmem:[%s23851_s11 + $0x35c] sm:$0xf0] }
 0x764   : > { %10308 = vmatpush.bf16.msrb.mxu0 %v12162_v20  ;;  %10477 = vmatpush.bf16.msrb.mxu1 %v13222_v55  ;;  %v15221_v20 = vld [vmem:[%s23851_s11 + $0x3a8] sm:$0xf0]  ;;  %v15480_v55 = vld [vmem:[%s23851_s11 + $0xbc4] sm:$0xf] }
 0x765   : > { %10816 = vmatpush.bf16.msra.mxu3 %v11782_v61  ;;  %v12030_v42 = vor.u32 %v15221_v20, %v12029_v38  ;;  %v15199_v20 = vld [vmem:[%s23851_s11 + $0x2f8] sm:$0xf0] }
 0x766   : > { %10651 = vmatpush.bf16.msrb.mxu2 %v14062_v52  ;;  %v21268_v52 = vadd.f32 %v10055_v45, %v10043_v47  ;;  %v13090_v47 = vor.u32 %v15480_v55, %v13087_v29  ;;  %v15210_v45 = vld [vmem:[%s23851_s11 + $0x350] sm:$0xf0]  ;;  %v12042_v29 = vor.u32 %v15217_v51, %v12039_v4  ;;  %v14671_v4 = vld [vmem:[%s23851_s11 + $0x184c] sm:$0xf0] }
 0x767   : > { %v15458_v55 = vld [vmem:[%s23851_s11 + $0xb14] sm:$0xf] }
 0x768   : > { %10309 = vmatpush.bf16.msrb.mxu0 %v12118_v25  ;;  %10478 = vmatpush.bf16.msrb.mxu1 %v13178_v56  ;;  %v11650_v25 = vor.u32 %v15124_v41, %v11649_v18  ;;  %v15469_v56 = vld [vmem:[%s23851_s11 + $0xb6c] sm:$0xf]  ;;  %v13322_v18 = vor.u32 %v15542_v11, %v13321_v30  ;;  %v13657_v41 = vld [vmem:[%s23851_s11 + $0x1038] sm:$0xf]  ;;  %v15195_v11 = vld [vmem:[%s23851_s11 + $0x2dc] sm:$0xf] }
 0x769   : > { %10652 = vmatmul.bf16.vlgmr.msrb.gmra.mxu2 %v18317_v9  ;;  %10817 = vmatpush.bf16.msra.mxu3 %v11738_v0  ;;  %v13043_v0 = vld [vmem:[%s23851_s11 + $0xb94] sm:$0xf0] }
 0x76a   : > { %10696 = vmatpush.bf16.msra.mxu2 %v12262_v7  ;;  %v15239_v7 = vld [vmem:[%s23851_s11 + $0x43c] sm:$0xf] }
 0x76b   : > { %v12130_v61 = vor.u32 %v15239_v7, %v12127_v43  ;;  %v10564_v7 = vpop.f32.mrf.mxu3  ;;  %v11986_v43 = vor.u32 %v15210_v45, %v11985_v33  ;;  %v15206_v33 = vld [vmem:[%s23851_s11 + $0x334] sm:$0xf] }
 0x76c   : > { %10310 = vmatpush.bf16.msrb.mxu0 %v12074_v14  ;;  %10479 = vmatpush.bf16.msrb.mxu1 %v13134_v19  ;;  %v11941_v14 = vld [vmem:[%s23851_s11 + $0x2d0] sm:$0xf]  ;;  %v21344_v19 = vpop.f32.mrf.mxu2  ;;  %v11998_v51 = vor.u32 %v15206_v33, %v11995_v62  ;;  %v11951_v7 = vld [vmem:[%s23851_s11 + $0x304] sm:$0xf0]  ;;  %v15613_v33 = vld [vmem:[%s23851_s11 + $0xfec] sm:$0xf] }
 0x76d   : > { %10818 = vmatpush.bf16.msra.mxu3 %v11694_v50  ;;  %v13046_v50 = vor.u32 %v15469_v56, %v13043_v0  ;;  %v11942_v24 = vor.u32 %v15199_v20, %v11941_v14  ;;  %v13613_v0 = vld [vmem:[%s23851_s11 + $0xfe0] sm:$0xf]  ;;  %v13667_v14 = vld [vmem:[%s23851_s11 + $0x106c] sm:$0xf0]  ;;  %v10069_v20 = vadd.f32 %v20732_v59, %v21268_v52  ;;  %v13623_v62 = vld [vmem:[%s23851_s11 + $0x1014] sm:$0xf0] }
 0x76e   : > { %10697 = vmatpush.bf16.msra.mxu2 %v12218_v17  ;;  %v15228_v17 = vld [vmem:[%s23851_s11 + $0x3e4] sm:$0xf] }
 0x76f   : > { %v12086_v39 = vor.u32 %v15228_v17, %v12083_v8  ;;  %v15628_v17 = vld [vmem:[%s23851_s11 + $0x1060] sm:$0xf0]  ;;  %v15887_v8 = vld [vmem:[%s23851_s11 + $0x187c] sm:$0xf] }
 0x770   : > { %10311 = vmatpush.bf16.msrb.mxu0 %v12030_v42  ;;  %10480 = vmatpush.bf16.msrb.mxu1 %v13090_v47  ;;  %v14715_v42 = vld [vmem:[%s23851_s11 + $0x18a4] sm:$0xf0]  ;;  %v13277_v47 = vld [vmem:[%s23851_s11 + $0xd30] sm:$0xf]  ;;  %v13658_v56 = vor.u32 %v15628_v17, %v13657_v41  ;;  %v15606_v17 = vld [vmem:[%s23851_s11 + $0xfb0] sm:$0xf0] }
 0x771   : > { %10819 = vmatpush.bf16.msra.mxu3 %v11650_v25  ;;  %v15531_v25 = vld [vmem:[%s23851_s11 + $0xd58] sm:$0xf0]  ;;  %v13569_v41 = vld [vmem:[%s23851_s11 + $0xf88] sm:$0xf] }
 0x772   : > { %10698 = vmatpush.bf16.msra.mxu2 %v12174_v28  ;;  %v15113_v28 = vld [vmem:[%s23851_s11 + $0x48] sm:$0xf0]  ;;  %v13278_v30 = vor.u32 %v15531_v25, %v13277_v47  ;;  %v13570_v25 = vor.u32 %v15606_v17, %v13569_v41  ;;  %v15843_v41 = vld [vmem:[%s23851_s11 + $0x171c] sm:$0xf]  ;;  %v14539_v17 = vld [vmem:[%s23851_s11 + $0x1744] sm:$0xf0] }
 0x773   : > { %v11606_v38 = vor.u32 %v15113_v28, %v11605_v2  ;;  %v15617_v2 = vld [vmem:[%s23851_s11 + $0x1008] sm:$0xf0]  ;;  %v15876_v28 = vld [vmem:[%s23851_s11 + $0x1824] sm:$0xf] }
 0x774   : > { %10312 = vmatpush.bf16.msrb.mxu0 %v11986_v43  ;;  %10481 = vmatpush.bf16.msrb.mxu1 %v13046_v50  ;;  %v15624_v43 = vld [vmem:[%s23851_s11 + $0x1044] sm:$0xf]  ;;  %v13233_v50 = vld [vmem:[%s23851_s11 + $0xcd8] sm:$0xf]  ;;  %v15509_v47 = vld [vmem:[%s23851_s11 + $0xca8] sm:$0xf0] }
 0x775   : > { %10820 = vmatpush.bf16.msra.mxu3 %v11606_v38  ;;  %v15520_v38 = vld [vmem:[%s23851_s11 + $0xd00] sm:$0xf0]  ;;  %v13670_v59 = vor.u32 %v15624_v43, %v13667_v14 }
 0x776   : > { %10699 = vmatpush.bf16.msra.mxu2 %v12130_v61  ;;  %v12999_v61 = vld [vmem:[%s23851_s11 + $0xb3c] sm:$0xf0]  ;;  %v13234_v52 = vor.u32 %v15520_v38, %v13233_v50  ;;  %v10107_v50 = vpop.f32.mrf.mxu0 }
 0x777   : > { %v13002_v45 = vor.u32 %v15458_v55, %v12999_v61  ;;  %v10447_v55 = vpop.f32.mrf.mxu2  ;;  %v13614_v61 = vor.u32 %v15617_v2, %v13613_v0  ;;  %v13525_v0 = vld [vmem:[%s23851_s11 + $0xf30] sm:$0xf] }
 0x778   : > { %10313 = vmatpush.bf16.msrb.mxu0 %v11942_v24  ;;  %10821 = vmatmul.bf16.vlgmr.msra.gmra.mxu3 %v17804_v49  ;;  %v13189_v24 = vld [vmem:[%s23851_s11 + $0xc80] sm:$0xf]  ;;  %v15584_v55 = vld [vmem:[%s23851_s11 + $0xf00] sm:$0xf0] }
 0x779   : > { %10865 = vmatpush.bf16.msrb.mxu3 %v13322_v18  ;;  %10482 = vmatpush.bf16.msrb.mxu1 %v13002_v45  ;;  %v11954_v18 = vor.u32 %v15195_v11, %v11951_v7  ;;  %v10082_v45 = vadd.f32 %v19915_v63, %v10069_v20  ;;  %v13190_v2 = vor.u32 %v15509_v47, %v13189_v24  ;;  %v14583_v63 = vld [vmem:[%s23851_s11 + $0x179c] sm:$0xf0]  ;;  %v13145_v11 = vld [vmem:[%s23851_s11 + $0xc28] sm:$0xf]  ;;  %v15498_v7 = vld [vmem:[%s23851_s11 + $0xc50] sm:$0xf0] }
 0x77a   : > { %10700 = vmatpush.bf16.msra.mxu2 %v12086_v39  ;;  %v14718_v39 = vor.u32 %v15887_v8, %v14715_v42  ;;  %v15865_v8 = vld [vmem:[%s23851_s11 + $0x17cc] sm:$0xf]  ;;  %v14627_v42 = vld [vmem:[%s23851_s11 + $0x17f4] sm:$0xf0]  ;;  %v14542_v24 = vor.u32 %v15843_v41, %v14539_v17  ;;  %v13437_v47 = vld [vmem:[%s23851_s11 + $0xe80] sm:$0xf] }
 0x77b   : > { %10314 = vmatmul.bf16.vlgmr.msrb.gmra.mxu0 %v18243_v54  ;;  %v10095_v43 = vadd.f32 %v19679_v53, %v10082_v45  ;;  %v13481_v20 = vld [vmem:[%s23851_s11 + $0xed8] sm:$0xf]  ;;  %v13146_v53 = vor.u32 %v15498_v7, %v13145_v11  ;;  %v13393_v7 = vld [vmem:[%s23851_s11 + $0xe28] sm:$0xf]  ;;  %v13013_v41 = vld [vmem:[%s23851_s11 + $0xb20] sm:$0xf] }
 0x77c   : > { %10358 = vmatpush.bf16.msra.mxu0 %v13658_v56  ;;  %10483 = vmatmul.bf16.vlgmr.msrb.gmra.mxu1 %v18277_v32  ;;  %v14630_v56 = vor.u32 %v15865_v8, %v14627_v42  ;;  %v13101_v8 = vld [vmem:[%s23851_s11 + $0xbd0] sm:$0xf]  ;;  %v15487_v42 = vld [vmem:[%s23851_s11 + $0xbf8] sm:$0xf0]  ;;  %v15465_v17 = vld [vmem:[%s23851_s11 + $0xb48] sm:$0xf0] }
 0x77d   : > { %10527 = vmatpush.bf16.msra.mxu1 %v14718_v39  ;;  %10866 = vmatpush.bf16.msrb.mxu3 %v13278_v30  ;;  %v15595_v39 = vld [vmem:[%s23851_s11 + $0xf58] sm:$0xf0]  ;;  %v13579_v30 = vld [vmem:[%s23851_s11 + $0xfbc] sm:$0xf0] }
 0x77e   : > { %10701 = vmatpush.bf16.msra.mxu2 %v12042_v29  ;;  %v14674_v29 = vor.u32 %v15876_v28, %v14671_v4  ;;  %v15854_v28 = vld [vmem:[%s23851_s11 + $0x1774] sm:$0xf]  ;;  %v13526_v14 = vor.u32 %v15595_v39, %v13525_v0  ;;  %v15832_v0 = vld [vmem:[%s23851_s11 + $0x16c4] sm:$0xf]  ;;  %v14495_v39 = vld [vmem:[%s23851_s11 + $0x16ec] sm:$0xf0] }
 0x77f   : > { %v15602_v4 = vld [vmem:[%s23851_s11 + $0xf94] sm:$0xf]  ;;  %v14586_v38 = vor.u32 %v15854_v28, %v14583_v63  ;;  %v13057_v28 = vld [vmem:[%s23851_s11 + $0xb78] sm:$0xf]  ;;  %v15476_v63 = vld [vmem:[%s23851_s11 + $0xba0] sm:$0xf0]  ;;  %v14498_v11 = vor.u32 %v15832_v0, %v14495_v39  ;;  %v13014_v0 = vor.u32 %v15465_v17, %v13013_v41 }
 0x780   : > { %10359 = vmatpush.bf16.msra.mxu0 %v13614_v61  ;;  %v21471_v61 = vadd.f32 %v10107_v50, %v10095_v43  ;;  %v15562_v43 = vld [vmem:[%s23851_s11 + $0xe50] sm:$0xf0]  ;;  %v14407_v39 = vld [vmem:[%s23851_s11 + $0x163c] sm:$0xf0]  ;;  %v12565_v17 = vld [vmem:[%s23851_s11 + $0x7a8] sm:$0xf] }
 0x781   : > { %10528 = vmatpush.bf16.msra.mxu1 %v14674_v29  ;;  %10867 = vmatpush.bf16.msrb.mxu3 %v13234_v52  ;;  %v21473_v29 = vpop.f32.mrf.mxu1  ;;  %v13535_v52 = vld [vmem:[%s23851_s11 + $0xf64] sm:$0xf0] }
 0x782   : > { %10702 = vmatpush.bf16.msra.mxu2 %v11998_v51  ;;  %v13626_v51 = vor.u32 %v15613_v33, %v13623_v62  ;;  %v21493_v33 = vpop.f32.mrf.mxu3  ;;  %v13482_v62 = vor.u32 %v15584_v55, %v13481_v20  ;;  %v15821_v20 = vld [vmem:[%s23851_s11 + $0x166c] sm:$0xf]  ;;  %v14451_v55 = vld [vmem:[%s23851_s11 + $0x1694] sm:$0xf0] }
 0x784   : > { %10360 = vmatpush.bf16.msra.mxu0 %v13570_v25  ;;  %v15573_v25 = vld [vmem:[%s23851_s11 + $0xea8] sm:$0xf0] }
 0x785   : > { %10529 = vmatpush.bf16.msra.mxu1 %v14630_v56  ;;  %10868 = vmatpush.bf16.msrb.mxu3 %v13190_v2  ;;  %v13102_v56 = vor.u32 %v15487_v42, %v13101_v8  ;;  %v13491_v2 = vld [vmem:[%s23851_s11 + $0xf0c] sm:$0xf0]  ;;  %v14729_v8 = vld [vmem:[%s23851_s11 + $0x1888] sm:$0xf]  ;;  %v15894_v42 = vld [vmem:[%s23851_s11 + $0x18b0] sm:$0xf0] }
 0x786   : > { %10703 = vmatpush.bf16.msra.mxu2 %v11954_v18  ;;  %v13582_v18 = vor.u32 %v15602_v4, %v13579_v30  ;;  %v13438_v4 = vor.u32 %v15573_v25, %v13437_v47  ;;  %v10109_v30 = vpop.f32.mrf.mxu0  ;;  %v13349_v47 = vld [vmem:[%s23851_s11 + $0xdd0] sm:$0xf]  ;;  %v15551_v25 = vld [vmem:[%s23851_s11 + $0xdf8] sm:$0xf0] }
 0x787   : > { %v15558_v30 = vld [vmem:[%s23851_s11 + $0xe34] sm:$0xf] }
 0x788   : > { %10361 = vmatpush.bf16.msra.mxu0 %v13526_v14 }
 0x789   : > { %10704 = vmatmul.bf16.vlgmr.msra.gmra.mxu2 %v18243_v54  ;;  %10530 = vmatpush.bf16.msra.mxu1 %v14586_v38  ;;  %v10278_v14 = vpop.f32.mrf.mxu1  ;;  %v13058_v38 = vor.u32 %v15476_v63, %v13057_v28  ;;  %v14730_v28 = vor.u32 %v15894_v42, %v14729_v8  ;;  %v12609_v63 = vld [vmem:[%s23851_s11 + $0x800] sm:$0xf]  ;;  %v13359_v8 = vld [vmem:[%s23851_s11 + $0xe04] sm:$0xf0]  ;;  %v14641_v42 = vld [vmem:[%s23851_s11 + $0x17d8] sm:$0xf] }
 0x78a   : > { %10748 = vmatpush.bf16.msrb.mxu2 %v13670_v59  ;;  %v15591_v59 = vld [vmem:[%s23851_s11 + $0xf3c] sm:$0xf]  ;;  %10869 = vmatpush.bf16.msrb.mxu3 %v13146_v53  ;;  %v13447_v53 = vld [vmem:[%s23851_s11 + $0xeb4] sm:$0xf0] }
 0x78b   : > { %v13538_v45 = vor.u32 %v15591_v59, %v13535_v52  ;;  %v10616_v59 = vpop.f32.mrf.mxu3  ;;  %v13394_v52 = vor.u32 %v15562_v43, %v13393_v7  ;;  %v13403_v7 = vld [vmem:[%s23851_s11 + $0xe5c] sm:$0xf0]  ;;  %v14685_v43 = vld [vmem:[%s23851_s11 + $0x1830] sm:$0xf]  ;;  %v15883_v14 = vld [vmem:[%s23851_s11 + $0x1858] sm:$0xf0] }
 0x78c   : > { %10362 = vmatpush.bf16.msra.mxu0 %v13482_v62  ;;  %v21549_v62 = vpop.f32.mrf.mxu2  ;;  %v14686_v41 = vor.u32 %v15883_v14, %v14685_v43  ;;  %v15354_v59 = vld [vmem:[%s23851_s11 + $0x7d0] sm:$0xf0]  ;;  %v15031_v43 = vld [vmem:[%s23851_s11 + $0x1b14] sm:$0xf0] }
 0x78d   : > { %10531 = vmatpush.bf16.msra.mxu1 %v14542_v24  ;;  %v14454_v24 = vor.u32 %v15821_v20, %v14451_v55  ;;  %v15021_v55 = vld [vmem:[%s23851_s11 + $0x1ae0] sm:$0xf] }
 0x78e   : > { %10749 = vmatpush.bf16.msrb.mxu2 %v13626_v51  ;;  %v15580_v51 = vld [vmem:[%s23851_s11 + $0xee4] sm:$0xf]  ;;  %10870 = vmatpush.bf16.msrb.mxu3 %v13102_v56 }
 0x78f   : > { %v13494_v50 = vor.u32 %v15580_v51, %v13491_v2  ;;  %v15065_v51 = vld [vmem:[%s23851_s11 + $0x1b38] sm:$0xf]  ;;  %v15980_v2 = vld [vmem:[%s23851_s11 + $0x1b60] sm:$0xf0] }
 0x790   : > { %10363 = vmatpush.bf16.msra.mxu0 %v13438_v4  ;;  %v15365_v4 = vld [vmem:[%s23851_s11 + $0x828] sm:$0xf0] }
 0x791   : > { %10532 = vmatpush.bf16.msra.mxu1 %v14498_v11  ;;  %v13350_v11 = vor.u32 %v15551_v25, %v13349_v47  ;;  %v12610_v20 = vor.u32 %v15365_v4, %v12609_v63  ;;  %v15976_v25 = vld [vmem:[%s23851_s11 + $0x1b44] sm:$0xf]  ;;  %v15958_v63 = vld [vmem:[%s23851_s11 + $0x1ab0] sm:$0xf0]  ;;  %v15343_v4 = vld [vmem:[%s23851_s11 + $0x778] sm:$0xf0] }
 0x792   : > { %10750 = vmatpush.bf16.msrb.mxu2 %v13582_v18  ;;  %v15569_v18 = vld [vmem:[%s23851_s11 + $0xe8c] sm:$0xf]  ;;  %10871 = vmatpush.bf16.msrb.mxu3 %v13058_v38  ;;  %v15066_v38 = vor.u32 %v15980_v2, %v15065_v51 }
 0x793   : > { %v13450_v56 = vor.u32 %v15569_v18, %v13447_v53  ;;  %v15969_v18 = vld [vmem:[%s23851_s11 + $0x1b08] sm:$0xf0]  ;;  %v13406_v53 = vor.u32 %v15558_v30, %v13403_v7  ;;  %v14597_v30 = vld [vmem:[%s23851_s11 + $0x1780] sm:$0xf] }
 0x794   : > { %10364 = vmatpush.bf16.msra.mxu0 %v13394_v52  ;;  %v15547_v52 = vld [vmem:[%s23851_s11 + $0xddc] sm:$0xf]  ;;  %v10499_v47 = vpop.f32.mrf.mxu2  ;;  %v15965_v7 = vld [vmem:[%s23851_s11 + $0x1aec] sm:$0xf] }
 0x795   : > { %10533 = vmatpush.bf16.msra.mxu1 %v14454_v24  ;;  %v15872_v24 = vld [vmem:[%s23851_s11 + $0x1800] sm:$0xf0]  ;;  %v13362_v51 = vor.u32 %v15547_v52, %v13359_v8  ;;  %v15954_v52 = vld [vmem:[%s23851_s11 + $0x1a94] sm:$0xf]  ;;  %v14987_v8 = vld [vmem:[%s23851_s11 + $0x1abc] sm:$0xf0] }
 0x796   : > { %10751 = vmatpush.bf16.msrb.mxu2 %v13538_v45  ;;  %v15810_v45 = vld [vmem:[%s23851_s11 + $0x1614] sm:$0xf]  ;;  %10872 = vmatpush.bf16.msrb.mxu3 %v13014_v0  ;;  %v15022_v0 = vor.u32 %v15969_v18, %v15021_v55  ;;  %v14642_v2 = vor.u32 %v15872_v24, %v14641_v42  ;;  %v14933_v55 = vld [vmem:[%s23851_s11 + $0x1a30] sm:$0xf]  ;;  %v15947_v18 = vld [vmem:[%s23851_s11 + $0x1a58] sm:$0xf0] }
 0x797   : > { %v14934_v24 = vor.u32 %v15947_v18, %v14933_v55  ;;  %v15310_v55 = vld [vmem:[%s23851_s11 + $0x670] sm:$0xf0]  ;;  %v14465_v18 = vld [vmem:[%s23851_s11 + $0x1678] sm:$0xf] }
 0x798   : > { %10365 = vmatpush.bf16.msra.mxu0 %v13350_v11  ;;  %v15861_v11 = vld [vmem:[%s23851_s11 + $0x17a8] sm:$0xf0]  ;;  %v10159_v47 = vpop.f32.mrf.mxu0 }
 0x799   : > { %10873 = vmatmul.bf16.vlgmr.msrb.gmra.mxu3 %v18277_v32 }
 0x79a   : > { %10752 = vmatpush.bf16.msrb.mxu2 %v13494_v50  ;;  %v14410_v50 = vor.u32 %v15810_v45, %v14407_v39  ;;  %10917 = vmatpush.bf16.msra.mxu3 %v14730_v28  ;;  %v15075_v45 = vld [vmem:[%s23851_s11 + $0x1b6c] sm:$0xf0]  ;;  %v12566_v39 = vor.u32 %v15354_v59, %v12565_v17  ;;  %v14977_v28 = vld [vmem:[%s23851_s11 + $0x1a88] sm:$0xf]  ;;  %v15850_v59 = vld [vmem:[%s23851_s11 + $0x1750] sm:$0xf0] }
 0x79b   : > { %10366 = vmatmul.bf16.vlgmr.msra.gmra.mxu0 %v18659_v26  ;;  %v14978_v14 = vor.u32 %v15958_v63, %v14977_v28  ;;  %v14553_v17 = vld [vmem:[%s23851_s11 + $0x1728] sm:$0xf]  ;;  %v15321_v28 = vld [vmem:[%s23851_s11 + $0x6c8] sm:$0xf0]  ;;  %v14509_v63 = vld [vmem:[%s23851_s11 + $0x16d0] sm:$0xf] }
 0x79c   : > { %10534 = vmatpush.bf16.msra.mxu1 %v14410_v50  ;;  %10410 = vmatpush.bf16.msrb.mxu0 %v15066_v38 }
 0x79e   : > { %10753 = vmatpush.bf16.msrb.mxu2 %v13450_v56  ;;  %v10121_v56 = vadd.f32 %v20836_v23, %v21471_v61  ;;  %10918 = vmatpush.bf16.msra.mxu3 %v14686_v41  ;;  %v12521_v23 = vld [vmem:[%s23851_s11 + $0x750] sm:$0xf]  ;;  %v15078_v61 = vor.u32 %v15976_v25, %v15075_v45  ;;  %v15034_v41 = vor.u32 %v15965_v7, %v15031_v43  ;;  %v21673_v25 = vpop.f32.mrf.mxu1 }
 0x79f   : > { %10535 = vmatmul.bf16.vlgmr.msra.gmra.mxu1 %v18691_v16  ;;  %v12522_v38 = vor.u32 %v15343_v4, %v12521_v23  ;;  %v15839_v23 = vld [vmem:[%s23851_s11 + $0x16f8] sm:$0xf0]  ;;  %v14943_v4 = vld [vmem:[%s23851_s11 + $0x1a64] sm:$0xf0] }
 0x7a0   : > { %10579 = vmatpush.bf16.msrb.mxu1 %v12610_v20  ;;  %10411 = vmatpush.bf16.msrb.mxu0 %v15022_v0  ;;  %v10134_v50 = vadd.f32 %v20109_v15, %v10121_v56  ;;  %v14598_v20 = vor.u32 %v15861_v11, %v14597_v30  ;;  %v15332_v15 = vld [vmem:[%s23851_s11 + $0x720] sm:$0xf0]  ;;  %v14554_v56 = vor.u32 %v15850_v59, %v14553_v17  ;;  %v14889_v0 = vld [vmem:[%s23851_s11 + $0x19d8] sm:$0xf]  ;;  %v21701_v30 = vpop.f32.mrf.mxu3  ;;  %v14801_v59 = vld [vmem:[%s23851_s11 + $0x1928] sm:$0xf] }
 0x7a1   : > { %v14510_v43 = vor.u32 %v15839_v23, %v14509_v63  ;;  %v15361_v63 = vld [vmem:[%s23851_s11 + $0x80c] sm:$0xf]  ;;  %v12619_v23 = vld [vmem:[%s23851_s11 + $0x834] sm:$0xf0] }
 0x7a2   : > { %10754 = vmatpush.bf16.msrb.mxu2 %v13406_v53  ;;  %10919 = vmatpush.bf16.msra.mxu3 %v14642_v2  ;;  %v12477_v53 = vld [vmem:[%s23851_s11 + $0x6f8] sm:$0xf]  ;;  %v10147_v42 = vadd.f32 %v19752_v36, %v10134_v50  ;;  %v12433_v36 = vld [vmem:[%s23851_s11 + $0x6a0] sm:$0xf]  ;;  %v14990_v2 = vor.u32 %v15954_v52, %v14987_v8  ;;  %v15925_v50 = vld [vmem:[%s23851_s11 + $0x19a8] sm:$0xf0]  ;;  %v10161_v52 = vpop.f32.mrf.mxu0 }
 0x7a3   : > { %v12478_v45 = vor.u32 %v15332_v15, %v12477_v53  ;;  %v12434_v7 = vor.u32 %v15321_v28, %v12433_v36  ;;  %v15828_v53 = vld [vmem:[%s23851_s11 + $0x16a0] sm:$0xf0]  ;;  %v14899_v15 = vld [vmem:[%s23851_s11 + $0x1a0c] sm:$0xf0]  ;;  %v14421_v36 = vld [vmem:[%s23851_s11 + $0x1620] sm:$0xf] }
 0x7a4   : > { %10580 = vmatpush.bf16.msrb.mxu1 %v12566_v39  ;;  %10412 = vmatpush.bf16.msrb.mxu0 %v14978_v14  ;;  %v15936_v39 = vld [vmem:[%s23851_s11 + $0x1a00] sm:$0xf0]  ;;  %v14845_v14 = vld [vmem:[%s23851_s11 + $0x1980] sm:$0xf]  ;;  %v14855_v28 = vld [vmem:[%s23851_s11 + $0x19b4] sm:$0xf0] }
 0x7a5   : > { %v14890_v11 = vor.u32 %v15936_v39, %v14889_v0  ;;  %v14846_v17 = vor.u32 %v15925_v50, %v14845_v14  ;;  %v15921_v39 = vld [vmem:[%s23851_s11 + $0x198c] sm:$0xf]  ;;  %v15903_v50 = vld [vmem:[%s23851_s11 + $0x18f8] sm:$0xf0]  ;;  %v14811_v52 = vld [vmem:[%s23851_s11 + $0x195c] sm:$0xf0] }
 0x7a6   : > { %10755 = vmatpush.bf16.msrb.mxu2 %v13362_v51  ;;  %10920 = vmatpush.bf16.msra.mxu3 %v14598_v20  ;;  %v21684_v51 = vadd.f32 %v10159_v47, %v10147_v42  ;;  %v10330_v8 = vpop.f32.mrf.mxu1  ;;  %v15914_v47 = vld [vmem:[%s23851_s11 + $0x1950] sm:$0xf0] }
 0x7a8   : > { %10581 = vmatpush.bf16.msrb.mxu1 %v12522_v38  ;;  %10413 = vmatpush.bf16.msrb.mxu0 %v14934_v24  ;;  %v12389_v38 = vld [vmem:[%s23851_s11 + $0x648] sm:$0xf]  ;;  %v14466_v24 = vor.u32 %v15828_v53, %v14465_v18  ;;  %v12622_v18 = vor.u32 %v15361_v63, %v12619_v23  ;;  %v15447_v53 = vld [vmem:[%s23851_s11 + $0xabc] sm:$0xf] }
 0x7a9   : > { %10756 = vmatmul.bf16.vlgmr.msrb.gmra.mxu2 %v18659_v26  ;;  %v12390_v42 = vor.u32 %v15310_v55, %v12389_v38  ;;  %v12301_v38 = vld [vmem:[%s23851_s11 + $0x598] sm:$0xf]  ;;  %v14858_v55 = vor.u32 %v15921_v39, %v14855_v28  ;;  %v15706_v28 = vld [vmem:[%s23851_s11 + $0x12d0] sm:$0xf0]  ;;  %v15899_v23 = vld [vmem:[%s23851_s11 + $0x18dc] sm:$0xf] }
 0x7aa   : > { %10800 = vmatpush.bf16.msra.mxu2 %v15078_v61  ;;  %v15943_v61 = vld [vmem:[%s23851_s11 + $0x1a3c] sm:$0xf]  ;;  %10921 = vmatpush.bf16.msra.mxu3 %v14554_v56 }
 0x7ab   : > { %v14946_v20 = vor.u32 %v15943_v61, %v14943_v4  ;;  %v15299_v56 = vld [vmem:[%s23851_s11 + $0x618] sm:$0xf0]  ;;  %v10668_v61 = vpop.f32.mrf.mxu3  ;;  %v14802_v4 = vor.u32 %v15914_v47, %v14801_v59  ;;  %v15910_v59 = vld [vmem:[%s23851_s11 + $0x1934] sm:$0xf]  ;;  %v9754_v47 = vperm.slane %v21228_v60, 3 }
 0x7ac   : > { %10582 = vmatpush.bf16.msrb.mxu1 %v12478_v45  ;;  %10414 = vmatpush.bf16.msrb.mxu0 %v14890_v11  ;;  %v12345_v45 = vld [vmem:[%s23851_s11 + $0x5f0] sm:$0xf]  ;;  %v13973_v60 = vld [vmem:[%s23851_s11 + $0x12a8] sm:$0xf] }
 0x7ad   : > { %v14757_v11 = vld [vmem:[%s23851_s11 + $0x18d0] sm:$0xf]  ;;  %v14767_v61 = vld [vmem:[%s23851_s11 + $0x1904] sm:$0xf0] }
 0x7ae   : > { %10801 = vmatpush.bf16.msra.mxu2 %v15034_v41  ;;  %v15932_v41 = vld [vmem:[%s23851_s11 + $0x19e4] sm:$0xf]  ;;  %10922 = vmatpush.bf16.msra.mxu3 %v14510_v43  ;;  %v12346_v43 = vor.u32 %v15299_v56, %v12345_v45  ;;  %v14758_v8 = vor.u32 %v15903_v50, %v14757_v11  ;;  %v15454_v11 = vld [vmem:[%s23851_s11 + $0xaf0] sm:$0xf0]  ;;  %v10173_v50 = vadd.f32 %v21049_v44, %v9754_v47 }
 0x7af   : > { %v14902_v0 = vor.u32 %v15932_v41, %v14899_v15  ;;  %v12955_v41 = vld [vmem:[%s23851_s11 + $0xae4] sm:$0xf0]  ;;  %v14017_v15 = vld [vmem:[%s23851_s11 + $0x1300] sm:$0xf] }
 0x7b0   : > { %10583 = vmatpush.bf16.msrb.mxu1 %v12434_v7  ;;  %10415 = vmatpush.bf16.msrb.mxu0 %v14846_v17  ;;  %v21760_v7 = vpop.f32.mrf.mxu2  ;;  %v15717_v17 = vld [vmem:[%s23851_s11 + $0x1328] sm:$0xf0]  ;;  %v12958_v56 = vor.u32 %v15447_v53, %v12955_v41  ;;  %v12867_v41 = vld [vmem:[%s23851_s11 + $0xa34] sm:$0xf0]  ;;  %v10186_v47 = vadd.f32 %v20306_v6, %v10173_v50  ;;  %v15403_v50 = vld [vmem:[%s23851_s11 + $0x95c] sm:$0xf] }
 0x7b1   : > { %v14018_v39 = vor.u32 %v15717_v17, %v14017_v15  ;;  %v15425_v53 = vld [vmem:[%s23851_s11 + $0xa0c] sm:$0xf]  ;;  %v13929_v17 = vld [vmem:[%s23851_s11 + $0x1250] sm:$0xf]  ;;  %v13885_v6 = vld [vmem:[%s23851_s11 + $0x11f8] sm:$0xf] }
 0x7b2   : > { %10802 = vmatpush.bf16.msra.mxu2 %v14990_v2  ;;  %v15817_v2 = vld [vmem:[%s23851_s11 + $0x1648] sm:$0xf0]  ;;  %10923 = vmatpush.bf16.msra.mxu3 %v14466_v24  ;;  %v12575_v24 = vld [vmem:[%s23851_s11 + $0x7dc] sm:$0xf0] }
 0x7b3   : > { %v14422_v14 = vor.u32 %v15817_v2, %v14421_v36  ;;  %v14814_v36 = vor.u32 %v15910_v59, %v14811_v52  ;;  %v12911_v2 = vld [vmem:[%s23851_s11 + $0xa8c] sm:$0xf0]  ;;  %v15695_v59 = vld [vmem:[%s23851_s11 + $0x1278] sm:$0xf0] }
 0x7b4   : > { %10584 = vmatpush.bf16.msrb.mxu1 %v12390_v42  ;;  %10416 = vmatpush.bf16.msrb.mxu0 %v14802_v4  ;;  %v15350_v42 = vld [vmem:[%s23851_s11 + $0x7b4] sm:$0xf]  ;;  %v12969_v4 = vld [vmem:[%s23851_s11 + $0xac8] sm:$0xf]  ;;  %v12925_v52 = vld [vmem:[%s23851_s11 + $0xa70] sm:$0xf] }
 0x7b5   : > { %v12578_v63 = vor.u32 %v15350_v42, %v12575_v24  ;;  %v12970_v44 = vor.u32 %v15454_v11, %v12969_v4  ;;  %v15328_v42 = vld [vmem:[%s23851_s11 + $0x704] sm:$0xf]  ;;  %v12487_v24 = vld [vmem:[%s23851_s11 + $0x72c] sm:$0xf0]  ;;  %v10199_v4 = vadd.f32 %v19854_v37, %v10186_v47 }
 0x7b6   : > { %10803 = vmatpush.bf16.msra.mxu2 %v14946_v20  ;;  %v15288_v20 = vld [vmem:[%s23851_s11 + $0x5c0] sm:$0xf0]  ;;  %10924 = vmatpush.bf16.msra.mxu3 %v14422_v14  ;;  %v12531_v14 = vld [vmem:[%s23851_s11 + $0x784] sm:$0xf0]  ;;  %v12735_v47 = vld [vmem:[%s23851_s11 + $0x92c] sm:$0xf0] }
 0x7b7   : > { %v12302_v45 = vor.u32 %v15288_v20, %v12301_v38 }
 0x7b8   : > { %10585 = vmatpush.bf16.msrb.mxu1 %v12346_v43  ;;  %10417 = vmatpush.bf16.msrb.mxu0 %v14758_v8  ;;  %v15339_v43 = vld [vmem:[%s23851_s11 + $0x75c] sm:$0xf]  ;;  %v10551_v38 = vpop.f32.mrf.mxu2 }
 0x7b9   : > { %10925 = vmatmul.bf16.vlgmr.msra.gmra.mxu3 %v18691_v16  ;;  %v12534_v15 = vor.u32 %v15339_v43, %v12531_v14  ;;  %v15443_v8 = vld [vmem:[%s23851_s11 + $0xa98] sm:$0xf0]  ;;  %v10211_v43 = vpop.f32.mrf.mxu0  ;;  %v12779_v38 = vld [vmem:[%s23851_s11 + $0x984] sm:$0xf0] }
 0x7ba   : > { %10804 = vmatpush.bf16.msra.mxu2 %v14902_v0  ;;  %v15436_v0 = vld [vmem:[%s23851_s11 + $0xa64] sm:$0xf]  ;;  %10969 = vmatpush.bf16.msrb.mxu3 %v12622_v18  ;;  %v14770_v18 = vor.u32 %v15899_v23, %v14767_v61  ;;  %v15317_v23 = vld [vmem:[%s23851_s11 + $0x6ac] sm:$0xf]  ;;  %v12443_v61 = vld [vmem:[%s23851_s11 + $0x6d4] sm:$0xf0] }
 0x7bb   : > { %v12914_v20 = vor.u32 %v15436_v0, %v12911_v2  ;;  %10418 = vmatmul.bf16.vlgmr.msrb.gmra.mxu0 %v19741_v48  ;;  %v15414_v0 = vld [vmem:[%s23851_s11 + $0x9b4] sm:$0xf]  ;;  %v12490_v2 = vor.u32 %v15328_v42, %v12487_v24  ;;  %v12446_v37 = vor.u32 %v15317_v23, %v12443_v61  ;;  %v15392_v24 = vld [vmem:[%s23851_s11 + $0x904] sm:$0xf]  ;;  %v15381_v61 = vld [vmem:[%s23851_s11 + $0x8ac] sm:$0xf] }
 0x7bc   : > { %10586 = vmatpush.bf16.msrb.mxu1 %v12302_v45  ;;  %10462 = vmatpush.bf16.msra.mxu0 %v12958_v56  ;;  %v12870_v45 = vor.u32 %v15425_v53, %v12867_v41  ;;  %v13930_v56 = vor.u32 %v15695_v59, %v13929_v17  ;;  %v13841_v53 = vld [vmem:[%s23851_s11 + $0x11a0] sm:$0xf]  ;;  %v15673_v41 = vld [vmem:[%s23851_s11 + $0x11c8] sm:$0xf0]  ;;  %v15306_v17 = vld [vmem:[%s23851_s11 + $0x654] sm:$0xf] }
 0x7bd   : > { %v12399_v59 = vld [vmem:[%s23851_s11 + $0x67c] sm:$0xf0]  ;;  %v13842_v42 = vor.u32 %v15673_v41, %v13841_v53  ;;  %v15284_v53 = vld [vmem:[%s23851_s11 + $0x5a4] sm:$0xf]  ;;  %v12311_v41 = vld [vmem:[%s23851_s11 + $0x5cc] sm:$0xf0] }
 0x7be   : > { %10805 = vmatpush.bf16.msra.mxu2 %v14858_v55  ;;  %v13974_v55 = vor.u32 %v15706_v28, %v13973_v60  ;;  %10970 = vmatpush.bf16.msrb.mxu3 %v12578_v63  ;;  %v15684_v60 = vld [vmem:[%s23851_s11 + $0x1220] sm:$0xf0]  ;;  %v12881_v28 = vld [vmem:[%s23851_s11 + $0xa18] sm:$0xf] }
 0x7bf   : > { %10587 = vmatmul.bf16.vlgmr.msrb.gmra.mxu1 %v18126_v31  ;;  %v15432_v63 = vld [vmem:[%s23851_s11 + $0xa40] sm:$0xf0]  ;;  %v13886_v14 = vor.u32 %v15684_v60, %v13885_v6  ;;  %v15295_v6 = vld [vmem:[%s23851_s11 + $0x5fc] sm:$0xf]  ;;  %v12355_v60 = vld [vmem:[%s23851_s11 + $0x624] sm:$0xf0] }
 0x7c0   : > { %10631 = vmatpush.bf16.msra.mxu1 %v14018_v39  ;;  %10463 = vmatpush.bf16.msra.mxu0 %v12914_v20  ;;  %v12823_v39 = vld [vmem:[%s23851_s11 + $0x9dc] sm:$0xf0]  ;;  %v21887_v20 = vadd.f32 %v10211_v43, %v10199_v4  ;;  %v12691_v4 = vld [vmem:[%s23851_s11 + $0x8d4] sm:$0xf0] }
 0x7c1   : > { %v12826_v11 = vor.u32 %v15414_v0, %v12823_v39  ;;  %v13797_v0 = vld [vmem:[%s23851_s11 + $0x1148] sm:$0xf]  ;;  %v15662_v39 = vld [vmem:[%s23851_s11 + $0x1170] sm:$0xf0] }
 0x7c2   : > { %10806 = vmatpush.bf16.msra.mxu2 %v14814_v36  ;;  %10971 = vmatpush.bf16.msrb.mxu3 %v12534_v15  ;;  %v12926_v36 = vor.u32 %v15443_v8, %v12925_v52  ;;  %v15421_v15 = vld [vmem:[%s23851_s11 + $0x9e8] sm:$0xf0]  ;;  %v21909_v52 = vpop.f32.mrf.mxu3  ;;  %v12782_v8 = vor.u32 %v15403_v50, %v12779_v38  ;;  %v13798_v23 = vor.u32 %v15662_v39, %v13797_v0  ;;  %v13753_v50 = vld [vmem:[%s23851_s11 + $0x10f0] sm:$0xf]  ;;  %v15651_v38 = vld [vmem:[%s23851_s11 + $0x1118] sm:$0xf0] }
 0x7c3   : > { %v12314_v0 = vor.u32 %v15284_v53, %v12311_v41  ;;  %v15640_v39 = vld [vmem:[%s23851_s11 + $0x10c0] sm:$0xf0]  ;;  %v15173_v41 = vld [vmem:[%s23851_s11 + $0x22c] sm:$0xf] }
 0x7c4   : > { %10632 = vmatpush.bf16.msra.mxu1 %v13974_v55  ;;  %10464 = vmatpush.bf16.msra.mxu0 %v12870_v45  ;;  %v21889_v55 = vpop.f32.mrf.mxu1 }
 0x7c6   : > { %10807 = vmatpush.bf16.msra.mxu2 %v14770_v18  ;;  %10972 = vmatpush.bf16.msrb.mxu3 %v12490_v2  ;;  %v12882_v18 = vor.u32 %v15432_v63, %v12881_v28  ;;  %v15410_v2 = vld [vmem:[%s23851_s11 + $0x990] sm:$0xf0]  ;;  %v12738_v28 = vor.u32 %v15392_v24, %v12735_v47  ;;  %v10213_v63 = vpop.f32.mrf.mxu0  ;;  %v12647_v47 = vld [vmem:[%s23851_s11 + $0x87c] sm:$0xf0] }
 0x7c7   : > { %v15370_v24 = vld [vmem:[%s23851_s11 + $0x854] sm:$0xf]  ;;  %v12705_v63 = vld [vmem:[%s23851_s11 + $0x8b8] sm:$0xf] }
 0x7c8   : > { %10633 = vmatpush.bf16.msra.mxu1 %v13930_v56  ;;  %10465 = vmatpush.bf16.msra.mxu0 %v12826_v11  ;;  %v12402_v56 = vor.u32 %v15306_v17, %v12399_v59  ;;  %v15713_v17 = vld [vmem:[%s23851_s11 + $0x130c] sm:$0xf]  ;;  %v14027_v59 = vld [vmem:[%s23851_s11 + $0x1334] sm:$0xf0] }
 0x7c9   : > { %10808 = vmatmul.bf16.vlgmr.msra.gmra.mxu2 %v19741_v48 }
 0x7ca   : > { %10852 = vmatpush.bf16.msrb.mxu2 %v12970_v44  ;;  %v12837_v44 = vld [vmem:[%s23851_s11 + $0x9c0] sm:$0xf]  ;;  %10973 = vmatpush.bf16.msrb.mxu3 %v12446_v37  ;;  %v15399_v37 = vld [vmem:[%s23851_s11 + $0x938] sm:$0xf0] }
 0x7cb   : > { %v12838_v45 = vor.u32 %v15421_v15, %v12837_v44  ;;  %v10720_v44 = vpop.f32.mrf.mxu3  ;;  %v12694_v15 = vor.u32 %v15381_v61, %v12691_v4  ;;  %v15388_v61 = vld [vmem:[%s23851_s11 + $0x8e0] sm:$0xf0]  ;;  %v15702_v4 = vld [vmem:[%s23851_s11 + $0x12b4] sm:$0xf] }
 0x7cc   : > { %10634 = vmatpush.bf16.msra.mxu1 %v13886_v14  ;;  %10466 = vmatpush.bf16.msra.mxu0 %v12782_v8  ;;  %v10382_v11 = vpop.f32.mrf.mxu1  ;;  %v12358_v14 = vor.u32 %v15295_v6, %v12355_v60  ;;  %v21965_v8 = vpop.f32.mrf.mxu2  ;;  %v14030_v6 = vor.u32 %v15713_v17, %v14027_v59  ;;  %v15184_v60 = vld [vmem:[%s23851_s11 + $0x284] sm:$0xf]  ;;  %v11863_v44 = vld [vmem:[%s23851_s11 + $0x254] sm:$0xf0]  ;;  %v15377_v17 = vld [vmem:[%s23851_s11 + $0x888] sm:$0xf0] }
 0x7cd   : > { %v13983_v11 = vld [vmem:[%s23851_s11 + $0x12dc] sm:$0xf0]  ;;  %v15691_v59 = vld [vmem:[%s23851_s11 + $0x125c] sm:$0xf] }
 0x7ce   : > { %10853 = vmatpush.bf16.msrb.mxu2 %v12926_v36  ;;  %v12793_v36 = vld [vmem:[%s23851_s11 + $0x968] sm:$0xf]  ;;  %10974 = vmatpush.bf16.msrb.mxu3 %v12402_v56  ;;  %v13986_v53 = vor.u32 %v15702_v4, %v13983_v11  ;;  %v15795_v4 = vld [vmem:[%s23851_s11 + $0x1598] sm:$0xf0] }
 0x7cf   : > { %v12794_v43 = vor.u32 %v15410_v2, %v12793_v36  ;;  %v15799_v36 = vld [vmem:[%s23851_s11 + $0x15bc] sm:$0xf]  ;;  %v14363_v2 = vld [vmem:[%s23851_s11 + $0x15e4] sm:$0xf0] }
 0x7d0   : > { %10635 = vmatpush.bf16.msra.mxu1 %v13842_v42  ;;  %10467 = vmatpush.bf16.msra.mxu0 %v12738_v28  ;;  %v13754_v42 = vor.u32 %v15651_v38, %v13753_v50  ;;  %v11907_v28 = vld [vmem:[%s23851_s11 + $0x2ac] sm:$0xf0]  ;;  %v15788_v38 = vld [vmem:[%s23851_s11 + $0x1564] sm:$0xf] }
 0x7d1   : > { %v11910_v50 = vor.u32 %v15184_v60, %v11907_v28  ;;  %v14275_v60 = vld [vmem:[%s23851_s11 + $0x1534] sm:$0xf0]  ;;  %v11819_v28 = vld [vmem:[%s23851_s11 + $0x1fc] sm:$0xf0] }
 0x7d2   : > { %10854 = vmatpush.bf16.msrb.mxu2 %v12882_v18  ;;  %v12749_v18 = vld [vmem:[%s23851_s11 + $0x910] sm:$0xf]  ;;  %10975 = vmatpush.bf16.msrb.mxu3 %v12358_v14  ;;  %v14366_v14 = vor.u32 %v15799_v36, %v14363_v2 }
 0x7d3   : > { %v12750_v56 = vor.u32 %v15399_v37, %v12749_v18  ;;  %v14319_v18 = vld [vmem:[%s23851_s11 + $0x158c] sm:$0xf0]  ;;  %v12706_v37 = vor.u32 %v15388_v61, %v12705_v63  ;;  %v15680_v63 = vld [vmem:[%s23851_s11 + $0x1204] sm:$0xf] }
 0x7d4   : > { %10636 = vmatpush.bf16.msra.mxu1 %v13798_v23  ;;  %10468 = vmatpush.bf16.msra.mxu0 %v12694_v15  ;;  %v12650_v23 = vor.u32 %v15370_v24, %v12647_v47  ;;  %v12661_v15 = vld [vmem:[%s23851_s11 + $0x860] sm:$0xf]  ;;  %v10603_v24 = vpop.f32.mrf.mxu2  ;;  %v14377_v47 = vld [vmem:[%s23851_s11 + $0x15c8] sm:$0xf]  ;;  %v14333_v61 = vld [vmem:[%s23851_s11 + $0x1570] sm:$0xf] }
 0x7d5   : > { %v12662_v36 = vor.u32 %v15377_v17, %v12661_v15  ;;  %v14289_v15 = vld [vmem:[%s23851_s11 + $0x1518] sm:$0xf]  ;;  %v15784_v17 = vld [vmem:[%s23851_s11 + $0x1540] sm:$0xf0] }
 0x7d6   : > { %10855 = vmatpush.bf16.msrb.mxu2 %v12838_v45  ;;  %v13709_v45 = vld [vmem:[%s23851_s11 + $0x1098] sm:$0xf]  ;;  %10976 = vmatpush.bf16.msrb.mxu3 %v12314_v0  ;;  %v14322_v0 = vor.u32 %v15788_v38, %v14319_v18  ;;  %v15766_v38 = vld [vmem:[%s23851_s11 + $0x14b4] sm:$0xf]  ;;  %v14231_v18 = vld [vmem:[%s23851_s11 + $0x14dc] sm:$0xf0] }
 0x7d8   : > { %10637 = vmatpush.bf16.msra.mxu1 %v13754_v42  ;;  %10469 = vmatpush.bf16.msra.mxu0 %v12650_v23  ;;  %v13939_v42 = vld [vmem:[%s23851_s11 + $0x1284] sm:$0xf0]  ;;  %v13895_v23 = vld [vmem:[%s23851_s11 + $0x122c] sm:$0xf0]  ;;  %v10263_v24 = vpop.f32.mrf.mxu0 }
 0x7d9   : > { %10977 = vmatmul.bf16.vlgmr.msrb.gmra.mxu3 %v18126_v31  ;;  %v13942_v2 = vor.u32 %v15691_v59, %v13939_v42  ;;  %v14234_v42 = vor.u32 %v15766_v38, %v14231_v18  ;;  %v11687_v18 = vld [vmem:[%s23851_s11 + $0xf4] sm:$0xf0] }
 0x7da   : > { %10856 = vmatpush.bf16.msrb.mxu2 %v12794_v43  ;;  %v13710_v43 = vor.u32 %v15640_v39, %v13709_v45  ;;  %11021 = vmatpush.bf16.msra.mxu3 %v14030_v6  ;;  %v15806_v45 = vld [vmem:[%s23851_s11 + $0x15f0] sm:$0xf0]  ;;  %v11866_v39 = vor.u32 %v15173_v41, %v11863_v44  ;;  %v15777_v6 = vld [vmem:[%s23851_s11 + $0x150c] sm:$0xf]  ;;  %v13851_v44 = vld [vmem:[%s23851_s11 + $0x11d4] sm:$0xf0] }
 0x7db   : > { %10470 = vmatmul.bf16.vlgmr.msra.gmra.mxu0 %v17820_v10  ;;  %v14278_v11 = vor.u32 %v15777_v6, %v14275_v60  ;;  %v15669_v41 = vld [vmem:[%s23851_s11 + $0x11ac] sm:$0xf]  ;;  %v11731_v6 = vld [vmem:[%s23851_s11 + $0x14c] sm:$0xf0]  ;;  %v15658_v60 = vld [vmem:[%s23851_s11 + $0x1154] sm:$0xf] }
 0x7dc   : > { %10638 = vmatpush.bf16.msra.mxu1 %v13710_v43  ;;  %10514 = vmatpush.bf16.msrb.mxu0 %v14366_v14 }
 0x7de   : > { %10857 = vmatpush.bf16.msrb.mxu2 %v12750_v56  ;;  %v10225_v56 = vadd.f32 %v21257_v21, %v21887_v20  ;;  %11022 = vmatpush.bf16.msra.mxu3 %v13986_v53  ;;  %v15162_v21 = vld [vmem:[%s23851_s11 + $0x1d4] sm:$0xf]  ;;  %v14378_v20 = vor.u32 %v15806_v45, %v14377_v47  ;;  %v14334_v53 = vor.u32 %v15795_v4, %v14333_v61  ;;  %v22089_v47 = vpop.f32.mrf.mxu1 }
 0x7df   : > { %10639 = vmatmul.bf16.vlgmr.msra.gmra.mxu1 %v18229_v57  ;;  %v11822_v14 = vor.u32 %v15162_v21, %v11819_v28  ;;  %v13807_v21 = vld [vmem:[%s23851_s11 + $0x117c] sm:$0xf0]  ;;  %v15773_v28 = vld [vmem:[%s23851_s11 + $0x14e8] sm:$0xf0] }
 0x7e0   : > { %10683 = vmatpush.bf16.msrb.mxu1 %v11910_v50  ;;  %10515 = vmatpush.bf16.msrb.mxu0 %v14322_v0  ;;  %v10238_v43 = vadd.f32 %v20506_v22, %v10225_v56  ;;  %v13898_v50 = vor.u32 %v15680_v63, %v13895_v23  ;;  %v11775_v22 = vld [vmem:[%s23851_s11 + $0x1a4] sm:$0xf0]  ;;  %v13854_v56 = vor.u32 %v15669_v41, %v13851_v44  ;;  %v15755_v0 = vld [vmem:[%s23851_s11 + $0x145c] sm:$0xf]  ;;  %v22116_v23 = vpop.f32.mrf.mxu3  ;;  %v11215_v41 = vrot.slane %v21684_v51, 6 }
 0x7e1   : > { %v15118_v51 = vld [vmem:[%s23851_s11 + $0x74] sm:$0xf] }
 0x7e2   : > { %10858 = vmatpush.bf16.msrb.mxu2 %v12706_v37  ;;  %11023 = vmatpush.bf16.msra.mxu3 %v13942_v2  ;;  %v15151_v37 = vld [vmem:[%s23851_s11 + $0x17c] sm:$0xf]  ;;  %v10251_v59 = vadd.f32 %v20050_v46, %v10238_v43  ;;  %v15140_v46 = vld [vmem:[%s23851_s11 + $0x124] sm:$0xf]  ;;  %v14290_v2 = vor.u32 %v15784_v17, %v14289_v15  ;;  %v15733_v17 = vld [vmem:[%s23851_s11 + $0x13ac] sm:$0xf] }
 0x7e3   : > { %v11778_v45 = vor.u32 %v15151_v37, %v11775_v22  ;;  %v11734_v4 = vor.u32 %v15140_v46, %v11731_v6  ;;  %v15744_v43 = vld [vmem:[%s23851_s11 + $0x1404] sm:$0xf]  ;;  %v15647_v37 = vld [vmem:[%s23851_s11 + $0x10fc] sm:$0xf]  ;;  %v14201_v22 = vld [vmem:[%s23851_s11 + $0x1468] sm:$0xf] }
 0x7e4   : > { %10684 = vmatpush.bf16.msrb.mxu1 %v11866_v39  ;;  %10516 = vmatpush.bf16.msrb.mxu0 %v14278_v11  ;;  %v14187_v39 = vld [vmem:[%s23851_s11 + $0x1484] sm:$0xf0]  ;;  %v13810_v11 = vor.u32 %v15658_v60, %v13807_v21  ;;  %v13719_v6 = vld [vmem:[%s23851_s11 + $0x10cc] sm:$0xf0]  ;;  %v15751_v60 = vld [vmem:[%s23851_s11 + $0x1438] sm:$0xf0] }
 0x7e5   : > { %v14190_v61 = vor.u32 %v15755_v0, %v14187_v39  ;;  %v11643_v0 = vld [vmem:[%s23851_s11 + $0x9c] sm:$0xf0]  ;;  %v11921_v21 = vld [vmem:[%s23851_s11 + $0x290] sm:$0xf] }
 0x7e6   : > { %10859 = vmatpush.bf16.msrb.mxu2 %v12662_v36  ;;  %11024 = vmatpush.bf16.msra.mxu3 %v13898_v50  ;;  %v10264_v36 = vadd.f32 %v10263_v24, %v10251_v59  ;;  %v10265_v59 = vpop.f32.mrf.mxu0 }
 0x7e7   : > { %v15180_v59 = vld [vmem:[%s23851_s11 + $0x260] sm:$0xf0] }
 0x7e8   : > { %10685 = vmatpush.bf16.msrb.mxu1 %v11822_v14  ;;  %v10277_v63 = vadd.f32 %v21473_v29, %v10264_v36  ;;  %10517 = vmatpush.bf16.msrb.mxu0 %v14234_v42  ;;  %v14143_v14 = vld [vmem:[%s23851_s11 + $0x142c] sm:$0xf0]  ;;  %v15129_v29 = vld [vmem:[%s23851_s11 + $0xcc] sm:$0xf]  ;;  %v10434_v42 = vpop.f32.mrf.mxu1 }
 0x7e9   : > { %10860 = vmatmul.bf16.vlgmr.msrb.gmra.mxu2 %v17820_v10  ;;  %v14146_v15 = vor.u32 %v15744_v43, %v14143_v14  ;;  %v11690_v24 = vor.u32 %v15129_v29, %v11687_v18  ;;  %v14157_v36 = vld [vmem:[%s23851_s11 + $0x1410] sm:$0xf]  ;;  %v11646_v43 = vor.u32 %v15118_v51, %v11643_v0  ;;  %v14055_v29 = vld [vmem:[%s23851_s11 + $0x137c] sm:$0xf0]  ;;  %v15266_v0 = vld [vmem:[%s23851_s11 + $0x510] sm:$0xf0] }
 0x7ea   : > { %10904 = vmatpush.bf16.msra.mxu2 %v14378_v20  ;;  %v14245_v20 = vld [vmem:[%s23851_s11 + $0x14c0] sm:$0xf]  ;;  %11025 = vmatpush.bf16.msra.mxu3 %v13854_v56  ;;  %v10290_v50 = vadd.f32 %v20711_v1, %v10277_v63  ;;  %v15762_v1 = vld [vmem:[%s23851_s11 + $0x1490] sm:$0xf0]  ;;  %v14099_v56 = vld [vmem:[%s23851_s11 + $0x13d4] sm:$0xf0]  ;;  %v10772_v63 = vpop.f32.mrf.mxu3 }
 0x7eb   : > { %v14246_v38 = vor.u32 %v15773_v28, %v14245_v20  ;;  %v14202_v46 = vor.u32 %v15762_v1, %v14201_v22  ;;  %v15191_v20 = vld [vmem:[%s23851_s11 + $0x2b8] sm:$0xf0]  ;;  %v15536_v22 = vld [vmem:[%s23851_s11 + $0xd84] sm:$0xf]  ;;  %v13315_v1 = vld [vmem:[%s23851_s11 + $0xdac] sm:$0xf0] }
 0x7ec   : > { %10686 = vmatpush.bf16.msrb.mxu1 %v11778_v45  ;;  %v11216_v44 = vrot.slane %v10290_v50, 5  ;;  %10518 = vmatpush.bf16.msrb.mxu0 %v14190_v61  ;;  %v14102_v61 = vor.u32 %v15733_v17, %v14099_v56  ;;  %v11599_v50 = vld [vmem:[%s23851_s11 + $0x44] sm:$0xf0]  ;;  %v11922_v18 = vor.u32 %v15191_v20, %v11921_v21  ;;  %v11877_v17 = vld [vmem:[%s23851_s11 + $0x238] sm:$0xf]  ;;  %v13318_v56 = vor.u32 %v15536_v22, %v13315_v1 }
 0x7ed   : > { %v12267_v21 = vld [vmem:[%s23851_s11 + $0x574] sm:$0xf0]  ;;  %v11833_v20 = vld [vmem:[%s23851_s11 + $0x1e0] sm:$0xf]  ;;  %v15169_v63 = vld [vmem:[%s23851_s11 + $0x208] sm:$0xf0] }
 0x7ee   : > { %10905 = vmatpush.bf16.msra.mxu2 %v14334_v53  ;;  %v13763_v53 = vld [vmem:[%s23851_s11 + $0x1124] sm:$0xf0]  ;;  %11026 = vmatpush.bf16.msra.mxu3 %v13810_v11  ;;  %v11226_v39 = vsel %vm11225_vm4, %v11215_v41, %v11216_v44  ;;  %v22182_v11 = vpop.f32.mrf.mxu2  ;;  %v14113_v41 = vld [vmem:[%s23851_s11 + $0x13b8] sm:$0xf]  ;;  %v15740_v44 = vld [vmem:[%s23851_s11 + $0x13e0] sm:$0xf0] }
 0x7ef   : > { %v13766_v45 = vor.u32 %v15647_v37, %v13763_v53  ;;  %v22177_v28 = vsel %vm11227_vm5, %v21098_v13, %v11226_v39  ;;  %v15107_v13 = vld [vmem:[%s23851_s11 + $0x1c] sm:$0xf]  ;;  %v12257_v37 = vld [vmem:[%s23851_s11 + $0x540] sm:$0xf]  ;;  %v15277_v53 = vld [vmem:[%s23851_s11 + $0x568] sm:$0xf0]  ;;  %v14114_v51 = vor.u32 %v15740_v44, %v14113_v41 }
 0x7f0   : > { %10687 = vmatpush.bf16.msrb.mxu1 %v11734_v4  ;;  %10519 = vmatpush.bf16.msrb.mxu0 %v14146_v15  ;;  %v15722_v4 = vld [vmem:[%s23851_s11 + $0x1354] sm:$0xf]  ;;  %v11602_v42 = vor.u32 %v15107_v13, %v11599_v50  ;;  %v15525_v39 = vld [vmem:[%s23851_s11 + $0xd2c] sm:$0xf]  ;;  %v15255_v13 = vld [vmem:[%s23851_s11 + $0x4b8] sm:$0xf0] }
 0x7f1   : > { %v14058_v15 = vor.u32 %v15722_v4, %v14055_v29  ;;  %v12169_v29 = vld [vmem:[%s23851_s11 + $0x490] sm:$0xf]  ;;  %v12223_v22 = vld [vmem:[%s23851_s11 + $0x51c] sm:$0xf0]  ;;  %v11789_v1 = vld [vmem:[%s23851_s11 + $0x188] sm:$0xf] }
 0x7f2   : > { %10906 = vmatpush.bf16.msra.mxu2 %v14290_v2  ;;  %v15636_v2 = vld [vmem:[%s23851_s11 + $0x10a4] sm:$0xf]  ;;  %11027 = vmatpush.bf16.msra.mxu3 %v13766_v45  ;;  %v12213_v45 = vld [vmem:[%s23851_s11 + $0x4e8] sm:$0xf]  ;;  %v15158_v41 = vld [vmem:[%s23851_s11 + $0x1b0] sm:$0xf0] }
 0x7f3   : > { %v13722_v14 = vor.u32 %v15636_v2, %v13719_v6  ;;  %v14069_v2 = vld [vmem:[%s23851_s11 + $0x1360] sm:$0xf]  ;;  %v15729_v6 = vld [vmem:[%s23851_s11 + $0x1388] sm:$0xf0]  ;;  %v12214_v4 = vor.u32 %v15266_v0, %v12213_v45  ;;  %v13183_v0 = vld [vmem:[%s23851_s11 + $0xca4] sm:$0xf0] }
 0x7f4   : > { %10688 = vmatpush.bf16.msrb.mxu1 %v11690_v24  ;;  %10520 = vmatpush.bf16.msrb.mxu0 %v14102_v61  ;;  %v12258_v24 = vor.u32 %v15277_v53, %v12257_v37  ;;  %v13227_v37 = vld [vmem:[%s23851_s11 + $0xcfc] sm:$0xf0]  ;;  %v15262_v53 = vld [vmem:[%s23851_s11 + $0x4f4] sm:$0xf] }
 0x7f5   : > { %v22277_v44 = vld [vmem:[%s23852_s12] sm:$0xff]  ;;  %v12226_v45 = vor.u32 %v15262_v53, %v12223_v22 }
 0x7f6   : > { %10907 = vmatpush.bf16.msra.mxu2 %v14246_v38  ;;  %v14158_v38 = vor.u32 %v15751_v60, %v14157_v36  ;;  %11028 = vmatpush.bf16.msra.mxu3 %v13722_v14  ;;  %v11878_v36 = vor.u32 %v15180_v59, %v11877_v17  ;;  %v15273_v60 = vld [vmem:[%s23851_s11 + $0x54c] sm:$0xf]  ;;  %v10655_v61 = vpop.f32.mrf.mxu2  ;;  %v14070_v14 = vor.u32 %v15729_v6, %v14069_v2  ;;  %v15147_v2 = vld [vmem:[%s23851_s11 + $0x158] sm:$0xf0] }
 0x7f7   : > { %v12270_v50 = vor.u32 %v15273_v60, %v12267_v21  ;;  %v12170_v17 = vor.u32 %v15255_v13, %v12169_v29  ;;  %v15233_v61 = vld [vmem:[%s23851_s11 + $0x408] sm:$0xf0]  ;;  %v15492_v29 = vld [vmem:[%s23851_s11 + $0xc24] sm:$0xf]  ;;  %v13139_v13 = vld [vmem:[%s23851_s11 + $0xc4c] sm:$0xf0] }
 0x7f8   : > { %10689 = vmatpush.bf16.msrb.mxu1 %v11646_v43  ;;  %10521 = vmatpush.bf16.msrb.mxu0 %v14058_v15  ;;  %v9755_v15 = vperm.slane %v22277_v44, 4  ;;  %v10315_v21 = vpop.f32.mrf.mxu0 }
 0x7f9   : > { %11029 = vmatmul.bf16.vlgmr.msra.gmra.mxu3 %v18229_v57 }
 0x7fa   : > { %10908 = vmatpush.bf16.msra.mxu2 %v14202_v46  ;;  %11073 = vmatpush.bf16.msrb.mxu3 %v11922_v18  ;;  %v13271_v46 = vld [vmem:[%s23851_s11 + $0xd54] sm:$0xf0]  ;;  %v15514_v18 = vld [vmem:[%s23851_s11 + $0xcd4] sm:$0xf]  ;;  %v10303_v6 = vadd.f32 %v20250_v3, %v9755_v15  ;;  %v22314_v3 = vpop.f32.mrf.mxu1 }
 0x7fb   : > { %v13274_v43 = vor.u32 %v15525_v39, %v13271_v46  ;;  %10522 = vmatmul.bf16.vlgmr.msrb.gmra.mxu0 %v18317_v9  ;;  %v13230_v59 = vor.u32 %v15514_v18, %v13227_v37  ;;  %v15251_v39 = vld [vmem:[%s23851_s11 + $0x49c] sm:$0xf]  ;;  %v12179_v46 = vld [vmem:[%s23851_s11 + $0x4c4] sm:$0xf0]  ;;  %v11701_v18 = vld [vmem:[%s23851_s11 + $0xd8] sm:$0xf]  ;;  %v22334_v53 = vpop.f32.mrf.mxu3 }
 0x7fc   : > { %10690 = vmatpush.bf16.msrb.mxu1 %v11602_v42  ;;  %10566 = vmatpush.bf16.msra.mxu0 %v12258_v24  ;;  %v12125_v42 = vld [vmem:[%s23851_s11 + $0x438] sm:$0xf]  ;;  %v15244_v24 = vld [vmem:[%s23851_s11 + $0x460] sm:$0xf0]  ;;  %v15222_v15 = vld [vmem:[%s23851_s11 + $0x3b0] sm:$0xf0] }
 0x7fd   : > { %v12126_v60 = vor.u32 %v15244_v24, %v12125_v42  ;;  %v15136_v37 = vld [vmem:[%s23851_s11 + $0x100] sm:$0xf0]  ;;  %v15481_v42 = vld [vmem:[%s23851_s11 + $0xbcc] sm:$0xf]  ;;  %v13095_v24 = vld [vmem:[%s23851_s11 + $0xbf4] sm:$0xf0] }
 0x7fe   : > { %10909 = vmatpush.bf16.msra.mxu2 %v14158_v38  ;;  %11074 = vmatpush.bf16.msrb.mxu3 %v11878_v36  ;;  %v11834_v38 = vor.u32 %v15169_v63, %v11833_v20  ;;  %v11745_v36 = vld [vmem:[%s23851_s11 + $0x130] sm:$0xf]  ;;  %v12081_v63 = vld [vmem:[%s23851_s11 + $0x3e0] sm:$0xf] }
 0x7ff   : > { %10691 = vmatmul.bf16.vlgmr.msrb.gmra.mxu1 %v17804_v49  ;;  %v12082_v22 = vor.u32 %v15233_v61, %v12081_v63  ;;  %v15470_v63 = vld [vmem:[%s23851_s11 + $0xb74] sm:$0xf]  ;;  %v13051_v61 = vld [vmem:[%s23851_s11 + $0xb9c] sm:$0xf0] }
 0x800   : > { %10735 = vmatpush.bf16.msra.mxu1 %v13318_v56  ;;  %10567 = vmatpush.bf16.msra.mxu0 %v12214_v4  ;;  %v11790_v56 = vor.u32 %v15158_v41, %v11789_v1  ;;  %v22312_v4 = vadd.f32 %v10315_v21, %v10303_v6  ;;  %v13142_v1 = vor.u32 %v15492_v29, %v13139_v13  ;;  %v12037_v41 = vld [vmem:[%s23851_s11 + $0x388] sm:$0xf]  ;;  %v15211_v6 = vld [vmem:[%s23851_s11 + $0x358] sm:$0xf0]  ;;  %v15114_v13 = vld [vmem:[%s23851_s11 + $0x50] sm:$0xf0] }
 0x801   : > { %v11613_v29 = vld [vmem:[%s23851_s11 + $0x28] sm:$0xf] }
 0x802   : > { %10910 = vmatpush.bf16.msra.mxu2 %v14114_v51  ;;  %11075 = vmatpush.bf16.msrb.mxu3 %v11834_v38  ;;  %v15503_v51 = vld [vmem:[%s23851_s11 + $0xc7c] sm:$0xf]  ;;  %v12135_v38 = vld [vmem:[%s23851_s11 + $0x46c] sm:$0xf0] }
 0x803   : > { %v13186_v20 = vor.u32 %v15503_v51, %v13183_v0  ;;  %v11657_v51 = vld [vmem:[%s23851_s11 + $0x80] sm:$0xf]  ;;  %v15125_v0 = vld [vmem:[%s23851_s11 + $0xa8] sm:$0xf0] }
 0x804   : > { %10736 = vmatpush.bf16.msra.mxu1 %v13274_v43  ;;  %10568 = vmatpush.bf16.msra.mxu0 %v12170_v17  ;;  %v12182_v43 = vor.u32 %v15251_v39, %v12179_v46  ;;  %v12038_v39 = vor.u32 %v15222_v15, %v12037_v41  ;;  %v10317_v46 = vpop.f32.mrf.mxu0  ;;  %v11949_v41 = vld [vmem:[%s23851_s11 + $0x2d8] sm:$0xf]  ;;  %v15200_v15 = vld [vmem:[%s23851_s11 + $0x300] sm:$0xf0] }
 0x805   : > { %v15207_v46 = vld [vmem:[%s23851_s11 + $0x33c] sm:$0xf] }
 0x806   : > { %10911 = vmatpush.bf16.msra.mxu2 %v14070_v14  ;;  %11076 = vmatpush.bf16.msrb.mxu3 %v11790_v56  ;;  %v11746_v14 = vor.u32 %v15147_v2, %v11745_v36  ;;  %v12091_v56 = vld [vmem:[%s23851_s11 + $0x414] sm:$0xf0]  ;;  %v13098_v36 = vor.u32 %v15481_v42, %v13095_v24  ;;  %v11993_v2 = vld [vmem:[%s23851_s11 + $0x330] sm:$0xf]  ;;  %v11614_v42 = vor.u32 %v15114_v13, %v11613_v29  ;;  %v13007_v24 = vld [vmem:[%s23851_s11 + $0xb44] sm:$0xf0] }
 0x807   : > { %v15877_v13 = vld [vmem:[%s23851_s11 + $0x182c] sm:$0xf] }
 0x808   : > { %10737 = vmatpush.bf16.msra.mxu1 %v13230_v59  ;;  %10569 = vmatpush.bf16.msra.mxu0 %v12126_v60  ;;  %v11702_v59 = vor.u32 %v15136_v37, %v11701_v18  ;;  %v10486_v60 = vpop.f32.mrf.mxu1  ;;  %v13329_v18 = vld [vmem:[%s23851_s11 + $0xd90] sm:$0xf]  ;;  %v15543_v37 = vld [vmem:[%s23851_s11 + $0xdb8] sm:$0xf0] }
 0x809   : > { %10912 = vmatmul.bf16.vlgmr.msra.gmra.mxu2 %v18317_v9  ;;  %v15532_v60 = vld [vmem:[%s23851_s11 + $0xd60] sm:$0xf0] }
 0x80a   : > { %10956 = vmatpush.bf16.msrb.mxu2 %v12270_v50  ;;  %v15240_v50 = vld [vmem:[%s23851_s11 + $0x444] sm:$0xf]  ;;  %11077 = vmatpush.bf16.msrb.mxu3 %v11746_v14  ;;  %v12047_v14 = vld [vmem:[%s23851_s11 + $0x3bc] sm:$0xf0] }
 0x80b   : > { %v12138_v17 = vor.u32 %v15240_v50, %v12135_v38  ;;  %v10824_v50 = vpop.f32.mrf.mxu3  ;;  %v11994_v38 = vor.u32 %v15211_v6, %v11993_v2  ;;  %v12003_v2 = vld [vmem:[%s23851_s11 + $0x364] sm:$0xf0]  ;;  %v13285_v6 = vld [vmem:[%s23851_s11 + $0xd38] sm:$0xf] }
 0x80c   : > { %10738 = vmatpush.bf16.msra.mxu1 %v13186_v20  ;;  %10570 = vmatpush.bf16.msra.mxu0 %v12082_v22  ;;  %v11658_v20 = vor.u32 %v15125_v0, %v11657_v51  ;;  %v22390_v22 = vpop.f32.mrf.mxu2  ;;  %v13330_v51 = vor.u32 %v15543_v37, %v13329_v18  ;;  %v15888_v0 = vld [vmem:[%s23851_s11 + $0x1884] sm:$0xf]  ;;  %v13286_v29 = vor.u32 %v15532_v60, %v13285_v6  ;;  %v14679_v50 = vld [vmem:[%s23851_s11 + $0x1854] sm:$0xf0]  ;;  %v11959_v18 = vld [vmem:[%s23851_s11 + $0x30c] sm:$0xf0] }
 0x80d   : > { %v13241_v37 = vld [vmem:[%s23851_s11 + $0xce0] sm:$0xf] }
 0x80e   : > { %10957 = vmatpush.bf16.msrb.mxu2 %v12226_v45  ;;  %v15229_v45 = vld [vmem:[%s23851_s11 + $0x3ec] sm:$0xf]  ;;  %11078 = vmatpush.bf16.msrb.mxu3 %v11702_v59  ;;  %v13631_v6 = vld [vmem:[%s23851_s11 + $0x101c] sm:$0xf0] }
 0x80f   : > { %v12094_v21 = vor.u32 %v15229_v45, %v12091_v56  ;;  %v13665_v45 = vld [vmem:[%s23851_s11 + $0x1040] sm:$0xf]  ;;  %v15629_v56 = vld [vmem:[%s23851_s11 + $0x1068] sm:$0xf0] }
 0x810   : > { %10739 = vmatpush.bf16.msra.mxu1 %v13142_v1  ;;  %10571 = vmatpush.bf16.msra.mxu0 %v12038_v39  ;;  %v13054_v1 = vor.u32 %v15470_v63, %v13051_v61  ;;  %v14723_v39 = vld [vmem:[%s23851_s11 + $0x18ac] sm:$0xf0]  ;;  %v13621_v61 = vld [vmem:[%s23851_s11 + $0xfe8] sm:$0xf] }
 0x811   : > { %v14726_v63 = vor.u32 %v15888_v0, %v14723_v39  ;;  %v15607_v0 = vld [vmem:[%s23851_s11 + $0xfb8] sm:$0xf0]  ;;  %v14635_v39 = vld [vmem:[%s23851_s11 + $0x17fc] sm:$0xf0] }
 0x812   : > { %10958 = vmatpush.bf16.msrb.mxu2 %v12182_v43  ;;  %v15218_v43 = vld [vmem:[%s23851_s11 + $0x394] sm:$0xf]  ;;  %11079 = vmatpush.bf16.msrb.mxu3 %v11658_v20  ;;  %v13666_v20 = vor.u32 %v15629_v56, %v13665_v45 }
 0x813   : > { %v12050_v59 = vor.u32 %v15218_v43, %v12047_v14  ;;  %v15618_v43 = vld [vmem:[%s23851_s11 + $0x1010] sm:$0xf0]  ;;  %v12006_v14 = vor.u32 %v15207_v46, %v12003_v2  ;;  %v13197_v46 = vld [vmem:[%s23851_s11 + $0xc88] sm:$0xf] }
 0x814   : > { %10740 = vmatpush.bf16.msra.mxu1 %v13098_v36  ;;  %10572 = vmatpush.bf16.msra.mxu0 %v11994_v38  ;;  %v11950_v36 = vor.u32 %v15200_v15, %v11949_v41  ;;  %v15196_v38 = vld [vmem:[%s23851_s11 + $0x2e4] sm:$0xf]  ;;  %v10707_v41 = vpop.f32.mrf.mxu2  ;;  %v15625_v15 = vld [vmem:[%s23851_s11 + $0x104c] sm:$0xf]  ;;  %v15614_v2 = vld [vmem:[%s23851_s11 + $0xff4] sm:$0xf] }
 0x815   : > { %v11962_v45 = vor.u32 %v15196_v38, %v11959_v18  ;;  %v15603_v38 = vld [vmem:[%s23851_s11 + $0xf9c] sm:$0xf]  ;;  %v13587_v18 = vld [vmem:[%s23851_s11 + $0xfc4] sm:$0xf0] }
 0x816   : > { %10959 = vmatpush.bf16.msrb.mxu2 %v12138_v17  ;;  %v15459_v17 = vld [vmem:[%s23851_s11 + $0xb1c] sm:$0xf]  ;;  %11080 = vmatpush.bf16.msrb.mxu3 %v11614_v42  ;;  %v13622_v42 = vor.u32 %v15618_v43, %v13621_v61  ;;  %v13533_v61 = vld [vmem:[%s23851_s11 + $0xf38] sm:$0xf]  ;;  %v15596_v43 = vld [vmem:[%s23851_s11 + $0xf60] sm:$0xf0] }
 0x818   : > { %10741 = vmatpush.bf16.msra.mxu1 %v13054_v1  ;;  %10573 = vmatpush.bf16.msra.mxu0 %v11950_v36  ;;  %v15521_v1 = vld [vmem:[%s23851_s11 + $0xd08] sm:$0xf0]  ;;  %v15510_v36 = vld [vmem:[%s23851_s11 + $0xcb0] sm:$0xf0]  ;;  %v10367_v41 = vpop.f32.mrf.mxu0 }
 0x819   : > { %11081 = vmatmul.bf16.vlgmr.msrb.gmra.mxu3 %v17804_v49  ;;  %v13242_v56 = vor.u32 %v15521_v1, %v13241_v37  ;;  %v13534_v1 = vor.u32 %v15596_v43, %v13533_v61  ;;  %v14503_v61 = vld [vmem:[%s23851_s11 + $0x16f4] sm:$0xf0]  ;;  %v13065_v43 = vld [vmem:[%s23851_s11 + $0xb80] sm:$0xf] }
 0x81a   : > { %10960 = vmatpush.bf16.msrb.mxu2 %v12094_v21  ;;  %v13010_v21 = vor.u32 %v15459_v17, %v13007_v24  ;;  %11125 = vmatpush.bf16.msra.mxu3 %v13330_v51  ;;  %v13675_v17 = vld [vmem:[%s23851_s11 + $0x1074] sm:$0xf0]  ;;  %v14682_v24 = vor.u32 %v15877_v13, %v14679_v50  ;;  %v13577_v51 = vld [vmem:[%s23851_s11 + $0xf90] sm:$0xf]  ;;  %v15499_v50 = vld [vmem:[%s23851_s11 + $0xc58] sm:$0xf0] }
 0x81b   : > { %10574 = vmatmul.bf16.vlgmr.msra.gmra.mxu0 %v18243_v54  ;;  %v13578_v60 = vor.u32 %v15607_v0, %v13577_v51  ;;  %v13153_v13 = vld [vmem:[%s23851_s11 + $0xc30] sm:$0xf]  ;;  %v13109_v0 = vld [vmem:[%s23851_s11 + $0xbd8] sm:$0xf] }
 0x81c   : > { %10742 = vmatpush.bf16.msra.mxu1 %v13010_v21  ;;  %10618 = vmatpush.bf16.msrb.mxu0 %v13666_v20  ;;  %v14547_v51 = vld [vmem:[%s23851_s11 + $0x174c] sm:$0xf0] }
 0x81e   : > { %10961 = vmatpush.bf16.msrb.mxu2 %v12050_v59  ;;  %v10329_v59 = vadd.f32 %v21673_v25, %v22312_v4  ;;  %11126 = vmatpush.bf16.msra.mxu3 %v13286_v29  ;;  %v15866_v25 = vld [vmem:[%s23851_s11 + $0x17d4] sm:$0xf]  ;;  %v13678_v4 = vor.u32 %v15625_v15, %v13675_v17  ;;  %v13634_v29 = vor.u32 %v15614_v2, %v13631_v6  ;;  %v22514_v15 = vpop.f32.mrf.mxu1 }
 0x81f   : > { %10743 = vmatmul.bf16.vlgmr.msra.gmra.mxu1 %v18277_v32  ;;  %v14638_v20 = vor.u32 %v15866_v25, %v14635_v39  ;;  %v15488_v25 = vld [vmem:[%s23851_s11 + $0xc00] sm:$0xf0]  ;;  %v13543_v39 = vld [vmem:[%s23851_s11 + $0xf6c] sm:$0xf0] }
 0x820   : > { %10787 = vmatpush.bf16.msrb.mxu1 %v14726_v63  ;;  %10619 = vmatpush.bf16.msrb.mxu0 %v13622_v42  ;;  %v10342_v21 = vadd.f32 %v20923_v27, %v10329_v59  ;;  %v13198_v63 = vor.u32 %v15510_v36, %v13197_v46  ;;  %v14591_v27 = vld [vmem:[%s23851_s11 + $0x17a4] sm:$0xf0]  ;;  %v13154_v59 = vor.u32 %v15499_v50, %v13153_v13  ;;  %v13489_v42 = vld [vmem:[%s23851_s11 + $0xee0] sm:$0xf]  ;;  %v22542_v46 = vpop.f32.mrf.mxu3  ;;  %v13401_v50 = vld [vmem:[%s23851_s11 + $0xe30] sm:$0xf] }
 0x821   : > { %v13110_v6 = vor.u32 %v15488_v25, %v13109_v0  ;;  %v14737_v0 = vld [vmem:[%s23851_s11 + $0x1890] sm:$0xf]  ;;  %v15895_v25 = vld [vmem:[%s23851_s11 + $0x18b8] sm:$0xf0] }
 0x822   : > { %10962 = vmatpush.bf16.msrb.mxu2 %v12006_v14  ;;  %11127 = vmatpush.bf16.msra.mxu3 %v13242_v56  ;;  %v15855_v14 = vld [vmem:[%s23851_s11 + $0x177c] sm:$0xf]  ;;  %v10355_v37 = vadd.f32 %v20450_v35, %v10342_v21  ;;  %v15844_v35 = vld [vmem:[%s23851_s11 + $0x1724] sm:$0xf]  ;;  %v13590_v56 = vor.u32 %v15603_v38, %v13587_v18  ;;  %v15574_v21 = vld [vmem:[%s23851_s11 + $0xeb0] sm:$0xf0]  ;;  %v10369_v38 = vpop.f32.mrf.mxu0 }
 0x823   : > { %v14594_v17 = vor.u32 %v15855_v14, %v14591_v27  ;;  %v14550_v2 = vor.u32 %v15844_v35, %v14547_v51  ;;  %v15477_v14 = vld [vmem:[%s23851_s11 + $0xba8] sm:$0xf0]  ;;  %v13499_v27 = vld [vmem:[%s23851_s11 + $0xf14] sm:$0xf0]  ;;  %v13021_v35 = vld [vmem:[%s23851_s11 + $0xb28] sm:$0xf] }
 0x824   : > { %10788 = vmatpush.bf16.msrb.mxu1 %v14682_v24  ;;  %10620 = vmatpush.bf16.msrb.mxu0 %v13578_v60  ;;  %v15585_v24 = vld [vmem:[%s23851_s11 + $0xf08] sm:$0xf0]  ;;  %v13445_v60 = vld [vmem:[%s23851_s11 + $0xe88] sm:$0xf]  ;;  %v13455_v51 = vld [vmem:[%s23851_s11 + $0xebc] sm:$0xf0] }
 0x825   : > { %v13490_v36 = vor.u32 %v15585_v24, %v13489_v42  ;;  %v13446_v13 = vor.u32 %v15574_v21, %v13445_v60  ;;  %v15570_v24 = vld [vmem:[%s23851_s11 + $0xe94] sm:$0xf]  ;;  %v15552_v21 = vld [vmem:[%s23851_s11 + $0xe00] sm:$0xf0]  ;;  %v13411_v38 = vld [vmem:[%s23851_s11 + $0xe64] sm:$0xf0] }
 0x826   : > { %10963 = vmatpush.bf16.msrb.mxu2 %v11962_v45  ;;  %11128 = vmatpush.bf16.msra.mxu3 %v13198_v63  ;;  %v22525_v45 = vadd.f32 %v10367_v41, %v10355_v37  ;;  %v10538_v18 = vpop.f32.mrf.mxu1  ;;  %v15563_v41 = vld [vmem:[%s23851_s11 + $0xe58] sm:$0xf0] }
 0x828   : > { %10789 = vmatpush.bf16.msrb.mxu1 %v14638_v20  ;;  %10621 = vmatpush.bf16.msrb.mxu0 %v13534_v1  ;;  %v15833_v20 = vld [vmem:[%s23851_s11 + $0x16cc] sm:$0xf]  ;;  %v13066_v1 = vor.u32 %v15477_v14, %v13065_v43  ;;  %v14738_v43 = vor.u32 %v15895_v25, %v14737_v0  ;;  %v15073_v14 = vld [vmem:[%s23851_s11 + $0x1b40] sm:$0xf]  ;;  %v15548_v25 = vld [vmem:[%s23851_s11 + $0xde4] sm:$0xf] }
 0x829   : > { %10964 = vmatmul.bf16.vlgmr.msrb.gmra.mxu2 %v18243_v54  ;;  %v14506_v37 = vor.u32 %v15833_v20, %v14503_v61  ;;  %v15811_v20 = vld [vmem:[%s23851_s11 + $0x161c] sm:$0xf]  ;;  %v13458_v61 = vor.u32 %v15570_v24, %v13455_v51 }
 0x82a   : > { %11008 = vmatpush.bf16.msra.mxu2 %v13678_v4  ;;  %v15592_v4 = vld [vmem:[%s23851_s11 + $0xf44] sm:$0xf]  ;;  %11129 = vmatpush.bf16.msra.mxu3 %v13154_v59  ;;  %v14459_v59 = vld [vmem:[%s23851_s11 + $0x169c] sm:$0xf0]  ;;  %v15355_v51 = vld [vmem:[%s23851_s11 + $0x7d8] sm:$0xf0] }
 0x82b   : > { %v13546_v63 = vor.u32 %v15592_v4, %v13543_v39  ;;  %v10876_v4 = vpop.f32.mrf.mxu3  ;;  %v13402_v39 = vor.u32 %v15563_v41, %v13401_v50  ;;  %v15559_v50 = vld [vmem:[%s23851_s11 + $0xe3c] sm:$0xf] }
 0x82c   : > { %10790 = vmatpush.bf16.msrb.mxu1 %v14594_v17  ;;  %10622 = vmatpush.bf16.msrb.mxu0 %v13490_v36  ;;  %v15822_v17 = vld [vmem:[%s23851_s11 + $0x1674] sm:$0xf]  ;;  %v13357_v36 = vld [vmem:[%s23851_s11 + $0xdd8] sm:$0xf]  ;;  %v13414_v24 = vor.u32 %v15559_v50, %v13411_v38  ;;  %v13367_v4 = vld [vmem:[%s23851_s11 + $0xe0c] sm:$0xf0] }
 0x82d   : > { %v13358_v18 = vor.u32 %v15552_v21, %v13357_v36  ;;  %v15083_v36 = vld [vmem:[%s23851_s11 + $0x1b74] sm:$0xf0]  ;;  %v10381_v21 = vadd.f32 %v21889_v55, %v22525_v45  ;;  %v15966_v50 = vld [vmem:[%s23851_s11 + $0x1af4] sm:$0xf]  ;;  %v15039_v38 = vld [vmem:[%s23851_s11 + $0x1b1c] sm:$0xf0] }
 0x82e   : > { %11009 = vmatpush.bf16.msra.mxu2 %v13634_v29  ;;  %v15581_v29 = vld [vmem:[%s23851_s11 + $0xeec] sm:$0xf]  ;;  %11130 = vmatpush.bf16.msra.mxu3 %v13110_v6  ;;  %v14462_v6 = vor.u32 %v15822_v17, %v14459_v59  ;;  %v15029_v59 = vld [vmem:[%s23851_s11 + $0x1ae8] sm:$0xf] }
 0x82f   : > { %v13502_v42 = vor.u32 %v15581_v29, %v13499_v27  ;;  %v15981_v29 = vld [vmem:[%s23851_s11 + $0x1b68] sm:$0xf0]  ;;  %v12617_v27 = vld [vmem:[%s23851_s11 + $0x808] sm:$0xf] }
 0x830   : > { %10791 = vmatpush.bf16.msrb.mxu1 %v14550_v2  ;;  %10623 = vmatpush.bf16.msrb.mxu0 %v13446_v13  ;;  %v22601_v2 = vpop.f32.mrf.mxu2  ;;  %v15366_v13 = vld [vmem:[%s23851_s11 + $0x830] sm:$0xf0]  ;;  %v15074_v17 = vor.u32 %v15981_v29, %v15073_v14  ;;  %v14985_v14 = vld [vmem:[%s23851_s11 + $0x1a90] sm:$0xf]  ;;  %v15959_v29 = vld [vmem:[%s23851_s11 + $0x1ab8] sm:$0xf0] }
 0x832   : > { %11010 = vmatpush.bf16.msra.mxu2 %v13590_v56  ;;  %v15466_v56 = vld [vmem:[%s23851_s11 + $0xb50] sm:$0xf0]  ;;  %11131 = vmatpush.bf16.msra.mxu3 %v13066_v1  ;;  %v15884_v1 = vld [vmem:[%s23851_s11 + $0x1860] sm:$0xf0] }
 0x833   : > { %v13022_v60 = vor.u32 %v15466_v56, %v13021_v35  ;;  %v15970_v35 = vld [vmem:[%s23851_s11 + $0x1b10] sm:$0xf0]  ;;  %v12573_v56 = vld [vmem:[%s23851_s11 + $0x7b0] sm:$0xf] }
 0x834   : > { %10792 = vmatpush.bf16.msrb.mxu1 %v14506_v37  ;;  %10624 = vmatpush.bf16.msrb.mxu0 %v13402_v39  ;;  %v14693_v37 = vld [vmem:[%s23851_s11 + $0x1838] sm:$0xf]  ;;  %v15977_v39 = vld [vmem:[%s23851_s11 + $0x1b4c] sm:$0xf] }
 0x835   : > { %v14694_v0 = vor.u32 %v15884_v1, %v14693_v37  ;;  %v15086_v55 = vor.u32 %v15977_v39, %v15083_v36  ;;  %v15862_v37 = vld [vmem:[%s23851_s11 + $0x17b0] sm:$0xf0]  ;;  %v14986_v1 = vor.u32 %v15959_v29, %v14985_v14  ;;  %v12441_v14 = vld [vmem:[%s23851_s11 + $0x6a8] sm:$0xf] }
 0x836   : > { %11011 = vmatpush.bf16.msra.mxu2 %v13546_v63  ;;  %v14415_v63 = vld [vmem:[%s23851_s11 + $0x1644] sm:$0xf0]  ;;  %11132 = vmatpush.bf16.msra.mxu3 %v13022_v60  ;;  %v15873_v60 = vld [vmem:[%s23851_s11 + $0x1808] sm:$0xf0]  ;;  %v15322_v29 = vld [vmem:[%s23851_s11 + $0x6d0] sm:$0xf0] }
 0x837   : > { %v14418_v41 = vor.u32 %v15811_v20, %v14415_v63  ;;  %v15030_v63 = vor.u32 %v15970_v35, %v15029_v59  ;;  %v14941_v59 = vld [vmem:[%s23851_s11 + $0x1a38] sm:$0xf] }
 0x838   : > { %10793 = vmatpush.bf16.msrb.mxu1 %v14462_v6  ;;  %10625 = vmatpush.bf16.msrb.mxu0 %v13358_v18  ;;  %v14649_v6 = vld [vmem:[%s23851_s11 + $0x17e0] sm:$0xf]  ;;  %v10759_v20 = vpop.f32.mrf.mxu2  ;;  %v14605_v18 = vld [vmem:[%s23851_s11 + $0x1788] sm:$0xf] }
 0x839   : > { %11133 = vmatmul.bf16.vlgmr.msra.gmra.mxu3 %v18277_v32  ;;  %v14650_v45 = vor.u32 %v15873_v60, %v14649_v6  ;;  %v14606_v35 = vor.u32 %v15862_v37, %v14605_v18  ;;  %v10419_v6 = vpop.f32.mrf.mxu0  ;;  %v15937_v20 = vld [vmem:[%s23851_s11 + $0x1a08] sm:$0xf0]  ;;  %v12442_v18 = vor.u32 %v15322_v29, %v12441_v14  ;;  %v14853_v37 = vld [vmem:[%s23851_s11 + $0x1988] sm:$0xf]  ;;  %v15818_v29 = vld [vmem:[%s23851_s11 + $0x1650] sm:$0xf0] }
 0x83a   : > { %11012 = vmatpush.bf16.msra.mxu2 %v13502_v42  ;;  %11177 = vmatpush.bf16.msrb.mxu3 %v14738_v43  ;;  %v12618_v42 = vor.u32 %v15366_v13, %v12617_v27  ;;  %v13370_v43 = vor.u32 %v15548_v25, %v13367_v4  ;;  %v12529_v27 = vld [vmem:[%s23851_s11 + $0x758] sm:$0xf]  ;;  %v15344_v13 = vld [vmem:[%s23851_s11 + $0x780] sm:$0xf0]  ;;  %v14561_v25 = vld [vmem:[%s23851_s11 + $0x1730] sm:$0xf] }
 0x83b   : > { %10626 = vmatmul.bf16.vlgmr.msrb.gmra.mxu0 %v18659_v26  ;;  %v15851_v4 = vld [vmem:[%s23851_s11 + $0x1758] sm:$0xf0]  ;;  %v14429_v14 = vld [vmem:[%s23851_s11 + $0x1628] sm:$0xf] }
 0x83c   : > { %10794 = vmatpush.bf16.msrb.mxu1 %v14418_v41  ;;  %10670 = vmatpush.bf16.msra.mxu0 %v15074_v17  ;;  %v10394_v41 = vadd.f32 %v21130_v34, %v10381_v21  ;;  %v12530_v17 = vor.u32 %v15344_v13, %v12529_v27  ;;  %v15333_v34 = vld [vmem:[%s23851_s11 + $0x728] sm:$0xf0]  ;;  %v14897_v21 = vld [vmem:[%s23851_s11 + $0x19e0] sm:$0xf]  ;;  %v14517_v27 = vld [vmem:[%s23851_s11 + $0x16d8] sm:$0xf] }
 0x83d   : > { %v15840_v13 = vld [vmem:[%s23851_s11 + $0x1700] sm:$0xf0] }
 0x83e   : > { %11013 = vmatpush.bf16.msra.mxu2 %v13458_v61  ;;  %v12574_v61 = vor.u32 %v15355_v51, %v12573_v56  ;;  %11178 = vmatpush.bf16.msrb.mxu3 %v14694_v0  ;;  %v12485_v56 = vld [vmem:[%s23851_s11 + $0x700] sm:$0xf]  ;;  %v15955_v51 = vld [vmem:[%s23851_s11 + $0x1a9c] sm:$0xf]  ;;  %v14995_v0 = vld [vmem:[%s23851_s11 + $0x1ac4] sm:$0xf0]  ;;  %v10407_v39 = vadd.f32 %v20655_v5, %v10394_v41  ;;  %v14562_v5 = vor.u32 %v15851_v4, %v14561_v25 }
 0x83f   : > { %10795 = vmatmul.bf16.vlgmr.msrb.gmra.mxu1 %v18691_v16  ;;  %v12486_v60 = vor.u32 %v15333_v34, %v12485_v56  ;;  %v14473_v56 = vld [vmem:[%s23851_s11 + $0x1680] sm:$0xf]  ;;  %v15829_v34 = vld [vmem:[%s23851_s11 + $0x16a8] sm:$0xf0]  ;;  %v14809_v4 = vld [vmem:[%s23851_s11 + $0x1930] sm:$0xf] }
 0x840   : > { %10839 = vmatpush.bf16.msra.mxu1 %v12618_v42  ;;  %10671 = vmatpush.bf16.msra.mxu0 %v15030_v63  ;;  %v15948_v42 = vld [vmem:[%s23851_s11 + $0x1a60] sm:$0xf0]  ;;  %v22728_v63 = vadd.f32 %v10419_v6, %v10407_v39  ;;  %v15915_v39 = vld [vmem:[%s23851_s11 + $0x1958] sm:$0xf0] }
 0x841   : > { %v14942_v36 = vor.u32 %v15948_v42, %v14941_v59  ;;  %v12397_v59 = vld [vmem:[%s23851_s11 + $0x650] sm:$0xf]  ;;  %v15311_v42 = vld [vmem:[%s23851_s11 + $0x678] sm:$0xf0] }
 0x842   : > { %11014 = vmatpush.bf16.msra.mxu2 %v13414_v24  ;;  %11179 = vmatpush.bf16.msrb.mxu3 %v14650_v45  ;;  %v15042_v24 = vor.u32 %v15966_v50, %v15039_v38  ;;  %v14951_v45 = vld [vmem:[%s23851_s11 + $0x1a6c] sm:$0xf0]  ;;  %v22750_v50 = vpop.f32.mrf.mxu3  ;;  %v14898_v38 = vor.u32 %v15937_v20, %v14897_v21  ;;  %v12398_v25 = vor.u32 %v15311_v42, %v12397_v59  ;;  %v12353_v21 = vld [vmem:[%s23851_s11 + $0x5f8] sm:$0xf]  ;;  %v15300_v20 = vld [vmem:[%s23851_s11 + $0x620] sm:$0xf0] }
 0x843   : > { %v15448_v59 = vld [vmem:[%s23851_s11 + $0xac4] sm:$0xf]  ;;  %v12963_v42 = vld [vmem:[%s23851_s11 + $0xaec] sm:$0xf0] }
 0x844   : > { %10840 = vmatpush.bf16.msra.mxu1 %v12574_v61  ;;  %10672 = vmatpush.bf16.msra.mxu0 %v14986_v1  ;;  %v22730_v61 = vpop.f32.mrf.mxu1  ;;  %v15926_v1 = vld [vmem:[%s23851_s11 + $0x19b0] sm:$0xf0] }
 0x846   : > { %11015 = vmatpush.bf16.msra.mxu2 %v13370_v43  ;;  %11180 = vmatpush.bf16.msrb.mxu3 %v14606_v35  ;;  %v14998_v43 = vor.u32 %v15955_v51, %v14995_v0  ;;  %v14907_v35 = vld [vmem:[%s23851_s11 + $0x1a14] sm:$0xf0]  ;;  %v14854_v51 = vor.u32 %v15926_v1, %v14853_v37  ;;  %v10421_v0 = vpop.f32.mrf.mxu0  ;;  %v14430_v1 = vor.u32 %v15818_v29, %v14429_v14  ;;  %v12977_v14 = vld [vmem:[%s23851_s11 + $0xad0] sm:$0xf]  ;;  %v15455_v29 = vld [vmem:[%s23851_s11 + $0xaf8] sm:$0xf0] }
 0x848   : > { %10841 = vmatpush.bf16.msra.mxu1 %v12530_v17  ;;  %10673 = vmatpush.bf16.msra.mxu0 %v14942_v36  ;;  %v14518_v17 = vor.u32 %v15840_v13, %v14517_v27  ;;  %v12354_v13 = vor.u32 %v15300_v20, %v12353_v21  ;;  %v13981_v21 = vld [vmem:[%s23851_s11 + $0x12b0] sm:$0xf]  ;;  %v15900_v20 = vld [vmem:[%s23851_s11 + $0x18e4] sm:$0xf] }
 0x849   : > { %11016 = vmatmul.bf16.vlgmr.msra.gmra.mxu2 %v18659_v26 }
 0x84a   : > { %11060 = vmatpush.bf16.msrb.mxu2 %v15086_v55  ;;  %v15944_v55 = vld [vmem:[%s23851_s11 + $0x1a44] sm:$0xf]  ;;  %11181 = vmatpush.bf16.msrb.mxu3 %v14562_v5  ;;  %v14863_v5 = vld [vmem:[%s23851_s11 + $0x19bc] sm:$0xf0] }
 0x84b   : > { %v14954_v41 = vor.u32 %v15944_v55, %v14951_v45  ;;  %v10928_v55 = vpop.f32.mrf.mxu3  ;;  %v14810_v45 = vor.u32 %v15915_v39, %v14809_v4  ;;  %v12966_v4 = vor.u32 %v15448_v59, %v12963_v42  ;;  %v15444_v59 = vld [vmem:[%s23851_s11 + $0xaa0] sm:$0xf0] }
 0x84c   : > { %10842 = vmatpush.bf16.msra.mxu1 %v12486_v60  ;;  %10674 = vmatpush.bf16.msra.mxu0 %v14898_v38  ;;  %v10590_v36 = vpop.f32.mrf.mxu1  ;;  %v14474_v60 = vor.u32 %v15829_v34, %v14473_v56  ;;  %v22800_v27 = vpop.f32.mrf.mxu2  ;;  %v14765_v38 = vld [vmem:[%s23851_s11 + $0x18d8] sm:$0xf]  ;;  %v15911_v34 = vld [vmem:[%s23851_s11 + $0x193c] sm:$0xf] }
 0x84d   : > { %v15437_v36 = vld [vmem:[%s23851_s11 + $0xa6c] sm:$0xf] }
 0x84e   : > { %11061 = vmatpush.bf16.msrb.mxu2 %v15042_v24  ;;  %v15933_v24 = vld [vmem:[%s23851_s11 + $0x19ec] sm:$0xf]  ;;  %11182 = vmatpush.bf16.msrb.mxu3 %v14518_v17 }
 0x84f   : > { %v14910_v6 = vor.u32 %v15933_v24, %v14907_v35  ;;  %v15289_v17 = vld [vmem:[%s23851_s11 + $0x5c8] sm:$0xf0]  ;;  %v14025_v24 = vld [vmem:[%s23851_s11 + $0x1308] sm:$0xf]  ;;  %v15718_v35 = vld [vmem:[%s23851_s11 + $0x1330] sm:$0xf0] }
 0x850   : > { %10843 = vmatpush.bf16.msra.mxu1 %v12442_v18  ;;  %10675 = vmatpush.bf16.msra.mxu0 %v14854_v51  ;;  %v15904_v18 = vld [vmem:[%s23851_s11 + $0x1900] sm:$0xf0]  ;;  %v14819_v51 = vld [vmem:[%s23851_s11 + $0x1964] sm:$0xf0]  ;;  %v14026_v39 = vor.u32 %v15718_v35, %v14025_v24 }
 0x851   : > { %v14766_v56 = vor.u32 %v15904_v18, %v14765_v38  ;;  %v15426_v18 = vld [vmem:[%s23851_s11 + $0xa14] sm:$0xf] }
 0x852   : > { %11062 = vmatpush.bf16.msrb.mxu2 %v14998_v43  ;;  %v15922_v43 = vld [vmem:[%s23851_s11 + $0x1994] sm:$0xf]  ;;  %11183 = vmatpush.bf16.msrb.mxu3 %v14474_v60  ;;  %v12919_v60 = vld [vmem:[%s23851_s11 + $0xa94] sm:$0xf0] }
 0x853   : > { %v14866_v37 = vor.u32 %v15922_v43, %v14863_v5  ;;  %v14775_v43 = vld [vmem:[%s23851_s11 + $0x190c] sm:$0xf0] }
 0x854   : > { %10844 = vmatpush.bf16.msra.mxu1 %v12398_v25  ;;  %10676 = vmatpush.bf16.msra.mxu0 %v14810_v45  ;;  %v9756_v25 = vperm.slane %v22277_v44, 5  ;;  %v15707_v44 = vld [vmem:[%s23851_s11 + $0x12d8] sm:$0xf0]  ;;  %v10811_v5 = vpop.f32.mrf.mxu2  ;;  %v12922_v45 = vor.u32 %v15437_v36, %v12919_v60  ;;  %v14778_v38 = vor.u32 %v15900_v20, %v14775_v43  ;;  %v12787_v20 = vld [vmem:[%s23851_s11 + $0x98c] sm:$0xf0] }
 0x856   : > { %11063 = vmatpush.bf16.msrb.mxu2 %v14954_v41  ;;  %v12309_v41 = vld [vmem:[%s23851_s11 + $0x5a0] sm:$0xf]  ;;  %11184 = vmatpush.bf16.msrb.mxu3 %v14430_v1  ;;  %v10433_v55 = vadd.f32 %v22089_v47, %v9756_v25  ;;  %v12978_v1 = vor.u32 %v15455_v29, %v12977_v14  ;;  %v13937_v47 = vld [vmem:[%s23851_s11 + $0x1258] sm:$0xf]  ;;  %v15674_v14 = vld [vmem:[%s23851_s11 + $0x11d0] sm:$0xf0] }
 0x857   : > { %v12310_v0 = vor.u32 %v15289_v17, %v12309_v41  ;;  %v15696_v41 = vld [vmem:[%s23851_s11 + $0x1280] sm:$0xf0]  ;;  %v12933_v17 = vld [vmem:[%s23851_s11 + $0xa78] sm:$0xf]  ;;  %v12889_v25 = vld [vmem:[%s23851_s11 + $0xa20] sm:$0xf] }
 0x858   : > { %10845 = vmatpush.bf16.msra.mxu1 %v12354_v13  ;;  %10677 = vmatpush.bf16.msra.mxu0 %v14766_v56  ;;  %v13982_v13 = vor.u32 %v15707_v44, %v13981_v21  ;;  %v10446_v42 = vadd.f32 %v21344_v19, %v10433_v55  ;;  %v13938_v35 = vor.u32 %v15696_v41, %v13937_v47  ;;  %v15415_v56 = vld [vmem:[%s23851_s11 + $0x9bc] sm:$0xf]  ;;  %v15685_v19 = vld [vmem:[%s23851_s11 + $0x1228] sm:$0xf0]  ;;  %v15404_v44 = vld [vmem:[%s23851_s11 + $0x964] sm:$0xf] }
 0x859   : > { %11185 = vmatmul.bf16.vlgmr.msrb.gmra.mxu3 %v18691_v16  ;;  %v12845_v29 = vld [vmem:[%s23851_s11 + $0x9c8] sm:$0xf]  ;;  %v15422_v55 = vld [vmem:[%s23851_s11 + $0x9f0] sm:$0xf0]  ;;  %v13805_v47 = vld [vmem:[%s23851_s11 + $0x1150] sm:$0xf] }
 0x85a   : > { %11064 = vmatpush.bf16.msrb.mxu2 %v14910_v6  ;;  %v14822_v6 = vor.u32 %v15911_v34, %v14819_v51  ;;  %v12831_v34 = vld [vmem:[%s23851_s11 + $0x9e4] sm:$0xf0]  ;;  %v12934_v51 = vor.u32 %v15444_v59, %v12933_v17  ;;  %v15663_v41 = vld [vmem:[%s23851_s11 + $0x1178] sm:$0xf0]  ;;  %v12801_v17 = vld [vmem:[%s23851_s11 + $0x970] sm:$0xf] }
 0x85b   : > { %10678 = vmatmul.bf16.vlgmr.msra.gmra.mxu0 %v19741_v48  ;;  %v12834_v36 = vor.u32 %v15415_v56, %v12831_v34  ;;  %v15411_v59 = vld [vmem:[%s23851_s11 + $0x998] sm:$0xf0]  ;;  %v13806_v56 = vor.u32 %v15663_v41, %v13805_v47  ;;  %v15382_v34 = vld [vmem:[%s23851_s11 + $0x8b4] sm:$0xf] }
 0x85c   : > { %10846 = vmatpush.bf16.msra.mxu1 %v12310_v0  ;;  %10722 = vmatpush.bf16.msrb.mxu0 %v12966_v4  ;;  %v13893_v0 = vld [vmem:[%s23851_s11 + $0x1200] sm:$0xf]  ;;  %v15433_v4 = vld [vmem:[%s23851_s11 + $0xa48] sm:$0xf0]  ;;  %v22900_v60 = vpop.f32.mrf.mxu1 }
 0x85d   : > { %v13894_v21 = vor.u32 %v15685_v19, %v13893_v0  ;;  %v12890_v5 = vor.u32 %v15433_v4, %v12889_v25  ;;  %v12802_v0 = vor.u32 %v15411_v59, %v12801_v17  ;;  %v13761_v19 = vld [vmem:[%s23851_s11 + $0x10f8] sm:$0xf]  ;;  %v15652_v25 = vld [vmem:[%s23851_s11 + $0x1120] sm:$0xf0] }
 0x85e   : > { %11065 = vmatpush.bf16.msrb.mxu2 %v14866_v37  ;;  %v12875_v37 = vld [vmem:[%s23851_s11 + $0xa3c] sm:$0xf0]  ;;  %v12757_v4 = vld [vmem:[%s23851_s11 + $0x918] sm:$0xf] }
 0x85f   : > { %10847 = vmatmul.bf16.vlgmr.msra.gmra.mxu1 %v18126_v31  ;;  %v12878_v24 = vor.u32 %v15426_v18, %v12875_v37  ;;  %v15393_v18 = vld [vmem:[%s23851_s11 + $0x90c] sm:$0xf]  ;;  %v12743_v37 = vld [vmem:[%s23851_s11 + $0x934] sm:$0xf0] }
 0x860   : > { %10891 = vmatpush.bf16.msrb.mxu1 %v14026_v39  ;;  %10723 = vmatpush.bf16.msrb.mxu0 %v12922_v45  ;;  %v10459_v39 = vadd.f32 %v20864_v58, %v10446_v42  ;;  %v13849_v58 = vld [vmem:[%s23851_s11 + $0x11a8] sm:$0xf]  ;;  %v22922_v45 = vpop.f32.mrf.mxu3  ;;  %v12746_v42 = vor.u32 %v15393_v18, %v12743_v37  ;;  %v11915_v18 = vld [vmem:[%s23851_s11 + $0x2b4] sm:$0xf0]  ;;  %v12713_v37 = vld [vmem:[%s23851_s11 + $0x8c0] sm:$0xf] }
 0x862   : > { %11066 = vmatpush.bf16.msrb.mxu2 %v14822_v6  ;;  %v10471_v6 = vpop.f32.mrf.mxu0 }
 0x863   : > { %v22908_v43 = vadd.f32 %v10471_v6, %v10459_v39  ;;  %v15400_v39 = vld [vmem:[%s23851_s11 + $0x940] sm:$0xf0] }
 0x864   : > { %10892 = vmatpush.bf16.msrb.mxu1 %v13982_v13  ;;  %10724 = vmatpush.bf16.msrb.mxu0 %v12878_v24  ;;  %v12790_v13 = vor.u32 %v15404_v44, %v12787_v20  ;;  %v13762_v20 = vor.u32 %v15652_v25, %v13761_v19  ;;  %v14385_v19 = vld [vmem:[%s23851_s11 + $0x15d0] sm:$0xf]  ;;  %v15807_v25 = vld [vmem:[%s23851_s11 + $0x15f8] sm:$0xf0] }
 0x866   : > { %11067 = vmatpush.bf16.msrb.mxu2 %v14778_v38  ;;  %v13850_v38 = vor.u32 %v15674_v14, %v13849_v58  ;;  %v13717_v58 = vld [vmem:[%s23851_s11 + $0x10a0] sm:$0xf]  ;;  %v15641_v14 = vld [vmem:[%s23851_s11 + $0x10c8] sm:$0xf0] }
 0x867   : > { %v13718_v41 = vor.u32 %v15641_v14, %v13717_v58  ;;  %v14386_v58 = vor.u32 %v15807_v25, %v14385_v19  ;;  %v14341_v14 = vld [vmem:[%s23851_s11 + $0x1578] sm:$0xf] }
 0x868   : > { %10893 = vmatpush.bf16.msrb.mxu1 %v13938_v35  ;;  %10725 = vmatpush.bf16.msrb.mxu0 %v12834_v36  ;;  %v10642_v35 = vpop.f32.mrf.mxu1  ;;  %v10980_v36 = vpop.f32.mrf.mxu3  ;;  %v11739_v25 = vld [vmem:[%s23851_s11 + $0x154] sm:$0xf0] }
 0x869   : > { %11068 = vmatmul.bf16.vlgmr.msrb.gmra.mxu2 %v19741_v48  ;;  %v14327_v35 = vld [vmem:[%s23851_s11 + $0x1594] sm:$0xf0] }
 0x86a   : > { %11112 = vmatpush.bf16.msra.mxu2 %v12978_v1  ;;  %v12846_v1 = vor.u32 %v15422_v55, %v12845_v29  ;;  %v10473_v24 = vpop.f32.mrf.mxu0  ;;  %v12758_v29 = vor.u32 %v15400_v39, %v12757_v4  ;;  %v15800_v55 = vld [vmem:[%s23851_s11 + $0x15c4] sm:$0xf]  ;;  %v10485_v4 = vadd.f32 %v22314_v3, %v22908_v43  ;;  %v15163_v3 = vld [vmem:[%s23851_s11 + $0x1dc] sm:$0xf]  ;;  %v11827_v43 = vld [vmem:[%s23851_s11 + $0x204] sm:$0xf0] }
 0x86b   : > { %v15789_v24 = vld [vmem:[%s23851_s11 + $0x156c] sm:$0xf] }
 0x86c   : > { %10894 = vmatpush.bf16.msrb.mxu1 %v13894_v21  ;;  %10726 = vmatpush.bf16.msrb.mxu0 %v12790_v13  ;;  %v15371_v21 = vld [vmem:[%s23851_s11 + $0x85c] sm:$0xf]  ;;  %v22963_v44 = vpop.f32.mrf.mxu2  ;;  %v14371_v13 = vld [vmem:[%s23851_s11 + $0x15ec] sm:$0xf0]  ;;  %v14330_v36 = vor.u32 %v15789_v24, %v14327_v35 }
 0x86d   : > { %v14374_v17 = vor.u32 %v15800_v55, %v14371_v13  ;;  %v10498_v13 = vadd.f32 %v21549_v62, %v10485_v4  ;;  %v11783_v62 = vld [vmem:[%s23851_s11 + $0x1ac] sm:$0xf0]  ;;  %v14253_v4 = vld [vmem:[%s23851_s11 + $0x14c8] sm:$0xf] }
 0x86e   : > { %11113 = vmatpush.bf16.msra.mxu2 %v12934_v51  ;;  %v12699_v51 = vld [vmem:[%s23851_s11 + $0x8dc] sm:$0xf0] }
 0x86f   : > { %v12702_v6 = vor.u32 %v15382_v34, %v12699_v51  ;;  %v11871_v34 = vld [vmem:[%s23851_s11 + $0x25c] sm:$0xf0]  ;;  %v12669_v51 = vld [vmem:[%s23851_s11 + $0x868] sm:$0xf] }
 0x870   : > { %10895 = vmatpush.bf16.msrb.mxu1 %v13850_v38  ;;  %10727 = vmatpush.bf16.msrb.mxu0 %v12746_v42  ;;  %v15185_v38 = vld [vmem:[%s23851_s11 + $0x28c] sm:$0xf] }
 0x871   : > { %v11918_v59 = vor.u32 %v15185_v38, %v11915_v18  ;;  %v11830_v38 = vor.u32 %v15163_v3, %v11827_v43  ;;  %v15767_v18 = vld [vmem:[%s23851_s11 + $0x14bc] sm:$0xf] }
 0x872   : > { %11114 = vmatpush.bf16.msra.mxu2 %v12890_v5  ;;  %v12655_v5 = vld [vmem:[%s23851_s11 + $0x884] sm:$0xf0] }
 0x873   : > { %v12658_v47 = vor.u32 %v15371_v21, %v12655_v5  ;;  %v14283_v5 = vld [vmem:[%s23851_s11 + $0x153c] sm:$0xf0] }
 0x874   : > { %10896 = vmatpush.bf16.msrb.mxu1 %v13806_v56  ;;  %10728 = vmatpush.bf16.msrb.mxu0 %v12702_v6  ;;  %v15174_v56 = vld [vmem:[%s23851_s11 + $0x234] sm:$0xf]  ;;  %v10863_v39 = vpop.f32.mrf.mxu2 }
 0x875   : > { %v11874_v6 = vor.u32 %v15174_v56, %v11871_v34  ;;  %v15756_v56 = vld [vmem:[%s23851_s11 + $0x1464] sm:$0xf]  ;;  %v14195_v34 = vld [vmem:[%s23851_s11 + $0x148c] sm:$0xf0]  ;;  %v15774_v39 = vld [vmem:[%s23851_s11 + $0x14f0] sm:$0xf0] }
 0x876   : > { %11115 = vmatpush.bf16.msra.mxu2 %v12846_v1  ;;  %v15389_v1 = vld [vmem:[%s23851_s11 + $0x8e8] sm:$0xf0]  ;;  %v14254_v43 = vor.u32 %v15774_v39, %v14253_v4  ;;  %v11607_v4 = vld [vmem:[%s23851_s11 + $0x4c] sm:$0xf0] }
 0x877   : > { %v12714_v42 = vor.u32 %v15389_v1, %v12713_v37  ;;  %v14239_v37 = vld [vmem:[%s23851_s11 + $0x14e4] sm:$0xf0] }
 0x878   : > { %10897 = vmatpush.bf16.msrb.mxu1 %v13762_v20  ;;  %10729 = vmatpush.bf16.msrb.mxu0 %v12658_v47  ;;  %v15778_v20 = vld [vmem:[%s23851_s11 + $0x1514] sm:$0xf]  ;;  %v15152_v47 = vld [vmem:[%s23851_s11 + $0x184] sm:$0xf]  ;;  %v10523_v24 = vpop.f32.mrf.mxu0 }
 0x879   : > { %v14286_v55 = vor.u32 %v15778_v20, %v14283_v5  ;;  %v11786_v35 = vor.u32 %v15152_v47, %v11783_v62  ;;  %v15745_v5 = vld [vmem:[%s23851_s11 + $0x140c] sm:$0xf]  ;;  %v14107_v47 = vld [vmem:[%s23851_s11 + $0x13dc] sm:$0xf0] }
 0x87a   : > { %11116 = vmatpush.bf16.msra.mxu2 %v12802_v0  ;;  %v15378_v0 = vld [vmem:[%s23851_s11 + $0x890] sm:$0xf0] }
 0x87b   : > { %v12670_v21 = vor.u32 %v15378_v0, %v12669_v51  ;;  %10730 = vmatmul.bf16.vlgmr.msrb.gmra.mxu0 %v17820_v10 }
 0x87c   : > { %10898 = vmatpush.bf16.msrb.mxu1 %v13718_v41  ;;  %10774 = vmatpush.bf16.msra.mxu0 %v14374_v17  ;;  %v14297_v41 = vld [vmem:[%s23851_s11 + $0x1520] sm:$0xf]  ;;  %v15785_v17 = vld [vmem:[%s23851_s11 + $0x1548] sm:$0xf0]  ;;  %v23065_v0 = vpop.f32.mrf.mxu1 }
 0x87d   : > { %v14298_v19 = vor.u32 %v15785_v17, %v14297_v41 }
 0x87e   : > { %11117 = vmatpush.bf16.msra.mxu2 %v12758_v29  ;;  %v15796_v29 = vld [vmem:[%s23851_s11 + $0x15a0] sm:$0xf0] }
 0x87f   : > { %10899 = vmatmul.bf16.vlgmr.msrb.gmra.mxu1 %v18229_v57  ;;  %v14342_v1 = vor.u32 %v15796_v29, %v14341_v14  ;;  %v11695_v14 = vld [vmem:[%s23851_s11 + $0xfc] sm:$0xf0]  ;;  %v14209_v29 = vld [vmem:[%s23851_s11 + $0x1470] sm:$0xf] }
 0x880   : > { %10943 = vmatpush.bf16.msra.mxu1 %v11918_v59  ;;  %10775 = vmatpush.bf16.msra.mxu0 %v14330_v36  ;;  %v10511_v59 = vadd.f32 %v21070_v12, %v10498_v13  ;;  %v15141_v12 = vld [vmem:[%s23851_s11 + $0x12c] sm:$0xf] }
 0x881   : > { %v11742_v20 = vor.u32 %v15141_v12, %v11739_v25  ;;  %v14063_v12 = vld [vmem:[%s23851_s11 + $0x1384] sm:$0xf0]  ;;  %v15108_v25 = vld [vmem:[%s23851_s11 + $0x24] sm:$0xf] }
 0x882   : > { %11118 = vmatpush.bf16.msra.mxu2 %v12714_v42  ;;  %v14242_v42 = vor.u32 %v15767_v18, %v14239_v37  ;;  %v10524_v51 = vadd.f32 %v10523_v24, %v10511_v59  ;;  %v10525_v18 = vpop.f32.mrf.mxu0  ;;  %v11651_v59 = vld [vmem:[%s23851_s11 + $0xa4] sm:$0xf0]  ;;  %v15752_v24 = vld [vmem:[%s23851_s11 + $0x1440] sm:$0xf0] }
 0x883   : > { %v13279_v18 = vld [vmem:[%s23851_s11 + $0xd5c] sm:$0xf0] }
 0x884   : > { %10944 = vmatpush.bf16.msra.mxu1 %v11874_v6  ;;  %10776 = vmatpush.bf16.msra.mxu0 %v14286_v55  ;;  %v10537_v36 = vadd.f32 %v22514_v15, %v10524_v51  ;;  %v23080_v6 = vpop.f32.mrf.mxu3  ;;  %v15130_v15 = vld [vmem:[%s23851_s11 + $0xd4] sm:$0xf]  ;;  %v15763_v55 = vld [vmem:[%s23851_s11 + $0x1498] sm:$0xf0]  ;;  %v10694_v41 = vpop.f32.mrf.mxu1 }
 0x885   : > { %v11698_v37 = vor.u32 %v15130_v15, %v11695_v14  ;;  %v14210_v17 = vor.u32 %v15763_v55, %v14209_v29  ;;  %v11610_v15 = vor.u32 %v15108_v25, %v11607_v4  ;;  %v12133_v25 = vld [vmem:[%s23851_s11 + $0x440] sm:$0xf]  ;;  %v15504_v4 = vld [vmem:[%s23851_s11 + $0xc84] sm:$0xf] }
 0x886   : > { %11119 = vmatpush.bf16.msra.mxu2 %v12670_v21  ;;  %v14198_v21 = vor.u32 %v15756_v56, %v14195_v34  ;;  %v10550_v3 = vadd.f32 %v21760_v7, %v10537_v36  ;;  %v11217_v7 = vrot.slane %v22728_v63, 4  ;;  %v15119_v63 = vld [vmem:[%s23851_s11 + $0x7c] sm:$0xf]  ;;  %v12265_v36 = vld [vmem:[%s23851_s11 + $0x548] sm:$0xf] }
 0x887   : > { %v15723_v34 = vld [vmem:[%s23851_s11 + $0x135c] sm:$0xf] }
 0x888   : > { %10945 = vmatpush.bf16.msra.mxu1 %v11830_v38  ;;  %10777 = vmatpush.bf16.msra.mxu0 %v14242_v42  ;;  %v11218_v13 = vrot.slane %v10550_v3, 3  ;;  %v14165_v42 = vld [vmem:[%s23851_s11 + $0x1418] sm:$0xf]  ;;  %v15741_v3 = vld [vmem:[%s23851_s11 + $0x13e8] sm:$0xf0] }
 0x889   : > { %11120 = vmatmul.bf16.vlgmr.msra.gmra.mxu2 %v17820_v10  ;;  %v14166_v39 = vor.u32 %v15752_v24, %v14165_v42  ;;  %v15256_v42 = vld [vmem:[%s23851_s11 + $0x4c0] sm:$0xf0]  ;;  %v15515_v24 = vld [vmem:[%s23851_s11 + $0xcdc] sm:$0xf] }
 0x88a   : > { %11164 = vmatpush.bf16.msrb.mxu2 %v14386_v58  ;;  %v14151_v58 = vld [vmem:[%s23851_s11 + $0x1434] sm:$0xf0]  ;;  %v23108_v62 = vsel %vm11229_vm6, %v11217_v7, %v11218_v13  ;;  %v12221_v7 = vld [vmem:[%s23851_s11 + $0x4f0] sm:$0xf]  ;;  %v15267_v13 = vld [vmem:[%s23851_s11 + $0x518] sm:$0xf0] }
 0x88b   : > { %v14154_v38 = vor.u32 %v15745_v5, %v14151_v58  ;;  %v13323_v5 = vld [vmem:[%s23851_s11 + $0xdb4] sm:$0xf0]  ;;  %v14121_v58 = vld [vmem:[%s23851_s11 + $0x13c0] sm:$0xf]  ;;  %v12222_v41 = vor.u32 %v15267_v13, %v12221_v7  ;;  %v12045_v13 = vld [vmem:[%s23851_s11 + $0x390] sm:$0xf] }
 0x88c   : > { %10946 = vmatpush.bf16.msra.mxu1 %v11786_v35  ;;  %10778 = vmatpush.bf16.msra.mxu0 %v14198_v21  ;;  %v11032_v35 = vpop.f32.mrf.mxu3  ;;  %v23125_v51 = vpop.f32.mrf.mxu2  ;;  %v15278_v21 = vld [vmem:[%s23851_s11 + $0x570] sm:$0xf0]  ;;  %v14122_v55 = vor.u32 %v15741_v3, %v14121_v58 }
 0x88d   : > { %v12266_v14 = vor.u32 %v15278_v21, %v12265_v36  ;;  %v13235_v35 = vld [vmem:[%s23851_s11 + $0xd04] sm:$0xf0]  ;;  %v15234_v58 = vld [vmem:[%s23851_s11 + $0x410] sm:$0xf0] }
 0x88e   : > { %11165 = vmatpush.bf16.msrb.mxu2 %v14342_v1  ;;  %v15734_v1 = vld [vmem:[%s23851_s11 + $0x13b4] sm:$0xf] }
 0x88f   : > { %v14110_v56 = vor.u32 %v15734_v1, %v14107_v47  ;;  %v15730_v1 = vld [vmem:[%s23851_s11 + $0x1390] sm:$0xf0] }
 0x890   : > { %10947 = vmatpush.bf16.msra.mxu1 %v11742_v20  ;;  %10779 = vmatpush.bf16.msra.mxu0 %v14154_v38  ;;  %v15537_v20 = vld [vmem:[%s23851_s11 + $0xd8c] sm:$0xf]  ;;  %v15526_v38 = vld [vmem:[%s23851_s11 + $0xd34] sm:$0xf] }
 0x891   : > { %v13326_v29 = vor.u32 %v15537_v20, %v13323_v5  ;;  %v12089_v5 = vld [vmem:[%s23851_s11 + $0x3e8] sm:$0xf] }
 0x892   : > { %11166 = vmatpush.bf16.msrb.mxu2 %v14298_v19  ;;  %v11654_v19 = vor.u32 %v15119_v63, %v11651_v59  ;;  %v12177_v59 = vld [vmem:[%s23851_s11 + $0x498] sm:$0xf] }
 0x894   : > { %10948 = vmatpush.bf16.msra.mxu1 %v11698_v37  ;;  %10780 = vmatpush.bf16.msra.mxu0 %v14110_v56  ;;  %v14077_v37 = vld [vmem:[%s23851_s11 + $0x1368] sm:$0xf]  ;;  %v10915_v47 = vpop.f32.mrf.mxu2  ;;  %v12178_v56 = vor.u32 %v15256_v42, %v12177_v59  ;;  %v15471_v42 = vld [vmem:[%s23851_s11 + $0xb7c] sm:$0xf] }
 0x895   : > { %v14078_v63 = vor.u32 %v15730_v1, %v14077_v37  ;;  %v13103_v37 = vld [vmem:[%s23851_s11 + $0xbfc] sm:$0xf0] }
 0x896   : > { %11167 = vmatpush.bf16.msrb.mxu2 %v14254_v43  ;;  %v14066_v43 = vor.u32 %v15723_v34, %v14063_v12  ;;  %v23189_v34 = vld [vmem:[%s23852_s12] sm:$0xff]  ;;  %v13238_v12 = vor.u32 %v15515_v24, %v13235_v35  ;;  %v13059_v24 = vld [vmem:[%s23851_s11 + $0xba4] sm:$0xf0] }
 0x898   : > { %10949 = vmatpush.bf16.msra.mxu1 %v11654_v19  ;;  %10781 = vmatpush.bf16.msra.mxu0 %v14066_v43  ;;  %v9757_v19 = vperm.slane %v23189_v34, 6  ;;  %v10575_v3 = vpop.f32.mrf.mxu0 }
 0x89a   : > { %11168 = vmatpush.bf16.msrb.mxu2 %v14210_v17  ;;  %v13282_v17 = vor.u32 %v15526_v38, %v13279_v18  ;;  %v10563_v21 = vadd.f32 %v21285_v40, %v9757_v19  ;;  %v13147_v40 = vld [vmem:[%s23851_s11 + $0xc54] sm:$0xf0]  ;;  %v15223_v38 = vld [vmem:[%s23851_s11 + $0x3b8] sm:$0xf0]  ;;  %v15482_v18 = vld [vmem:[%s23851_s11 + $0xbd4] sm:$0xf]  ;;  %v13062_v19 = vor.u32 %v15471_v42, %v13059_v24 }
 0x89b   : > { %10782 = vmatmul.bf16.vlgmr.msra.gmra.mxu0 %v18317_v9  ;;  %v12046_v1 = vor.u32 %v15223_v38, %v12045_v13  ;;  %v13106_v47 = vor.u32 %v15482_v18, %v13103_v37  ;;  %v15878_v13 = vld [vmem:[%s23851_s11 + $0x1834] sm:$0xf]  ;;  %v14687_v38 = vld [vmem:[%s23851_s11 + $0x185c] sm:$0xf0] }
 0x89c   : > { %10950 = vmatpush.bf16.msra.mxu1 %v11610_v15  ;;  %10826 = vmatpush.bf16.msrb.mxu0 %v12266_v14  ;;  %v23212_v43 = vpop.f32.mrf.mxu1  ;;  %v15493_v15 = vld [vmem:[%s23851_s11 + $0xc2c] sm:$0xf]  ;;  %v10576_v14 = vadd.f32 %v10575_v3, %v10563_v21  ;;  %v15630_v21 = vld [vmem:[%s23851_s11 + $0x1070] sm:$0xf0]  ;;  %v13541_v24 = vld [vmem:[%s23851_s11 + $0xf40] sm:$0xf] }
 0x89d   : > { %v13150_v7 = vor.u32 %v15493_v15, %v13147_v40 }
 0x89e   : > { %11169 = vmatpush.bf16.msrb.mxu2 %v14166_v39  ;;  %v13191_v39 = vld [vmem:[%s23851_s11 + $0xcac] sm:$0xf0]  ;;  %v10589_v37 = vadd.f32 %v22730_v61, %v10576_v14  ;;  %v14643_v61 = vld [vmem:[%s23851_s11 + $0x1804] sm:$0xf0] }
 0x89f   : > { %10951 = vmatmul.bf16.vlgmr.msra.gmra.mxu1 %v17804_v49  ;;  %v15245_v49 = vld [vmem:[%s23851_s11 + $0x468] sm:$0xf0]  ;;  %v13194_v20 = vor.u32 %v15504_v4, %v13191_v39  ;;  %v13015_v39 = vld [vmem:[%s23851_s11 + $0xb4c] sm:$0xf0] }
 0x8a0   : > { %10995 = vmatpush.bf16.msrb.mxu1 %v13326_v29  ;;  %10827 = vmatpush.bf16.msrb.mxu0 %v12222_v41  ;;  %v12134_v36 = vor.u32 %v15245_v49, %v12133_v25  ;;  %v12090_v29 = vor.u32 %v15234_v58, %v12089_v5  ;;  %v12001_v41 = vld [vmem:[%s23851_s11 + $0x338] sm:$0xf]  ;;  %v15201_v25 = vld [vmem:[%s23851_s11 + $0x308] sm:$0xf0]  ;;  %v15460_v49 = vld [vmem:[%s23851_s11 + $0xb24] sm:$0xf]  ;;  %v10602_v42 = vadd.f32 %v21965_v8, %v10589_v37 }
 0x8a1   : > { %v14731_v5 = vld [vmem:[%s23851_s11 + $0x18b4] sm:$0xf0]  ;;  %v13018_v3 = vor.u32 %v15460_v49, %v13015_v39  ;;  %v15586_v49 = vld [vmem:[%s23851_s11 + $0xf10] sm:$0xf0]  ;;  %v15564_v37 = vld [vmem:[%s23851_s11 + $0xe60] sm:$0xf0] }
 0x8a2   : > { %11170 = vmatpush.bf16.msrb.mxu2 %v14122_v55  ;;  %v23220_v55 = vpop.f32.mrf.mxu3  ;;  %v10615_v8 = vadd.f32 %v21493_v33, %v10602_v42  ;;  %v15553_v42 = vld [vmem:[%s23851_s11 + $0xe08] sm:$0xf0] }
 0x8a4   : > { %10996 = vmatpush.bf16.msrb.mxu1 %v13282_v17  ;;  %10828 = vmatpush.bf16.msrb.mxu0 %v12178_v56  ;;  %v15212_v17 = vld [vmem:[%s23851_s11 + $0x360] sm:$0xf0]  ;;  %v10746_v59 = vpop.f32.mrf.mxu1 }
 0x8a5   : > { %v12002_v35 = vor.u32 %v15212_v17, %v12001_v41  ;;  %v13585_v41 = vld [vmem:[%s23851_s11 + $0xf98] sm:$0xf]  ;;  %v15608_v17 = vld [vmem:[%s23851_s11 + $0xfc0] sm:$0xf0] }
 0x8a6   : > { %11171 = vmatpush.bf16.msrb.mxu2 %v14078_v63  ;;  %v10577_v63 = vpop.f32.mrf.mxu0  ;;  %v13586_v14 = vor.u32 %v15608_v17, %v13585_v41  ;;  %v14467_v41 = vld [vmem:[%s23851_s11 + $0x16a4] sm:$0xf0] }
 0x8a7   : > { %v15867_v63 = vld [vmem:[%s23851_s11 + $0x17dc] sm:$0xf] }
 0x8a8   : > { %10997 = vmatpush.bf16.msrb.mxu1 %v13238_v12  ;;  %10829 = vmatpush.bf16.msrb.mxu0 %v12134_v36  ;;  %v11957_v12 = vld [vmem:[%s23851_s11 + $0x2e0] sm:$0xf]  ;;  %v13673_v36 = vld [vmem:[%s23851_s11 + $0x1048] sm:$0xf]  ;;  %v14646_v59 = vor.u32 %v15867_v63, %v14643_v61 }
 0x8a9   : > { %11172 = vmatmul.bf16.vlgmr.msrb.gmra.mxu2 %v18317_v9  ;;  %v11958_v58 = vor.u32 %v15201_v25, %v11957_v12  ;;  %v13674_v15 = vor.u32 %v15630_v21, %v13673_v36  ;;  %v13497_v25 = vld [vmem:[%s23851_s11 + $0xee8] sm:$0xf]  ;;  %v15845_v36 = vld [vmem:[%s23851_s11 + $0x172c] sm:$0xf]  ;;  %v14555_v21 = vld [vmem:[%s23851_s11 + $0x1754] sm:$0xf0] }
 0x8aa   : > { %v11084_v56 = vpop.f32.mrf.mxu3 }
 0x8ab   : > { %v15856_v56 = vld [vmem:[%s23851_s11 + $0x1784] sm:$0xf] }
 0x8ac   : > { %10998 = vmatpush.bf16.msrb.mxu1 %v13194_v20  ;;  %10830 = vmatpush.bf16.msrb.mxu0 %v12090_v29  ;;  %v23255_v4 = vpop.f32.mrf.mxu2  ;;  %v15889_v20 = vld [vmem:[%s23851_s11 + $0x188c] sm:$0xf]  ;;  %v13629_v29 = vld [vmem:[%s23851_s11 + $0xff0] sm:$0xf] }
 0x8ad   : > { %v14734_v40 = vor.u32 %v15889_v20, %v14731_v5  ;;  %v13498_v5 = vor.u32 %v15586_v49, %v13497_v25 }
 0x8b0   : > { %10999 = vmatpush.bf16.msrb.mxu1 %v13150_v7  ;;  %10831 = vmatpush.bf16.msrb.mxu0 %v12046_v1  ;;  %v15619_v7 = vld [vmem:[%s23851_s11 + $0x1018] sm:$0xf0] }
 0x8b1   : > { %v13630_v18 = vor.u32 %v15619_v7, %v13629_v29  ;;  %v15834_v29 = vld [vmem:[%s23851_s11 + $0x16d4] sm:$0xf]  ;;  %v14511_v7 = vld [vmem:[%s23851_s11 + $0x16fc] sm:$0xf0] }
 0x8b4   : > { %11000 = vmatpush.bf16.msrb.mxu1 %v13106_v47  ;;  %10832 = vmatpush.bf16.msrb.mxu0 %v12002_v35  ;;  %v10967_v1 = vpop.f32.mrf.mxu2  ;;  %v14690_v47 = vor.u32 %v15878_v13, %v14687_v38  ;;  %v15597_v35 = vld [vmem:[%s23851_s11 + $0xf68] sm:$0xf0]  ;;  %v14514_v38 = vor.u32 %v15834_v29, %v14511_v7 }
 0x8b8   : > { %11001 = vmatpush.bf16.msrb.mxu1 %v13062_v19  ;;  %10833 = vmatpush.bf16.msrb.mxu0 %v11958_v58  ;;  %v13542_v19 = vor.u32 %v15597_v35, %v13541_v24  ;;  %v10627_v39 = vpop.f32.mrf.mxu0  ;;  %v15812_v24 = vld [vmem:[%s23851_s11 + $0x1624] sm:$0xf] }
 0x8b9   : > { %v23325_v20 = vadd.f32 %v10627_v39, %v10615_v8  ;;  %v12625_v8 = vld [vmem:[%s23851_s11 + $0x810] sm:$0xf] }
 0x8bb   : > { %10834 = vmatmul.bf16.vlgmr.msrb.gmra.mxu0 %v18243_v54 }
 0x8bc   : > { %11002 = vmatpush.bf16.msrb.mxu1 %v13018_v3  ;;  %10878 = vmatpush.bf16.msra.mxu0 %v13674_v15  ;;  %v23327_v33 = vpop.f32.mrf.mxu1  ;;  %v23329_v58 = vpop.f32.mrf.mxu3  ;;  %v14558_v3 = vor.u32 %v15845_v36, %v14555_v21  ;;  %v13453_v15 = vld [vmem:[%s23851_s11 + $0xe90] sm:$0xf] }
 0x8bd   : > { %v15037_v21 = vld [vmem:[%s23851_s11 + $0x1af0] sm:$0xf] }
 0x8bf   : > { %11003 = vmatmul.bf16.vlgmr.msrb.gmra.mxu1 %v18277_v32  ;;  %v14599_v32 = vld [vmem:[%s23851_s11 + $0x17ac] sm:$0xf0] }
 0x8c0   : > { %11047 = vmatpush.bf16.msra.mxu1 %v14734_v40  ;;  %10879 = vmatpush.bf16.msra.mxu0 %v13630_v18  ;;  %v14602_v12 = vor.u32 %v15856_v56, %v14599_v32  ;;  %v15575_v40 = vld [vmem:[%s23851_s11 + $0xeb8] sm:$0xf0]  ;;  %v13409_v18 = vld [vmem:[%s23851_s11 + $0xe38] sm:$0xf]  ;;  %v10629_v1 = vpop.f32.mrf.mxu0  ;;  %v14423_v56 = vld [vmem:[%s23851_s11 + $0x164c] sm:$0xf0] }
 0x8c1   : > { %v13454_v13 = vor.u32 %v15575_v40, %v13453_v15  ;;  %v13410_v63 = vor.u32 %v15564_v37, %v13409_v18  ;;  %v15081_v32 = vld [vmem:[%s23851_s11 + $0x1b48] sm:$0xf]  ;;  %v14426_v49 = vor.u32 %v15812_v24, %v14423_v56  ;;  %v15356_v15 = vld [vmem:[%s23851_s11 + $0x7e0] sm:$0xf0]  ;;  %v12537_v18 = vld [vmem:[%s23851_s11 + $0x760] sm:$0xf] }
 0x8c2   : > { %v15345_v37 = vld [vmem:[%s23851_s11 + $0x788] sm:$0xf0]  ;;  %v12449_v56 = vld [vmem:[%s23851_s11 + $0x6b0] sm:$0xf] }
 0x8c4   : > { %11048 = vmatpush.bf16.msra.mxu1 %v14690_v47  ;;  %10880 = vmatpush.bf16.msra.mxu0 %v13586_v14  ;;  %v15823_v47 = vld [vmem:[%s23851_s11 + $0x167c] sm:$0xf]  ;;  %v10798_v17 = vpop.f32.mrf.mxu1  ;;  %v11136_v61 = vpop.f32.mrf.mxu3 }
 0x8c5   : > { %v14470_v14 = vor.u32 %v15823_v47, %v14467_v41  ;;  %v12538_v47 = vor.u32 %v15345_v37, %v12537_v18  ;;  %v14949_v41 = vld [vmem:[%s23851_s11 + $0x1a40] sm:$0xf]  ;;  %v15949_v17 = vld [vmem:[%s23851_s11 + $0x1a68] sm:$0xf0] }
 0x8c6   : > { %v14950_v61 = vor.u32 %v15949_v17, %v14949_v41  ;;  %v12317_v41 = vld [vmem:[%s23851_s11 + $0x5a8] sm:$0xf] }
 0x8c8   : > { %11049 = vmatpush.bf16.msra.mxu1 %v14646_v59  ;;  %10881 = vmatpush.bf16.msra.mxu0 %v13542_v19  ;;  %v13365_v59 = vld [vmem:[%s23851_s11 + $0xde0] sm:$0xf]  ;;  %v15982_v19 = vld [vmem:[%s23851_s11 + $0x1b70] sm:$0xf0] }
 0x8c9   : > { %v13366_v25 = vor.u32 %v15553_v42, %v13365_v59  ;;  %v15082_v39 = vor.u32 %v15982_v19, %v15081_v32  ;;  %v14905_v59 = vld [vmem:[%s23851_s11 + $0x19e8] sm:$0xf]  ;;  %v15938_v42 = vld [vmem:[%s23851_s11 + $0x1a10] sm:$0xf0]  ;;  %v15323_v32 = vld [vmem:[%s23851_s11 + $0x6d8] sm:$0xf0] }
 0x8cc   : > { %11050 = vmatpush.bf16.msra.mxu1 %v14602_v12  ;;  %10882 = vmatpush.bf16.msra.mxu0 %v13498_v5  ;;  %v23364_v35 = vpop.f32.mrf.mxu2  ;;  %v15367_v12 = vld [vmem:[%s23851_s11 + $0x838] sm:$0xf0] }
 0x8cd   : > { %v12626_v36 = vor.u32 %v15367_v12, %v12625_v8  ;;  %v15971_v5 = vld [vmem:[%s23851_s11 + $0x1b18] sm:$0xf0]  ;;  %v14906_v8 = vor.u32 %v15938_v42, %v14905_v59  ;;  %v12450_v12 = vor.u32 %v15323_v32, %v12449_v56  ;;  %v14033_v59 = vld [vmem:[%s23851_s11 + $0x1310] sm:$0xf] }
 0x8ce   : > { %v15038_v40 = vor.u32 %v15971_v5, %v15037_v21  ;;  %v15312_v21 = vld [vmem:[%s23851_s11 + $0x680] sm:$0xf0]  ;;  %v15719_v42 = vld [vmem:[%s23851_s11 + $0x1338] sm:$0xf0] }
 0x8d0   : > { %11051 = vmatpush.bf16.msra.mxu1 %v14558_v3  ;;  %10883 = vmatpush.bf16.msra.mxu0 %v13454_v13  ;;  %v12581_v3 = vld [vmem:[%s23851_s11 + $0x7b8] sm:$0xf] }
 0x8d1   : > { %v12582_v7 = vor.u32 %v15356_v15, %v12581_v3  ;;  %v14993_v13 = vld [vmem:[%s23851_s11 + $0x1a98] sm:$0xf] }
 0x8d2   : > { %v14817_v15 = vld [vmem:[%s23851_s11 + $0x1938] sm:$0xf] }
 0x8d4   : > { %11052 = vmatpush.bf16.msra.mxu1 %v14514_v38  ;;  %10884 = vmatpush.bf16.msra.mxu0 %v13410_v63  ;;  %v11019_v29 = vpop.f32.mrf.mxu2  ;;  %v15960_v38 = vld [vmem:[%s23851_s11 + $0x1ac0] sm:$0xf0]  ;;  %v12493_v63 = vld [vmem:[%s23851_s11 + $0x708] sm:$0xf] }
 0x8d5   : > { %v14994_v1 = vor.u32 %v15960_v38, %v14993_v13  ;;  %v15301_v13 = vld [vmem:[%s23851_s11 + $0x628] sm:$0xf0] }
 0x8d8   : > { %11053 = vmatpush.bf16.msra.mxu1 %v14470_v14  ;;  %10885 = vmatpush.bf16.msra.mxu0 %v13366_v25  ;;  %v23425_v24 = vpop.f32.mrf.mxu0  ;;  %v14861_v25 = vld [vmem:[%s23851_s11 + $0x1990] sm:$0xf] }
 0x8db   : > { %10886 = vmatmul.bf16.vlgmr.msra.gmra.mxu0 %v18659_v26 }
 0x8dc   : > { %11054 = vmatpush.bf16.msra.mxu1 %v14426_v49  ;;  %10930 = vmatpush.bf16.msrb.mxu0 %v15082_v39  ;;  %v23433_v19 = vpop.f32.mrf.mxu1  ;;  %v15927_v49 = vld [vmem:[%s23851_s11 + $0x19b8] sm:$0xf0]  ;;  %v23441_v39 = vpop.f32.mrf.mxu3 }
 0x8dd   : > { %v14862_v5 = vor.u32 %v15927_v49, %v14861_v25  ;;  %v15438_v25 = vld [vmem:[%s23851_s11 + $0xa74] sm:$0xf]  ;;  %v12927_v49 = vld [vmem:[%s23851_s11 + $0xa9c] sm:$0xf0] }
 0x8df   : > { %11055 = vmatmul.bf16.vlgmr.msra.gmra.mxu1 %v18691_v16  ;;  %v15334_v16 = vld [vmem:[%s23851_s11 + $0x730] sm:$0xf0] }
 0x8e0   : > { %11099 = vmatpush.bf16.msrb.mxu1 %v12626_v36  ;;  %10931 = vmatpush.bf16.msrb.mxu0 %v15038_v40  ;;  %v12494_v14 = vor.u32 %v15334_v16, %v12493_v63  ;;  %v12405_v36 = vld [vmem:[%s23851_s11 + $0x658] sm:$0xf]  ;;  %v15916_v40 = vld [vmem:[%s23851_s11 + $0x1960] sm:$0xf0]  ;;  %v10681_v29 = vpop.f32.mrf.mxu0  ;;  %v15290_v63 = vld [vmem:[%s23851_s11 + $0x5d0] sm:$0xf0] }
 0x8e1   : > { %v12406_v3 = vor.u32 %v15312_v21, %v12405_v36  ;;  %v14818_v18 = vor.u32 %v15916_v40, %v14817_v15  ;;  %v15449_v16 = vld [vmem:[%s23851_s11 + $0xacc] sm:$0xf]  ;;  %v12318_v32 = vor.u32 %v15290_v63, %v12317_v41  ;;  %v13989_v36 = vld [vmem:[%s23851_s11 + $0x12b8] sm:$0xf]  ;;  %v15708_v21 = vld [vmem:[%s23851_s11 + $0x12e0] sm:$0xf0] }
 0x8e2   : > { %v15427_v15 = vld [vmem:[%s23851_s11 + $0xa1c] sm:$0xf]  ;;  %v12883_v40 = vld [vmem:[%s23851_s11 + $0xa44] sm:$0xf0]  ;;  %v15405_v63 = vld [vmem:[%s23851_s11 + $0x96c] sm:$0xf] }
 0x8e4   : > { %11100 = vmatpush.bf16.msrb.mxu1 %v12582_v7  ;;  %10932 = vmatpush.bf16.msrb.mxu0 %v14994_v1  ;;  %v12361_v7 = vld [vmem:[%s23851_s11 + $0x600] sm:$0xf]  ;;  %v10850_v38 = vpop.f32.mrf.mxu1  ;;  %v11188_v17 = vpop.f32.mrf.mxu3 }
 0x8e5   : > { %v12362_v37 = vor.u32 %v15301_v13, %v12361_v7  ;;  %v14773_v1 = vld [vmem:[%s23851_s11 + $0x18e0] sm:$0xf]  ;;  %v15697_v13 = vld [vmem:[%s23851_s11 + $0x1288] sm:$0xf0]  ;;  %v12886_v38 = vor.u32 %v15427_v15, %v12883_v40  ;;  %v15383_v15 = vld [vmem:[%s23851_s11 + $0x8bc] sm:$0xf] }
 0x8e6   : > { %v13945_v7 = vld [vmem:[%s23851_s11 + $0x1260] sm:$0xf]  ;;  %v12707_v40 = vld [vmem:[%s23851_s11 + $0x8e4] sm:$0xf0] }
 0x8e8   : > { %11101 = vmatpush.bf16.msrb.mxu1 %v12538_v47  ;;  %10933 = vmatpush.bf16.msrb.mxu0 %v14950_v61  ;;  %v15905_v47 = vld [vmem:[%s23851_s11 + $0x1908] sm:$0xf0]  ;;  %v12971_v61 = vld [vmem:[%s23851_s11 + $0xaf4] sm:$0xf0] }
 0x8e9   : > { %v14774_v56 = vor.u32 %v15905_v47, %v14773_v1  ;;  %v12839_v1 = vld [vmem:[%s23851_s11 + $0x9ec] sm:$0xf0]  ;;  %v13901_v47 = vld [vmem:[%s23851_s11 + $0x1208] sm:$0xf] }
 0x8ec   : > { %11102 = vmatpush.bf16.msrb.mxu1 %v12494_v14  ;;  %10934 = vmatpush.bf16.msrb.mxu0 %v14906_v8  ;;  %v23479_v14 = vpop.f32.mrf.mxu2  ;;  %v12974_v8 = vor.u32 %v15449_v16, %v12971_v61  ;;  %v12795_v16 = vld [vmem:[%s23851_s11 + $0x994] sm:$0xf0]  ;;  %v13857_v61 = vld [vmem:[%s23851_s11 + $0x11b0] sm:$0xf] }
 0x8f0   : > { %11103 = vmatpush.bf16.msrb.mxu1 %v12450_v12  ;;  %10935 = vmatpush.bf16.msrb.mxu0 %v14862_v5  ;;  %v14034_v12 = vor.u32 %v15719_v42, %v14033_v59  ;;  %v12930_v5 = vor.u32 %v15438_v25, %v12927_v49  ;;  %v15675_v59 = vld [vmem:[%s23851_s11 + $0x11d8] sm:$0xf0]  ;;  %v15394_v25 = vld [vmem:[%s23851_s11 + $0x914] sm:$0xf]  ;;  %v12751_v49 = vld [vmem:[%s23851_s11 + $0x93c] sm:$0xf0] }
 0x8f4   : > { %11104 = vmatpush.bf16.msrb.mxu1 %v12406_v3  ;;  %10936 = vmatpush.bf16.msrb.mxu0 %v14818_v18  ;;  %v13990_v3 = vor.u32 %v15708_v21, %v13989_v36  ;;  %v11071_v29 = vpop.f32.mrf.mxu2  ;;  %v13946_v18 = vor.u32 %v15697_v13, %v13945_v7  ;;  %v13813_v36 = vld [vmem:[%s23851_s11 + $0x1158] sm:$0xf]  ;;  %v15664_v21 = vld [vmem:[%s23851_s11 + $0x1180] sm:$0xf0]  ;;  %v15653_v7 = vld [vmem:[%s23851_s11 + $0x1128] sm:$0xf0] }
 0x8f5   : > { %v13769_v29 = vld [vmem:[%s23851_s11 + $0x1100] sm:$0xf] }
 0x8f8   : > { %11105 = vmatpush.bf16.msrb.mxu1 %v12362_v37  ;;  %10937 = vmatpush.bf16.msrb.mxu0 %v14774_v56  ;;  %v15416_v37 = vld [vmem:[%s23851_s11 + $0x9c4] sm:$0xf]  ;;  %v10731_v42 = vpop.f32.mrf.mxu0 }
 0x8f9   : > { %v12842_v41 = vor.u32 %v15416_v37, %v12839_v1  ;;  %v13770_v37 = vor.u32 %v15653_v7, %v13769_v29  ;;  %v15372_v1 = vld [vmem:[%s23851_s11 + $0x864] sm:$0xf] }
 0x8fb   : > { %10938 = vmatmul.bf16.vlgmr.msrb.gmra.mxu0 %v19741_v48 }
 0x8fc   : > { %11106 = vmatpush.bf16.msrb.mxu1 %v12318_v32  ;;  %10982 = vmatpush.bf16.msra.mxu0 %v12974_v8  ;;  %v23537_v56 = vpop.f32.mrf.mxu1  ;;  %v12798_v32 = vor.u32 %v15405_v63, %v12795_v16  ;;  %v9758_v8 = vperm.slane %v23189_v34, 7  ;;  %v12754_v34 = vor.u32 %v15394_v25, %v12751_v49 }
 0x8ff   : > { %11107 = vmatmul.bf16.vlgmr.msrb.gmra.mxu1 %v18126_v31  ;;  %v15686_v31 = vld [vmem:[%s23851_s11 + $0x1230] sm:$0xf0] }
 0x900   : > { %11151 = vmatpush.bf16.msra.mxu1 %v14034_v12  ;;  %10983 = vmatpush.bf16.msra.mxu0 %v12930_v5  ;;  %v13902_v17 = vor.u32 %v15686_v31, %v13901_v47  ;;  %v13858_v12 = vor.u32 %v15675_v59, %v13857_v61  ;;  %v10693_v5 = vadd.f32 %v23065_v0, %v9758_v8  ;;  %v10733_v13 = vpop.f32.mrf.mxu0  ;;  %v12663_v47 = vld [vmem:[%s23851_s11 + $0x88c] sm:$0xf0]  ;;  %v13725_v31 = vld [vmem:[%s23851_s11 + $0x10a8] sm:$0xf]  ;;  %v15790_v8 = vld [vmem:[%s23851_s11 + $0x1574] sm:$0xf] }
 0x901   : > { %v12666_v16 = vor.u32 %v15372_v1, %v12663_v47  ;;  %v15735_v1 = vld [vmem:[%s23851_s11 + $0x13bc] sm:$0xf]  ;;  %v14115_v47 = vld [vmem:[%s23851_s11 + $0x13e4] sm:$0xf0] }
 0x904   : > { %11152 = vmatpush.bf16.msra.mxu1 %v13990_v3  ;;  %10984 = vmatpush.bf16.msra.mxu0 %v12886_v38  ;;  %v13814_v3 = vor.u32 %v15664_v21, %v13813_v36  ;;  %v10902_v0 = vpop.f32.mrf.mxu1  ;;  %v12710_v38 = vor.u32 %v15383_v15, %v12707_v40  ;;  %v14291_v36 = vld [vmem:[%s23851_s11 + $0x1544] sm:$0xf0]  ;;  %v14247_v15 = vld [vmem:[%s23851_s11 + $0x14ec] sm:$0xf0] }
 0x905   : > { %v15746_v0 = vld [vmem:[%s23851_s11 + $0x1414] sm:$0xf] }
 0x908   : > { %11153 = vmatpush.bf16.msra.mxu1 %v13946_v18  ;;  %10985 = vmatpush.bf16.msra.mxu0 %v12842_v41  ;;  %v10706_v18 = vadd.f32 %v22390_v22, %v10693_v5  ;;  %v15642_v41 = vld [vmem:[%s23851_s11 + $0x10d0] sm:$0xf0]  ;;  %v15801_v22 = vld [vmem:[%s23851_s11 + $0x15cc] sm:$0xf] }
 0x909   : > { %v13726_v59 = vor.u32 %v15642_v41, %v13725_v31 }
 0x90a   : > { %v10719_v61 = vadd.f32 %v21909_v52, %v10706_v18  ;;  %v15779_v52 = vld [vmem:[%s23851_s11 + $0x151c] sm:$0xf] }
 0x90b   : > { %v14294_v5 = vor.u32 %v15779_v52, %v14291_v36  ;;  %v15268_v52 = vld [vmem:[%s23851_s11 + $0x520] sm:$0xf0] }
 0x90c   : > { %11154 = vmatpush.bf16.msra.mxu1 %v13902_v17  ;;  %10986 = vmatpush.bf16.msra.mxu0 %v12798_v32  ;;  %v14379_v17 = vld [vmem:[%s23851_s11 + $0x15f4] sm:$0xf0]  ;;  %v23584_v63 = vpop.f32.mrf.mxu2  ;;  %v10732_v25 = vadd.f32 %v10731_v42, %v10719_v61  ;;  %v10641_v42 = vadd.f32 %v22900_v60, %v23325_v20  ;;  %v14071_v61 = vld [vmem:[%s23851_s11 + $0x138c] sm:$0xf0] }
 0x90d   : > { %v14382_v32 = vor.u32 %v15801_v22, %v14379_v17  ;;  %v14203_v60 = vld [vmem:[%s23851_s11 + $0x1494] sm:$0xf0] }
 0x90e   : > { %v10745_v21 = vadd.f32 %v23212_v43, %v10732_v25  ;;  %v10654_v40 = vadd.f32 %v22182_v11, %v10641_v42  ;;  %v23676_v42 = vld [vmem:[%s23852_s12 + $0x8] sm:$0x7] }
 0x910   : > { %11155 = vmatpush.bf16.msra.mxu1 %v13858_v12  ;;  %10987 = vmatpush.bf16.msra.mxu0 %v12754_v34  ;;  %v14335_v12 = vld [vmem:[%s23851_s11 + $0x159c] sm:$0xf0]  ;;  %v10758_v43 = vadd.f32 %v22601_v2, %v10745_v21  ;;  %v10667_v7 = vadd.f32 %v21701_v30, %v10654_v40  ;;  %v15257_v21 = vld [vmem:[%s23851_s11 + $0x4c8] sm:$0xf0] }
 0x911   : > { %v14338_v49 = vor.u32 %v15790_v8, %v14335_v12 }
 0x912   : > { %v10771_v20 = vadd.f32 %v22116_v23, %v10758_v43  ;;  %v10680_v18 = vadd.f32 %v23425_v24, %v10667_v7  ;;  %v9759_v43 = vperm.slane %v23676_v42, 0 }
 0x914   : > { %11156 = vmatpush.bf16.msra.mxu1 %v13814_v3  ;;  %10988 = vmatpush.bf16.msra.mxu0 %v12710_v38  ;;  %v11123_v34 = vpop.f32.mrf.mxu2  ;;  %v15768_v3 = vld [vmem:[%s23851_s11 + $0x14c4] sm:$0xf]  ;;  %v14159_v38 = vld [vmem:[%s23851_s11 + $0x143c] sm:$0xf0]  ;;  %v11219_v31 = vrot.slane %v10680_v18, 2 }
 0x915   : > { %v14162_v30 = vor.u32 %v15746_v0, %v14159_v38  ;;  %v15213_v38 = vld [vmem:[%s23851_s11 + $0x368] sm:$0xf0] }
 0x918   : > { %11157 = vmatpush.bf16.msra.mxu1 %v13770_v37  ;;  %10989 = vmatpush.bf16.msra.mxu0 %v12666_v16  ;;  %v10783_v29 = vpop.f32.mrf.mxu0  ;;  %v15724_v16 = vld [vmem:[%s23851_s11 + $0x1364] sm:$0xf] }
 0x919   : > { %v10784_v13 = vadd.f32 %v10783_v29, %v10771_v20 }
 0x91b   : > { %10990 = vmatmul.bf16.vlgmr.msra.gmra.mxu0 %v17820_v10  ;;  %v14250_v10 = vor.u32 %v15768_v3, %v14247_v15  ;;  %v10797_v23 = vadd.f32 %v23327_v33, %v10784_v13  ;;  %v12141_v3 = vld [vmem:[%s23851_s11 + $0x448] sm:$0xf]  ;;  %v15246_v15 = vld [vmem:[%s23851_s11 + $0x470] sm:$0xf0]  ;;  %v12053_v13 = vld [vmem:[%s23851_s11 + $0x398] sm:$0xf] }
 0x91c   : > { %11158 = vmatpush.bf16.msra.mxu1 %v13726_v59  ;;  %11034 = vmatpush.bf16.msrb.mxu0 %v14382_v32  ;;  %v23620_v2 = vpop.f32.mrf.mxu1  ;;  %v12273_v59 = vld [vmem:[%s23851_s11 + $0x550] sm:$0xf]  ;;  %v15279_v32 = vld [vmem:[%s23851_s11 + $0x578] sm:$0xf0]  ;;  %v12142_v40 = vor.u32 %v15246_v15, %v12141_v3  ;;  %v15565_v3 = vld [vmem:[%s23851_s11 + $0xe68] sm:$0xf0] }
 0x91d   : > { %v10810_v37 = vadd.f32 %v22800_v27, %v10797_v23  ;;  %v14118_v27 = vor.u32 %v15735_v1, %v14115_v47  ;;  %v12274_v25 = vor.u32 %v15279_v32, %v12273_v59  ;;  %v15202_v1 = vld [vmem:[%s23851_s11 + $0x310] sm:$0xf0]  ;;  %v13681_v47 = vld [vmem:[%s23851_s11 + $0x1050] sm:$0xf]  ;;  %v13549_v32 = vld [vmem:[%s23851_s11 + $0xf48] sm:$0xf] }
 0x91f   : > { %11159 = vmatmul.bf16.vlgmr.msra.gmra.mxu1 %v18229_v57  ;;  %v15757_v57 = vld [vmem:[%s23851_s11 + $0x146c] sm:$0xf]  ;;  %v11220_v41 = vrot.slane %v10810_v37, 1 }
 0x920   : > { %11035 = vmatpush.bf16.msrb.mxu0 %v14338_v49  ;;  %v14206_v11 = vor.u32 %v15757_v57, %v14203_v60  ;;  %v10785_v24 = vpop.f32.mrf.mxu0  ;;  %v12229_v49 = vld [vmem:[%s23851_s11 + $0x4f8] sm:$0xf]  ;;  %v10823_v57 = vadd.f32 %v22334_v53, %v9759_v43  ;;  %v12009_v53 = vld [vmem:[%s23851_s11 + $0x340] sm:$0xf] }
 0x921   : > { %v11232_v33 = vsel %vm11231_vm7, %v11219_v31, %v11220_v41  ;;  %v12230_v36 = vor.u32 %v15268_v52, %v12229_v49  ;;  %v12010_v37 = vor.u32 %v15213_v38, %v12009_v53  ;;  %v15631_v31 = vld [vmem:[%s23851_s11 + $0x1078] sm:$0xf0]  ;;  %v15001_v53 = vld [vmem:[%s23851_s11 + $0x1aa0] sm:$0xf]  ;;  %v15961_v38 = vld [vmem:[%s23851_s11 + $0x1ac8] sm:$0xf0] }
 0x922   : > { %v11234_v17 = vsel %vm11233_vm8, %v23108_v62, %v11232_v33  ;;  %v14074_v62 = vor.u32 %v15724_v16, %v14071_v61  ;;  %v13682_v24 = vor.u32 %v15631_v31, %v13681_v47  ;;  %v13637_v33 = vld [vmem:[%s23851_s11 + $0xff8] sm:$0xf]  ;;  %v15609_v16 = vld [vmem:[%s23851_s11 + $0xfc8] sm:$0xf0] }
 0x923   : > { %v11236_v8 = vsel %vm11235_vm9, %v22177_v28, %v11234_v17  ;;  %v12185_v28 = vld [vmem:[%s23851_s11 + $0x4a0] sm:$0xf] }
 0x924   : > { %11036 = vmatpush.bf16.msrb.mxu0 %v14294_v5  ;;  %v10954_v22 = vpop.f32.mrf.mxu1  ;;  %11241 = vst [vmem:[%s23641_s28] sm:$0xff] %v11236_v8  ;;  %v12186_v5 = vor.u32 %v15257_v21, %v12185_v28  ;;  %v13593_v17 = vld [vmem:[%s23851_s11 + $0xfa0] sm:$0xf]  ;;  %v15598_v8 = vld [vmem:[%s23851_s11 + $0xf70] sm:$0xf0] }
 0x925   : > { %v15620_v22 = vld [vmem:[%s23851_s11 + $0x1020] sm:$0xf0]  ;;  %v13594_v59 = vor.u32 %v15609_v16, %v13593_v17  ;;  %v14825_v16 = vld [vmem:[%s23851_s11 + $0x1940] sm:$0xf] }
 0x928   : > { %11037 = vmatpush.bf16.msrb.mxu0 %v14250_v10  ;;  %v15235_v10 = vld [vmem:[%s23851_s11 + $0x418] sm:$0xf0] }
 0x92c   : > { %11038 = vmatpush.bf16.msrb.mxu0 %v14206_v11  ;;  %v23657_v12 = vpop.f32.mrf.mxu2  ;;  %v15224_v11 = vld [vmem:[%s23851_s11 + $0x3c0] sm:$0xf0] }
 0x92d   : > { %v12054_v0 = vor.u32 %v15224_v11, %v12053_v13  ;;  %v15045_v13 = vld [vmem:[%s23851_s11 + $0x1af8] sm:$0xf]  ;;  %v15972_v11 = vld [vmem:[%s23851_s11 + $0x1b20] sm:$0xf0] }
 0x930   : > { %11039 = vmatpush.bf16.msrb.mxu0 %v14162_v30  ;;  %v11965_v30 = vld [vmem:[%s23851_s11 + $0x2e8] sm:$0xf] }
 0x931   : > { %v11966_v41 = vor.u32 %v15202_v1, %v11965_v30  ;;  %v15950_v30 = vld [vmem:[%s23851_s11 + $0x1a70] sm:$0xf0] }
 0x934   : > { %11040 = vmatpush.bf16.msrb.mxu0 %v14118_v27  ;;  %v11175_v34 = vpop.f32.mrf.mxu2  ;;  %v13638_v27 = vor.u32 %v15620_v22, %v13637_v33 }
 0x935   : > { %v15576_v34 = vld [vmem:[%s23851_s11 + $0xec0] sm:$0xf0] }
 0x938   : > { %11041 = vmatpush.bf16.msrb.mxu0 %v14074_v62  ;;  %v10835_v60 = vpop.f32.mrf.mxu0 }
 0x939   : > { %v10836_v20 = vadd.f32 %v10835_v60, %v10823_v57  ;;  %v15089_v57 = vld [vmem:[%s23851_s11 + $0x1b50] sm:$0xf]  ;;  %v15983_v60 = vld [vmem:[%s23851_s11 + $0x1b78] sm:$0xf0] }
 0x93b   : > { %11042 = vmatmul.bf16.vlgmr.msrb.gmra.mxu0 %v18317_v9  ;;  %v12097_v9 = vld [vmem:[%s23851_s11 + $0x3f0] sm:$0xf]  ;;  %v10849_v61 = vadd.f32 %v23433_v19, %v10836_v20 }
 0x93c   : > { %11086 = vmatpush.bf16.msra.mxu0 %v12274_v25  ;;  %v23692_v29 = vpop.f32.mrf.mxu1  ;;  %v12098_v7 = vor.u32 %v15235_v10, %v12097_v9  ;;  %v13550_v25 = vor.u32 %v15598_v8, %v13549_v32  ;;  %v13505_v19 = vld [vmem:[%s23851_s11 + $0xef0] sm:$0xf]  ;;  %v13373_v9 = vld [vmem:[%s23851_s11 + $0xde8] sm:$0xf]  ;;  %v15554_v10 = vld [vmem:[%s23851_s11 + $0xe10] sm:$0xf0] }
 0x93d   : > { %v10862_v62 = vadd.f32 %v22963_v44, %v10849_v61  ;;  %v13461_v44 = vld [vmem:[%s23851_s11 + $0xe98] sm:$0xf]  ;;  %v13374_v20 = vor.u32 %v15554_v10, %v13373_v9  ;;  %v14781_v8 = vld [vmem:[%s23851_s11 + $0x18e8] sm:$0xf] }
 0x93f   : > { %v10875_v49 = vadd.f32 %v22542_v46, %v10862_v62  ;;  %v13417_v46 = vld [vmem:[%s23851_s11 + $0xe40] sm:$0xf]  ;;  %v15906_v62 = vld [vmem:[%s23851_s11 + $0x1910] sm:$0xf0] }
 0x940   : > { %11087 = vmatpush.bf16.msra.mxu0 %v12230_v36  ;;  %v10837_v18 = vpop.f32.mrf.mxu0 }
 0x944   : > { %11088 = vmatpush.bf16.msra.mxu0 %v12186_v5  ;;  %v11006_v23 = vpop.f32.mrf.mxu1  ;;  %v13462_v5 = vor.u32 %v15576_v34, %v13461_v44 }
 0x945   : > { %v15002_v23 = vor.u32 %v15961_v38, %v15001_v53  ;;  %v11242_v38 = vlaneseq }
 0x947   : > { %vm11244_vm10 = vcmp.lt.s32.totalorder %v11242_v38, 384 }
 0x948   : > { %11089 = vmatpush.bf16.msra.mxu0 %v12142_v40  ;;  %v13418_v40 = vor.u32 %v15565_v3, %v13417_v46 }
 0x94c   : > { %11090 = vmatpush.bf16.msra.mxu0 %v12098_v7  ;;  %v15090_v7 = vor.u32 %v15983_v60, %v15089_v57  ;;  %v9761_v60 = vperm.slane %v23676_v42, 2 }
 0x950   : > { %11091 = vmatpush.bf16.msra.mxu0 %v12054_v0  ;;  %v15046_v0 = vor.u32 %v15972_v11, %v15045_v13 }
 0x954   : > { %11092 = vmatpush.bf16.msra.mxu0 %v12010_v37  ;;  %v14957_v37 = vld [vmem:[%s23851_s11 + $0x1a48] sm:$0xf] }
 0x955   : > { %v14958_v47 = vor.u32 %v15950_v30, %v14957_v37 }
 0x958   : > { %11093 = vmatpush.bf16.msra.mxu0 %v11966_v41  ;;  %v10887_v52 = vpop.f32.mrf.mxu0 }
 0x959   : > { %v10888_v36 = vadd.f32 %v10887_v52, %v10875_v49 }
 0x95b   : > { %11094 = vmatmul.bf16.vlgmr.msra.gmra.mxu0 %v18243_v54  ;;  %v15587_v54 = vld [vmem:[%s23851_s11 + $0xf18] sm:$0xf0]  ;;  %v10901_v18 = vadd.f32 %v23537_v56, %v10888_v36  ;;  %v14913_v56 = vld [vmem:[%s23851_s11 + $0x19f0] sm:$0xf] }
 0x95c   : > { %11138 = vmatpush.bf16.msrb.mxu0 %v13682_v24  ;;  %v23746_v28 = vpop.f32.mrf.mxu1  ;;  %v13506_v21 = vor.u32 %v15587_v54, %v13505_v19  ;;  %v9760_v19 = vperm.slane %v23676_v42, 1 }
 0x95d   : > { %v10914_v1 = vadd.f32 %v23125_v51, %v10901_v18  ;;  %v14869_v51 = vld [vmem:[%s23851_s11 + $0x1998] sm:$0xf] }
 0x95e   : > { %v10953_v54 = vadd.f32 %v23620_v2, %v9760_v19 }
 0x95f   : > { %v10927_v31 = vadd.f32 %v22750_v50, %v10914_v1  ;;  %v15917_v50 = vld [vmem:[%s23851_s11 + $0x1968] sm:$0xf0] }
 0x960   : > { %11139 = vmatpush.bf16.msrb.mxu0 %v13638_v27  ;;  %v10889_v15 = vpop.f32.mrf.mxu0  ;;  %v15928_v27 = vld [vmem:[%s23851_s11 + $0x19c0] sm:$0xf0]  ;;  %v14826_v32 = vor.u32 %v15917_v50, %v14825_v16  ;;  %v10966_v49 = vadd.f32 %v23255_v4, %v10953_v54 }
 0x961   : > { %v14870_v17 = vor.u32 %v15928_v27, %v14869_v51 }
 0x962   : > { %v10979_v52 = vadd.f32 %v22922_v45, %v10966_v49 }
 0x964   : > { %11140 = vmatpush.bf16.msrb.mxu0 %v13594_v59  ;;  %v11058_v43 = vpop.f32.mrf.mxu1 }
 0x968   : > { %11141 = vmatpush.bf16.msrb.mxu0 %v13550_v25  ;;  %v14782_v25 = vor.u32 %v15906_v62, %v14781_v8 }
 0x96c   : > { %11142 = vmatpush.bf16.msrb.mxu0 %v13506_v21 }
 0x970   : > { %11143 = vmatpush.bf16.msrb.mxu0 %v13462_v5 }
 0x974   : > { %11144 = vmatpush.bf16.msrb.mxu0 %v13418_v40 }
 0x978   : > { %11145 = vmatpush.bf16.msrb.mxu0 %v13374_v20  ;;  %v10939_v41 = vpop.f32.mrf.mxu0 }
 0x979   : > { %v10940_v24 = vadd.f32 %v10939_v41, %v10927_v31 }
 0x97b   : > { %11146 = vmatmul.bf16.vlgmr.msrb.gmra.mxu0 %v18659_v26  ;;  %v15939_v26 = vld [vmem:[%s23851_s11 + $0x1a18] sm:$0xf0] }
 0x97c   : > { %11190 = vmatpush.bf16.msra.mxu0 %v15090_v7  ;;  %v11108_v33 = vpop.f32.mrf.mxu1  ;;  %v14914_v22 = vor.u32 %v15939_v26, %v14913_v56 }
 0x980   : > { %11191 = vmatpush.bf16.msra.mxu0 %v15046_v0  ;;  %v10941_v61 = vpop.f32.mrf.mxu0 }
 0x984   : > { %11192 = vmatpush.bf16.msra.mxu0 %v15002_v23  ;;  %v11110_v59 = vpop.f32.mrf.mxu1 }
 0x988   : > { %11193 = vmatpush.bf16.msra.mxu0 %v14958_v47 }
 0x98c   : > { %11194 = vmatpush.bf16.msra.mxu0 %v14914_v22 }
 0x990   : > { %11195 = vmatpush.bf16.msra.mxu0 %v14870_v17 }
 0x994   : > { %11196 = vmatpush.bf16.msra.mxu0 %v14826_v32 }
 0x998   : > { %11197 = vmatpush.bf16.msra.mxu0 %v14782_v25  ;;  %v10991_v36 = vpop.f32.mrf.mxu0 }
 0x999   : > { %v10992_v21 = vadd.f32 %v10991_v36, %v10979_v52 }
 0x99b   : > { %11198 = vmatmul.bf16.vlgmr.msra.gmra.mxu0 %v19741_v48  ;;  %v11005_v46 = vadd.f32 %v23692_v29, %v10992_v21  ;;  %v11083_v29 = vadd.f32 %v23220_v55, %v9761_v60 }
 0x99c   : > { %v11160_v44 = vpop.f32.mrf.mxu1 }
 0x99d   : > { %v11018_v3 = vadd.f32 %v23364_v35, %v11005_v46 }
 0x99f   : > { %v11031_v15 = vadd.f32 %v23080_v6, %v11018_v3 }
 0x9a0   : > { %v10993_v34 = vpop.f32.mrf.mxu0 }
 0x9a4   : > { %v11162_v5 = vpop.f32.mrf.mxu1 }
 0x9b8   : > { %v11043_v43 = vpop.f32.mrf.mxu0 }
 0x9b9   : > { %v11044_v40 = vadd.f32 %v11043_v43, %v11031_v15 }
 0x9bb   : > { %v11057_v2 = vadd.f32 %v23746_v28, %v11044_v40 }
 0x9bd   : > { %v11070_v48 = vadd.f32 %v23479_v14, %v11057_v2 }
 0x9bf   : > { %v11221_v4 = vrot.slane %v11070_v48, 7 }
 0x9c0   : > { %v11045_v9 = vpop.f32.mrf.mxu0 }
 0x9c1   : > { %v11237_v45 = vsel %vm11223_vm3, %v10940_v24, %v11221_v4 }
 0x9d8   : > { %v11095_v10 = vpop.f32.mrf.mxu0 }
 0x9d9   : > { %v11096_v35 = vadd.f32 %v11095_v10, %v11083_v29 }
 0x9db   : > { %v11109_v6 = vadd.f32 %v11108_v33, %v11096_v35 }
 0x9dd   : > { %v11122_v13 = vadd.f32 %v23584_v63, %v11109_v6 }
 0x9df   : > { %v11135_v28 = vadd.f32 %v23329_v58, %v11122_v13 }
 0x9e0   : > { %v11097_v57 = vpop.f32.mrf.mxu0 }
 0x9f8   : > { %v11147_v20 = vpop.f32.mrf.mxu0 }
 0x9f9   : > { %v11148_v14 = vadd.f32 %v11147_v20, %v11135_v28 }
 0x9fb   : > { %v11161_v11 = vadd.f32 %v11160_v44, %v11148_v14 }
 0x9fd   : > { %v11174_v0 = vadd.f32 %v23657_v12, %v11161_v11 }
 0x9ff   : > { %v11187_v53 = vadd.f32 %v23441_v39, %v11174_v0 }
 0xa00   : > { %v11149_v7 = vpop.f32.mrf.mxu0 }
 0xa18   : > { %v11199_v18 = vpop.f32.mrf.mxu0 }
 0xa19   : > { %v11200_v42 = vadd.f32 %v11199_v18, %v11187_v53 }
 0xa1b   : > { %v11222_v23 = vrot.slane %v11200_v42, 6 }
 0xa1d   : > { %v11238_v55 = vsel %vm11227_vm5, %v11237_v45, %v11222_v23 }
 0xa1e   : > { %11246 = vst.msk [vmem:[%s23641_s28 + $0x8] sm:$0x7] %vm11244_vm10, %v11238_v55 }
 0xa20   : > { %v11201_v37 = vpop.f32.mrf.mxu0 }
 0xa21 PF: > { %s23_s25 = sadd.s32 1, %s16025_s25  }
 0xa22   : > { %p20_p4 = scmp.ge.s32.totalorder %s23_s25, 4  }
 0xa24   :  { %22 = sbr.rel (!%p20_p4) target bundleno = 1 (0x1), region = 104 }

</bundles_post_ra>
